<compile_context>
chip_gen: v6e
topology: v6e:2x2x1
jax: 0.10.0
libtpu: 0.0.40
codegen_flags: <defaults>
</compile_context>

<pallas_src>
import jax
import jax.numpy as jnp
from jax import lax
from jax.experimental import pallas as pl
from jax.experimental.pallas import tpu as pltpu

C1 = 192      # branch1 1x1 out channels
C2A = 128     # branch2 1x1 out channels
C2B = 160     # branch2 1x7 out channels
C2C = 192     # branch2 7x1 out channels
KTAP = 7      # 7-tap convs
PAD = 3       # 'same' padding for 7 taps


def _inception_b_kernel(
    x_ref,                      # (1, H+6, W, Cin) f32 — whole H-padded image, resident per n
    w12_ref, o12_ref,           # fused 1x1 [branch2a | branch1]: (Cin, 320) bf16, (1, 320) f32
    w2b_ref, o2b_ref,           # 1x7 taps: (7, 128, 160) bf16, (1, 160) f32
    w2c_ref, o2c_ref,           # 7x1 taps: (7, 160, 192) bf16, (1, 192) f32
    wl1_ref, wl2_ref, bl_ref,   # split linear conv (scale folded): (192, Cin) bf16 x2, (1, Cin) f32
    out_ref,                    # (1, TILE_H, W, Cin)
    padb_ref,                   # VMEM scratch (TILE_H+6, W+6, 128) bf16 (W-padded input of 1x7)
    padc_ref,                   # VMEM scratch ((TILE_H+6)*W, 160) bf16  (flat H-padded input of 7x1)
):
    h = pl.program_id(1)
    nh = pl.num_programs(1)
    _, TH, W, Cin = out_ref.shape
    HEXT = TH + 2 * PAD            # extended rows: output rows plus the 7x1 halo
    EW = HEXT * W
    THW = TH * W

    # Extended row window inside the H-padded image: rows [h*TH, h*TH + TH + 2*PAD).
    row0 = pl.multiple_of(h * TH, TH)
    xe = x_ref[0, pl.ds(row0, HEXT), :, :]              # (HEXT, W, Cin) f32
    xb = xe.reshape(EW, Cin).astype(jnp.bfloat16)
    xc = xe[PAD:PAD + TH].reshape(THW, Cin)             # central rows, residual (f32)

    # ---------------- fused branch1 + branch2a (single 1x1 matmul, extended rows) ----------------
    y12 = jnp.dot(xb, w12_ref[...], preferred_element_type=jnp.float32)
    y12 = jnp.maximum(y12 + o12_ref[...], 0.0)          # (EW, 320)
    b2a = y12[:, :C2A]                                   # (EW, 128)   branch2a (lane-aligned split)
    b1 = y12[PAD * W:PAD * W + THW, C2A:]                # (THW, 192)  branch1, central rows only

    # ---------------- branch2b: 1x7 'same' conv = 7 accumulated dots from a W-padded scratch ----
    padb_ref[:, PAD:PAD + W, :] = b2a.reshape(HEXT, W, C2A).astype(jnp.bfloat16)
    padb_ref[:, :PAD, :] = jnp.zeros((HEXT, PAD, C2A), jnp.bfloat16)
    padb_ref[:, PAD + W:, :] = jnp.zeros((HEXT, PAD, C2A), jnp.bfloat16)
    acc_b = jnp.dot(padb_ref[:, 0:W, :].reshape(EW, C2A), w2b_ref[0],
                    preferred_element_type=jnp.float32)
    for k in range(1, KTAP):                             # static unroll, MXU-accumulated
        acc_b = acc_b + jnp.dot(padb_ref[:, k:k + W, :].reshape(EW, C2A), w2b_ref[k],
                                preferred_element_type=jnp.float32)
    b2b = jnp.maximum(acc_b + o2b_ref[...], 0.0)         # (EW, 160)

    # ---------------- branch2c: 7x1 'same' conv via flat row-aligned padded scratch --------------
    padc_ref[...] = b2b.astype(jnp.bfloat16)             # halo rows = genuine neighbour rows

    @pl.when(h == 0)                                     # top image boundary -> zero pad rows
    def _():
        padc_ref[0:PAD * W, :] = jnp.zeros((PAD * W, C2B), jnp.bfloat16)

    @pl.when(h == nh - 1)                                # bottom image boundary -> zero pad rows
    def _():
        padc_ref[(TH + PAD) * W:, :] = jnp.zeros((PAD * W, C2B), jnp.bfloat16)

    # tap k reads flat rows [k*W, k*W + TH*W): row-aligned offsets, no relayout copies
    acc_c = jnp.dot(padc_ref[0:THW, :], w2c_ref[0], preferred_element_type=jnp.float32)
    for k in range(1, KTAP):
        acc_c = acc_c + jnp.dot(padc_ref[k * W:k * W + THW, :], w2c_ref[k],
                                preferred_element_type=jnp.float32)
    b2c = jnp.maximum(acc_c + o2c_ref[...], 0.0)         # (THW, 192)

    # ---------------- linear 1x1 conv (split wl, no 384-lane concat) + residual + ReLU -----------
    lin = jnp.dot(b1.astype(jnp.bfloat16), wl1_ref[...], preferred_element_type=jnp.float32)
    lin = lin + jnp.dot(b2c.astype(jnp.bfloat16), wl2_ref[...], preferred_element_type=jnp.float32)
    out = jnp.maximum(lin + bl_ref[...] + xc, 0.0)       # residual scale folded into wl/bl
    out_ref[0] = out.reshape(TH, W, Cin).astype(out_ref.dtype)


def inception_resnet_b(x_nhwc, kp, *, tile_h=8, out_dtype=jnp.float32):
    """x_nhwc: (N, H, W, Cin) float32. kp: prepared (folded / fused / bf16) kernel params."""
    N, H, W, Cin = x_nhwc.shape
    if H % tile_h != 0:
        tile_h = H                     # graceful fallback: single row-tile per image
    nh = H // tile_h
    Hp = H + 2 * PAD
    Hext = tile_h + 2 * PAD

    # Zero rows for the H halo; halo activations are recomputed per tile and the
    # out-of-image rows are re-zeroed before the 7x1 conv, so the pad values are inert.
    x_pad = jnp.pad(x_nhwc, ((0, 0), (PAD, PAD), (0, 0), (0, 0)))

    def const_spec(arr):
        nd = arr.ndim
        idx = lambda n, h, _nd=nd: (0,) * _nd
        try:    # constant operands: single buffer (their block index never changes)
            return pl.BlockSpec(arr.shape, idx, pipeline_mode=pl.Buffered(1))
        except (AttributeError, TypeError):
            return pl.BlockSpec(arr.shape, idx)

    in_specs = [
        # Whole padded image resident per n (block index constant along h): at block17
        # sizes (17x17x1088) this is ~1.3 MB, reused across consecutive h steps without re-DMA.
        pl.BlockSpec((1, Hp, W, Cin), lambda n, h: (n, 0, 0, 0)),
        const_spec(kp["w12"]), const_spec(kp["o12"]),
        const_spec(kp["w2b"]), const_spec(kp["o2b"]),
        const_spec(kp["w2c"]), const_spec(kp["o2c"]),
        const_spec(kp["wl1"]), const_spec(kp["wl2"]), const_spec(kp["bl"]),
    ]

    # VMEM budget derived from actual block/scratch/weight sizes (v7x: 64 MiB / TC).
    weight_bytes = sum(int(v.size) * jnp.dtype(v.dtype).itemsize for v in kp.values())
    block_bytes = (2 * Hp * W * Cin * 4                           # input block (double-buffered)
                   + 2 * tile_h * W * Cin * jnp.dtype(out_dtype).itemsize
                   + Hext * (W + 2 * PAD) * C2A * 2               # 1x7 padded scratch
                   + Hext * W * C2B * 2)                          # 7x1 flat padded scratch
    vmem_limit = int(min(max(4 * (weight_bytes + block_bytes), 16 * 1024 * 1024),
                         48 * 1024 * 1024))

    return pl.pallas_call(
        _inception_b_kernel,
        out_shape=jax.ShapeDtypeStruct((N, H, W, Cin), out_dtype),
        grid=(N, nh),
        in_specs=in_specs,
        out_specs=pl.BlockSpec((1, tile_h, W, Cin), lambda n, h: (n, h, 0, 0)),
        scratch_shapes=[
            pltpu.VMEM((Hext, W + 2 * PAD, C2A), jnp.bfloat16),   # W-padded 1x7 input
            pltpu.VMEM((Hext * W, C2B), jnp.bfloat16),            # flat H-padded 7x1 input
        ],
        compiler_params=pltpu.CompilerParams(
            dimension_semantics=("parallel", "parallel"),
            vmem_limit_bytes=vmem_limit),
    )(
        x_pad,
        kp["w12"], kp["o12"],
        kp["w2b"], kp["o2b"],
        kp["w2c"], kp["o2c"],
        kp["wl1"], kp["wl2"], kp["bl"],
    )


# ---------------------------------------------------------------------------
# Parameter construction (deterministic, synthetic), host-side folding/fusion,
# and a pure-JAX f32 reference.
# ---------------------------------------------------------------------------
def _fold_bn(key, cout, eps=1e-5):
    """Per-channel (scale, bias) equivalent to an eval-mode BatchNorm2d."""
    k1, k2, k3, k4 = jax.random.split(key, 4)
    gamma = 1.0 + 0.1 * jax.random.normal(k1, (cout,), jnp.float32)
    beta = 0.1 * jax.random.normal(k2, (cout,), jnp.float32)
    mean = 0.1 * jax.random.normal(k3, (cout,), jnp.float32)
    var = jnp.abs(1.0 + 0.1 * jax.random.normal(k4, (cout,), jnp.float32))
    s = gamma / jnp.sqrt(var + eps)
    o = beta - mean * s
    return s.reshape(1, cout), o.reshape(1, cout)


def make_params(key, cin):
    ks = jax.random.split(key, 12)
    std = 0.1
    p = {}
    p["w1"] = std * jax.random.normal(ks[0], (cin, C1), jnp.float32)
    p["s1"], p["o1"] = _fold_bn(ks[1], C1)
    p["w2a"] = std * jax.random.normal(ks[2], (cin, C2A), jnp.float32)
    p["s2a"], p["o2a"] = _fold_bn(ks[3], C2A)
    p["w2b"] = std * jax.random.normal(ks[4], (KTAP, C2A, C2B), jnp.float32)  # 1x7 taps along W
    p["s2b"], p["o2b"] = _fold_bn(ks[5], C2B)
    p["w2c"] = std * jax.random.normal(ks[6], (KTAP, C2B, C2C), jnp.float32)  # 7x1 taps along H
    p["s2c"], p["o2c"] = _fold_bn(ks[7], C2C)
    p["wl"] = std * jax.random.normal(ks[8], (C1 + C2C, cin), jnp.float32)
    p["bl"] = (std * jax.random.normal(ks[9], (cin,), jnp.float32)).reshape(1, cin)
    return p


def prepare_kernel_params(p, scale):
    """Fold BN scale into conv weights, fuse the two 1x1s, split wl, fold residual
    scale into wl/bl, and cast matmul operands to bf16 (one-time transform)."""
    w2a = p["w2a"] * p["s2a"]                                  # (Cin, 128)
    w1 = p["w1"] * p["s1"]                                     # (Cin, 192)
    w12 = jnp.concatenate([w2a, w1], axis=1)                   # (Cin, 320)  [branch2a | branch1]
    o12 = jnp.concatenate([p["o2a"], p["o1"]], axis=1)         # (1, 320)
    w2b = p["w2b"] * p["s2b"][None, :, :]                      # (7, 128, 160) per-tap
    w2c = p["w2c"] * p["s2c"][None, :, :]                      # (7, 160, 192) per-tap
    wl = p["wl"] * scale
    bl = p["bl"] * scale
    return {
        "w12": w12.astype(jnp.bfloat16), "o12": o12,
        "w2b": w2b.astype(jnp.bfloat16), "o2b": p["o2b"],
        "w2c": w2c.astype(jnp.bfloat16), "o2c": p["o2c"],
        "wl1": wl[:C1].astype(jnp.bfloat16),
        "wl2": wl[C1:].astype(jnp.bfloat16),
        "bl": bl,
    }


def reference_forward(x_nhwc, p, scale=0.1):
    dn = ("NHWC", "HWIO", "NHWC")

    def conv_bn_relu(x, w_hwio, s, o):
        y = lax.conv_general_dilated(x, w_hwio, (1, 1), "SAME",
                                     dimension_numbers=dn,
                                     precision=jax.lax.Precision.HIGHEST)
        return jnp.maximum(y * s.reshape(1, 1, 1, -1) + o.reshape(1, 1, 1, -1), 0.0)

    cin = x_nhwc.shape[-1]
    b1 = conv_bn_relu(x_nhwc, p["w1"].reshape(1, 1, cin, C1), p["s1"], p["o1"])
    b2 = conv_bn_relu(x_nhwc, p["w2a"].reshape(1, 1, cin, C2A), p["s2a"], p["o2a"])
    b2 = conv_bn_relu(b2, p["w2b"].reshape(1, KTAP, C2A, C2B), p["s2b"], p["o2b"])
    b2 = conv_bn_relu(b2, p["w2c"].reshape(KTAP, 1, C2B, C2C), p["s2c"], p["o2c"])
    mixed = jnp.concatenate([b1, b2], axis=-1)
    lin = lax.conv_general_dilated(mixed, p["wl"].reshape(1, 1, C1 + C2C, cin), (1, 1),
                                   "SAME", dimension_numbers=dn,
                                   precision=jax.lax.Precision.HIGHEST)
    lin = lin + p["bl"].reshape(1, 1, 1, cin)
    return jnp.maximum(lin * scale + x_nhwc, 0.0)


if __name__ == "__main__":
    N, Cin, H, W = 2, 32, 16, 16
    key = jax.random.PRNGKey(0)
    kx, kparam = jax.random.split(key)

    x_nchw = jax.random.normal(kx, (N, Cin, H, W), jnp.float32)   # PyTorch-style NCHW input
    x_nhwc = jnp.transpose(x_nchw, (0, 2, 3, 1))                  # kernel layout: NHWC
    params = make_params(kparam, Cin)
    kparams = prepare_kernel_params(params, scale=0.1)

    out_nhwc = jax.block_until_ready(inception_resnet_b(x_nhwc, kparams, tile_h=8))
    ref = reference_forward(x_nhwc, params, scale=0.1)

    assert out_nhwc.shape == (N, H, W, Cin)
    # bf16 MXU operands + f32 accumulation vs. an f32 HIGHEST-precision reference.
    assert jnp.allclose(out_nhwc, ref, rtol=5e-2, atol=5e-2), "mismatch vs JAX reference"

    out_nchw = jnp.transpose(out_nhwc, (0, 3, 1, 2))              # back to PyTorch NCHW
    jax.block_until_ready(out_nchw)
    print("KERNEL_OK")
</pallas_src>

<mosaic_0001>
module attributes {stable_mosaic.version = 11 : i64} {
  func.func @_inception_b_kernel(%arg0: i32, %arg1: i32, %arg2: memref<1x22x16x32xf32, #tpu.memory_space<vmem>>, %arg3: memref<32x320xbf16, #tpu.memory_space<vmem>>, %arg4: memref<1x320xf32, #tpu.memory_space<vmem>>, %arg5: memref<7x128x160xbf16, #tpu.memory_space<vmem>>, %arg6: memref<1x160xf32, #tpu.memory_space<vmem>>, %arg7: memref<7x160x192xbf16, #tpu.memory_space<vmem>>, %arg8: memref<1x192xf32, #tpu.memory_space<vmem>>, %arg9: memref<192x32xbf16, #tpu.memory_space<vmem>>, %arg10: memref<192x32xbf16, #tpu.memory_space<vmem>>, %arg11: memref<1x32xf32, #tpu.memory_space<vmem>>, %arg12: memref<1x8x16x32xf32, #tpu.memory_space<vmem>>, %arg13: memref<14x22x128xbf16, #tpu.memory_space<vmem>>, %arg14: memref<224x160xbf16, #tpu.memory_space<vmem>>) attributes {dimension_semantics = [#tpu.dimension_semantics<parallel>, #tpu.dimension_semantics<parallel>], iteration_bounds = array<i64: 2, 2>, scalar_prefetch = 0 : i64, scratch_operands = 2 : i64, tpu.core_type = #tpu.core_type<tc>, window_params = [{transform_indices = @transform_0, window_bounds = array<i64: 1, 22, 16, 32>}, {pipeline_mode = #tpu.pipeline_mode<synchronous>, transform_indices = @transform_1, window_bounds = array<i64: 32, 320>}, {pipeline_mode = #tpu.pipeline_mode<synchronous>, transform_indices = @transform_2, window_bounds = array<i64: 1, 320>}, {pipeline_mode = #tpu.pipeline_mode<synchronous>, transform_indices = @transform_3, window_bounds = array<i64: 7, 128, 160>}, {pipeline_mode = #tpu.pipeline_mode<synchronous>, transform_indices = @transform_4, window_bounds = array<i64: 1, 160>}, {pipeline_mode = #tpu.pipeline_mode<synchronous>, transform_indices = @transform_5, window_bounds = array<i64: 7, 160, 192>}, {pipeline_mode = #tpu.pipeline_mode<synchronous>, transform_indices = @transform_6, window_bounds = array<i64: 1, 192>}, {pipeline_mode = #tpu.pipeline_mode<synchronous>, transform_indices = @transform_7, window_bounds = array<i64: 192, 32>}, {pipeline_mode = #tpu.pipeline_mode<synchronous>, transform_indices = @transform_8, window_bounds = array<i64: 192, 32>}, {pipeline_mode = #tpu.pipeline_mode<synchronous>, transform_indices = @transform_9, window_bounds = array<i64: 1, 32>}, {transform_indices = @transform_10, window_bounds = array<i64: 1, 8, 16, 32>}]} {
    %c8_i32 = arith.constant 8 : i32
    %0 = arith.muli %arg1, %c8_i32 : i32
    %1 = tpu.assume_multiple %0, 8 : i32
    %c0 = arith.constant 0 : index
    %2 = arith.index_cast %1 : i32 to index
    %c0_0 = arith.constant 0 : index
    %c0_1 = arith.constant 0 : index
    %3 = vector.load %arg2[%c0, %2, %c0_0, %c0_1] : memref<1x22x16x32xf32, #tpu.memory_space<vmem>>, vector<1x14x16x32xf32>
    %4 = vector.shape_cast %3 : vector<1x14x16x32xf32> to vector<14x16x32xf32>
    %5 = vector.shape_cast %4 : vector<14x16x32xf32> to vector<224x32xf32>
    %6 = arith.truncf %5 : vector<224x32xf32> to vector<224x32xbf16>
    %7 = vector.extract_strided_slice %4 {offsets = [3, 0, 0], sizes = [8, 16, 32], strides = [1, 1, 1]} : vector<14x16x32xf32> to vector<8x16x32xf32>
    %8 = vector.shape_cast %7 : vector<8x16x32xf32> to vector<128x32xf32>
    %c0_2 = arith.constant 0 : index
    %c0_3 = arith.constant 0 : index
    %9 = vector.load %arg3[%c0_2, %c0_3] : memref<32x320xbf16, #tpu.memory_space<vmem>>, vector<32x320xbf16>
    %cst = arith.constant dense<0.000000e+00> : vector<224x320xf32>
    %10 = tpu.matmul %6, %9, %cst {dimension_numbers = #tpu.dot_dimension_numbers<[1], [0], [0], [1], [0, 0, 1, 1], [], []>} : vector<224x32xbf16>, vector<32x320xbf16>, vector<224x320xf32> -> vector<224x320xf32>
    %c0_4 = arith.constant 0 : index
    %c0_5 = arith.constant 0 : index
    %11 = vector.load %arg4[%c0_4, %c0_5] : memref<1x320xf32, #tpu.memory_space<vmem>>, vector<1x320xf32>
    %12 = vector.broadcast %11 : vector<1x320xf32> to vector<224x320xf32>
    %13 = arith.addf %10, %12 : vector<224x320xf32>
    %cst_6 = arith.constant 0.000000e+00 : f32
    %14 = vector.broadcast %cst_6 : f32 to vector<224x320xf32>
    %15 = arith.maximumf %13, %14 : vector<224x320xf32>
    %16 = vector.extract_strided_slice %15 {offsets = [0, 0], sizes = [224, 128], strides = [1, 1]} : vector<224x320xf32> to vector<224x128xf32>
    %17 = vector.extract_strided_slice %15 {offsets = [48, 128], sizes = [128, 192], strides = [1, 1]} : vector<224x320xf32> to vector<128x192xf32>
    %18 = vector.shape_cast %16 : vector<224x128xf32> to vector<14x16x128xf32>
    %19 = arith.truncf %18 : vector<14x16x128xf32> to vector<14x16x128xbf16>
    %c0_7 = arith.constant 0 : index
    %c3 = arith.constant 3 : index
    %c0_8 = arith.constant 0 : index
    %20 = vector.load %arg13[%c0_7, %c3, %c0_8] : memref<14x22x128xbf16, #tpu.memory_space<vmem>>, vector<14x16x128xbf16>
    tpu.vector_store %arg13[%c0_7, %c3, %c0_8], %19 {strides = array<i32>} : memref<14x22x128xbf16, #tpu.memory_space<vmem>>, vector<14x16x128xbf16>,
    %cst_9 = arith.constant 0.000000e+00 : bf16
    %21 = vector.broadcast %cst_9 : bf16 to vector<14x3x128xbf16>
    %c0_10 = arith.constant 0 : index
    %c0_11 = arith.constant 0 : index
    %c0_12 = arith.constant 0 : index
    %22 = vector.load %arg13[%c0_10, %c0_11, %c0_12] : memref<14x22x128xbf16, #tpu.memory_space<vmem>>, vector<14x3x128xbf16>
    tpu.vector_store %arg13[%c0_10, %c0_11, %c0_12], %21 {strides = array<i32>} : memref<14x22x128xbf16, #tpu.memory_space<vmem>>, vector<14x3x128xbf16>,
    %cst_13 = arith.constant 0.000000e+00 : bf16
    %23 = vector.broadcast %cst_13 : bf16 to vector<14x3x128xbf16>
    %c0_14 = arith.constant 0 : index
    %c19 = arith.constant 19 : index
    %c0_15 = arith.constant 0 : index
    %24 = vector.load %arg13[%c0_14, %c19, %c0_15] : memref<14x22x128xbf16, #tpu.memory_space<vmem>>, vector<14x3x128xbf16>
    tpu.vector_store %arg13[%c0_14, %c19, %c0_15], %23 {strides = array<i32>} : memref<14x22x128xbf16, #tpu.memory_space<vmem>>, vector<14x3x128xbf16>,
    %c0_16 = arith.constant 0 : index
    %c0_17 = arith.constant 0 : index
    %c0_18 = arith.constant 0 : index
    %25 = vector.load %arg13[%c0_16, %c0_17, %c0_18] : memref<14x22x128xbf16, #tpu.memory_space<vmem>>, vector<14x16x128xbf16>
    %26 = vector.shape_cast %25 : vector<14x16x128xbf16> to vector<224x128xbf16>
    %c0_19 = arith.constant 0 : index
    %c0_20 = arith.constant 0 : index
    %c0_21 = arith.constant 0 : index
    %27 = vector.load %arg5[%c0_19, %c0_20, %c0_21] : memref<7x128x160xbf16, #tpu.memory_space<vmem>>, vector<1x128x160xbf16>
    %28 = vector.shape_cast %27 : vector<1x128x160xbf16> to vector<128x160xbf16>
    %cst_22 = arith.constant dense<0.000000e+00> : vector<224x160xf32>
    %29 = tpu.matmul %26, %28, %cst_22 {dimension_numbers = #tpu.dot_dimension_numbers<[1], [0], [0], [1], [0, 0, 1, 1], [], []>} : vector<224x128xbf16>, vector<128x160xbf16>, vector<224x160xf32> -> vector<224x160xf32>
    %c0_23 = arith.constant 0 : index
    %c1 = arith.constant 1 : index
    %c0_24 = arith.constant 0 : index
    %30 = vector.load %arg13[%c0_23, %c1, %c0_24] : memref<14x22x128xbf16, #tpu.memory_space<vmem>>, vector<14x16x128xbf16>
    %31 = vector.shape_cast %30 : vector<14x16x128xbf16> to vector<224x128xbf16>
    %c1_25 = arith.constant 1 : index
    %c0_26 = arith.constant 0 : index
    %c0_27 = arith.constant 0 : index
    %32 = vector.load %arg5[%c1_25, %c0_26, %c0_27] : memref<7x128x160xbf16, #tpu.memory_space<vmem>>, vector<1x128x160xbf16>
    %33 = vector.shape_cast %32 : vector<1x128x160xbf16> to vector<128x160xbf16>
    %cst_28 = arith.constant dense<0.000000e+00> : vector<224x160xf32>
    %34 = tpu.matmul %31, %33, %cst_28 {dimension_numbers = #tpu.dot_dimension_numbers<[1], [0], [0], [1], [0, 0, 1, 1], [], []>} : vector<224x128xbf16>, vector<128x160xbf16>, vector<224x160xf32> -> vector<224x160xf32>
    %35 = arith.addf %29, %34 : vector<224x160xf32>
    %c0_29 = arith.constant 0 : index
    %c2 = arith.constant 2 : index
    %c0_30 = arith.constant 0 : index
    %36 = vector.load %arg13[%c0_29, %c2, %c0_30] : memref<14x22x128xbf16, #tpu.memory_space<vmem>>, vector<14x16x128xbf16>
    %37 = vector.shape_cast %36 : vector<14x16x128xbf16> to vector<224x128xbf16>
    %c2_31 = arith.constant 2 : index
    %c0_32 = arith.constant 0 : index
    %c0_33 = arith.constant 0 : index
    %38 = vector.load %arg5[%c2_31, %c0_32, %c0_33] : memref<7x128x160xbf16, #tpu.memory_space<vmem>>, vector<1x128x160xbf16>
    %39 = vector.shape_cast %38 : vector<1x128x160xbf16> to vector<128x160xbf16>
    %cst_34 = arith.constant dense<0.000000e+00> : vector<224x160xf32>
    %40 = tpu.matmul %37, %39, %cst_34 {dimension_numbers = #tpu.dot_dimension_numbers<[1], [0], [0], [1], [0, 0, 1, 1], [], []>} : vector<224x128xbf16>, vector<128x160xbf16>, vector<224x160xf32> -> vector<224x160xf32>
    %41 = arith.addf %35, %40 : vector<224x160xf32>
    %c0_35 = arith.constant 0 : index
    %c3_36 = arith.constant 3 : index
    %c0_37 = arith.constant 0 : index
    %42 = vector.load %arg13[%c0_35, %c3_36, %c0_37] : memref<14x22x128xbf16, #tpu.memory_space<vmem>>, vector<14x16x128xbf16>
    %43 = vector.shape_cast %42 : vector<14x16x128xbf16> to vector<224x128xbf16>
    %c3_38 = arith.constant 3 : index
    %c0_39 = arith.constant 0 : index
    %c0_40 = arith.constant 0 : index
    %44 = vector.load %arg5[%c3_38, %c0_39, %c0_40] : memref<7x128x160xbf16, #tpu.memory_space<vmem>>, vector<1x128x160xbf16>
    %45 = vector.shape_cast %44 : vector<1x128x160xbf16> to vector<128x160xbf16>
    %cst_41 = arith.constant dense<0.000000e+00> : vector<224x160xf32>
    %46 = tpu.matmul %43, %45, %cst_41 {dimension_numbers = #tpu.dot_dimension_numbers<[1], [0], [0], [1], [0, 0, 1, 1], [], []>} : vector<224x128xbf16>, vector<128x160xbf16>, vector<224x160xf32> -> vector<224x160xf32>
    %47 = arith.addf %41, %46 : vector<224x160xf32>
    %c0_42 = arith.constant 0 : index
    %c4 = arith.constant 4 : index
    %c0_43 = arith.constant 0 : index
    %48 = vector.load %arg13[%c0_42, %c4, %c0_43] : memref<14x22x128xbf16, #tpu.memory_space<vmem>>, vector<14x16x128xbf16>
    %49 = vector.shape_cast %48 : vector<14x16x128xbf16> to vector<224x128xbf16>
    %c4_44 = arith.constant 4 : index
    %c0_45 = arith.constant 0 : index
    %c0_46 = arith.constant 0 : index
    %50 = vector.load %arg5[%c4_44, %c0_45, %c0_46] : memref<7x128x160xbf16, #tpu.memory_space<vmem>>, vector<1x128x160xbf16>
    %51 = vector.shape_cast %50 : vector<1x128x160xbf16> to vector<128x160xbf16>
    %cst_47 = arith.constant dense<0.000000e+00> : vector<224x160xf32>
    %52 = tpu.matmul %49, %51, %cst_47 {dimension_numbers = #tpu.dot_dimension_numbers<[1], [0], [0], [1], [0, 0, 1, 1], [], []>} : vector<224x128xbf16>, vector<128x160xbf16>, vector<224x160xf32> -> vector<224x160xf32>
    %53 = arith.addf %47, %52 : vector<224x160xf32>
    %c0_48 = arith.constant 0 : index
    %c5 = arith.constant 5 : index
    %c0_49 = arith.constant 0 : index
    %54 = vector.load %arg13[%c0_48, %c5, %c0_49] : memref<14x22x128xbf16, #tpu.memory_space<vmem>>, vector<14x16x128xbf16>
    %55 = vector.shape_cast %54 : vector<14x16x128xbf16> to vector<224x128xbf16>
    %c5_50 = arith.constant 5 : index
    %c0_51 = arith.constant 0 : index
    %c0_52 = arith.constant 0 : index
    %56 = vector.load %arg5[%c5_50, %c0_51, %c0_52] : memref<7x128x160xbf16, #tpu.memory_space<vmem>>, vector<1x128x160xbf16>
    %57 = vector.shape_cast %56 : vector<1x128x160xbf16> to vector<128x160xbf16>
    %cst_53 = arith.constant dense<0.000000e+00> : vector<224x160xf32>
    %58 = tpu.matmul %55, %57, %cst_53 {dimension_numbers = #tpu.dot_dimension_numbers<[1], [0], [0], [1], [0, 0, 1, 1], [], []>} : vector<224x128xbf16>, vector<128x160xbf16>, vector<224x160xf32> -> vector<224x160xf32>
    %59 = arith.addf %53, %58 : vector<224x160xf32>
    %c0_54 = arith.constant 0 : index
    %c6 = arith.constant 6 : index
    %c0_55 = arith.constant 0 : index
    %60 = vector.load %arg13[%c0_54, %c6, %c0_55] : memref<14x22x128xbf16, #tpu.memory_space<vmem>>, vector<14x16x128xbf16>
    %61 = vector.shape_cast %60 : vector<14x16x128xbf16> to vector<224x128xbf16>
    %c6_56 = arith.constant 6 : index
    %c0_57 = arith.constant 0 : index
    %c0_58 = arith.constant 0 : index
    %62 = vector.load %arg5[%c6_56, %c0_57, %c0_58] : memref<7x128x160xbf16, #tpu.memory_space<vmem>>, vector<1x128x160xbf16>
    %63 = vector.shape_cast %62 : vector<1x128x160xbf16> to vector<128x160xbf16>
    %cst_59 = arith.constant dense<0.000000e+00> : vector<224x160xf32>
    %64 = tpu.matmul %61, %63, %cst_59 {dimension_numbers = #tpu.dot_dimension_numbers<[1], [0], [0], [1], [0, 0, 1, 1], [], []>} : vector<224x128xbf16>, vector<128x160xbf16>, vector<224x160xf32> -> vector<224x160xf32>
    %65 = arith.addf %59, %64 : vector<224x160xf32>
    %c0_60 = arith.constant 0 : index
    %c0_61 = arith.constant 0 : index
    %66 = vector.load %arg6[%c0_60, %c0_61] : memref<1x160xf32, #tpu.memory_space<vmem>>, vector<1x160xf32>
    %67 = vector.broadcast %66 : vector<1x160xf32> to vector<224x160xf32>
    %68 = arith.addf %65, %67 : vector<224x160xf32>
    %cst_62 = arith.constant 0.000000e+00 : f32
    %69 = vector.broadcast %cst_62 : f32 to vector<224x160xf32>
    %70 = arith.maximumf %68, %69 : vector<224x160xf32>
    %71 = arith.truncf %70 : vector<224x160xf32> to vector<224x160xbf16>
    %c0_63 = arith.constant 0 : index
    %c0_64 = arith.constant 0 : index
    %72 = vector.load %arg14[%c0_63, %c0_64] : memref<224x160xbf16, #tpu.memory_space<vmem>>, vector<224x160xbf16>
    tpu.vector_store %arg14[%c0_63, %c0_64], %71 {strides = array<i32>} : memref<224x160xbf16, #tpu.memory_space<vmem>>, vector<224x160xbf16>,
    %c0_i32 = arith.constant 0 : i32
    %73 = arith.cmpi eq, %arg1, %c0_i32 : i32
    %74 = arith.extui %73 : i1 to i32
    %c0_i32_65 = arith.constant 0 : i32
    %75 = arith.cmpi ne, %74, %c0_i32_65 : i32
    scf.if %75 {
      %cst_119 = arith.constant 0.000000e+00 : bf16
      %135 = vector.broadcast %cst_119 : bf16 to vector<48x160xbf16>
      %c0_120 = arith.constant 0 : index
      %c0_121 = arith.constant 0 : index
      %136 = vector.load %arg14[%c0_120, %c0_121] : memref<224x160xbf16, #tpu.memory_space<vmem>>, vector<48x160xbf16>
      tpu.vector_store %arg14[%c0_120, %c0_121], %135 {strides = array<i32>} : memref<224x160xbf16, #tpu.memory_space<vmem>>, vector<48x160xbf16>,
    } else {
    }
    %c1_i32 = arith.constant 1 : i32
    %76 = arith.cmpi eq, %arg1, %c1_i32 : i32
    %77 = arith.extui %76 : i1 to i32
    %c0_i32_66 = arith.constant 0 : i32
    %78 = arith.cmpi ne, %77, %c0_i32_66 : i32
    scf.if %78 {
      %cst_119 = arith.constant 0.000000e+00 : bf16
      %135 = vector.broadcast %cst_119 : bf16 to vector<48x160xbf16>
      %c176 = arith.constant 176 : index
      %c0_120 = arith.constant 0 : index
      %136 = vector.load %arg14[%c176, %c0_120] : memref<224x160xbf16, #tpu.memory_space<vmem>>, vector<48x160xbf16>
      tpu.vector_store %arg14[%c176, %c0_120], %135 {strides = array<i32>} : memref<224x160xbf16, #tpu.memory_space<vmem>>, vector<48x160xbf16>,
    } else {
    }
    %c0_67 = arith.constant 0 : index
    %c0_68 = arith.constant 0 : index
    %79 = vector.load %arg14[%c0_67, %c0_68] : memref<224x160xbf16, #tpu.memory_space<vmem>>, vector<128x160xbf16>
    %c0_69 = arith.constant 0 : index
    %c0_70 = arith.constant 0 : index
    %c0_71 = arith.constant 0 : index
    %80 = vector.load %arg7[%c0_69, %c0_70, %c0_71] : memref<7x160x192xbf16, #tpu.memory_space<vmem>>, vector<1x160x192xbf16>
    %81 = vector.shape_cast %80 : vector<1x160x192xbf16> to vector<160x192xbf16>
    %cst_72 = arith.constant dense<0.000000e+00> : vector<128x192xf32>
    %82 = tpu.matmul %79, %81, %cst_72 {dimension_numbers = #tpu.dot_dimension_numbers<[1], [0], [0], [1], [0, 0, 1, 1], [], []>} : vector<128x160xbf16>, vector<160x192xbf16>, vector<128x192xf32> -> vector<128x192xf32>
    %c16 = arith.constant 16 : index
    %c0_73 = arith.constant 0 : index
    %83 = vector.load %arg14[%c16, %c0_73] : memref<224x160xbf16, #tpu.memory_space<vmem>>, vector<128x160xbf16>
    %c1_74 = arith.constant 1 : index
    %c0_75 = arith.constant 0 : index
    %c0_76 = arith.constant 0 : index
    %84 = vector.load %arg7[%c1_74, %c0_75, %c0_76] : memref<7x160x192xbf16, #tpu.memory_space<vmem>>, vector<1x160x192xbf16>
    %85 = vector.shape_cast %84 : vector<1x160x192xbf16> to vector<160x192xbf16>
    %cst_77 = arith.constant dense<0.000000e+00> : vector<128x192xf32>
    %86 = tpu.matmul %83, %85, %cst_77 {dimension_numbers = #tpu.dot_dimension_numbers<[1], [0], [0], [1], [0, 0, 1, 1], [], []>} : vector<128x160xbf16>, vector<160x192xbf16>, vector<128x192xf32> -> vector<128x192xf32>
    %87 = arith.addf %82, %86 : vector<128x192xf32>
    %c32 = arith.constant 32 : index
    %c0_78 = arith.constant 0 : index
    %88 = vector.load %arg14[%c32, %c0_78] : memref<224x160xbf16, #tpu.memory_space<vmem>>, vector<128x160xbf16>
    %c2_79 = arith.constant 2 : index
    %c0_80 = arith.constant 0 : index
    %c0_81 = arith.constant 0 : index
    %89 = vector.load %arg7[%c2_79, %c0_80, %c0_81] : memref<7x160x192xbf16, #tpu.memory_space<vmem>>, vector<1x160x192xbf16>
    %90 = vector.shape_cast %89 : vector<1x160x192xbf16> to vector<160x192xbf16>
    %cst_82 = arith.constant dense<0.000000e+00> : vector<128x192xf32>
    %91 = tpu.matmul %88, %90, %cst_82 {dimension_numbers = #tpu.dot_dimension_numbers<[1], [0], [0], [1], [0, 0, 1, 1], [], []>} : vector<128x160xbf16>, vector<160x192xbf16>, vector<128x192xf32> -> vector<128x192xf32>
    %92 = arith.addf %87, %91 : vector<128x192xf32>
    %c48 = arith.constant 48 : index
    %c0_83 = arith.constant 0 : index
    %93 = vector.load %arg14[%c48, %c0_83] : memref<224x160xbf16, #tpu.memory_space<vmem>>, vector<128x160xbf16>
    %c3_84 = arith.constant 3 : index
    %c0_85 = arith.constant 0 : index
    %c0_86 = arith.constant 0 : index
    %94 = vector.load %arg7[%c3_84, %c0_85, %c0_86] : memref<7x160x192xbf16, #tpu.memory_space<vmem>>, vector<1x160x192xbf16>
    %95 = vector.shape_cast %94 : vector<1x160x192xbf16> to vector<160x192xbf16>
    %cst_87 = arith.constant dense<0.000000e+00> : vector<128x192xf32>
    %96 = tpu.matmul %93, %95, %cst_87 {dimension_numbers = #tpu.dot_dimension_numbers<[1], [0], [0], [1], [0, 0, 1, 1], [], []>} : vector<128x160xbf16>, vector<160x192xbf16>, vector<128x192xf32> -> vector<128x192xf32>
    %97 = arith.addf %92, %96 : vector<128x192xf32>
    %c64 = arith.constant 64 : index
    %c0_88 = arith.constant 0 : index
    %98 = vector.load %arg14[%c64, %c0_88] : memref<224x160xbf16, #tpu.memory_space<vmem>>, vector<128x160xbf16>
    %c4_89 = arith.constant 4 : index
    %c0_90 = arith.constant 0 : index
    %c0_91 = arith.constant 0 : index
    %99 = vector.load %arg7[%c4_89, %c0_90, %c0_91] : memref<7x160x192xbf16, #tpu.memory_space<vmem>>, vector<1x160x192xbf16>
    %100 = vector.shape_cast %99 : vector<1x160x192xbf16> to vector<160x192xbf16>
    %cst_92 = arith.constant dense<0.000000e+00> : vector<128x192xf32>
    %101 = tpu.matmul %98, %100, %cst_92 {dimension_numbers = #tpu.dot_dimension_numbers<[1], [0], [0], [1], [0, 0, 1, 1], [], []>} : vector<128x160xbf16>, vector<160x192xbf16>, vector<128x192xf32> -> vector<128x192xf32>
    %102 = arith.addf %97, %101 : vector<128x192xf32>
    %c80 = arith.constant 80 : index
    %c0_93 = arith.constant 0 : index
    %103 = vector.load %arg14[%c80, %c0_93] : memref<224x160xbf16, #tpu.memory_space<vmem>>, vector<128x160xbf16>
    %c5_94 = arith.constant 5 : index
    %c0_95 = arith.constant 0 : index
    %c0_96 = arith.constant 0 : index
    %104 = vector.load %arg7[%c5_94, %c0_95, %c0_96] : memref<7x160x192xbf16, #tpu.memory_space<vmem>>, vector<1x160x192xbf16>
    %105 = vector.shape_cast %104 : vector<1x160x192xbf16> to vector<160x192xbf16>
    %cst_97 = arith.constant dense<0.000000e+00> : vector<128x192xf32>
    %106 = tpu.matmul %103, %105, %cst_97 {dimension_numbers = #tpu.dot_dimension_numbers<[1], [0], [0], [1], [0, 0, 1, 1], [], []>} : vector<128x160xbf16>, vector<160x192xbf16>, vector<128x192xf32> -> vector<128x192xf32>
    %107 = arith.addf %102, %106 : vector<128x192xf32>
    %c96 = arith.constant 96 : index
    %c0_98 = arith.constant 0 : index
    %108 = vector.load %arg14[%c96, %c0_98] : memref<224x160xbf16, #tpu.memory_space<vmem>>, vector<128x160xbf16>
    %c6_99 = arith.constant 6 : index
    %c0_100 = arith.constant 0 : index
    %c0_101 = arith.constant 0 : index
    %109 = vector.load %arg7[%c6_99, %c0_100, %c0_101] : memref<7x160x192xbf16, #tpu.memory_space<vmem>>, vector<1x160x192xbf16>
    %110 = vector.shape_cast %109 : vector<1x160x192xbf16> to vector<160x192xbf16>
    %cst_102 = arith.constant dense<0.000000e+00> : vector<128x192xf32>
    %111 = tpu.matmul %108, %110, %cst_102 {dimension_numbers = #tpu.dot_dimension_numbers<[1], [0], [0], [1], [0, 0, 1, 1], [], []>} : vector<128x160xbf16>, vector<160x192xbf16>, vector<128x192xf32> -> vector<128x192xf32>
    %112 = arith.addf %107, %111 : vector<128x192xf32>
    %c0_103 = arith.constant 0 : index
    %c0_104 = arith.constant 0 : index
    %113 = vector.load %arg8[%c0_103, %c0_104] : memref<1x192xf32, #tpu.memory_space<vmem>>, vector<1x192xf32>
    %114 = vector.broadcast %113 : vector<1x192xf32> to vector<128x192xf32>
    %115 = arith.addf %112, %114 : vector<128x192xf32>
    %cst_105 = arith.constant 0.000000e+00 : f32
    %116 = vector.broadcast %cst_105 : f32 to vector<128x192xf32>
    %117 = arith.maximumf %115, %116 : vector<128x192xf32>
    %118 = arith.truncf %17 : vector<128x192xf32> to vector<128x192xbf16>
    %c0_106 = arith.constant 0 : index
    %c0_107 = arith.constant 0 : index
    %119 = vector.load %arg9[%c0_106, %c0_107] : memref<192x32xbf16, #tpu.memory_space<vmem>>, vector<192x32xbf16>
    %cst_108 = arith.constant dense<0.000000e+00> : vector<128x32xf32>
    %120 = tpu.matmul %118, %119, %cst_108 {dimension_numbers = #tpu.dot_dimension_numbers<[1], [0], [0], [1], [0, 0, 1, 1], [], []>} : vector<128x192xbf16>, vector<192x32xbf16>, vector<128x32xf32> -> vector<128x32xf32>
    %121 = arith.truncf %117 : vector<128x192xf32> to vector<128x192xbf16>
    %c0_109 = arith.constant 0 : index
    %c0_110 = arith.constant 0 : index
    %122 = vector.load %arg10[%c0_109, %c0_110] : memref<192x32xbf16, #tpu.memory_space<vmem>>, vector<192x32xbf16>
    %cst_111 = arith.constant dense<0.000000e+00> : vector<128x32xf32>
    %123 = tpu.matmul %121, %122, %cst_111 {dimension_numbers = #tpu.dot_dimension_numbers<[1], [0], [0], [1], [0, 0, 1, 1], [], []>} : vector<128x192xbf16>, vector<192x32xbf16>, vector<128x32xf32> -> vector<128x32xf32>
    %124 = arith.addf %120, %123 : vector<128x32xf32>
    %c0_112 = arith.constant 0 : index
    %c0_113 = arith.constant 0 : index
    %125 = vector.load %arg11[%c0_112, %c0_113] : memref<1x32xf32, #tpu.memory_space<vmem>>, vector<1x32xf32>
    %126 = vector.broadcast %125 : vector<1x32xf32> to vector<128x32xf32>
    %127 = arith.addf %124, %126 : vector<128x32xf32>
    %128 = arith.addf %127, %8 : vector<128x32xf32>
    %cst_114 = arith.constant 0.000000e+00 : f32
    %129 = vector.broadcast %cst_114 : f32 to vector<128x32xf32>
    %130 = arith.maximumf %128, %129 : vector<128x32xf32>
    %131 = vector.shape_cast %130 : vector<128x32xf32> to vector<8x16x32xf32>
    %c0_115 = arith.constant 0 : index
    %c0_116 = arith.constant 0 : index
    %c0_117 = arith.constant 0 : index
    %c0_118 = arith.constant 0 : index
    %132 = vector.load %arg12[%c0_115, %c0_116, %c0_117, %c0_118] : memref<1x8x16x32xf32, #tpu.memory_space<vmem>>, vector<1x8x16x32xf32>
    %133 = vector.shape_cast %132 : vector<1x8x16x32xf32> to vector<8x16x32xf32>
    %134 = vector.shape_cast %131 : vector<8x16x32xf32> to vector<1x8x16x32xf32>
    tpu.vector_store %arg12[%c0_115, %c0_116, %c0_117, %c0_118], %134 {strides = array<i32>} : memref<1x8x16x32xf32, #tpu.memory_space<vmem>>, vector<1x8x16x32xf32>,
    return
  }
  func.func @transform_0(%arg0: i32, %arg1: i32) -> (i32, i32, i32, i32) {
    %c0_i32 = arith.constant 0 : i32
    %c0_i32_0 = arith.constant 0 : i32
    %c0_i32_1 = arith.constant 0 : i32
    %c0_i32_2 = arith.constant 0 : i32
    return %arg0, %c0_i32, %c0_i32_0, %c0_i32_1 : i32, i32, i32, i32
  }
  func.func @transform_1(%arg0: i32, %arg1: i32) -> (i32, i32) {
    %c0_i32 = arith.constant 0 : i32
    %c0_i32_0 = arith.constant 0 : i32
    %c0_i32_1 = arith.constant 0 : i32
    return %c0_i32, %c0_i32_0 : i32, i32
  }
  func.func @transform_2(%arg0: i32, %arg1: i32) -> (i32, i32) {
    %c0_i32 = arith.constant 0 : i32
    %c0_i32_0 = arith.constant 0 : i32
    %c0_i32_1 = arith.constant 0 : i32
    return %c0_i32, %c0_i32_0 : i32, i32
  }
  func.func @transform_3(%arg0: i32, %arg1: i32) -> (i32, i32, i32) {
    %c0_i32 = arith.constant 0 : i32
    %c0_i32_0 = arith.constant 0 : i32
    %c0_i32_1 = arith.constant 0 : i32
    %c0_i32_2 = arith.constant 0 : i32
    return %c0_i32, %c0_i32_0, %c0_i32_1 : i32, i32, i32
  }
  func.func @transform_4(%arg0: i32, %arg1: i32) -> (i32, i32) {
    %c0_i32 = arith.constant 0 : i32
    %c0_i32_0 = arith.constant 0 : i32
    %c0_i32_1 = arith.constant 0 : i32
    return %c0_i32, %c0_i32_0 : i32, i32
  }
  func.func @transform_5(%arg0: i32, %arg1: i32) -> (i32, i32, i32) {
    %c0_i32 = arith.constant 0 : i32
    %c0_i32_0 = arith.constant 0 : i32
    %c0_i32_1 = arith.constant 0 : i32
    %c0_i32_2 = arith.constant 0 : i32
    return %c0_i32, %c0_i32_0, %c0_i32_1 : i32, i32, i32
  }
  func.func @transform_6(%arg0: i32, %arg1: i32) -> (i32, i32) {
    %c0_i32 = arith.constant 0 : i32
    %c0_i32_0 = arith.constant 0 : i32
    %c0_i32_1 = arith.constant 0 : i32
    return %c0_i32, %c0_i32_0 : i32, i32
  }
  func.func @transform_7(%arg0: i32, %arg1: i32) -> (i32, i32) {
    %c0_i32 = arith.constant 0 : i32
    %c0_i32_0 = arith.constant 0 : i32
    %c0_i32_1 = arith.constant 0 : i32
    return %c0_i32, %c0_i32_0 : i32, i32
  }
  func.func @transform_8(%arg0: i32, %arg1: i32) -> (i32, i32) {
    %c0_i32 = arith.constant 0 : i32
    %c0_i32_0 = arith.constant 0 : i32
    %c0_i32_1 = arith.constant 0 : i32
    return %c0_i32, %c0_i32_0 : i32, i32
  }
  func.func @transform_9(%arg0: i32, %arg1: i32) -> (i32, i32) {
    %c0_i32 = arith.constant 0 : i32
    %c0_i32_0 = arith.constant 0 : i32
    %c0_i32_1 = arith.constant 0 : i32
    return %c0_i32, %c0_i32_0 : i32, i32
  }
  func.func @transform_10(%arg0: i32, %arg1: i32) -> (i32, i32, i32, i32) {
    %c0_i32 = arith.constant 0 : i32
    %c0_i32_0 = arith.constant 0 : i32
    %c0_i32_1 = arith.constant 0 : i32
    return %arg0, %arg1, %c0_i32, %c0_i32_0 : i32, i32, i32, i32
  }
}

</mosaic_0001>

<bundles_post_ra>
// kernel: tpu_custom_call.1
= control target key start
LH: loop header
LB: loop body
LE: loop exit
PB: predicated region body
PF: predicated region fallthrough
CT: control target
= control target key end

     0   :  { %s15647_s0 = inlined_call_operand.hbm [shape: f32[2,22,16,32], index: 0, kind: input, shape index: {}]   ;;  %s15648_s1 = inlined_call_operand.vmem [shape: bf16[32,320], index: 1, kind: input, shape index: {}]   ;;  %s15649_s2 = inlined_call_operand.vmem [shape: f32[1,320], index: 2, kind: input, shape index: {}]   ;;  %s15650_s3 = inlined_call_operand.vmem [shape: bf16[7,128,160], index: 3, kind: input, shape index: {}]   ;;  %s15651_s4 = inlined_call_operand.vmem [shape: f32[1,160], index: 4, kind: input, shape index: {}]   ;;  %s15652_s5 = inlined_call_operand.vmem [shape: bf16[7,160,192], index: 5, kind: input, shape index: {}]   ;;  %s15653_s6 = inlined_call_operand.vmem [shape: f32[1,192], index: 6, kind: input, shape index: {}]   ;;  %s15654_s7 = inlined_call_operand.vmem [shape: bf16[192,32], index: 7, kind: input, shape index: {}]   ;;  %s15655_s8 = inlined_call_operand.vmem [shape: bf16[192,32], index: 8, kind: input, shape index: {}]   ;;  %s15656_s9 = inlined_call_operand.vmem [shape: f32[1,32], index: 9, kind: input, shape index: {}]   ;;  %s15657_s10 = inlined_call_operand.hbm [shape: f32[2,16,16,32], index: 10, kind: output, shape index: {}]  }
   0x1   :  { %15742 = sst [smem:[#allocation116_spill]] %s15656_s9 }
   0x2   :  { %15743 = sst [smem:[#allocation117_spill]] %s15657_s10 }
   0x3   :  { %15 = vsyncpa [#allocation5], 0 }
   0x4   :  { %17 = vsyncpa [#allocation5 + $0x1], 0 }
   0x5   :  { %18 = vsyncpa [#allocation6], 0 }
   0x6   :  { %20 = vsyncpa [#allocation6 + $0x1], 0  ;;  %s10977_s13 = smov 0   ;;  %s10979_s14 = smov 0  }
   0x7   :  { %s10981_s15 = smov 0   ;;  %s10983_s16 = smov 0  }
   0x8   :  { %s10985_s17 = smov 0   ;;  %s10987_s18 = smov 0  }
   0x9   :  { %s10989_s19 = smov 0   ;;  %s10991_s20 = smov 0  }
   0xa   :  { %s10993_s21 = smov 0   ;;  %s10995_s22 = smov 0  }
   0xb   :  { %s10997_s23 = smov 0  }
   0xc LB: > { %15744 = sst [smem:[#allocation10_spill]] %s10879_s15  ;;  %s9096_s24 = sadd.s32 4294967295, %s10911_s23   ;;  %s10911_s23 = sphi %s10997_s23, %s26_s23   ;;  %s10907_s22 = sphi %s10995_s22, %s16244_s22   ;;  %s10903_s21 = sphi %s10993_s21, %s16243_s21   ;;  %s10899_s20 = sphi %s10991_s20, %s16242_s20   ;;  %s10895_s19 = sphi %s10989_s19, %s16241_s19   ;;  %s10891_s18 = sphi %s10987_s18, %s16240_s18   ;;  %s10887_s17 = sphi %s10985_s17, %s16248_s17   ;;  %s10883_s16 = sphi %s10983_s16, %s16247_s16   ;;  %s10879_s15 = sphi %s10981_s15, %s16238_s15   ;;  %s10875_s14 = sphi %s10979_s14, %s16246_s14   ;;  %s10871_s13 = sphi %s10977_s13, %s16245_s13  }
   0xd   : > { %15745 = sst [smem:[#allocation11_spill]] %s10891_s18  ;;  %s9097_s25 = sadd.s32 4294967294, %s10911_s23  }
   0xe   : > { %15746 = sst [smem:[#allocation12_spill]] %s10899_s20  ;;  %s35_s26 = sadd.s32 1, %s10903_s21 }
   0xf   : > { %15747 = sst [smem:[#allocation13_spill]] %s10903_s21  ;;  %s38_s27 = sadd.s32 1, %s10907_s22 }
  0x10   : > { %15748 = sst [smem:[#allocation14_spill]] %s10907_s22  ;;  %p36_p0 = scmp.ge.s32.totalorder %s35_s26, 2 }
  0x11   : > { %s45_s28 = sadd.s32 1, %s10891_s18  ;;  %p52_p1 = scmp.ne.s32.totalorder %s10891_s18, %s10887_s17 }
  0x12   : > { %p53_p2 = scmp.eq.s32.totalorder %s10911_s23, 0  ;;  %s16250_s26 = smov (%p36_p0, %s35_s26), 0 }
  0x13   : > { %15749 = sst [smem:[#allocation15_spill]] %s16250_s26  ;;  %s16252_s27 = smov (!%p36_p0, %s38_s27), %s10907_s22 }
  0x14   : > { %p11041_p3 = por %p53_p2, %p52_p1  ;;  %p58_p4 = scmp.ne.s32.totalorder %s10887_s17, %s10883_s16 }
  0x15   : > { %p40_p5 = scmp.ge.s32.totalorder %s16252_s27, 2  ;;  %p59_p6 = scmp.eq.s32.totalorder %s9096_s24, 0 }
  0x16   : > { %s258_s30 = ssub.s32 %s10903_s21, %s16250_s26  ;;  %s262_s11 = sadd.s32 1, %s10879_s15 }
  0x17   : > { %s16254_s27 = smov (%p40_p5, %s16252_s27), 0  ;;  %p11051_p7 = por %p59_p6, %p58_p4 }
  0x18   : > { %15751 = sst [smem:[#allocation16_spill]] %s16254_s27  ;;  %p272_p8 = scmp.ne.s32.totalorder %s10879_s15, %s10875_s14 }
  0x19   : > { %s42_s10 = ssub.s32 %s10907_s22, %s16254_s27  ;;  %p273_p9 = scmp.eq.s32.totalorder %s9096_s24, 3 }
  0x1a   : > { %p43_p10 = scmp.eq.s32.totalorder %s42_s10, 0  ;;  %s259_s16 = sor.u32 %s258_s30, %s42_s10 }
  0x1b   : > { %p260_p11 = scmp.eq.s32.totalorder %s259_s16, 0  ;;  %p11059_p12 = por %p273_p9, %p272_p8 }
  0x1c   : > { %s11064_s21 = scalar_select %p43_p10, %s10891_s18, %s45_s28  }
  0x1d   : > { %s11067_s20 = scalar_select %p260_p11, %s10879_s15, %s262_s11  }
  0x1e   : > { %15754 = sst [smem:[#allocation17_spill]] %s11064_s21  ;;  %p278_p13 = scmp.ne.s32.totalorder %s10875_s14, %s10871_s13 }
  0x1f   : > { %15755 = sst [smem:[#allocation18_spill]] %s11067_s20  ;;  %p279_p0 = scmp.eq.s32.totalorder %s9097_s25, 3 }
  0x20   : > { %p10128_p1 = scmp.lt.s32.totalorder %s10911_s23, 4  ;;  %s326_s24 = sand.u32 1, %s10891_s18  }
  0x21   : > { %p11072_p2 = por %p279_p0, %p278_p13  ;;  %s10113_s27 = smul.u32 352, %s326_s24 }
  0x22   : > { %s10114_s10 = smul.u32 5632, %s10907_s22  ;;  %p11080_p4 = pnand %p10128_p1, %p11041_p3 }
  0x23   : > { %s330_s21 = scalar_lea.vmem [#allocation4], %s10113_s27  ;;  %p9101_p5 = scmp.ge.s32.totalorder %s10911_s23, 1 }
  0x24   : > { %s336_s11 = scalar_lea.hbm %s15647_s0, %s10114_s10  ;;  %s337_s25 = sshll.u32 %s330_s21, 4  ;;  %s338_s25 = int_to_ptr.vmem [resolvable:$true] %s337_s25 }
  0x25   : > { %s327_s20 = scalar_lea.sflag [#allocation5], %s326_s24  ;;  %p10765_p6 = pneg %p11080_p4 }
  0x26   : > { %s10776_s18 = scalar_lea.vmem %s338_s25, 5632  ;;  %s10913_s29 = smov [#allocation4]  }
  0x27   : > { %p10777_p8 = scmp.ne.s32.totalorder %s338_s25, %s10776_s18  ;;  %s10781_s22 = sshll.u32 %s10913_s29, 4  ;;  %s10782_s22 = int_to_ptr.vmem [resolvable:$false] %s10781_s22 }
  0x28   : > { %s10783_s15 = scalar_lea.vmem %s10782_s22, 11264  ;;  %p10784_p3 = scmp.lt.s32.totalorder %s338_s25, %s10782_s22 }
  0x29   : > { %p10779_p9 = pnand %p10777_p8, %p10765_p6  ;;  %p10785_p11 = scmp.lt.s32.totalorder %s10783_s15, %s10776_s18 }
  0x2b   : > { %p10780_p10 = pneg %p10779_p9  ;;  %p10786_p13 = por %p10785_p11, %p10784_p3 }
  0x2d   : > { %p10787_p0 = pnand %p10786_p13, %p10780_p10 }
  0x2f   : > { %10790 = shalt.err (!%p10787_p0)
}
  0x30   : > { %s10914_s27 = smov 128   ;;  %s10915_s21 = smov 8  }
  0x31   : > { %10123 = dma.hbm_to_vmem [thread:$0]  (!%p11080_p4), %s336_s11, 5632, %s338_s25, %s327_s20, %s10914_s27, %s10914_s27, %s10915_s21  }
  0x32   : > { %p345_p1 = scmp.lt.s32.totalorder %s10911_s23, 5 }
  0x34   : > { %p346_p6 = pnand %p9101_p5, %p345_p1 }
  0x36   : > { %349 = sbr.rel (%p346_p6) target bundleno = 1731 (0x6c3), region = 60 }
  0x3b   : > { %s351_s24 = sand.u32 1, %s10887_s17  }
  0x3c   : > { %s10115_s10 = smul.u32 352, %s351_s24  ;;  %s352_s22 = scalar_lea.sflag [#allocation5], %s351_s24 }
  0x3e   : > { %s355_s15 = scalar_lea.vmem [#allocation4], %s10115_s10 }
  0x3f   : > { %10862 = dma.done.wait (%p11051_p7), %s352_s22, 5632  }
  0x40   : > { %10864 = vsyncadd (%p11051_p7), %s352_s22, 4294961664  ;;  %s389_s18 = sand.u32 1, %s10875_s14   ;;  %v15668_v0 = vmov 0   ;;  %s10007_s30 = sshll.u32 %s10895_s19, 7  ;;  %v10225_v1 = vld [vmem:[%s15648_s1 + $0x1c] ss:$12 sps:$4 sm:$0xff]  }
  0x41   : > { %s11103_s20 = sshll.u32 %s389_s18, 7  ;;  %571 = vmatprep.mubr.bf16.mxu0 %v15668_v0  ;;  %s11107_s16 = scalar_lea.vmem %s355_s15, %s10007_s30 [#allocation4]  ;;  %v10227_v2 = vld [vmem:[%s15648_s1 + $0x18] ss:$12 sps:$4 sm:$0xff]   ;;  %551 = vmatprep.subr.bf16.mxu0 %v10225_v1  ;;  %v10230_v5 = vld [vmem:[%s15648_s1] ss:$12 sps:$4 sm:$0xff]   ;;  %vm496_vm0 = vcmask 261120  }
  0x42   : > { %v10228_v3 = vld [vmem:[%s15648_s1 + $0x4] ss:$12 sps:$4 sm:$0xff]   ;;  %552 = vmatpush1.bf16.msra.mxu0 %v10227_v2  ;;  %v398_v6 = vld [vmem:[%s11107_s16 + $0x8] sm:$0xff]  ;;  %v400_v9 = vld [vmem:[%s11107_s16 + $0x18] sm:$0xff]  ;;  %vm1288_vm1 = vcmask 1043457   ;;  %vm1295_vm6 = vcmask 1041408  }
  0x43   : > { %v397_v4 = vld [vmem:[%s11107_s16] sm:$0xff]  ;;  %553 = vmatprep.subr.bf16.mxu0 %v10228_v3  ;;  %v399_v8 = vld [vmem:[%s11107_s16 + $0x10] sm:$0xff]  ;;  %v402_v15 = vld [vmem:[%s11107_s16 + $0x28] sm:$0xff]  ;;  %vm1289_vm2 = vsmask.f32 7942  ;;  %vm1433_vm9 = vcmask 1042433  }
  0x44   : > { %v425_v7 = vpack.c.bf16 %v398_v6, %v397_v4  ;;  %v10231_v10 = vld [vmem:[%s15648_s1 + $0x20] ss:$12 sps:$4 sm:$0xff]   ;;  %v10232_v11 = vld [vmem:[%s15648_s1 + $0x8] ss:$12 sps:$4 sm:$0xff]   ;;  %v426_v12 = vpack.c.bf16 %v400_v9, %v399_v8  ;;  %v10233_v16 = vld [vmem:[%s15650_s3 + $0xf0] ss:$8 sps:$4 sm:$0xff]  }
  0x45   : > { %10081 = vmatprep.subr.bf16.mxu1 %v10231_v10  ;;  %v401_v13 = vld [vmem:[%s11107_s16 + $0x20] sm:$0xff]  ;;  %v10235_v14 = vld [vmem:[%s15650_s3 + $0xf4] ss:$8 sps:$4 sm:$0xff]   ;;  %v11165_v24 = vld [vmem:[%s11107_s16 + $0x48] sm:$0xff]  ;;  %vm977_vm3 = vsmask.f32 1280 }
  0x46   : > { %10085 = vmatprep.mubr.msk.bf16.mxu1 %vm496_vm0, %v425_v7  ;;  %554 = vmatpush1.bf16.msra.mxu0 %v10230_v5  ;;  %v10238_v17 = vld [vmem:[%s15650_s3 + $0xe4] ss:$8 sps:$4 sm:$0xff]   ;;  %v427_v18 = vpack.c.bf16 %v402_v15, %v401_v13  ;;  %v10236_v19 = vld [vmem:[%s15650_s3 + $0xe0] ss:$8 sps:$4 sm:$0xff]   ;;  %v10241_v20 = vld [vmem:[%s15650_s3 + $0xd4] ss:$8 sps:$4 sm:$0xff]  }
  0x47   : > { %10082 = vmatpush3.bf16.msra.mxu1 %v10231_v10  ;;  %v11155_v21 = vld [vmem:[%s11107_s16 + $0x30] sm:$0xff]  ;;  %v11158_v22 = vld [vmem:[%s11107_s16 + $0x38] sm:$0xff]  ;;  %v11162_v23 = vld [vmem:[%s11107_s16 + $0x40] sm:$0xff]  ;;  %15761 = vst [vmem:[#allocation22_spill] sm:$0xff] %v11165_v24  ;;  %vm978_vm5 = vsmask.f32 5392 }
  0x48   : > { %10083 = vmatprep.subr.bf16.mxu1 %v10232_v11  ;;  %15758 = vst [vmem:[#allocation19_spill] sm:$0xff] %v11155_v21  ;;  %15759 = vst [vmem:[#allocation20_spill] sm:$0xff] %v11158_v22  ;;  %v10239_v25 = vld [vmem:[%s15650_s3 + $0xd0] ss:$8 sps:$4 sm:$0xff]   ;;  %v428_v26 = vpack.c.bf16 %v11158_v22, %v11155_v21  ;;  %v429_v27 = vpack.c.bf16 %v11165_v24, %v11162_v23  ;;  %v11185_v30 = vld [vmem:[%s11107_s16 + $0x60] sm:$0xff]  ;;  %s14190_s22 = scalar_lea.vmem [#allocation7], %s11103_s20 }
  0x49   : > { %9111 = vmatmul.mubr.msk.bf16.vlgmr.msra.gmra.mxu0 %vm496_vm0, %v425_v7  ;;  %15760 = vst [vmem:[#allocation21_spill] sm:$0xff] %v11162_v23  ;;  %v11178_v28 = vld [vmem:[%s11107_s16 + $0x50] sm:$0xff]  ;;  %v11181_v29 = vld [vmem:[%s11107_s16 + $0x58] sm:$0xff]  ;;  %15764 = vst [vmem:[#allocation25_spill] sm:$0xff] %v11185_v30  ;;  %vm1535_vm11 = vsmask.f32 3328 }
  0x4a   : > { %579 = vmatprep.mubr.bf16.mxu0 %v15668_v0  ;;  %15762 = vst [vmem:[#allocation23_spill] sm:$0xff] %v11178_v28  ;;  %15763 = vst [vmem:[#allocation24_spill] sm:$0xff] %v11181_v29  ;;  %v11188_v31 = vld [vmem:[%s11107_s16 + $0x68] sm:$0xff]  ;;  %v430_v32 = vpack.c.bf16 %v11181_v29, %v11178_v28  ;;  %v11198_v34 = vld [vmem:[%s11107_s16 + $0x70] sm:$0xff]  ;;  %vm1536_vm12 = vsmask.f32 7440 }
  0x4b   : > { %10084 = vmatpush3.bf16.msra.mxu1 %v10232_v11  ;;  %15765 = vst [vmem:[#allocation26_spill] sm:$0xff] %v11188_v31  ;;  %v431_v33 = vpack.c.bf16 %v11188_v31, %v11185_v30  ;;  %15766 = vst [vmem:[#allocation27_spill] sm:$0xff] %v11198_v34  ;;  %v11201_v35 = vld [vmem:[%s11107_s16 + $0x78] sm:$0xff]  ;;  %v11205_v36 = vld [vmem:[%s11107_s16 + $0x80] sm:$0xff]  ;;  %vm3076_vm14 = vsmask.f32 2304 }
  0x4c   : > { %2027 = vmatprep.subr.bf16.mxu1 %v10235_v14  ;;  %15767 = vst [vmem:[#allocation28_spill] sm:$0xff] %v11201_v35  ;;  %15768 = vst [vmem:[#allocation29_spill] sm:$0xff] %v11205_v36  ;;  %v11208_v37 = vld [vmem:[%s11107_s16 + $0x88] sm:$0xff]  ;;  %v432_v38 = vpack.c.bf16 %v11201_v35, %v11198_v34  ;;  %v11218_v40 = vld [vmem:[%s11107_s16 + $0x90] sm:$0xff]  ;;  %vm3077_vm15 = vsmask.f32 6416 }
  0x4d   : > { %15769 = vst [vmem:[#allocation30_spill] sm:$0xff] %v11208_v37  ;;  %v433_v39 = vpack.c.bf16 %v11208_v37, %v11205_v36  ;;  %15770 = vst [vmem:[#allocation31_spill] sm:$0xff] %v11218_v40  ;;  %v11221_v41 = vld [vmem:[%s11107_s16 + $0x98] sm:$0xff]  ;;  %v11225_v42 = vld [vmem:[%s11107_s16 + $0xa0] sm:$0xff]  ;;  %v15798_v36 = vmov 0   ;;  %p9543_p7 = scmp.ne.s32.totalorder %s10895_s19, 0 }
  0x4e   : > { %10086 = vmatmul.mubr.msk.bf16.vlgmr.msra.gmra.mxu1 %vm496_vm0, %v426_v12  ;;  %15771 = vst [vmem:[#allocation32_spill] sm:$0xff] %v11221_v41  ;;  %15772 = vst [vmem:[#allocation33_spill] sm:$0xff] %v11225_v42  ;;  %v11228_v43 = vld [vmem:[%s11107_s16 + $0xa8] sm:$0xff]  ;;  %v434_v44 = vpack.c.bf16 %v11221_v41, %v11218_v40  ;;  %v419_v46 = vld [vmem:[%s11107_s16 + $0xb0] sm:$0xff] }
  0x4f   : > { %2028 = vmatpush1.bf16.msra.mxu1 %v10233_v16  ;;  %10089 = vmatprep.mubr.msk.bf16.mxu1 %vm496_vm0, %v427_v18  ;;  %15773 = vst [vmem:[#allocation34_spill] sm:$0xff] %v11228_v43  ;;  %v435_v45 = vpack.c.bf16 %v11228_v43, %v11225_v42  ;;  %v420_v47 = vld [vmem:[%s11107_s16 + $0xb8] sm:$0xff]  ;;  %v421_v48 = vld [vmem:[%s11107_s16 + $0xc0] sm:$0xff]  ;;  %v422_v49 = vld [vmem:[%s11107_s16 + $0xc8] sm:$0xff] }
  0x50   : > { %2029 = vmatprep.subr.bf16.mxu1 %v10238_v17  ;;  %v436_v50 = vpack.c.bf16 %v420_v47, %v419_v46  ;;  %v437_v51 = vpack.c.bf16 %v422_v49, %v421_v48  ;;  %v423_v52 = vld [vmem:[%s11107_s16 + $0xd0] sm:$0xff]  ;;  %v424_v53 = vld [vmem:[%s11107_s16 + $0xd8] sm:$0xff]  ;;  %v10247_v57 = vld [vmem:[%s15650_s3 + $0x64] ss:$8 sps:$4 sm:$0xff]  }
  0x51   : > { %9112 = vmatmul.mubr.msk.bf16.gmra.mxu0 %vm496_vm0, %v426_v12  ;;  %v438_v54 = vpack.c.bf16 %v424_v53, %v423_v52  ;;  %v10244_v55 = vld [vmem:[%s15650_s3 + $0x74] ss:$8 sps:$4 sm:$0xff]   ;;  %v10242_v56 = vld [vmem:[%s15650_s3 + $0x70] ss:$8 sps:$4 sm:$0xff]   ;;  %v10245_v58 = vld [vmem:[%s15650_s3 + $0x60] ss:$8 sps:$4 sm:$0xff]  }
  0x52   : > { %587 = vmatprep.mubr.bf16.mxu0 %v15668_v0  ;;  %2364 = vmatprep.subr.bf16.mxu0 %v10244_v55  ;;  %v10253_v59 = vld [vmem:[%s15650_s3 + $0x54] ss:$8 sps:$4 sm:$0xff]   ;;  %v10251_v60 = vld [vmem:[%s15650_s3 + $0x50] ss:$8 sps:$4 sm:$0xff]   ;;  %v10259_v61 = vld [vmem:[%s15650_s3 + $0x44] ss:$8 sps:$4 sm:$0xff]  }
  0x53   : > { %2030 = vmatpush1.bf16.msra.mxu1 %v10236_v19  ;;  %2365 = vmatpush1.bf16.msra.mxu0 %v10242_v56  ;;  %v10257_v62 = vld [vmem:[%s15650_s3 + $0x40] ss:$8 sps:$4 sm:$0xff]   ;;  %v10262_v63 = vld [vmem:[%s15650_s3 + $0x34] ss:$8 sps:$4 sm:$0xff]   ;;  %v10260_v1 = vld [vmem:[%s15650_s3 + $0x30] ss:$8 sps:$4 sm:$0xff]   ;;  %v449_v19 = vlaneseq }
  0x54   : > { %2031 = vmatprep.subr.bf16.mxu1 %v10241_v20  ;;  %2366 = vmatprep.subr.bf16.mxu0 %v10247_v57  ;;  %v10250_v2 = vld [vmem:[%s15650_s3 + $0xc4] ss:$8 sps:$4 sm:$0xff]   ;;  %v10248_v3 = vld [vmem:[%s15650_s3 + $0xc0] ss:$8 sps:$4 sm:$0xff]   ;;  %v10271_v6 = vld [vmem:[%s15650_s3 + $0x14] ss:$8 sps:$4 sm:$0xff]  }
  0x55   : > { %v10268_v4 = vld [vmem:[%s15650_s3 + $0x24] ss:$8 sps:$4 sm:$0xff]   ;;  %v10266_v5 = vld [vmem:[%s15650_s3 + $0x20] ss:$8 sps:$4 sm:$0xff]   ;;  %v10256_v7 = vld [vmem:[%s15650_s3 + $0xb4] ss:$8 sps:$4 sm:$0xff]  }
  0x56   : > { %10090 = vmatmul.mubr.msk.bf16.gmra.mxu1 %vm496_vm0, %v428_v26  ;;  %v10269_v8 = vld [vmem:[%s15650_s3 + $0x10] ss:$8 sps:$4 sm:$0xff]   ;;  %v10277_v10 = vld [vmem:[%s15650_s3 + $0x4] ss:$8 sps:$4 sm:$0xff]   ;;  %v10275_v12 = vld [vmem:[%s15650_s3] ss:$8 sps:$4 sm:$0xff]  }
  0x57   : > { %10093 = vmatprep.mubr.msk.bf16.mxu1 %vm496_vm0, %v429_v27  ;;  %2032 = vmatpush1.bf16.msra.mxu1 %v10239_v25  ;;  %v10254_v9 = vld [vmem:[%s15650_s3 + $0xb0] ss:$8 sps:$4 sm:$0xff]   ;;  %v10265_v11 = vld [vmem:[%s15650_s3 + $0xa4] ss:$8 sps:$4 sm:$0xff]   ;;  %v10263_v13 = vld [vmem:[%s15650_s3 + $0xa0] ss:$8 sps:$4 sm:$0xff]  }
  0x58   : > { %2367 = vmatpush1.bf16.msra.mxu0 %v10245_v58  ;;  %2033 = vmatprep.subr.bf16.mxu1 %v10250_v2  ;;  %v10274_v14 = vld [vmem:[%s15650_s3 + $0x94] ss:$8 sps:$4 sm:$0xff]   ;;  %v10272_v15 = vld [vmem:[%s15650_s3 + $0x90] ss:$8 sps:$4 sm:$0xff]   ;;  %v10281_v16 = vld [vmem:[%s15650_s3 + $0x84] ss:$8 sps:$4 sm:$0xff]  }
  0x59   : > { %9113 = vmatmul.mubr.msk.bf16.gmra.mxu0 %vm496_vm0, %v427_v18  ;;  %2368 = vmatprep.subr.bf16.mxu0 %v10253_v59  ;;  %v10279_v17 = vld [vmem:[%s15650_s3 + $0x80] ss:$8 sps:$4 sm:$0xff]   ;;  %v10285_v18 = vld [vmem:[%s15650_s3 + $0x174] ss:$8 sps:$4 sm:$0xff]   ;;  %v11345_v20 = vshrl.u32 %v449_v19, 7  ;;  %vm11363_vm4 = vmand %vm1288_vm1, %vm1289_vm2 }
  0x5a   : > { %595 = vmatprep.mubr.bf16.mxu0 %v15668_v0  ;;  %v1291_v57 = vld [vmem:[#allocation2] sm:$0xe]  ;;  %vm11370_vm7 = vmor %vm977_vm3, %vm978_vm5  ;;  %v1342_v30 = vld [vmem:[#allocation2 + $0x54] sm:$0xe]  ;;  %vm3825_vm5 = vcmask 1045508  }
  0x5b   : > { %2034 = vmatpush1.bf16.msra.mxu1 %v10248_v3  ;;  %v11348_v25 = vsub.s32 0, %v11345_v20  ;;  %vm11377_vm8 = vmand %vm1295_vm6, %vm977_vm3  ;;  %v1346_v24 = vld [vmem:[#allocation2 + $0x5c] sm:$0x3]  ;;  %vm2580_vm3 = vcmask 1046532  }
  0x5c   : > { %2369 = vmatpush1.bf16.msra.mxu0 %v10251_v60  ;;  %2035 = vmatprep.subr.bf16.mxu1 %v10256_v7  ;;  %vm11399_vm10 = vmand %vm1433_vm9, %vm1289_vm2  ;;  %vm2579_vm2 = vcmask 1042432   ;;  %vm5068_vm9 = vcmask 1044484  }
  0x5d   : > { %2370 = vmatprep.subr.bf16.mxu0 %v10259_v61  ;;  %15774 = vst [vmem:[#allocation35_spill] sm:$0xff] %v11348_v25  ;;  %vm11513_vm13 = vmor %vm1535_vm11, %vm1536_vm12  ;;  %vm5843_vm11 = vcmask 261124  }
  0x5e   : > { %10094 = vmatmul.mubr.msk.bf16.gmra.mxu1 %vm496_vm0, %v430_v32  ;;  %vm12129_vm1 = vmor %vm3076_vm14, %vm3077_vm15 }
  0x5f   : > { %10097 = vmatprep.mubr.msk.bf16.mxu1 %vm496_vm0, %v431_v33  ;;  %2036 = vmatpush1.bf16.msra.mxu1 %v10254_v9 }
  0x60   : > { %2371 = vmatpush1.bf16.msra.mxu0 %v10257_v62  ;;  %2037 = vmatprep.subr.bf16.mxu1 %v10265_v11 }
  0x61   : > { %9114 = vmatmul.mubr.msk.bf16.gmra.mxu0 %vm496_vm0, %v428_v26  ;;  %2372 = vmatprep.subr.bf16.mxu0 %v10262_v63  ;;  %v11353_v26 = vld [vmem:[%s15649_s2] sm:$0x7] }
  0x62   : > { %605 = vmatprep.mubr.bf16.mxu0 %v15668_v0 }
  0x63   : > { %2038 = vmatpush1.bf16.msra.mxu1 %v10263_v13  ;;  %v1297_v13 = vld [vmem:[#allocation2 + $0x8] sm:$0x3] }
  0x64   : > { %2373 = vmatpush1.bf16.msra.mxu0 %v10260_v1  ;;  %2039 = vmatprep.subr.bf16.mxu1 %v10274_v14 }
  0x65   : > { %2374 = vmatprep.subr.bf16.mxu0 %v10268_v4 }
  0x66   : > { %10098 = vmatmul.mubr.msk.bf16.gmra.mxu1 %vm496_vm0, %v432_v38 }
  0x67   : > { %10101 = vmatprep.mubr.msk.bf16.mxu1 %vm496_vm0, %v433_v39  ;;  %2040 = vmatpush1.bf16.msra.mxu1 %v10272_v15 }
  0x68   : > { %2375 = vmatpush1.bf16.msra.mxu0 %v10266_v5  ;;  %2041 = vmatprep.subr.bf16.mxu1 %v10281_v16  ;;  %v15777_v5 = vmov 0 }
  0x69   : > { %9115 = vmatmul.mubr.msk.bf16.gmra.mxu0 %vm496_vm0, %v429_v27  ;;  %2376 = vmatprep.subr.bf16.mxu0 %v10271_v6  ;;  %v11357_v27 = vrot.slane %v11353_v26, %v11348_v25  ;;  %v15778_v5 = vsel %vm11370_vm7, 4294967295, %v15777_v5 }
  0x6a   : > { %615 = vmatprep.mubr.bf16.mxu0 %v15668_v0  ;;  %15779 = vst [vmem:[#allocation36_spill] sm:$0xff] %v15778_v5 }
  0x6b   : > { %2042 = vmatpush1.bf16.msra.mxu1 %v10279_v17 }
  0x6c   : > { %2377 = vmatpush1.bf16.msra.mxu0 %v10269_v8  ;;  %2833 = vmatprep.subr.bf16.mxu1 %v10285_v18 }
  0x6d   : > { %2378 = vmatprep.subr.bf16.mxu0 %v10277_v10 }
  0x6e   : > { %10102 = vmatmul.mubr.msk.bf16.gmra.mxu1 %vm496_vm0, %v434_v44 }
  0x6f   : > { %10105 = vmatprep.mubr.msk.bf16.mxu1 %vm496_vm0, %v435_v45 }
  0x70   : > { %2379 = vmatpush1.bf16.msra.mxu0 %v10275_v12 }
  0x71   : > { %9116 = vmatmul.mubr.msk.bf16.gmra.mxu0 %vm496_vm0, %v430_v32 }
  0x72   : > { %625 = vmatprep.mubr.bf16.mxu0 %v15668_v0 }
  0x76   : > { %10106 = vmatmul.mubr.msk.bf16.gmra.mxu1 %vm496_vm0, %v436_v50 }
  0x77   : > { %10109 = vmatprep.mubr.msk.bf16.mxu1 %vm496_vm0, %v437_v51 }
  0x79   : > { %9117 = vmatmul.mubr.msk.bf16.gmra.mxu0 %vm496_vm0, %v431_v33 }
  0x7a   : > { %635 = vmatprep.mubr.bf16.mxu0 %v15668_v0 }
  0x7e   : > { %10110 = vmatmul.mubr.msk.bf16.gmra.mxu1 %vm496_vm0, %v438_v54 }
  0x7f   : > { %2059 = vmatprep.mubr.bf16.mxu1 %v15668_v0 }
  0x81   : > { %9118 = vmatmul.mubr.msk.bf16.gmra.mxu0 %vm496_vm0, %v432_v38 }
  0x82   : > { %645 = vmatprep.mubr.bf16.mxu0 %v15668_v0 }
  0x89   : > { %9119 = vmatmul.mubr.msk.bf16.gmra.mxu0 %vm496_vm0, %v433_v39 }
  0x8a   : > { %655 = vmatprep.mubr.bf16.mxu0 %v15668_v0 }
  0x91   : > { %9120 = vmatmul.mubr.msk.bf16.gmra.mxu0 %vm496_vm0, %v434_v44 }
  0x92   : > { %665 = vmatprep.mubr.bf16.mxu0 %v15668_v0 }
  0x99   : > { %9121 = vmatmul.mubr.msk.bf16.gmra.mxu0 %vm496_vm0, %v435_v45 }
  0x9a   : > { %675 = vmatprep.mubr.bf16.mxu0 %v15668_v0 }
  0xa1   : > { %9122 = vmatmul.mubr.msk.bf16.gmra.mxu0 %vm496_vm0, %v436_v50 }
  0xa2   : > { %683 = vmatprep.mubr.bf16.mxu0 %v15668_v0 }
  0xa9   : > { %9123 = vmatmul.mubr.msk.bf16.gmra.mxu0 %vm496_vm0, %v437_v51 }
  0xaa   : > { %691 = vmatprep.mubr.bf16.mxu0 %v15668_v0 }
  0xb1   : > { %9124 = vmatmul.mubr.msk.bf16.gmra.mxu0 %vm496_vm0, %v438_v54 }
  0xb2   : > { %2396 = vmatprep.mubr.bf16.mxu0 %v15668_v0 }
 0x109   : > { %v573_v32 = vpop.f32.mrf.mxu0 }
 0x10a   : > { %v574_v33 = vadd.f32 %v573_v32, %v11357_v27 }
 0x10b   : > { %v575_v38 = vpop.f32.mrf.mxu0 }
 0x10c   : > { %v833_v39 = vmax.f32 %v574_v33, 0.0 }
 0x10d   : > { %v576_v44 = vpop.f32.mrf.mxu0 }
 0x10e   : > { %v10008_v45 = vpack.c.bf16 %v833_v39, %v833_v39  ;;  %v577_v46 = vadd.f32 %v576_v44, %v11357_v27  ;;  %v10087_v1 = vpop.f32.mrf.mxu1 }
 0x10f   : > { %v578_v47 = vpop.f32.mrf.mxu0 }
 0x110   : > { %v981_v48 = vshrl.u32 %v10008_v45, 16  ;;  %v984_v49 = vshll.u32 %v10008_v45, 16  ;;  %v834_v50 = vmax.f32 %v577_v46, 0.0  ;;  %v734_v9 = vpop.f32.mrf.mxu1 }
 0x111   : > { %v581_v51 = vpop.f32.mrf.mxu0 }
 0x112   : > { %v983_v52 = vrot.slane %v981_v48, 6  ;;  %v986_v53 = vrot.slane %v984_v49, 7  ;;  %v10009_v54 = vpack.c.bf16 %v834_v50, %v834_v50  ;;  %v582_v55 = vadd.f32 %v581_v51, %v11357_v27  ;;  %v10088_v18 = vpop.f32.mrf.mxu1  ;;  %v1300_v48 = vld [vmem:[#allocation2 + $0xc] sm:$0xe] }
 0x113   : > { %v583_v58 = vpop.f32.mrf.mxu0 }
 0x114   : > { %v987_v59 = vor.u32 %v986_v53, %v983_v52  ;;  %v990_v60 = vshrl.u32 %v10009_v54, 16  ;;  %v993_v61 = vshll.u32 %v10009_v54, 16  ;;  %v835_v62 = vmax.f32 %v582_v55, 0.0  ;;  %v736_v46 = vpop.f32.mrf.mxu1 }
 0x115   : > { %v584_v63 = vpop.f32.mrf.mxu0  ;;  %v11387_v54 = vsub.s32 1, %v11345_v20 }
 0x116   : > { %v1292_v2 = vsel %vm11363_vm4, %v987_v59, %v1291_v57  ;;  %v992_v3 = vrot.slane %v990_v60, 6  ;;  %v995_v4 = vrot.slane %v993_v61, 7  ;;  %v10010_v6 = vpack.c.bf16 %v835_v62, %v835_v62 }
 0x117   : > { %1293 = vst [vmem:[#allocation2] sm:$0xe] %v1292_v2  ;;  %v585_v7 = vadd.f32 %v584_v63, %v11357_v27  ;;  %v586_v8 = vpop.f32.mrf.mxu0  ;;  %v988_v10 = vrot.slane %v987_v59, 4  ;;  %15782 = vst [vmem:[#allocation37_spill] sm:$0xff] %v11387_v54 }
 0x118   : > { %v996_v11 = vor.u32 %v995_v4, %v992_v3  ;;  %v1000_v14 = vshrl.u32 %v10010_v6, 16  ;;  %v1003_v15 = vshll.u32 %v10010_v6, 16 }
 0x119   : > { %v836_v16 = vmax.f32 %v585_v7, 0.0  ;;  %v589_v17 = vpop.f32.mrf.mxu0  ;;  %v11396_v7 = vrot.slane %v11353_v26, %v11387_v54 }
 0x11a   : > { %v997_v19 = vsel %vm11370_vm7, %v988_v10, %v996_v11  ;;  %v998_v32 = vrot.slane %v996_v11, 4  ;;  %v590_v33 = vadd.f32 %v589_v17, %v11357_v27  ;;  %v1002_v38 = vrot.slane %v1000_v14, 6 }
 0x11b   : > { %1294 = vst [vmem:[#allocation2 + $0x4] sm:$0xf] %v997_v19  ;;  %v1005_v39 = vrot.slane %v1003_v15, 7  ;;  %v10011_v44 = vpack.c.bf16 %v836_v16, %v836_v16  ;;  %v591_v45 = vpop.f32.mrf.mxu0  ;;  %v1304_v15 = vld [vmem:[#allocation2 + $0x14] sm:$0x3] }
 0x11c   : > { %v1298_v47 = vsel %vm11377_vm8, %v998_v32, %v1297_v13  ;;  %v837_v49 = vmax.f32 %v590_v33, 0.0  ;;  %v1307_v16 = vld [vmem:[#allocation2 + $0x18] sm:$0xe] }
 0x11d   : > { %1299 = vst [vmem:[#allocation2 + $0x8] sm:$0x3] %v1298_v47  ;;  %v1006_v50 = vor.u32 %v1005_v39, %v1002_v38  ;;  %v1009_v51 = vshrl.u32 %v10011_v44, 16  ;;  %v1012_v52 = vshll.u32 %v10011_v44, 16  ;;  %v592_v53 = vpop.f32.mrf.mxu0 }
 0x11e   : > { %v1391_v55 = vld [vmem:[#allocation2] sm:$0x3]  ;;  %v10012_v57 = vpack.c.bf16 %v837_v49, %v837_v49  ;;  %v593_v58 = vadd.f32 %v592_v53, %v11357_v27 }
 0x11f   : > { %v1392_v59 = vsel %vm11377_vm8, 0, %v1391_v55  ;;  %v1301_v60 = vsel %vm11363_vm4, %v1006_v50, %v1300_v48  ;;  %v1011_v61 = vrot.slane %v1009_v51, 6  ;;  %v594_v62 = vpop.f32.mrf.mxu0  ;;  %v1014_v63 = vrot.slane %v1012_v52, 7  ;;  %v10312_v55 = vld [vmem:[%s15650_s3 + $0x1f4] ss:$8 sps:$4 sm:$0xff]  }
 0x120   : > { %1393 = vst [vmem:[#allocation2] sm:$0x3] %v1392_v59  ;;  %1302 = vst [vmem:[#allocation2 + $0xc] sm:$0xe] %v1301_v60  ;;  %v1019_v1 = vshrl.u32 %v10012_v57, 16  ;;  %v1022_v2 = vshll.u32 %v10012_v57, 16  ;;  %3554 = vmatprep.subr.bf16.mxu0 %v10312_v55 }
 0x121   : > { %v838_v3 = vmax.f32 %v593_v58, 0.0  ;;  %v1007_v4 = vrot.slane %v1006_v50, 4  ;;  %v597_v6 = vpop.f32.mrf.mxu0  ;;  %v1015_v9 = vor.u32 %v1014_v63, %v1011_v61 }
 0x122   : > { %v1021_v10 = vrot.slane %v1019_v1, 6  ;;  %v1024_v11 = vrot.slane %v1022_v2, 7  ;;  %v11403_v14 = vld [vmem:[#allocation2 + $0x4] sm:$0xf]  ;;  %v598_v17 = vadd.f32 %v597_v6, %v11357_v27 }
 0x123   : > { %v10013_v13 = vpack.c.bf16 %v838_v3, %v838_v3  ;;  %v599_v18 = vpop.f32.mrf.mxu0  ;;  %v11407_v19 = vshll.u32 %v11403_v14, 16  ;;  %v11410_v26 = vshrl.u32 %v11403_v14, 16  ;;  %v1016_v33 = vsel %vm11370_vm7, %v1007_v4, %v1015_v9 }
 0x124   : > { %v1435_v32 = vld [vmem:[#allocation2 + $0x8] sm:$0x6]  ;;  %v1017_v38 = vrot.slane %v1015_v9, 4  ;;  %v1025_v39 = vor.u32 %v1024_v11, %v1021_v10  ;;  %1303 = vst [vmem:[#allocation2 + $0x10] sm:$0xf] %v1016_v33  ;;  %v839_v47 = vmax.f32 %v598_v17, 0.0  ;;  %v11417_v48 = vadd.f32 %v599_v18, %v11396_v7 }
 0x125   : > { %15785 = vst [vmem:[#allocation38_spill] sm:$0xff] %v11407_v19  ;;  %15786 = vst [vmem:[#allocation39_spill] sm:$0xff] %v11410_v26  ;;  %v1028_v44 = vshrl.u32 %v10013_v13, 16  ;;  %v1436_v45 = vsel %vm11399_vm10, 0, %v1435_v32  ;;  %v1031_v46 = vshll.u32 %v10013_v13, 16  ;;  %v601_v49 = vpop.f32.mrf.mxu0 }
 0x126   : > { %15787 = vst [vmem:[#allocation40_spill] sm:$0xff] %v11417_v48  ;;  %1437 = vst [vmem:[#allocation2 + $0x8] sm:$0x6] %v1436_v45  ;;  %v1305_v50 = vsel %vm11377_vm8, %v1017_v38, %v1304_v15  ;;  %v1026_v51 = vrot.slane %v1025_v39, 4  ;;  %v1308_v52 = vsel %vm11363_vm4, %v1025_v39, %v1307_v16  ;;  %v10014_v59 = vpack.c.bf16 %v839_v47, %v839_v47  ;;  %v1311_v15 = vld [vmem:[#allocation2 + $0x20] sm:$0x3] }
 0x127   : > { %v1030_v53 = vrot.slane %v1028_v44, 6  ;;  %v1394_v57 = vld [vmem:[#allocation2 + $0xc] sm:$0x3]  ;;  %1306 = vst [vmem:[#allocation2 + $0x14] sm:$0x3] %v1305_v50  ;;  %v1033_v58 = vrot.slane %v1031_v46, 7  ;;  %v602_v61 = vadd.f32 %v601_v49, %v11357_v27  ;;  %v603_v62 = vpop.f32.mrf.mxu0 }
 0x128   : > { %1309 = vst [vmem:[#allocation2 + $0x18] sm:$0xe] %v1308_v52  ;;  %v1477_v63 = vld [vmem:[#allocation2] sm:$0xf]  ;;  %v1395_v1 = vsel %vm11377_vm8, 0, %v1394_v57  ;;  %v11431_v2 = vadd.f32 %v603_v62, %v11396_v7  ;;  %v1038_v9 = vshrl.u32 %v10014_v59, 16 }
 0x129   : > { %v1539_v3 = vshrl.u32 %v1477_v63, 16  ;;  %v1542_v4 = vshll.u32 %v1477_v63, 16  ;;  %1396 = vst [vmem:[#allocation2 + $0xc] sm:$0x3] %v1395_v1  ;;  %v1034_v6 = vor.u32 %v1033_v58, %v1030_v53  ;;  %v1041_v10 = vshll.u32 %v10014_v59, 16  ;;  %v607_v13 = vpop.f32.mrf.mxu0 }
 0x12a   : > { %15788 = vst [vmem:[#allocation41_spill] sm:$0xff] %v11431_v2  ;;  %v842_v11 = vmax.f32 %v602_v61, 0.0  ;;  %v608_v17 = vadd.f32 %v607_v13, %v11357_v27  ;;  %v1040_v39 = vrot.slane %v1038_v9, 6  ;;  %v10310_v46 = vld [vmem:[%s15650_s3 + $0x1f0] ss:$8 sps:$4 sm:$0xff]   ;;  %v9213_v52 = vcombine.low %v1477_v63, %v11403_v14 }
 0x12b   : > { %v11435_v18 = vrot.slane %v1539_v3, 4  ;;  %v11437_v32 = vrot.slane %v1542_v4, 5  ;;  %v1035_v33 = vsel %vm11370_vm7, %v1026_v51, %v1034_v6  ;;  %v1036_v38 = vrot.slane %v1034_v6, 4  ;;  %v609_v45 = vpop.f32.mrf.mxu0  ;;  %v1314_v47 = vld [vmem:[#allocation2 + $0x24] sm:$0xe] }
 0x12c   : > { %v1043_v44 = vrot.slane %v1041_v10, 7  ;;  %1310 = vst [vmem:[#allocation2 + $0x1c] sm:$0xf] %v1035_v33  ;;  %v10015_v49 = vpack.c.bf16 %v842_v11, %v842_v11  ;;  %v845_v50 = vmax.f32 %v608_v17, 0.0  ;;  %v11446_v53 = vadd.f32 %v609_v45, %v11396_v7  ;;  %v10315_v51 = vld [vmem:[%s15650_s3 + $0x1e4] ss:$8 sps:$4 sm:$0xff]   ;;  %2397 = vmatmul.mubr.bf16.vlgmr.msra.gmra.mxu0 %v9213_v52 }
 0x12d   : > { %v1312_v55 = vsel %vm11377_vm8, %v1036_v38, %v1311_v15  ;;  %v611_v58 = vpop.f32.mrf.mxu0  ;;  %v1545_v59 = vor.u32 %v11437_v32, %v11435_v18  ;;  %v1550_v61 = vrot.slane %v11407_v19, 5  ;;  %v10313_v14 = vld [vmem:[%s15650_s3 + $0x1e0] ss:$8 sps:$4 sm:$0xff]   ;;  %2406 = vmatprep.mubr.bf16.mxu0 %v15668_v0  ;;  %3555 = vmatpush1.bf16.msra.mxu0 %v10310_v46  ;;  %v10319_v17 = vld [vmem:[%s15650_s3 + $0x1d4] ss:$8 sps:$4 sm:$0xff]  }
 0x12e   : > { %15789 = vst [vmem:[#allocation42_spill] sm:$0xff] %v11446_v53  ;;  %v1044_v57 = vor.u32 %v1043_v44, %v1040_v39  ;;  %v1438_v62 = vld [vmem:[#allocation2 + $0x14] sm:$0x6]  ;;  %1313 = vst [vmem:[#allocation2 + $0x20] sm:$0x3] %v1312_v55  ;;  %v1047_v1 = vshrl.u32 %v10015_v49, 16  ;;  %v10016_v4 = vpack.c.bf16 %v845_v50, %v845_v50  ;;  %v612_v6 = vadd.f32 %v611_v58, %v11357_v27 }
 0x12f   : > { %v1397_v63 = vld [vmem:[#allocation2 + $0x18] sm:$0x3]  ;;  %v1050_v3 = vshll.u32 %v10015_v49, 16  ;;  %v1439_v9 = vsel %vm11399_vm10, 0, %v1438_v62  ;;  %v613_v15 = vpop.f32.mrf.mxu0  ;;  %3556 = vmatprep.subr.bf16.mxu0 %v10315_v51 }
 0x130   : > { %v1398_v10 = vsel %vm11377_vm8, 0, %v1397_v63  ;;  %v1045_v11 = vrot.slane %v1044_v57, 4  ;;  %v1315_v13 = vsel %vm11363_vm4, %v1044_v57, %v1314_v47  ;;  %1440 = vst [vmem:[#allocation2 + $0x14] sm:$0x6] %v1439_v9  ;;  %v1049_v33 = vrot.slane %v1047_v1, 6 }
 0x131   : > { %1399 = vst [vmem:[#allocation2 + $0x18] sm:$0x3] %v1398_v10  ;;  %1316 = vst [vmem:[#allocation2 + $0x24] sm:$0xe] %v1315_v13  ;;  %v1052_v38 = vrot.slane %v1050_v3, 7  ;;  %v1057_v39 = vshrl.u32 %v10016_v4, 16  ;;  %v11472_v50 = vadd.f32 %v613_v15, %v11396_v7  ;;  %v617_v46 = vpop.f32.mrf.mxu0  ;;  %3557 = vmatpush1.bf16.msra.mxu0 %v10313_v14 }
 0x132   : > { %v1060_v44 = vshll.u32 %v10016_v4, 16  ;;  %v1479_v45 = vld [vmem:[#allocation2 + $0xc] sm:$0xf]  ;;  %v848_v47 = vmax.f32 %v612_v6, 0.0  ;;  %v1321_v63 = vld [vmem:[#allocation2 + $0x30] sm:$0xe]  ;;  %v618_v1 = vadd.f32 %v617_v46, %v11357_v27  ;;  %3558 = vmatprep.subr.bf16.mxu0 %v10319_v17 }
 0x133   : > { %15790 = vst [vmem:[#allocation43_spill] sm:$0xff] %v11472_v50  ;;  %v1563_v52 = vshrl.u32 %v1479_v45, 16  ;;  %v1053_v55 = vor.u32 %v1052_v38, %v1049_v33  ;;  %v1318_v57 = vld [vmem:[#allocation2 + $0x2c] sm:$0x3]  ;;  %v1059_v58 = vrot.slane %v1057_v39, 6  ;;  %v1566_v6 = vshll.u32 %v1479_v45, 16  ;;  %v619_v10 = vpop.f32.mrf.mxu0 }
 0x134   : > { %v1062_v62 = vrot.slane %v1060_v44, 7  ;;  %v10017_v3 = vpack.c.bf16 %v848_v47, %v848_v47  ;;  %v11476_v9 = vld [vmem:[#allocation2 + $0x10] sm:$0xf]  ;;  %v1521_v13 = vld [vmem:[#allocation2 + $0x8] sm:$0x1]  ;;  %v851_v39 = vmax.f32 %v618_v1, 0.0 }
 0x135   : > { %v11478_v51 = vrot.slane %v1563_v52, 4  ;;  %v1054_v15 = vsel %vm11370_vm7, %v1045_v11, %v1053_v55  ;;  %v1055_v33 = vrot.slane %v1053_v55, 4  ;;  %v10317_v44 = vld [vmem:[%s15650_s3 + $0x1d0] ss:$8 sps:$4 sm:$0xff]   ;;  %v10325_v47 = vld [vmem:[%s15650_s3 + $0x1c4] ss:$8 sps:$4 sm:$0xff]   ;;  %v9214_v11 = vcombine.low %v1479_v45, %v11476_v9  ;;  %v621_v55 = vpop.f32.mrf.mxu0 }
 0x136   : > { %v1063_v38 = vor.u32 %v1062_v62, %v1059_v58  ;;  %v1441_v46 = vld [vmem:[#allocation2 + $0x20] sm:$0x6]  ;;  %1317 = vst [vmem:[#allocation2 + $0x28] sm:$0xf] %v1054_v15  ;;  %v1066_v52 = vshrl.u32 %v10017_v3, 16  ;;  %v1069_v4 = vshll.u32 %v10017_v3, 16  ;;  %v10018_v15 = vpack.c.bf16 %v851_v39, %v851_v39  ;;  %3559 = vmatpush1.bf16.msra.mxu0 %v10317_v44 }
 0x137   : > { %v11488_v14 = vrot.slane %v1566_v6, 5  ;;  %v1442_v58 = vsel %vm11399_vm10, 0, %v1441_v46  ;;  %v1319_v62 = vsel %vm11377_vm8, %v1055_v33, %v1318_v57  ;;  %2407 = vmatmul.mubr.bf16.gmra.mxu0 %v9214_v11  ;;  %v11498_v45 = vadd.f32 %v619_v10, %v11396_v7  ;;  %v623_v16 = vpop.f32.mrf.mxu0  ;;  %3560 = vmatprep.subr.bf16.mxu0 %v10325_v47 }
 0x138   : > { %v1064_v17 = vrot.slane %v1063_v38, 4  ;;  %v1322_v1 = vsel %vm11363_vm4, %v1063_v38, %v1321_v63  ;;  %1443 = vst [vmem:[#allocation2 + $0x20] sm:$0x6] %v1442_v58  ;;  %v1400_v49 = vld [vmem:[#allocation2 + $0x24] sm:$0x3]  ;;  %v1068_v3 = vrot.slane %v1066_v52, 6  ;;  %2416 = vmatprep.mubr.bf16.mxu0 %v15668_v0  ;;  %v622_v58 = vadd.f32 %v621_v55, %v11357_v27 }
 0x139   : > { %1320 = vst [vmem:[#allocation2 + $0x2c] sm:$0x3] %v1319_v62  ;;  %1323 = vst [vmem:[#allocation2 + $0x30] sm:$0xe] %v1322_v1  ;;  %v1071_v6 = vrot.slane %v1069_v4, 7  ;;  %v1401_v46 = vsel %vm11377_vm8, 0, %v1400_v49  ;;  %v627_v32 = vpop.f32.mrf.mxu0  ;;  %v1569_v42 = vor.u32 %v11488_v14, %v11478_v51 }
 0x13a   : > { %15791 = vst [vmem:[#allocation44_spill] sm:$0xff] %v11498_v45  ;;  %v1546_v57 = vrot.slane %v1545_v59, 4  ;;  %v1554_v63 = vrot.slane %v11410_v26, 4  ;;  %v1558_v33 = vshll.u32 %v1521_v13, 16  ;;  %v10323_v4 = vld [vmem:[%s15650_s3 + $0x1c0] ss:$8 sps:$4 sm:$0xff]  }
 0x13b   : > { %1402 = vst [vmem:[#allocation2 + $0x24] sm:$0x3] %v1401_v46  ;;  %v1072_v10 = vor.u32 %v1071_v6, %v1068_v3  ;;  %v1076_v38 = vshrl.u32 %v10018_v15, 16  ;;  %v1079_v39 = vshll.u32 %v10018_v15, 16  ;;  %v10329_v59 = vld [vmem:[%s15650_s3 + $0x1b4] ss:$8 sps:$4 sm:$0xff]   ;;  %v629_v15 = vpop.f32.mrf.mxu0  ;;  %3561 = vmatpush1.bf16.msra.mxu0 %v10323_v4 }
 0x13c   : > { %v1325_v13 = vld [vmem:[#allocation2 + $0x38] sm:$0x3]  ;;  %v1551_v44 = vsel %vm11513_vm13, %v1546_v57, %v1550_v61  ;;  %v1555_v52 = vor.u32 %v1554_v63, %v1550_v61  ;;  %v1560_v11 = vrot.slane %v1558_v33, 5  ;;  %v1328_v46 = vld [vmem:[#allocation2 + $0x3c] sm:$0xe]  ;;  %v854_v60 = vmax.f32 %v622_v58, 0.0  ;;  %3562 = vmatprep.subr.bf16.mxu0 %v10329_v59 }
 0x13d   : > { %v11527_v62 = vld [vmem:[#allocation2 + $0x18] sm:$0xf]  ;;  %v1073_v47 = vsel %vm11370_vm7, %v1064_v17, %v1072_v10  ;;  %v1074_v1 = vrot.slane %v1072_v10, 4  ;;  %v1078_v3 = vrot.slane %v1076_v38, 6  ;;  %v1081_v6 = vrot.slane %v1079_v39, 7  ;;  %v631_v38 = vpop.f32.mrf.mxu0 }
 0x13e   : > { %1324 = vst [vmem:[#allocation2 + $0x34] sm:$0xf] %v1073_v47  ;;  %v1556_v49 = vrot.slane %v1555_v52, 4  ;;  %v11532_v57 = vadd.f32 %v623_v16, %v11396_v7  ;;  %v628_v61 = vadd.f32 %v627_v32, %v11357_v27  ;;  %v10327_v55 = vld [vmem:[%s15650_s3 + $0x1b0] ss:$8 sps:$4 sm:$0xff]   ;;  %v1587_v33 = vshrl.u32 %v11527_v62, 16 }
 0x13f   : > { %v1326_v17 = vsel %vm11377_vm8, %v1074_v1, %v1325_v13  ;;  %v11540_v63 = vor.u32 %v1081_v6, %v1078_v3  ;;  %v10332_v16 = vld [vmem:[%s15650_s3 + $0x1a4] ss:$8 sps:$4 sm:$0xff]   ;;  %v10019_v32 = vpack.c.bf16 %v854_v60, %v854_v60  ;;  %v10283_v1 = vld [vmem:[%s15650_s3 + $0x170] ss:$8 sps:$4 sm:$0xff]   ;;  %v11560_v3 = vpop.f32.mrf.mxu0  ;;  %3563 = vmatpush1.bf16.msra.mxu0 %v10327_v55  ;;  %v10330_v55 = vld [vmem:[%s15650_s3 + $0x1a0] ss:$8 sps:$4 sm:$0xff]   ;;  %v632_v37 = vadd.f32 %v631_v38, %v11357_v27 }
 0x140   : > { %15794 = vst [vmem:[#allocation45_spill] sm:$0xff] %v11532_v57  ;;  %v1444_v4 = vld [vmem:[#allocation2 + $0x2c] sm:$0x6]  ;;  %v1403_v39 = vld [vmem:[#allocation2 + $0x30] sm:$0x3]  ;;  %v857_v58 = vmax.f32 %v628_v61, 0.0  ;;  %v1561_v60 = vsel %vm11513_vm13, %v1556_v49, %v1560_v11  ;;  %v11573_v11 = vadd.f32 %v629_v15, %v11396_v7  ;;  %3564 = vmatprep.subr.bf16.mxu0 %v10332_v16 }
 0x141   : > { %1327 = vst [vmem:[#allocation2 + $0x38] sm:$0x3] %v1326_v17  ;;  %v1445_v13 = vsel %vm11399_vm10, 0, %v1444_v4  ;;  %v1404_v47 = vsel %vm11377_vm8, 0, %v1403_v39  ;;  %v1329_v59 = vsel %vm11363_vm4, %v11540_v63, %v1328_v46  ;;  %v9183_v6 = vcombine.low %v1551_v44, %v1561_v60  ;;  %v11562_v39 = vld [vmem:[#allocation2 + $0x1c] sm:$0xf] }
 0x142   : > { %1446 = vst [vmem:[#allocation2 + $0x2c] sm:$0x6] %v1445_v13  ;;  %1405 = vst [vmem:[#allocation2 + $0x30] sm:$0x3] %v1404_v47  ;;  %v1085_v61 = vshrl.u32 %v10019_v32, 16  ;;  %v1088_v17 = vshll.u32 %v10019_v32, 16  ;;  %v10020_v4 = vpack.c.bf16 %v857_v58, %v857_v58  ;;  %v9215_v49 = vcombine.low %v11527_v62, %v11562_v39  ;;  %v11578_v58 = vpop.f32.mrf.mxu0 }
 0x143   : > { %1330 = vst [vmem:[#allocation2 + $0x3c] sm:$0xe] %v1329_v59  ;;  %v10289_v46 = vld [vmem:[%s15650_s3 + $0x164] ss:$8 sps:$4 sm:$0xff]   ;;  %v1083_v52 = vrot.slane %v11540_v63, 4  ;;  %v11568_v10 = vrot.slane %v1587_v33, 4  ;;  %2060 = vmatmul.mubr.bf16.vlgmr.msra.gmra.mxu1 %v9183_v6  ;;  %3565 = vmatpush1.bf16.msra.mxu0 %v10330_v55 }
 0x144   : > { %15795 = vst [vmem:[#allocation46_spill] sm:$0xff] %v11573_v11  ;;  %v1522_v44 = vld [vmem:[#allocation2 + $0x14] sm:$0x1]  ;;  %v10287_v32 = vld [vmem:[%s15650_s3 + $0x160] ss:$8 sps:$4 sm:$0xff]   ;;  %v1087_v63 = vrot.slane %v1085_v61, 6  ;;  %2834 = vmatpush1.bf16.msra.mxu1 %v10283_v1  ;;  %2069 = vmatprep.mubr.bf16.mxu1 %v15668_v0  ;;  %v639_v61 = vpop.f32.mrf.mxu0 }
 0x145   : > { %v1090_v33 = vrot.slane %v1088_v17, 7  ;;  %v1095_v13 = vshrl.u32 %v10020_v4, 16  ;;  %v1098_v47 = vshll.u32 %v10020_v4, 16  ;;  %v10336_v15 = vld [vmem:[%s15650_s3 + $0x194] ss:$8 sps:$4 sm:$0xff]   ;;  %v11591_v16 = vshll.u32 %v11476_v9, 16  ;;  %2417 = vmatmul.mubr.bf16.gmra.mxu0 %v9215_v49  ;;  %2835 = vmatprep.subr.bf16.mxu1 %v10289_v46 }
 0x146   : > { %v1332_v59 = vld [vmem:[#allocation2 + $0x44] sm:$0x3]  ;;  %v1335_v60 = vld [vmem:[#allocation2 + $0x48] sm:$0xe]  ;;  %v11594_v6 = vshrl.u32 %v11476_v9, 16  ;;  %v1582_v0 = vshll.u32 %v1522_v44, 16  ;;  %2426 = vmatprep.mubr.bf16.mxu0 %v15798_v36  ;;  %3566 = vmatprep.subr.bf16.mxu0 %v10336_v15 }
 0x147   : > { %15796 = vst [vmem:[#allocation47_spill] sm:$0xff] %v11591_v16  ;;  %v10294_v1 = vld [vmem:[%s15650_s3 + $0x154] ss:$8 sps:$4 sm:$0xff]   ;;  %v1091_v17 = vor.u32 %v1090_v33, %v1087_v63  ;;  %v1097_v4 = vrot.slane %v1095_v13, 6  ;;  %v1100_v41 = vrot.slane %v1098_v47, 7  ;;  %v1570_v43 = vrot.slane %v1569_v42, 4  ;;  %v11606_v63 = vpop.f32.mrf.mxu0 }
 0x148   : > { %15797 = vst [vmem:[#allocation48_spill] sm:$0xff] %v11594_v6  ;;  %v10334_v51 = vld [vmem:[%s15650_s3 + $0x190] ss:$8 sps:$4 sm:$0xff]   ;;  %v1574_v9 = vrot.slane %v11591_v16, 5  ;;  %v1578_v40 = vrot.slane %v11594_v6, 4  ;;  %v15799_v13 = vshll.u32 %v11527_v62, 16  ;;  %2836 = vmatpush1.bf16.msra.mxu1 %v10287_v32  ;;  %v11638_v32 = vadd.f32 %v11560_v3, %v11396_v7 }
 0x149   : > { %v1447_v14 = vld [vmem:[#allocation2 + $0x38] sm:$0x6]  ;;  %v1092_v49 = vsel %vm11370_vm7, %v1083_v52, %v1091_v17  ;;  %v1093_v44 = vrot.slane %v1091_v17, 4  ;;  %v11612_v33 = vor.u32 %v1100_v41, %v1097_v4  ;;  %v10342_v38 = vld [vmem:[%s15650_s3 + $0x184] ss:$8 sps:$4 sm:$0xff]   ;;  %v860_v17 = vmax.f32 %v632_v37, 0.0  ;;  %2837 = vmatprep.subr.bf16.mxu1 %v10294_v1  ;;  %3567 = vmatpush1.bf16.msra.mxu0 %v10334_v51 }
 0x14a   : > { %v1448_v46 = vsel %vm11399_vm10, 0, %v1447_v14  ;;  %v10292_v42 = vld [vmem:[%s15650_s3 + $0x150] ss:$8 sps:$4 sm:$0xff]   ;;  %v1406_v55 = vld [vmem:[#allocation2 + $0x3c] sm:$0x3]  ;;  %v1592_v47 = vrot.slane %v15799_v13, 5  ;;  %v1575_v52 = vsel %vm11513_vm13, %v1570_v43, %v1574_v9  ;;  %v1579_v41 = vor.u32 %v1578_v40, %v1574_v9  ;;  %v643_v14 = vpop.f32.mrf.mxu0  ;;  %3568 = vmatprep.subr.bf16.mxu0 %v10342_v38 }
 0x14b   : > { %1449 = vst [vmem:[#allocation2 + $0x38] sm:$0x6] %v1448_v46  ;;  %1331 = vst [vmem:[#allocation2 + $0x40] sm:$0xf] %v1092_v49  ;;  %v11624_v4 = vld [vmem:[#allocation2 + $0x24] sm:$0xf]  ;;  %v1333_v46 = vsel %vm11377_vm8, %v1093_v44, %v1332_v59  ;;  %v1336_v62 = vsel %vm11363_vm4, %v11612_v33, %v1335_v60  ;;  %v10021_v43 = vpack.c.bf16 %v860_v17, %v860_v17 }
 0x14c   : > { %v1407_v15 = vsel %vm11377_vm8, 0, %v1406_v55  ;;  %v1584_v49 = vrot.slane %v1582_v0, 5  ;;  %v10299_v37 = vld [vmem:[%s15650_s3 + $0x144] ss:$8 sps:$4 sm:$0xff]   ;;  %1334 = vst [vmem:[#allocation2 + $0x44] sm:$0x3] %v1333_v46  ;;  %v638_v59 = vadd.f32 %v11578_v58, %v11357_v27  ;;  %v647_v0 = vpop.f32.mrf.mxu0  ;;  %v11652_v3 = vadd.f32 %v639_v61, %v11396_v7  ;;  %2838 = vmatpush1.bf16.msra.mxu1 %v10292_v42 }
 0x14d   : > { %1408 = vst [vmem:[#allocation2 + $0x3c] sm:$0x3] %v1407_v15  ;;  %1337 = vst [vmem:[#allocation2 + $0x48] sm:$0xe] %v1336_v62  ;;  %v1580_v40 = vrot.slane %v1579_v41, 4  ;;  %v1102_v1 = vrot.slane %v11612_v33, 4  ;;  %2839 = vmatprep.subr.bf16.mxu1 %v10299_v37  ;;  %v1593_v33 = vor.u32 %v1592_v47, %v11568_v10 }
 0x14e   : > { %15800 = vst [vmem:[#allocation49_spill] sm:$0xff] %v11638_v32  ;;  %v11642_v9 = vld [vmem:[#allocation2 + $0x28] sm:$0xf]  ;;  %v1611_v44 = vshrl.u32 %v11624_v4, 16  ;;  %15801 = vst [vmem:[#allocation50_spill] sm:$0xff] %v11652_v3  ;;  %v1104_v13 = vshrl.u32 %v10021_v43, 16  ;;  %v11662_v15 = vpop.f32.mrf.mxu0 }
 0x14f   : > { %v10340_v60 = vld [vmem:[%s15650_s3 + $0x180] ss:$8 sps:$4 sm:$0xff]   ;;  %v9216_v55 = vcombine.low %v11624_v4, %v11642_v9  ;;  %v1585_v51 = vsel %vm11513_vm13, %v1580_v40, %v1584_v49  ;;  %v1107_v41 = vshll.u32 %v10021_v43, 16  ;;  %v863_v61 = vmax.f32 %v638_v59, 0.0  ;;  %v10304_v38 = vld [vmem:[%s15650_s3 + $0x134] ss:$8 sps:$4 sm:$0xff]  }
 0x150   : > { %v10297_v58 = vld [vmem:[%s15650_s3 + $0x140] ss:$8 sps:$4 sm:$0xff]   ;;  %v9184_v46 = vcombine.low %v1575_v52, %v1585_v51  ;;  %v11664_v62 = vrot.slane %v1611_v44, 4  ;;  %v1614_v35 = vshll.u32 %v11624_v4, 16  ;;  %v1106_v49 = vrot.slane %v1104_v13, 6  ;;  %v11675_v52 = vpop.f32.mrf.mxu0  ;;  %3569 = vmatpush1.bf16.msra.mxu0 %v10340_v60 }
 0x151   : > { %v11660_v17 = vld [vmem:[#allocation2 + $0x20] sm:$0x1]  ;;  %2427 = vmatmul.mubr.bf16.gmra.mxu0 %v9216_v55  ;;  %v1109_v40 = vrot.slane %v1107_v41, 7  ;;  %v11673_v42 = vld [vmem:[#allocation2 + $0x30] sm:$0xf]  ;;  %v10022_v37 = vpack.c.bf16 %v863_v61, %v863_v61  ;;  %v11678_v59 = vshll.u32 %v11562_v39, 16  ;;  %v642_v60 = vadd.f32 %v11606_v63, %v11357_v27  ;;  %2840 = vmatpush1.bf16.msra.mxu1 %v10297_v58 }
 0x152   : > { %2436 = vmatprep.mubr.bf16.mxu0 %v15798_v36  ;;  %2070 = vmatmul.mubr.bf16.gmra.mxu1 %v9184_v46  ;;  %v1339_v4 = vld [vmem:[#allocation2 + $0x50] sm:$0x3]  ;;  %v11681_v44 = vshrl.u32 %v11562_v39, 16  ;;  %v1606_v55 = vshll.u32 %v11660_v17, 16  ;;  %v1594_v51 = vrot.slane %v1593_v33, 4  ;;  %v11691_v13 = vadd.f32 %v643_v14, %v11396_v7  ;;  %v11695_v39 = vpop.f32.mrf.mxu0 }
 0x153   : > { %v10302_v10 = vld [vmem:[%s15650_s3 + $0x130] ss:$8 sps:$4 sm:$0xff]   ;;  %v1110_v47 = vor.u32 %v1109_v40, %v1106_v49  ;;  %2079 = vmatprep.mubr.bf16.mxu1 %v15798_v36  ;;  %v11693_v41 = vld [vmem:[#allocation2 + $0x34] sm:$0xf]  ;;  %v10308_v17 = vld [vmem:[%s15650_s3 + $0x124] ss:$8 sps:$4 sm:$0xff]   ;;  %v648_v33 = vadd.f32 %v647_v0, %v11357_v27  ;;  %2841 = vmatprep.subr.bf16.mxu1 %v10304_v38 }
 0x154   : > { %15802 = vst [vmem:[#allocation51_spill] sm:$0xff] %v11691_v13  ;;  %v1450_v46 = vld [vmem:[#allocation2 + $0x44] sm:$0x6]  ;;  %v1409_v61 = vld [vmem:[#allocation2 + $0x48] sm:$0x3]  ;;  %v1114_v49 = vshrl.u32 %v10022_v37, 16  ;;  %v9217_v63 = vcombine.low %v11673_v42, %v11693_v41  ;;  %v11709_v31 = vpop.f32.mrf.mxu0 }
 0x155   : > { %v1117_v40 = vshll.u32 %v10022_v37, 16  ;;  %v1451_v14 = vsel %vm11399_vm10, 0, %v1450_v46  ;;  %v1410_v58 = vsel %vm11377_vm8, 0, %v1409_v61  ;;  %v1111_v43 = vsel %vm11370_vm7, %v1102_v1, %v1110_v47  ;;  %2842 = vmatpush1.bf16.msra.mxu1 %v10302_v10  ;;  %v1356_v13 = vld [vmem:[#allocation2 + $0x6c] sm:$0xe] }
 0x156   : > { %v1112_v34 = vrot.slane %v1110_v47, 4  ;;  %1452 = vst [vmem:[#allocation2 + $0x44] sm:$0x6] %v1451_v14  ;;  %1411 = vst [vmem:[#allocation2 + $0x48] sm:$0x3] %v1410_v58  ;;  %v1116_v0 = vrot.slane %v1114_v49, 6  ;;  %v11716_v47 = vpop.f32.mrf.mxu0  ;;  %2843 = vmatprep.subr.bf16.mxu1 %v10308_v17 }
 0x157   : > { %1338 = vst [vmem:[#allocation2 + $0x4c] sm:$0xf] %v1111_v43  ;;  %v1119_v37 = vrot.slane %v1117_v40, 7  ;;  %v1598_v38 = vrot.slane %v11678_v59, 5  ;;  %v1602_v29 = vrot.slane %v11681_v44, 4  ;;  %v1616_v61 = vrot.slane %v1614_v35, 5 }
 0x158   : > { %v1340_v46 = vsel %vm11377_vm8, %v1112_v34, %v1339_v4  ;;  %v866_v28 = vmax.f32 %v642_v60, 0.0  ;;  %v10306_v43 = vld [vmem:[%s15650_s3 + $0x120] ss:$8 sps:$4 sm:$0xff]   ;;  %v1608_v14 = vrot.slane %v1606_v55, 5  ;;  %v869_v58 = vmax.f32 %v648_v33, 0.0 }
 0x159   : > { %1341 = vst [vmem:[#allocation2 + $0x50] sm:$0x3] %v1340_v46  ;;  %v1120_v49 = vor.u32 %v1119_v37, %v1116_v0  ;;  %v1603_v40 = vor.u32 %v1602_v29, %v1598_v38  ;;  %2437 = vmatmul.mubr.bf16.gmra.mxu0 %v9217_v63  ;;  %v10322_v34 = vld [vmem:[%s15650_s3 + $0x114] ss:$8 sps:$4 sm:$0xff]   ;;  %v1599_v35 = vsel %vm11513_vm13, %v1594_v51, %v1598_v38  ;;  %v1635_v10 = vshrl.u32 %v11673_v42, 16  ;;  %v11732_v29 = vpop.f32.mrf.mxu0 }
 0x15a   : > { %v10023_v4 = vpack.c.bf16 %v866_v28, %v866_v28  ;;  %v11729_v60 = vadd.f32 %v11662_v15, %v11396_v7  ;;  %2446 = vmatprep.mubr.bf16.mxu0 %v15798_v36  ;;  %v10024_v33 = vpack.c.bf16 %v869_v58, %v869_v58  ;;  %v1638_v63 = vshll.u32 %v11673_v42, 16  ;;  %2844 = vmatpush1.bf16.msra.mxu1 %v10306_v43  ;;  %v10320_v15 = vld [vmem:[%s15650_s3 + $0x110] ss:$8 sps:$4 sm:$0xff]   ;;  %v10339_v43 = vld [vmem:[%s15650_s3 + $0x104] ss:$8 sps:$4 sm:$0xff]  }
 0x15b   : > { %v1343_v55 = vsel %vm11363_vm4, %v1120_v49, %v1342_v30  ;;  %v1604_v17 = vrot.slane %v1603_v40, 4  ;;  %v1121_v0 = vrot.slane %v1120_v49, 4  ;;  %v11737_v37 = vrot.slane %v1635_v10, 4  ;;  %v11739_v38 = vpop.f32.mrf.mxu0  ;;  %v1524_v49 = vld [vmem:[#allocation2 + $0x2c] sm:$0x1]  ;;  %2845 = vmatprep.subr.bf16.mxu1 %v10322_v34 }
 0x15c   : > { %15803 = vst [vmem:[#allocation52_spill] sm:$0xff] %v11729_v60  ;;  %1344 = vst [vmem:[#allocation2 + $0x54] sm:$0xe] %v1343_v55  ;;  %v1123_v28 = vshrl.u32 %v10023_v4, 16  ;;  %v1126_v51 = vshll.u32 %v10023_v4, 16  ;;  %v1133_v46 = vshrl.u32 %v10024_v33, 16  ;;  %v1617_v55 = vor.u32 %v1616_v61, %v11664_v62 }
 0x15d   : > { %v1609_v30 = vsel %vm11513_vm13, %v1604_v17, %v1608_v14  ;;  %v1136_v40 = vshll.u32 %v10024_v33, 16  ;;  %v11748_v1 = vpop.f32.mrf.mxu0  ;;  %v1349_v17 = vld [vmem:[#allocation2 + $0x60] sm:$0xe]  ;;  %v11754_v33 = vshll.u32 %v11642_v9, 16  ;;  %v11757_v34 = vshrl.u32 %v11642_v9, 16 }
 0x15e   : > { %v9185_v58 = vcombine.low %v1599_v35, %v1609_v30  ;;  %v1125_v4 = vrot.slane %v1123_v28, 6  ;;  %v1128_v10 = vrot.slane %v1126_v51, 7  ;;  %v1135_v23 = vrot.slane %v1133_v46, 6  ;;  %v10337_v46 = vld [vmem:[%s15650_s3 + $0x100] ss:$8 sps:$4 sm:$0xff]   ;;  %2846 = vmatpush1.bf16.msra.mxu1 %v10320_v15 }
 0x15f   : > { %v1138_v14 = vrot.slane %v1136_v40, 7  ;;  %v1618_v62 = vrot.slane %v1617_v55, 4  ;;  %v1630_v61 = vshll.u32 %v1524_v49, 16  ;;  %v652_v51 = vadd.f32 %v11675_v52, %v11357_v27  ;;  %v11761_v30 = vpop.f32.mrf.mxu0  ;;  %v10345_v52 = vld [vmem:[%s15650_s3 + $0x274] ss:$8 sps:$4 sm:$0xff]   ;;  %2847 = vmatprep.subr.bf16.mxu1 %v10339_v43 }
 0x160   : > { %v1453_v35 = vld [vmem:[#allocation2 + $0x50] sm:$0x6]  ;;  %2080 = vmatmul.mubr.bf16.gmra.mxu1 %v9185_v58  ;;  %v1129_v28 = vor.u32 %v1128_v10, %v1125_v4  ;;  %v1622_v9 = vrot.slane %v11754_v33, 5  ;;  %v1626_v49 = vrot.slane %v11757_v34, 4  ;;  %v1640_v10 = vrot.slane %v1638_v63, 5 }
 0x161   : > { %v1454_v40 = vsel %vm11399_vm10, 0, %v1453_v35  ;;  %v11768_v42 = vor.u32 %v1138_v14, %v1135_v23  ;;  %2089 = vmatprep.mubr.bf16.mxu1 %v15798_v36  ;;  %v872_v55 = vmax.f32 %v652_v51, 0.0  ;;  %v11778_v23 = vld [vmem:[#allocation2 + $0x3c] sm:$0xf]  ;;  %v11780_v14 = vpop.f32.mrf.mxu0  ;;  %v1632_v21 = vrot.slane %v1630_v61, 5 }
 0x162   : > { %1455 = vst [vmem:[#allocation2 + $0x50] sm:$0x6] %v1454_v40  ;;  %v1130_v58 = vsel %vm11370_vm7, %v1121_v0, %v1129_v28  ;;  %v1131_v4 = vrot.slane %v1129_v28, 4  ;;  %v1627_v40 = vor.u32 %v1626_v49, %v1622_v9  ;;  %v11792_v43 = vadd.f32 %v11695_v39, %v11396_v7  ;;  %v11800_v49 = vld [vmem:[#allocation2 + $0x40] sm:$0xf]  ;;  %2848 = vmatpush1.bf16.msra.mxu1 %v10337_v46 }
 0x163   : > { %v1412_v35 = vld [vmem:[#allocation2 + $0x54] sm:$0x3]  ;;  %1345 = vst [vmem:[#allocation2 + $0x58] sm:$0xf] %v1130_v58  ;;  %v1140_v15 = vrot.slane %v11768_v42, 4  ;;  %v1350_v22 = vsel %vm11363_vm4, %v11768_v42, %v1349_v17  ;;  %v10025_v28 = vpack.c.bf16 %v872_v55, %v872_v55  ;;  %v11794_v51 = vpop.f32.mrf.mxu0  ;;  %v1623_v42 = vsel %vm11513_vm13, %v1618_v62, %v1622_v9  ;;  %4078 = vmatprep.subr.bf16.mxu1 %v10345_v52 }
 0x164   : > { %v1413_v0 = vsel %vm11377_vm8, 0, %v1412_v35  ;;  %v1347_v63 = vsel %vm11377_vm8, %v1131_v4, %v1346_v24  ;;  %1351 = vst [vmem:[#allocation2 + $0x60] sm:$0xe] %v1350_v22  ;;  %15804 = vst [vmem:[#allocation53_spill] sm:$0xff] %v11792_v43  ;;  %v1628_v17 = vrot.slane %v1627_v40, 4  ;;  %v658_v61 = vadd.f32 %v11709_v31, %v11357_v27 }
 0x165   : > { %1414 = vst [vmem:[#allocation2 + $0x54] sm:$0x3] %v1413_v0  ;;  %1348 = vst [vmem:[#allocation2 + $0x5c] sm:$0x3] %v1347_v63  ;;  %v1659_v22 = vshrl.u32 %v11778_v23, 16  ;;  %v1142_v24 = vshrl.u32 %v10025_v28, 16  ;;  %v9218_v4 = vcombine.low %v11778_v23, %v11800_v49  ;;  %v11806_v55 = vpop.f32.mrf.mxu0  ;;  %v1641_v52 = vor.u32 %v1640_v10, %v11737_v37 }
 0x166   : > { %v1145_v58 = vshll.u32 %v10025_v28, 16  ;;  %v1633_v62 = vsel %vm11513_vm13, %v1628_v17, %v1632_v21  ;;  %v875_v9 = vmax.f32 %v658_v61, 0.0  ;;  %v1662_v35 = vshll.u32 %v11778_v23, 16  ;;  %v1525_v40 = vld [vmem:[#allocation2 + $0x38] sm:$0x1]  ;;  %v11825_v23 = vpop.f32.mrf.mxu1 }
 0x167   : > { %v11810_v31 = vrot.slane %v1659_v22, 4  ;;  %v9186_v46 = vcombine.low %v1623_v42, %v1633_v62  ;;  %v1144_v0 = vrot.slane %v1142_v24, 6  ;;  %2447 = vmatmul.mubr.bf16.gmra.mxu0 %v9218_v4  ;;  %v11815_v28 = vadd.f32 %v11716_v47, %v11396_v7  ;;  %v679_v39 = vpop.f32.mrf.mxu0  ;;  %v1353_v61 = vld [vmem:[#allocation2 + $0x68] sm:$0x3] }
 0x168   : > { %v1147_v63 = vrot.slane %v1145_v58, 7  ;;  %v10026_v43 = vpack.c.bf16 %v875_v9, %v875_v9  ;;  %v11819_v21 = vshll.u32 %v11693_v41, 16  ;;  %v11822_v17 = vshrl.u32 %v11693_v41, 16  ;;  %2456 = vmatprep.mubr.bf16.mxu0 %v15798_v36  ;;  %v11830_v37 = vld [vmem:[#allocation2 + $0x48] sm:$0xf]  ;;  %v746_v9 = vpop.f32.mrf.mxu1 }
 0x169   : > { %15805 = vst [vmem:[#allocation54_spill] sm:$0xff] %v11815_v28  ;;  %2090 = vmatmul.mubr.bf16.gmra.mxu1 %v9186_v46  ;;  %v1654_v22 = vshll.u32 %v1525_v40, 16  ;;  %v662_v24 = vadd.f32 %v11732_v29, %v11357_v27  ;;  %v11832_v10 = vpop.f32.mrf.mxu0  ;;  %v1642_v4 = vrot.slane %v1641_v52, 4  ;;  %v1664_v60 = vrot.slane %v1662_v35, 5 }
 0x16a   : > { %v1148_v42 = vor.u32 %v1147_v63, %v1144_v0  ;;  %v1152_v41 = vshrl.u32 %v10026_v43, 16  ;;  %v1155_v39 = vshll.u32 %v10026_v43, 16  ;;  %2099 = vmatprep.mubr.bf16.mxu1 %v15798_v36  ;;  %v1646_v62 = vrot.slane %v11819_v21, 5  ;;  %v11843_v9 = vpop.f32.mrf.mxu1 }
 0x16b   : > { %v1415_v58 = vld [vmem:[#allocation2 + $0x60] sm:$0x3]  ;;  %v1650_v63 = vrot.slane %v11822_v17, 4  ;;  %v682_v47 = vpop.f32.mrf.mxu0  ;;  %v668_v35 = vadd.f32 %v11748_v1, %v11357_v27  ;;  %v1686_v1 = vshll.u32 %v11830_v37, 16  ;;  %v672_v45 = vadd.f32 %v11780_v14, %v11357_v27 }
 0x16c   : > { %v1456_v46 = vld [vmem:[#allocation2 + $0x5c] sm:$0x6]  ;;  %v1416_v40 = vsel %vm11377_vm8, 0, %v1415_v58  ;;  %v1149_v29 = vsel %vm11370_vm7, %v1140_v15, %v1148_v42  ;;  %v1150_v0 = vrot.slane %v1148_v42, 4  ;;  %v1154_v52 = vrot.slane %v1152_v41, 6 }
 0x16d   : > { %v1457_v43 = vsel %vm11399_vm10, 0, %v1456_v46  ;;  %1417 = vst [vmem:[#allocation2 + $0x60] sm:$0x3] %v1416_v40  ;;  %1352 = vst [vmem:[#allocation2 + $0x64] sm:$0xf] %v1149_v29  ;;  %v1157_v28 = vrot.slane %v1155_v39, 7  ;;  %v1647_v15 = vsel %vm11513_vm13, %v1642_v4, %v1646_v62  ;;  %v1651_v42 = vor.u32 %v1650_v63, %v1646_v62  ;;  %v11849_v3 = vpop.f32.mrf.mxu0  ;;  %v748_v40 = vpop.f32.mrf.mxu1 }
 0x16e   : > { %1458 = vst [vmem:[#allocation2 + $0x5c] sm:$0x6] %v1457_v43  ;;  %v1354_v58 = vsel %vm11377_vm8, %v1150_v0, %v1353_v61  ;;  %v878_v47 = vmax.f32 %v662_v24, 0.0  ;;  %v11853_v41 = vadd.f32 %v11739_v38, %v11396_v7  ;;  %v11857_v39 = vld [vmem:[#allocation2 + $0x4c] sm:$0xf]  ;;  %v1683_v61 = vshrl.u32 %v11830_v37, 16 }
 0x16f   : > { %1355 = vst [vmem:[#allocation2 + $0x68] sm:$0x3] %v1354_v58  ;;  %v1158_v46 = vor.u32 %v1157_v28, %v1154_v52  ;;  %v1652_v29 = vrot.slane %v1651_v42, 4  ;;  %v1656_v4 = vrot.slane %v1654_v22, 5  ;;  %v9219_v24 = vcombine.low %v11830_v37, %v11857_v39  ;;  %v687_v0 = vpop.f32.mrf.mxu0  ;;  %v11866_v43 = vpop.f32.mrf.mxu1  ;;  %v1526_v37 = vld [vmem:[#allocation2 + $0x44] sm:$0x1] }
 0x170   : > { %15806 = vst [vmem:[#allocation55_spill] sm:$0xff] %v11853_v41  ;;  %v10027_v62 = vpack.c.bf16 %v878_v47, %v878_v47  ;;  %v881_v63 = vmax.f32 %v668_v35, 0.0  ;;  %v11876_v35 = vadd.f32 %v11761_v30, %v11396_v7  ;;  %v3157_v18 = vrot.slane %v11757_v34, 5 }
 0x171   : > { %v1357_v28 = vsel %vm11363_vm4, %v1158_v46, %v1356_v13  ;;  %v1159_v52 = vrot.slane %v1158_v46, 4  ;;  %v1657_v22 = vsel %vm11513_vm13, %v1652_v29, %v1656_v4  ;;  %2457 = vmatmul.mubr.bf16.gmra.mxu0 %v9219_v24  ;;  %v11870_v47 = vpop.f32.mrf.mxu0  ;;  %v11872_v13 = vrot.slane %v1683_v61, 4  ;;  %v11879_v46 = vpop.f32.mrf.mxu1  ;;  %v1360_v61 = vld [vmem:[#allocation2 + $0x74] sm:$0x3] }
 0x172   : > { %1358 = vst [vmem:[#allocation2 + $0x6c] sm:$0xe] %v1357_v28  ;;  %v1161_v58 = vshrl.u32 %v10027_v62, 16  ;;  %v1164_v42 = vshll.u32 %v10027_v62, 16  ;;  %v9187_v40 = vcombine.low %v1647_v15, %v1657_v22  ;;  %v10028_v0 = vpack.c.bf16 %v881_v63, %v881_v63  ;;  %15807 = vst [vmem:[#allocation56_spill] sm:$0xff] %v11876_v35  ;;  %2466 = vmatprep.mubr.bf16.mxu0 %v15798_v36 }
 0x173   : > { %v1665_v4 = vor.u32 %v1664_v60, %v11810_v31  ;;  %v11883_v62 = vshll.u32 %v11800_v49, 16  ;;  %v690_v15 = vpop.f32.mrf.mxu0  ;;  %v11887_v22 = vshrl.u32 %v11800_v49, 16  ;;  %v11889_v38 = vpop.f32.mrf.mxu1  ;;  %v11898_v35 = vld [vmem:[#allocation2 + $0x54] sm:$0xf] }
 0x174   : > { %v1163_v28 = vrot.slane %v1161_v58, 6  ;;  %v1166_v29 = vrot.slane %v1164_v42, 7  ;;  %2100 = vmatmul.mubr.bf16.gmra.mxu1 %v9187_v40  ;;  %v1171_v24 = vshrl.u32 %v10028_v0, 16  ;;  %v1174_v63 = vshll.u32 %v10028_v0, 16  ;;  %v1493_v54 = vld [vmem:[#allocation2 + $0x60] sm:$0xf] }
 0x175   : > { %15808 = vst [vmem:[#allocation57_spill] sm:$0xff] %v11883_v62  ;;  %15809 = vst [vmem:[#allocation58_spill] sm:$0xff] %v11887_v22  ;;  %2109 = vmatprep.mubr.bf16.mxu1 %v15798_v36  ;;  %v1666_v60 = vrot.slane %v1665_v4, 4  ;;  %v1670_v31 = vrot.slane %v11883_v62, 5  ;;  %v1678_v42 = vshll.u32 %v1526_v37, 16  ;;  %v11893_v15 = vpop.f32.mrf.mxu0  ;;  %v1674_v49 = vrot.slane %v11887_v22, 4  ;;  %v11900_v32 = vpop.f32.mrf.mxu1 }
 0x176   : > { %v1459_v41 = vld [vmem:[#allocation2 + $0x68] sm:$0x6]  ;;  %v1167_v58 = vor.u32 %v1166_v29, %v1163_v28  ;;  %v1173_v0 = vrot.slane %v1171_v24, 6  ;;  %v1176_v30 = vrot.slane %v1174_v63, 7  ;;  %v1363_v4 = vld [vmem:[#allocation2 + $0x78] sm:$0xe] }
 0x177   : > { %v1460_v40 = vsel %vm11399_vm10, 0, %v1459_v41  ;;  %v1688_v37 = vrot.slane %v1686_v1, 5  ;;  %v1671_v11 = vsel %vm11513_vm13, %v1666_v60, %v1670_v31  ;;  %v695_v57 = vpop.f32.mrf.mxu0  ;;  %v1675_v63 = vor.u32 %v1674_v49, %v1670_v31 }
 0x178   : > { %1461 = vst [vmem:[#allocation2 + $0x68] sm:$0x6] %v1460_v40  ;;  %v1168_v28 = vsel %vm11370_vm7, %v1159_v52, %v1167_v58  ;;  %v1169_v29 = vrot.slane %v1167_v58, 4  ;;  %v11906_v24 = vor.u32 %v1176_v30, %v1173_v0  ;;  %v11912_v40 = vadd.f32 %v11794_v51, %v11396_v7  ;;  %v11914_v52 = vpop.f32.mrf.mxu1 }
 0x179   : > { %v1418_v41 = vld [vmem:[#allocation2 + $0x6c] sm:$0x3]  ;;  %1359 = vst [vmem:[#allocation2 + $0x70] sm:$0xf] %v1168_v28  ;;  %v678_v30 = vadd.f32 %v11806_v55, %v11357_v27  ;;  %v1707_v58 = vshrl.u32 %v11898_v35, 16  ;;  %v11923_v60 = vpop.f32.mrf.mxu0  ;;  %v1676_v14 = vrot.slane %v1675_v63, 4  ;;  %v1689_v63 = vor.u32 %v1688_v37, %v11872_v13 }
 0x17a   : > { %15810 = vst [vmem:[#allocation59_spill] sm:$0xff] %v11912_v40  ;;  %v1419_v1 = vsel %vm11377_vm8, 0, %v1418_v41  ;;  %v1361_v57 = vsel %vm11377_vm8, %v1169_v29, %v1360_v61  ;;  %v1364_v7 = vsel %vm11363_vm4, %v11906_v24, %v1363_v4  ;;  %v1680_v51 = vrot.slane %v1678_v42, 5  ;;  %v11928_v0 = vpop.f32.mrf.mxu1  ;;  %v11932_v28 = vld [vmem:[#allocation2 + $0x58] sm:$0xf] }
 0x17b   : > { %1420 = vst [vmem:[#allocation2 + $0x6c] sm:$0x3] %v1419_v1  ;;  %1362 = vst [vmem:[#allocation2 + $0x74] sm:$0x3] %v1361_v57  ;;  %v884_v31 = vmax.f32 %v672_v45, 0.0  ;;  %v1178_v61 = vrot.slane %v11906_v24, 4  ;;  %v698_v41 = vpop.f32.mrf.mxu0  ;;  %v9220_v45 = vcombine.low %v11898_v35, %v11932_v28 }
 0x17c   : > { %1365 = vst [vmem:[#allocation2 + $0x78] sm:$0xe] %v1364_v7  ;;  %v887_v49 = vmax.f32 %v678_v30, 0.0  ;;  %v11934_v29 = vrot.slane %v1707_v58, 4  ;;  %v1681_v1 = vsel %vm11513_vm13, %v1676_v14, %v1680_v51  ;;  %v1527_v42 = vld [vmem:[#allocation2 + $0x50] sm:$0x1]  ;;  %v11941_v24 = vpop.f32.mrf.mxu1 }
 0x17d   : > { %v10029_v4 = vpack.c.bf16 %v884_v31, %v884_v31  ;;  %v9188_v57 = vcombine.low %v1671_v11, %v1681_v1  ;;  %v1710_v30 = vshll.u32 %v11898_v35, 16  ;;  %v11945_v58 = vshll.u32 %v11857_v39, 16  ;;  %2467 = vmatmul.mubr.bf16.gmra.mxu0 %v9220_v45  ;;  %v1370_v40 = vld [vmem:[#allocation2 + $0x84] sm:$0xe] }
 0x17e   : > { %v10030_v7 = vpack.c.bf16 %v887_v49, %v887_v49  ;;  %v1690_v14 = vrot.slane %v1689_v63, 4  ;;  %v11948_v51 = vshrl.u32 %v11857_v39, 16  ;;  %v11950_v31 = vpop.f32.mrf.mxu1  ;;  %v1702_v49 = vshll.u32 %v1527_v42, 16  ;;  %2476 = vmatprep.mubr.bf16.mxu0 %v15798_v36 }
 0x17f   : > { %v1180_v41 = vshrl.u32 %v10029_v4, 16  ;;  %v1183_v55 = vshll.u32 %v10029_v4, 16  ;;  %2110 = vmatmul.mubr.bf16.gmra.mxu1 %v9188_v57  ;;  %v1694_v11 = vrot.slane %v11945_v58, 5  ;;  %v681_v39 = vadd.f32 %v11832_v10, %v11357_v27 }
 0x180   : > { %v1190_v13 = vshrl.u32 %v10030_v7, 16  ;;  %v1193_v37 = vshll.u32 %v10030_v7, 16  ;;  %2119 = vmatprep.mubr.bf16.mxu1 %v15798_v36  ;;  %v1698_v4 = vrot.slane %v11948_v51, 4  ;;  %v11958_v45 = vpop.f32.mrf.mxu1  ;;  %v1712_v50 = vrot.slane %v1710_v30, 5 }
 0x181   : > { %v1182_v35 = vrot.slane %v1180_v41, 6  ;;  %v1185_v1 = vrot.slane %v1183_v55, 7  ;;  %15811 = vst [vmem:[#allocation60_spill] sm:$0xff] %v11958_v45  ;;  %v1695_v42 = vsel %vm11513_vm13, %v1690_v14, %v1694_v11  ;;  %v888_v48 = vmax.f32 %v681_v39, 0.0 }
 0x182   : > { %v1462_v63 = vld [vmem:[#allocation2 + $0x74] sm:$0x6]  ;;  %v1192_v57 = vrot.slane %v1190_v13, 6  ;;  %v1195_v7 = vrot.slane %v1193_v37, 7  ;;  %v1699_v2 = vor.u32 %v1698_v4, %v1694_v11  ;;  %v11964_v25 = vpop.f32.mrf.mxu1  ;;  %v1367_v13 = vld [vmem:[#allocation2 + $0x80] sm:$0x3]  ;;  %v686_v14 = vadd.f32 %v11849_v3, %v11357_v27 }
 0x183   : > { %v1463_v55 = vsel %vm11399_vm10, 0, %v1462_v63  ;;  %v1421_v41 = vld [vmem:[#allocation2 + $0x78] sm:$0x3]  ;;  %v1186_v53 = vor.u32 %v1185_v1, %v1182_v35  ;;  %15812 = vst [vmem:[#allocation61_spill] sm:$0xff] %v11964_v25  ;;  %v1704_v30 = vrot.slane %v1702_v49, 5  ;;  %v10031_v1 = vpack.c.bf16 %v888_v48, %v888_v48 }
 0x184   : > { %1464 = vst [vmem:[#allocation2 + $0x74] sm:$0x6] %v1463_v55  ;;  %v1422_v10 = vsel %vm11377_vm8, 0, %v1421_v41  ;;  %v1196_v37 = vor.u32 %v1195_v7, %v1192_v57  ;;  %v1700_v11 = vrot.slane %v1699_v2, 4  ;;  %v11972_v4 = vpop.f32.mrf.mxu1  ;;  %v889_v55 = vmax.f32 %v686_v14, 0.0 }
 0x185   : > { %1423 = vst [vmem:[#allocation2 + $0x78] sm:$0x3] %v1422_v10  ;;  %v1187_v63 = vsel %vm11370_vm7, %v1178_v61, %v1186_v53  ;;  %v1188_v35 = vrot.slane %v1186_v53, 4  ;;  %15813 = vst [vmem:[#allocation62_spill] sm:$0xff] %v11972_v4  ;;  %v1731_v41 = vshrl.u32 %v1493_v54, 16  ;;  %v1199_v57 = vshrl.u32 %v10031_v1, 16 }
 0x186   : > { %1366 = vst [vmem:[#allocation2 + $0x7c] sm:$0xf] %v1187_v63  ;;  %v1371_v39 = vsel %vm11363_vm4, %v1196_v37, %v1370_v40  ;;  %v1705_v3 = vsel %vm11513_vm13, %v1700_v11, %v1704_v30  ;;  %v1202_v61 = vshll.u32 %v10031_v1, 16  ;;  %v11980_v53 = vld [vmem:[#allocation2 + $0x64] sm:$0xf]  ;;  %v11982_v48 = vpop.f32.mrf.mxu1  ;;  %v10032_v7 = vpack.c.bf16 %v889_v55, %v889_v55 }
 0x187   : > { %v1368_v49 = vsel %vm11377_vm8, %v1188_v35, %v1367_v13  ;;  %1372 = vst [vmem:[#allocation2 + $0x84] sm:$0xe] %v1371_v39  ;;  %15814 = vst [vmem:[#allocation63_spill] sm:$0xff] %v11982_v48  ;;  %v9189_v2 = vcombine.low %v1695_v42, %v1705_v3  ;;  %v1734_v10 = vshll.u32 %v1493_v54, 16  ;;  %v9221_v40 = vcombine.low %v1493_v54, %v11980_v53  ;;  %v1528_v14 = vld [vmem:[#allocation2 + $0x5c] sm:$0x1] }
 0x188   : > { %1369 = vst [vmem:[#allocation2 + $0x80] sm:$0x3] %v1368_v49  ;;  %v1201_v63 = vrot.slane %v1199_v57, 6  ;;  %v1204_v4 = vrot.slane %v1202_v61, 7  ;;  %v1713_v13 = vor.u32 %v1712_v50, %v11934_v29  ;;  %v11987_v35 = vshll.u32 %v11932_v28, 16  ;;  %v10107_v30 = vpop.f32.mrf.mxu1 }
 0x189   : > { %v1197_v11 = vrot.slane %v1196_v37, 4  ;;  %2120 = vmatmul.mubr.bf16.gmra.mxu1 %v9189_v2  ;;  %v1209_v1 = vshrl.u32 %v10032_v7, 16  ;;  %v1212_v39 = vshll.u32 %v10032_v7, 16  ;;  %2477 = vmatmul.mubr.bf16.gmra.mxu0 %v9221_v40  ;;  %v11990_v42 = vshrl.u32 %v11932_v28, 16  ;;  %v1374_v49 = vld [vmem:[#allocation2 + $0x8c] sm:$0x3] }
 0x18a   : > { %v1205_v55 = vor.u32 %v1204_v4, %v1201_v63  ;;  %2129 = vmatprep.mubr.bf16.mxu1 %v15798_v36  ;;  %v1714_v54 = vrot.slane %v1713_v13, 4  ;;  %v1718_v3 = vrot.slane %v11987_v35, 5  ;;  %v1726_v50 = vshll.u32 %v1528_v14, 16  ;;  %2486 = vmatprep.mubr.bf16.mxu0 %v15798_v36  ;;  %v11995_v29 = vpop.f32.mrf.mxu1  ;;  %v1495_v7 = vld [vmem:[#allocation2 + $0x6c] sm:$0xf] }
 0x18b   : > { %15815 = vst [vmem:[#allocation64_spill] sm:$0xff] %v11995_v29  ;;  %v1211_v37 = vrot.slane %v1209_v1, 6  ;;  %v1214_v57 = vrot.slane %v1212_v39, 7  ;;  %v1733_v61 = vrot.slane %v1731_v41, 4  ;;  %v1722_v2 = vrot.slane %v11990_v42, 4 }
 0x18c   : > { %v1206_v28 = vsel %vm11370_vm7, %v1197_v11, %v1205_v55  ;;  %v1207_v4 = vrot.slane %v1205_v55, 4  ;;  %v1377_v40 = vld [vmem:[#allocation2 + $0x90] sm:$0xe]  ;;  %v1736_v63 = vrot.slane %v1734_v10, 5  ;;  %v1719_v13 = vsel %vm11513_vm13, %v1714_v54, %v1718_v3  ;;  %v10108_v14 = vpop.f32.mrf.mxu1 }
 0x18d   : > { %1373 = vst [vmem:[#allocation2 + $0x88] sm:$0xf] %v1206_v28  ;;  %v12002_v48 = vor.u32 %v1214_v57, %v1211_v37  ;;  %v1723_v1 = vor.u32 %v1722_v2, %v1718_v3  ;;  %v689_v41 = vadd.f32 %v11870_v47, %v11357_v27  ;;  %v694_v39 = vadd.f32 %v11893_v15, %v11357_v27  ;;  %v12020_v2 = vld [vmem:[#allocation2 + $0x70] sm:$0xf] }
 0x18e   : > { %v1424_v30 = vld [vmem:[#allocation2 + $0x84] sm:$0x3]  ;;  %v1375_v10 = vsel %vm11377_vm8, %v1207_v4, %v1374_v49  ;;  %v1728_v55 = vrot.slane %v1726_v50, 5  ;;  %v1755_v54 = vshrl.u32 %v1495_v7, 16  ;;  %v12012_v14 = vpop.f32.mrf.mxu1  ;;  %v1758_v37 = vshll.u32 %v1495_v7, 16 }
 0x18f   : > { %v1465_v29 = vld [vmem:[#allocation2 + $0x80] sm:$0x6]  ;;  %v1425_v11 = vsel %vm11377_vm8, 0, %v1424_v30  ;;  %15816 = vst [vmem:[#allocation65_spill] sm:$0xff] %v12012_v14  ;;  %1376 = vst [vmem:[#allocation2 + $0x8c] sm:$0x3] %v1375_v10  ;;  %v1378_v47 = vsel %vm11363_vm4, %v12002_v48, %v1377_v40  ;;  %v9222_v4 = vcombine.low %v1495_v7, %v12020_v2  ;;  %v1737_v30 = vor.u32 %v1736_v63, %v1733_v61 }
 0x190   : > { %v1466_v3 = vsel %vm11399_vm10, 0, %v1465_v29  ;;  %1426 = vst [vmem:[#allocation2 + $0x84] sm:$0x3] %v1425_v11  ;;  %v1724_v15 = vrot.slane %v1723_v1, 4  ;;  %v1216_v57 = vrot.slane %v12002_v48, 4  ;;  %v890_v49 = vmax.f32 %v689_v41, 0.0  ;;  %v10111_v28 = vpop.f32.mrf.mxu1 }
 0x191   : > { %1467 = vst [vmem:[#allocation2 + $0x80] sm:$0x6] %v1466_v3  ;;  %1379 = vst [vmem:[#allocation2 + $0x90] sm:$0xe] %v1378_v47  ;;  %v891_v50 = vmax.f32 %v694_v39, 0.0  ;;  %v12026_v11 = vshll.u32 %v11980_v53, 16  ;;  %2487 = vmatmul.mubr.bf16.gmra.mxu0 %v9222_v4  ;;  %v697_v4 = vadd.f32 %v11923_v60, %v11357_v27 }
 0x192   : > { %v1729_v29 = vsel %vm11513_vm13, %v1724_v15, %v1728_v55  ;;  %v10033_v1 = vpack.c.bf16 %v890_v49, %v890_v49  ;;  %v1529_v3 = vld [vmem:[#allocation2 + $0x68] sm:$0x1]  ;;  %v12029_v48 = vshrl.u32 %v11980_v53, 16  ;;  %v822_v41 = vpop.f32.mrf.mxu1  ;;  %v10363_v39 = vld [vmem:[%s15650_s3 + $0x2f4] ss:$8 sps:$4 sm:$0xff]   ;;  %v12034_v47 = vrot.slane %v1755_v54, 4  ;;  %2496 = vmatprep.mubr.bf16.mxu0 %v15798_v36 }
 0x193   : > { %15817 = vst [vmem:[#allocation66_spill] sm:$0xff] %v12026_v11  ;;  %v9190_v40 = vcombine.low %v1719_v13, %v1729_v29  ;;  %v10034_v10 = vpack.c.bf16 %v891_v50, %v891_v50  ;;  %v12036_v55 = vrot.slane %v1758_v37, 5  ;;  %v1738_v61 = vrot.slane %v1737_v30, 4  ;;  %v1497_v53 = vld [vmem:[#allocation2 + $0x78] sm:$0xf]  ;;  %4796 = vmatprep.subr.bf16.mxu0 %v10363_v39 }
 0x194   : > { %15818 = vst [vmem:[#allocation67_spill] sm:$0xff] %v12029_v48  ;;  %v1742_v7 = vrot.slane %v12026_v11, 5  ;;  %v1218_v63 = vshrl.u32 %v10033_v1, 16  ;;  %v1221_v13 = vshll.u32 %v10033_v1, 16  ;;  %v10112_v50 = vpop.f32.mrf.mxu1  ;;  %v1384_v28 = vld [vmem:[#allocation2 + $0x9c] sm:$0xe] }
 0x195   : > { %2130 = vmatmul.mubr.bf16.gmra.mxu1 %v9190_v40  ;;  %v1228_v15 = vshrl.u32 %v10034_v10, 16  ;;  %v1231_v49 = vshll.u32 %v10034_v10, 16  ;;  %v1746_v37 = vrot.slane %v12029_v48, 4  ;;  %v1750_v29 = vshll.u32 %v1529_v3, 16  ;;  %v1498_v60 = vld [vmem:[#allocation2 + $0x7c] sm:$0xf] }
 0x196   : > { %2139 = vmatprep.mubr.bf16.mxu1 %v15798_v36  ;;  %v1743_v54 = vsel %vm11513_vm13, %v1738_v61, %v1742_v7  ;;  %v1468_v30 = vld [vmem:[#allocation2 + $0x8c] sm:$0x6]  ;;  %v1220_v40 = vrot.slane %v1218_v63, 6  ;;  %v1223_v1 = vrot.slane %v1221_v13, 7  ;;  %v824_v14 = vpop.f32.mrf.mxu1  ;;  %v892_v45 = vmax.f32 %v697_v4, 0.0 }
 0x197   : > { %v1230_v10 = vrot.slane %v1228_v15, 6  ;;  %v1233_v41 = vrot.slane %v1231_v49, 7  ;;  %v1469_v50 = vsel %vm11399_vm10, 0, %v1468_v30  ;;  %v1747_v25 = vor.u32 %v1746_v37, %v1742_v7  ;;  %v1381_v63 = vld [vmem:[#allocation2 + $0x98] sm:$0x3] }
 0x198   : > { %v1427_v11 = vld [vmem:[#allocation2 + $0x90] sm:$0x3]  ;;  %v1779_v61 = vshrl.u32 %v1497_v53, 16  ;;  %1470 = vst [vmem:[#allocation2 + $0x8c] sm:$0x6] %v1469_v50  ;;  %v1224_v48 = vor.u32 %v1223_v1, %v1220_v40  ;;  %v1782_v39 = vshll.u32 %v1497_v53, 16  ;;  %v10035_v14 = vpack.c.bf16 %v892_v45, %v892_v45 }
 0x199   : > { %v1428_v3 = vsel %vm11377_vm8, 0, %v1427_v11  ;;  %v1234_v27 = vor.u32 %v1233_v41, %v1230_v10  ;;  %v1748_v13 = vrot.slane %v1747_v25, 4  ;;  %v1752_v15 = vrot.slane %v1750_v29, 5  ;;  %v1530_v50 = vld [vmem:[#allocation2 + $0x74] sm:$0x1] }
 0x19a   : > { %1429 = vst [vmem:[#allocation2 + $0x90] sm:$0x3] %v1428_v3  ;;  %v9223_v49 = vcombine.low %v1497_v53, %v1498_v60  ;;  %v1225_v30 = vsel %vm11370_vm7, %v1216_v57, %v1224_v48  ;;  %v1226_v7 = vrot.slane %v1224_v48, 4  ;;  %v1781_v4 = vrot.slane %v1779_v61, 4  ;;  %v1499_v45 = vld [vmem:[#allocation2 + $0x84] sm:$0xf] }
 0x19b   : > { %v1385_v37 = vsel %vm11363_vm4, %v1234_v27, %v1384_v28  ;;  %1380 = vst [vmem:[#allocation2 + $0x94] sm:$0xf] %v1225_v30  ;;  %v1753_v11 = vsel %vm11513_vm13, %v1748_v13, %v1752_v15  ;;  %v1237_v40 = vshrl.u32 %v10035_v14, 16  ;;  %v1240_v1 = vshll.u32 %v10035_v14, 16  ;;  %v1388_v15 = vld [vmem:[#allocation2 + $0xa4] sm:$0x3]  ;;  %vm12202_vm4 = vmor %vm2579_vm2, %vm2580_vm3 }
 0x19c   : > { %1386 = vst [vmem:[#allocation2 + $0x9c] sm:$0xe] %v1385_v37  ;;  %v1784_v25 = vrot.slane %v1782_v39, 5  ;;  %2497 = vmatmul.mubr.bf16.gmra.mxu0 %v9223_v49  ;;  %v1382_v53 = vsel %vm11377_vm8, %v1226_v7, %v1381_v63  ;;  %v9191_v57 = vcombine.low %v1743_v54, %v1753_v11  ;;  %v1761_v56 = vor.u32 %v12036_v55, %v12034_v47  ;;  %v1500_v55 = vld [vmem:[#allocation2 + $0x88] sm:$0xf] }
 0x19d   : > { %v12061_v48 = vshll.u32 %v12020_v2, 16  ;;  %2506 = vmatprep.mubr.bf16.mxu0 %v15798_v36  ;;  %1383 = vst [vmem:[#allocation2 + $0x98] sm:$0x3] %v1382_v53  ;;  %v1239_v28 = vrot.slane %v1237_v40, 6  ;;  %v1242_v29 = vrot.slane %v1240_v1, 7  ;;  %v12065_v10 = vshrl.u32 %v12020_v2, 16 }
 0x19e   : > { %v1774_v41 = vshll.u32 %v1530_v50, 16  ;;  %2140 = vmatmul.mubr.bf16.gmra.mxu1 %v9191_v57  ;;  %v1762_v61 = vrot.slane %v1761_v56, 4  ;;  %v1803_v54 = vshrl.u32 %v1499_v45, 16  ;;  %v1235_v39 = vrot.slane %v1234_v27, 4  ;;  %v1531_v27 = vld [vmem:[#allocation2 + $0x80] sm:$0x1] }
 0x19f   : > { %v1766_v3 = vrot.slane %v12061_v48, 5  ;;  %v1243_v63 = vor.u32 %v1242_v29, %v1239_v28  ;;  %2149 = vmatprep.mubr.bf16.mxu1 %v15798_v36  ;;  %v1770_v47 = vrot.slane %v12065_v10, 4  ;;  %v1806_v13 = vshll.u32 %v1499_v45, 16 }
 0x1a0   : > { %v1776_v14 = vrot.slane %v1774_v41, 5  ;;  %v9224_v49 = vcombine.low %v1499_v45, %v1500_v55  ;;  %v1785_v30 = vor.u32 %v1784_v25, %v1781_v4  ;;  %v1805_v1 = vrot.slane %v1803_v54, 4 }
 0x1a1   : > { %v1244_v2 = vsel %vm11370_vm7, %v1235_v39, %v1243_v63  ;;  %v1245_v7 = vrot.slane %v1243_v63, 4  ;;  %v1767_v37 = vsel %vm11513_vm13, %v1762_v61, %v1766_v3  ;;  %v1771_v50 = vor.u32 %v1770_v47, %v1766_v3  ;;  %v1501_v11 = vld [vmem:[#allocation2 + $0x90] sm:$0xf] }
 0x1a2   : > { %1387 = vst [vmem:[#allocation2 + $0xa0] sm:$0xf] %v1244_v2  ;;  %v1808_v53 = vrot.slane %v1806_v13, 5  ;;  %v12074_v57 = vshll.u32 %v1498_v60, 16  ;;  %v12076_v56 = vshrl.u32 %v1498_v60, 16  ;;  %v1786_v28 = vrot.slane %v1785_v30, 4 }
 0x1a3   : > { %v1430_v40 = vld [vmem:[#allocation2 + $0x9c] sm:$0x3]  ;;  %v1389_v25 = vsel %vm11377_vm8, %v1245_v7, %v1388_v15  ;;  %v1772_v45 = vrot.slane %v1771_v50, 4  ;;  %v1798_v3 = vshll.u32 %v1531_v27, 16  ;;  %v1827_v60 = vshrl.u32 %v1501_v11, 16 }
 0x1a4   : > { %v1431_v4 = vsel %vm11377_vm8, 0, %v1430_v40  ;;  %2507 = vmatmul.mubr.bf16.gmra.mxu0 %v9224_v49  ;;  %v1471_v29 = vld [vmem:[#allocation2 + $0x98] sm:$0x6]  ;;  %1390 = vst [vmem:[#allocation2 + $0xa4] sm:$0x3] %v1389_v25  ;;  %v1790_v41 = vrot.slane %v12074_v57, 5  ;;  %v1809_v7 = vor.u32 %v1808_v53, %v1805_v1  ;;  %vm12715_vm8 = vmor %vm1295_vm6, %vm3825_vm5 }
 0x1a5   : > { %1432 = vst [vmem:[#allocation2 + $0x9c] sm:$0x3] %v1431_v4  ;;  %v1794_v61 = vrot.slane %v12076_v56, 4  ;;  %2516 = vmatprep.mubr.bf16.mxu0 %v15798_v36  ;;  %v1472_v54 = vsel %vm11399_vm10, 0, %v1471_v29  ;;  %v1777_v12 = vsel %vm11513_vm13, %v1772_v45, %v1776_v14  ;;  %v1502_v39 = vld [vmem:[#allocation2 + $0x94] sm:$0xf] }
 0x1a6   : > { %v1830_v63 = vshll.u32 %v1501_v11, 16  ;;  %1473 = vst [vmem:[#allocation2 + $0x98] sm:$0x6] %v1472_v54  ;;  %v9192_v47 = vcombine.low %v1767_v37, %v1777_v12  ;;  %v1829_v15 = vrot.slane %v1827_v60, 4  ;;  %v9225_v49 = vcombine.low %v1501_v11, %v1502_v39  ;;  %v1532_v30 = vld [vmem:[#allocation2 + $0x8c] sm:$0x1] }
 0x1a7   : > { %v1795_v13 = vor.u32 %v1794_v61, %v1790_v41  ;;  %v12089_v50 = vshll.u32 %v1500_v55, 16  ;;  %v12091_v27 = vshrl.u32 %v1500_v55, 16  ;;  %v1791_v40 = vsel %vm11513_vm13, %v1786_v28, %v1790_v41  ;;  %v12100_v29 = vld [vmem:[#allocation2] sm:$0xe] }
 0x1a8   : > { %v1832_v2 = vrot.slane %v1830_v63, 5  ;;  %2150 = vmatmul.mubr.bf16.gmra.mxu1 %v9192_v47  ;;  %v1800_v14 = vrot.slane %v1798_v3, 5  ;;  %v1822_v11 = vshll.u32 %v1532_v30, 16  ;;  %v12098_v45 = vshll.u32 %v1502_v39, 16  ;;  %v1533_v63 = vld [vmem:[#allocation2 + $0x98] sm:$0x1] }
 0x1a9   : > { %v1796_v4 = vrot.slane %v1795_v13, 4  ;;  %2159 = vmatprep.mubr.bf16.mxu1 %v15798_v36  ;;  %v1814_v37 = vrot.slane %v12089_v50, 5  ;;  %v1818_v25 = vrot.slane %v12091_v27, 4  ;;  %v1810_v1 = vrot.slane %v1809_v7, 4  ;;  %v3062_v30 = vld [vmem:[#allocation2 + $0x8] sm:$0x3] }
 0x1aa   : > { %15819 = vst [vmem:[#allocation68_spill] sm:$0xff] %v12098_v45  ;;  %v1833_v53 = vor.u32 %v1832_v2, %v1829_v15  ;;  %v12104_v3 = vshrl.u32 %v1502_v39, 16  ;;  %v1824_v47 = vrot.slane %v1822_v11, 5  ;;  %v1838_v15 = vrot.slane %v12098_v45, 5  ;;  %v1504_v2 = vld [vmem:[#allocation2 + $0xa0] sm:$0xf] }
 0x1ab   : > { %v1474_v55 = vld [vmem:[#allocation2 + $0xa4] sm:$0x6]  ;;  %v1801_v28 = vsel %vm11513_vm13, %v1796_v4, %v1800_v14  ;;  %v1819_v41 = vor.u32 %v1818_v25, %v1814_v37  ;;  %v3080_v8 = vshrl.u32 %v12100_v29, 16  ;;  %v1846_v14 = vshll.u32 %v1533_v63, 16 }
 0x1ac   : > { %2517 = vmatmul.mubr.bf16.gmra.mxu0 %v9225_v49  ;;  %v1503_v61 = vld [vmem:[#allocation2 + $0x9c] sm:$0xf]  ;;  %15820 = vst [vmem:[#allocation69_spill] sm:$0xff] %v12104_v3  ;;  %v1475_v60 = vsel %vm11399_vm10, 0, %v1474_v55  ;;  %v9193_v54 = vcombine.low %v1791_v40, %v1801_v28  ;;  %v1815_v49 = vsel %vm11513_vm13, %v1810_v1, %v1814_v37  ;;  %v1834_v7 = vrot.slane %v1833_v53, 4 }
 0x1ad   : > { %2526 = vmatprep.mubr.bf16.mxu0 %v15798_v36  ;;  %v1851_v12 = vshrl.u32 %v1503_v61, 16  ;;  %1476 = vst [vmem:[#allocation2 + $0xa4] sm:$0x6] %v1475_v60  ;;  %v1854_v13 = vshll.u32 %v1503_v61, 16  ;;  %v1820_v39 = vrot.slane %v1819_v41, 4  ;;  %v9226_v40 = vcombine.low %v1503_v61, %v1504_v2 }
 0x1ae   : > { %v1842_v4 = vrot.slane %v12104_v3, 4  ;;  %v3083_v25 = vshll.u32 %v12100_v29, 16  ;;  %v3082_v55 = vrot.slane %v3080_v8, 5  ;;  %v3088_v28 = vrot.slane %v11410_v26, 5 }
 0x1af   : > { %v1853_v11 = vrot.slane %v1851_v12, 4  ;;  %v3089_v60 = vrot.slane %v11407_v19, 6  ;;  %v1856_v37 = vrot.slane %v1854_v13, 5  ;;  %v3094_v53 = vshrl.u32 %v3062_v30, 16  ;;  %v12124_v19 = vld [vmem:[#allocation2 + $0xc] sm:$0xe] }
 0x1b0   : > { %2160 = vmatmul.mubr.bf16.gmra.mxu1 %v9193_v54  ;;  %v3085_v1 = vrot.slane %v3083_v25, 6  ;;  %v3097_v41 = vshll.u32 %v3062_v30, 16  ;;  %v1825_v61 = vsel %vm11513_vm13, %v1820_v39, %v1824_v47  ;;  %v12120_v63 = vshll.u32 %v1504_v2, 16  ;;  %v3063_v25 = vld [vmem:[#allocation2 + $0x14] sm:$0x3] }
 0x1b1   : > { %2169 = vmatprep.mubr.bf16.mxu1 %v15798_v36  ;;  %v3090_v5 = vor.u32 %v3089_v60, %v3088_v28  ;;  %v12122_v45 = vshrl.u32 %v1504_v2, 16  ;;  %v1843_v54 = vor.u32 %v1842_v4, %v1838_v15  ;;  %v3096_v8 = vrot.slane %v3094_v53, 5 }
 0x1b2   : > { %15821 = vst [vmem:[#allocation70_spill] sm:$0xff] %v12120_v63  ;;  %v3086_v12 = vor.u32 %v3085_v1, %v3082_v55  ;;  %v3099_v26 = vrot.slane %v3097_v41, 6  ;;  %v9194_v3 = vcombine.low %v1815_v49, %v1825_v61  ;;  %v1857_v2 = vor.u32 %v1856_v37, %v1853_v11  ;;  %v1534_v41 = vld [vmem:[#allocation2 + $0xa4] sm:$0x1] }
 0x1b3   : > { %15822 = vst [vmem:[#allocation71_spill] sm:$0xff] %v12122_v45  ;;  %v3092_v30 = vrot.slane %v3090_v5, 4  ;;  %v1866_v4 = vrot.slane %v12122_v45, 4  ;;  %v3103_v55 = vshrl.u32 %v12124_v19, 16  ;;  %v3106_v49 = vshll.u32 %v12124_v19, 16 }
 0x1b4   : > { %2527 = vmatmul.mubr.bf16.gmra.mxu0 %v9226_v40  ;;  %v3087_v47 = vrot.slane %v3086_v12, 4  ;;  %v3100_v39 = vor.u32 %v3099_v26, %v3096_v8  ;;  %v1862_v40 = vrot.slane %v12120_v63, 5  ;;  %v1839_v28 = vsel %vm11513_vm13, %v1834_v7, %v1838_v15  ;;  %v10361_v12 = vld [vmem:[%s15650_s3 + $0x2f0] ss:$8 sps:$4 sm:$0xff]  }
 0x1b5   : > { %3586 = vmatprep.mubr.bf16.mxu0 %v15798_v36  ;;  %v1844_v60 = vrot.slane %v1843_v54, 4  ;;  %v1848_v1 = vrot.slane %v1846_v14, 5  ;;  %v3105_v11 = vrot.slane %v3103_v55, 5  ;;  %v3108_v37 = vrot.slane %v3106_v49, 6 }
 0x1b6   : > { %v3101_v53 = vsel %vm12129_vm1, %v3092_v30, %v3100_v39  ;;  %v3091_v26 = vsel %vm12129_vm1, %v3087_v47, %v3090_v5  ;;  %v3111_v61 = vrot.slane %v11594_v6, 5  ;;  %v3112_v7 = vrot.slane %v11591_v16, 6  ;;  %v12152_v39 = vld [vmem:[#allocation2 + $0x18] sm:$0xe]  ;;  %v3064_v6 = vld [vmem:[#allocation2 + $0x20] sm:$0x3] }
 0x1b7   : > { %v9319_v15 = vcombine.low %v3091_v26, %v3101_v53  ;;  %v3117_v14 = vshrl.u32 %v3063_v25, 16  ;;  %v3120_v54 = vshll.u32 %v3063_v25, 16  ;;  %v1858_v5 = vrot.slane %v1857_v2, 4  ;;  %v10364_v2 = vld [vmem:[%s15650_s3 + $0x2e0] ss:$8 sps:$4 sm:$0xff]  }
 0x1b8   : > { %2170 = vmatmul.mubr.bf16.gmra.mxu1 %v9194_v3  ;;  %v10366_v3 = vld [vmem:[%s15650_s3 + $0x2e4] ss:$8 sps:$4 sm:$0xff]   ;;  %v1867_v8 = vor.u32 %v1866_v4, %v1862_v40  ;;  %v1870_v47 = vshll.u32 %v1534_v41, 16  ;;  %v3109_v30 = vor.u32 %v3108_v37, %v3105_v11  ;;  %v1849_v55 = vsel %vm11513_vm13, %v1844_v60, %v1848_v1 }
 0x1b9   : > { %2179 = vmatprep.mubr.bf16.mxu1 %v15798_v36  ;;  %v3113_v49 = vor.u32 %v3112_v7, %v3111_v61  ;;  %v3119_v53 = vrot.slane %v3117_v14, 5  ;;  %v3122_v26 = vrot.slane %v3120_v54, 6  ;;  %v9195_v16 = vcombine.low %v1839_v28, %v1849_v55  ;;  %v10369_v28 = vld [vmem:[%s15650_s3 + $0x2d4] ss:$8 sps:$4 sm:$0xff]  }
 0x1ba   : > { %v3110_v25 = vrot.slane %v3109_v30, 4  ;;  %v3126_v11 = vshrl.u32 %v12152_v39, 16  ;;  %v3129_v60 = vshll.u32 %v12152_v39, 16  ;;  %v1863_v1 = vsel %vm11513_vm13, %v1858_v5, %v1862_v40  ;;  %v12171_v30 = vld [vmem:[#allocation2 + $0x24] sm:$0xe] }
 0x1bb   : > { %v3115_v4 = vrot.slane %v3113_v49, 4  ;;  %v3123_v41 = vor.u32 %v3122_v26, %v3119_v53  ;;  %v1868_v37 = vrot.slane %v1867_v8, 4  ;;  %v1872_v61 = vrot.slane %v1870_v47, 5  ;;  %v10367_v5 = vld [vmem:[%s15650_s3 + $0x2d0] ss:$8 sps:$4 sm:$0xff]  }
 0x1bc   : > { %3587 = vmatmul.mubr.bf16.vlgmr.msra.gmra.mxu0 %v9319_v15  ;;  %v3128_v7 = vrot.slane %v3126_v11, 5  ;;  %v3131_v14 = vrot.slane %v3129_v60, 6  ;;  %v3135_v54 = vrot.slane %v11678_v59, 6  ;;  %v3140_v55 = vshrl.u32 %v3064_v6, 16  ;;  %v3065_v11 = vld [vmem:[#allocation2 + $0x2c] sm:$0x3] }
 0x1bd   : > { %3596 = vmatprep.mubr.bf16.mxu0 %v15798_v36  ;;  %4797 = vmatpush1.bf16.msra.mxu0 %v10361_v12  ;;  %v3134_v12 = vrot.slane %v11681_v44, 5  ;;  %v3124_v15 = vsel %vm12129_vm1, %v3115_v4, %v3123_v41  ;;  %v3143_v40 = vshll.u32 %v3064_v6, 16  ;;  %v10415_v6 = vld [vmem:[#allocation2 + $0x4] sm:$0xf]  ;;  %v9243_v41 = vrot.slane %v12100_v29, 9 }
 0x1be   : > { %4798 = vmatprep.subr.bf16.mxu0 %v10366_v3  ;;  %v3114_v3 = vsel %vm12129_vm1, %v3110_v25, %v3113_v49  ;;  %v3132_v47 = vor.u32 %v3131_v14, %v3128_v7  ;;  %v1873_v49 = vsel %vm11513_vm13, %v1868_v37, %v1872_v61  ;;  %v2584_v26 = vrot.slane %v10415_v6, 5  ;;  %v10416_v37 = vld [vmem:[#allocation2 + $0x8] sm:$0x1]  ;;  %v10417_v6 = vld [vmem:[#allocation2 + $0x10] sm:$0xf] }
 0x1bf   : > { %v9320_v8 = vcombine.low %v3114_v3, %v3124_v15  ;;  %v3136_v53 = vor.u32 %v3135_v54, %v3134_v12  ;;  %v3142_v25 = vrot.slane %v3140_v55, 5  ;;  %v9196_v4 = vcombine.low %v1863_v1, %v1873_v49  ;;  %v10373_v1 = vld [vmem:[%s15650_s3 + $0x2c0] ss:$8 sps:$4 sm:$0xff]   ;;  %v10378_v3 = vld [vmem:[%s15650_s3 + $0x2b4] ss:$8 sps:$4 sm:$0xff]  }
 0x1c0   : > { %2180 = vmatmul.mubr.bf16.gmra.mxu1 %v9195_v16  ;;  %v10375_v16 = vld [vmem:[%s15650_s3 + $0x2c4] ss:$8 sps:$4 sm:$0xff]   ;;  %v3149_v60 = vshrl.u32 %v12171_v30, 16  ;;  %v3133_v12 = vrot.slane %v3132_v47, 4  ;;  %v2587_v61 = vrot.slane %v10416_v37, 5  ;;  %v3158_v54 = vrot.slane %v11754_v33, 6 }
 0x1c1   : > { %4799 = vmatpush1.bf16.msra.mxu0 %v10364_v2  ;;  %2189 = vmatprep.mubr.bf16.mxu1 %v15798_v36  ;;  %v3145_v2 = vrot.slane %v3143_v40, 6  ;;  %v3138_v15 = vrot.slane %v3136_v53, 4  ;;  %v2586_v55 = vrot.slane %v2584_v26, 4  ;;  %v12198_v47 = vld [vmem:[#allocation2 + $0x30] sm:$0xe]  ;;  %vm5067_vm6 = vcmask 1040384  }
 0x1c2   : > { %4800 = vmatprep.subr.bf16.mxu0 %v10369_v28  ;;  %v3152_v28 = vshll.u32 %v12171_v30, 16  ;;  %v3151_v29 = vrot.slane %v3149_v60, 5  ;;  %v3159_v60 = vor.u32 %v3158_v54, %v3157_v18  ;;  %v10418_v18 = vld [vmem:[#allocation2 + $0x14] sm:$0x1]  ;;  %vm13218_vm10 = vmor %vm5067_vm6, %vm5068_vm9 }
 0x1c3   : > { %v3146_v7 = vor.u32 %v3145_v2, %v3142_v25  ;;  %v3137_v2 = vsel %vm12129_vm1, %v3133_v12, %v3136_v53  ;;  %v10381_v53 = vld [vmem:[%s15650_s3 + $0x2a4] ss:$8 sps:$4 sm:$0xff]   ;;  %v2588_v12 = vsel %vm12202_vm4, %v2586_v55, %v2587_v61  ;;  %v10379_v61 = vld [vmem:[%s15650_s3 + $0x2a0] ss:$8 sps:$4 sm:$0xff]   ;;  %v10343_v55 = vld [vmem:[%s15650_s3 + $0x270] ss:$8 sps:$4 sm:$0xff]  }
 0x1c4   : > { %3597 = vmatmul.mubr.bf16.gmra.mxu0 %v9320_v8  ;;  %v3154_v14 = vrot.slane %v3152_v28, 6  ;;  %v3166_v8 = vshll.u32 %v3065_v11, 16 }
 0x1c5   : > { %3606 = vmatprep.mubr.bf16.mxu0 %v15798_v36  ;;  %4801 = vmatpush1.bf16.msra.mxu0 %v10367_v5  ;;  %v3147_v40 = vsel %vm12129_vm1, %v3138_v15, %v3146_v7  ;;  %v3163_v5 = vshrl.u32 %v3065_v11, 16  ;;  %v10376_v11 = vld [vmem:[%s15650_s3 + $0x2b0] ss:$8 sps:$4 sm:$0xff]   ;;  %v2585_v7 = vsel %vm12202_vm4, %v9243_v41, %v2584_v26 }
 0x1c6   : > { %4802 = vmatprep.subr.bf16.mxu0 %v10375_v16  ;;  %v2591_v16 = vrot.slane %v10417_v6, 5  ;;  %v3155_v25 = vor.u32 %v3154_v14, %v3151_v29  ;;  %v3168_v15 = vrot.slane %v3166_v8, 6  ;;  %v9321_v37 = vcombine.low %v3137_v2, %v3147_v40 }
 0x1c7   : > { %v3165_v28 = vrot.slane %v3163_v5, 5  ;;  %v9244_v29 = vrot.slane %v12124_v19, 9  ;;  %v3172_v14 = vshrl.u32 %v12198_v47, 16  ;;  %v3175_v5 = vshll.u32 %v12198_v47, 16 }
 0x1c8   : > { %2190 = vmatmul.mubr.bf16.gmra.mxu1 %v9196_v4  ;;  %v3066_v4 = vld [vmem:[#allocation2 + $0x38] sm:$0x3]  ;;  %v2593_v26 = vrot.slane %v2591_v16, 4  ;;  %v3156_v41 = vrot.slane %v3155_v25, 4  ;;  %v3180_v19 = vrot.slane %v11822_v17, 5  ;;  %v3181_v40 = vrot.slane %v11819_v21, 6 }
 0x1c9   : > { %4803 = vmatpush1.bf16.msra.mxu0 %v10373_v1  ;;  %2865 = vmatprep.mubr.bf16.mxu1 %v15798_v36  ;;  %v2594_v1 = vrot.slane %v10418_v18, 5  ;;  %v3169_v54 = vor.u32 %v3168_v15, %v3165_v28  ;;  %v3174_v8 = vrot.slane %v3172_v14, 5  ;;  %v3177_v6 = vrot.slane %v3175_v5, 6 }
 0x1ca   : > { %4804 = vmatprep.subr.bf16.mxu0 %v10378_v3  ;;  %v3161_v3 = vrot.slane %v3159_v60, 4  ;;  %v3186_v2 = vshrl.u32 %v3066_v4, 16  ;;  %v9273_v25 = vcombine.low %v2585_v7, %v2588_v12  ;;  %v12233_v28 = vsel %vm12202_vm4, %v9244_v29, %v2591_v16  ;;  %v10384_v16 = vld [vmem:[%s15650_s3 + $0x294] ss:$8 sps:$4 sm:$0xff]   ;;  %v10346_v12 = vld [vmem:[%s15650_s3 + $0x260] ss:$8 sps:$4 sm:$0xff]  }
 0x1cb   : > { %v3189_v15 = vshll.u32 %v3066_v4, 16  ;;  %v9245_v18 = vrot.slane %v12152_v39, 9  ;;  %v12243_v5 = vor.u32 %v3181_v40, %v3180_v19  ;;  %v2595_v29 = vsel %vm12202_vm4, %v2593_v26, %v2594_v1  ;;  %v10382_v1 = vld [vmem:[%s15650_s3 + $0x290] ss:$8 sps:$4 sm:$0xff]  }
 0x1cc   : > { %3607 = vmatmul.mubr.bf16.gmra.mxu0 %v9321_v37  ;;  %v12235_v37 = vld [vmem:[#allocation2 + $0x3c] sm:$0xe]  ;;  %v3170_v14 = vsel %vm12129_vm1, %v3161_v3, %v3169_v54  ;;  %v3188_v7 = vrot.slane %v3186_v2, 5  ;;  %v3160_v39 = vsel %vm12129_vm1, %v3156_v41, %v3159_v60  ;;  %v3178_v40 = vor.u32 %v3177_v6, %v3174_v8  ;;  %v10420_v60 = vld [vmem:[%s15649_s2] sm:$0x7] }
 0x1cd   : > { %3616 = vmatprep.mubr.bf16.mxu0 %v15798_v36  ;;  %4805 = vmatpush1.bf16.msra.mxu0 %v10376_v11  ;;  %v10348_v11 = vld [vmem:[%s15650_s3 + $0x264] ss:$8 sps:$4 sm:$0xff]   ;;  %v3191_v4 = vrot.slane %v3189_v15, 6  ;;  %v10419_v54 = vld [vmem:[#allocation2 + $0x1c] sm:$0xf]  ;;  %v3195_v3 = vshrl.u32 %v12235_v37, 16  ;;  %v9322_v26 = vcombine.low %v3160_v39, %v3170_v14 }
 0x1ce   : > { %4806 = vmatprep.subr.bf16.mxu0 %v10381_v53  ;;  %v459_v53 = vsub.s32 2, %v11345_v20  ;;  %v2598_v19 = vrot.slane %v10419_v54, 5  ;;  %v9274_v20 = vcombine.low %v12233_v28, %v2595_v29  ;;  %v3067_v8 = vld [vmem:[#allocation2 + $0x44] sm:$0x3]  ;;  %v3198_v6 = vshll.u32 %v12235_v37, 16 }
 0x1cf   : > { %v10390_v2 = vld [vmem:[%s15650_s3 + $0x284] ss:$8 sps:$4 sm:$0xff]   ;;  %v3184_v28 = vrot.slane %v12243_v5, 4  ;;  %v3192_v15 = vor.u32 %v3191_v4, %v3188_v7  ;;  %v10351_v14 = vld [vmem:[%s15650_s3 + $0x254] ss:$8 sps:$4 sm:$0xff]   ;;  %v3203_v7 = vrot.slane %v11887_v22, 5 }
 0x1d0   : > { %2866 = vmatmul.mubr.bf16.vlgmr.msra.gmra.mxu1 %v9273_v25  ;;  %v12265_v41 = vrot.slane %v10420_v60, %v459_v53  ;;  %v3204_v4 = vrot.slane %v11883_v62, 6  ;;  %v3197_v53 = vrot.slane %v3195_v3, 5  ;;  %v3200_v39 = vrot.slane %v3198_v6, 6  ;;  %v12298_v22 = vld [vmem:[#allocation2 + $0x48] sm:$0xe] }
 0x1d1   : > { %4807 = vmatpush1.bf16.msra.mxu0 %v10379_v61  ;;  %4079 = vmatpush1.bf16.msra.mxu1 %v10343_v55  ;;  %v12273_v61 = vsel %vm12202_vm4, %v9245_v18, %v2598_v19  ;;  %v10421_v55 = vld [vmem:[#allocation2 + $0x20] sm:$0x1]  ;;  %v3209_v54 = vshrl.u32 %v3067_v8, 16  ;;  %v9246_v3 = vrot.slane %v12171_v30, 9 }
 0x1d2   : > { %2875 = vmatprep.mubr.bf16.mxu1 %v15798_v36  ;;  %4080 = vmatprep.subr.bf16.mxu1 %v10348_v11  ;;  %v2601_v25 = vrot.slane %v10421_v55, 5  ;;  %v12281_v29 = vadd.f32 %v11825_v23, %v12265_v41  ;;  %v10349_v11 = vld [vmem:[%s15650_s3 + $0x250] ss:$8 sps:$4 sm:$0xff]   ;;  %v12288_v18 = vadd.f32 %v11843_v9, %v12265_v41  ;;  %v10388_v23 = vld [vmem:[%s15650_s3 + $0x280] ss:$8 sps:$4 sm:$0xff]   ;;  %v3212_v55 = vshll.u32 %v3067_v8, 16 }
 0x1d3   : > { %4808 = vmatprep.subr.bf16.mxu0 %v10384_v16  ;;  %v3179_v16 = vrot.slane %v3178_v40, 4  ;;  %v3193_v40 = vsel %vm12129_vm1, %v3184_v28, %v3192_v15  ;;  %v3211_v62 = vrot.slane %v3209_v54, 5  ;;  %v12308_v8 = vadd.f32 %v11866_v43, %v12265_v41  ;;  %v10423_v28 = vld [vmem:[#allocation2 + $0x2c] sm:$0x1] }
 0x1d4   : > { %3617 = vmatmul.mubr.bf16.gmra.mxu0 %v9322_v26  ;;  %15827 = vst [vmem:[#allocation72_spill] sm:$0xff] %v12281_v29  ;;  %15828 = vst [vmem:[#allocation73_spill] sm:$0xff] %v12288_v18  ;;  %v2600_v26 = vrot.slane %v2598_v19, 4  ;;  %v3205_v19 = vor.u32 %v3204_v4, %v3203_v7  ;;  %v3214_v9 = vrot.slane %v3212_v55, 6  ;;  %v2608_v15 = vrot.slane %v10423_v28, 5 }
 0x1d5   : > { %3626 = vmatprep.mubr.bf16.mxu0 %v15798_v36  ;;  %4809 = vmatpush1.bf16.msra.mxu0 %v10382_v1  ;;  %v10422_v1 = vld [vmem:[#allocation2 + $0x28] sm:$0xf]  ;;  %15829 = vst [vmem:[#allocation74_spill] sm:$0xff] %v12308_v8  ;;  %v3183_v30 = vsel %vm12129_vm1, %v3179_v16, %v12243_v5  ;;  %v12319_v7 = vadd.f32 %v11889_v38, %v12265_v41  ;;  %v3068_v4 = vld [vmem:[#allocation2 + $0x50] sm:$0x3]  ;;  %v3218_v54 = vshrl.u32 %v12298_v22, 16 }
 0x1d6   : > { %4081 = vmatpush1.bf16.msra.mxu1 %v10346_v12  ;;  %4810 = vmatprep.subr.bf16.mxu0 %v10390_v2  ;;  %v2605_v6 = vrot.slane %v10422_v1, 5  ;;  %v10354_v12 = vld [vmem:[%s15650_s3 + $0x244] ss:$8 sps:$4 sm:$0xff]   ;;  %v12312_v2 = vadd.f32 %v11879_v46, %v12265_v41  ;;  %v9323_v43 = vcombine.low %v3183_v30, %v3193_v40  ;;  %v10352_v5 = vld [vmem:[%s15650_s3 + $0x240] ss:$8 sps:$4 sm:$0xff]   ;;  %v3207_v55 = vrot.slane %v3205_v19, 4 }
 0x1d7   : > { %4082 = vmatprep.subr.bf16.mxu1 %v10351_v14  ;;  %v3201_v14 = vor.u32 %v3200_v39, %v3197_v53  ;;  %15831 = vst [vmem:[#allocation76_spill] sm:$0xff] %v12319_v7  ;;  %v3215_v53 = vor.u32 %v3214_v9, %v3211_v62  ;;  %v3221_v39 = vshll.u32 %v12298_v22, 16  ;;  %v3220_v40 = vrot.slane %v3218_v54, 5 }
 0x1d8   : > { %15830 = vst [vmem:[#allocation75_spill] sm:$0xff] %v12312_v2  ;;  %2876 = vmatmul.mubr.bf16.gmra.mxu1 %v9274_v20  ;;  %v2607_v16 = vrot.slane %v2605_v6, 4  ;;  %v3226_v1 = vrot.slane %v11948_v51, 5  ;;  %v3227_v30 = vrot.slane %v11945_v58, 6  ;;  %v3232_v28 = vshrl.u32 %v3068_v4, 16 }
 0x1d9   : > { %4811 = vmatpush1.bf16.msra.mxu0 %v10388_v23  ;;  %2885 = vmatprep.mubr.bf16.mxu1 %v15798_v36  ;;  %v2602_v23 = vsel %vm12202_vm4, %v2600_v26, %v2601_v25  ;;  %v3202_v62 = vrot.slane %v3201_v14, 4  ;;  %v3223_v9 = vrot.slane %v3221_v39, 6  ;;  %v3235_v38 = vshll.u32 %v3068_v4, 16  ;;  %v10355_v25 = vld [vmem:[%s15650_s3 + $0x230] ss:$8 sps:$4 sm:$0xff]  }
 0x1da   : > { %4083 = vmatpush1.bf16.msra.mxu1 %v10349_v11  ;;  %v10357_v11 = vld [vmem:[%s15650_s3 + $0x234] ss:$8 sps:$4 sm:$0xff]   ;;  %v12341_v46 = vadd.f32 %v11900_v32, %v12265_v41  ;;  %v2606_v26 = vsel %vm12202_vm4, %v9246_v3, %v2605_v6  ;;  %v2609_v14 = vsel %vm12202_vm4, %v2607_v16, %v2608_v15  ;;  %v10360_v32 = vld [vmem:[%s15650_s3 + $0x224] ss:$8 sps:$4 sm:$0xff]   ;;  %v9247_v6 = vrot.slane %v12198_v47, 9 }
 0x1db   : > { %4084 = vmatprep.subr.bf16.mxu1 %v10354_v12  ;;  %v9275_v12 = vcombine.low %v12273_v61, %v2602_v23  ;;  %v3234_v61 = vrot.slane %v3232_v28, 5  ;;  %v12352_v4 = vld [vmem:[#allocation2 + $0x54] sm:$0xe]  ;;  %v3224_v54 = vor.u32 %v3223_v9, %v3220_v40  ;;  %v3237_v39 = vrot.slane %v3235_v38, 6  ;;  %v10425_v40 = vld [vmem:[#allocation2 + $0x38] sm:$0x1] }
 0x1dc   : > { %3627 = vmatmul.mubr.bf16.gmra.mxu0 %v9323_v43  ;;  %15832 = vst [vmem:[#allocation77_spill] sm:$0xff] %v12341_v46  ;;  %v3216_v43 = vsel %vm12129_vm1, %v3207_v55, %v3215_v53  ;;  %v3206_v3 = vsel %vm12129_vm1, %v3202_v62, %v3205_v19  ;;  %v12363_v15 = vadd.f32 %v11914_v52, %v12265_v41  ;;  %v10424_v38 = vld [vmem:[#allocation2 + $0x34] sm:$0xf]  ;;  %v3069_v19 = vld [vmem:[#allocation2 + $0x5c] sm:$0x3]  ;;  %v3241_v47 = vshrl.u32 %v12352_v4, 16 }
 0x1dd   : > { %3636 = vmatprep.mubr.bf16.mxu0 %v15798_v36  ;;  %v12367_v16 = vadd.f32 %v11928_v0, %v12265_v41  ;;  %v9324_v53 = vcombine.low %v3206_v3, %v3216_v43  ;;  %v12372_v55 = vadd.f32 %v11941_v24, %v12265_v41  ;;  %v10358_v52 = vld [vmem:[%s15650_s3 + $0x220] ss:$8 sps:$4 sm:$0xff]   ;;  %v2615_v0 = vrot.slane %v10425_v40, 5  ;;  %v10372_v24 = vld [vmem:[%s15650_s3 + $0x214] ss:$8 sps:$4 sm:$0xff]  }
 0x1de   : > { %4085 = vmatpush1.bf16.msra.mxu1 %v10352_v5  ;;  %v3228_v5 = vor.u32 %v3227_v30, %v3226_v1  ;;  %15833 = vst [vmem:[#allocation78_spill] sm:$0xff] %v12363_v15  ;;  %v3238_v1 = vor.u32 %v3237_v39, %v3234_v61  ;;  %v3225_v30 = vrot.slane %v3224_v54, 4  ;;  %v3243_v43 = vrot.slane %v3241_v47, 5  ;;  %v10370_v54 = vld [vmem:[%s15650_s3 + $0x210] ss:$8 sps:$4 sm:$0xff]  }
 0x1df   : > { %4086 = vmatprep.subr.bf16.mxu1 %v10357_v11  ;;  %15834 = vst [vmem:[#allocation79_spill] sm:$0xff] %v12367_v16  ;;  %v2612_v11 = vrot.slane %v10424_v38, 5  ;;  %15835 = vst [vmem:[#allocation80_spill] sm:$0xff] %v12372_v55  ;;  %v3249_v61 = vrot.slane %v11990_v42, 5  ;;  %v3250_v39 = vrot.slane %v11987_v35, 6  ;;  %v3255_v3 = vshrl.u32 %v3069_v19, 16 }
 0x1e0   : > { %2886 = vmatmul.mubr.bf16.gmra.mxu1 %v9275_v12  ;;  %v3230_v28 = vrot.slane %v3228_v5, 4  ;;  %v3258_v40 = vshll.u32 %v3069_v19, 16  ;;  %v9276_v12 = vcombine.low %v2606_v26, %v2609_v14  ;;  %v12405_v20 = vld [vmem:[#allocation2 + $0x60] sm:$0xe]  ;;  %v3229_v14 = vsel %vm12129_vm1, %v3225_v30, %v3228_v5  ;;  %v3074_v46 = vld [vmem:[#allocation2 + $0x98] sm:$0x3] }
 0x1e1   : > { %2895 = vmatprep.mubr.bf16.mxu1 %v15798_v36  ;;  %v3257_v62 = vrot.slane %v3255_v3, 5  ;;  %v3251_v19 = vor.u32 %v3250_v39, %v3249_v61  ;;  %v2613_v26 = vsel %vm12202_vm4, %v9247_v6, %v2612_v11  ;;  %v3070_v6 = vld [vmem:[#allocation2 + $0x68] sm:$0x3]  ;;  %v15844_v30 = vld [vmem:[#allocation66_spill] sm:$0xff]  ;;  %v9249_v55 = vrot.slane %v12298_v22, 9 }
 0x1e2   : > { %4087 = vmatpush1.bf16.msra.mxu1 %v10355_v25  ;;  %v3244_v25 = vshll.u32 %v12352_v4, 16  ;;  %v3239_v47 = vsel %vm12129_vm1, %v3230_v28, %v3238_v1  ;;  %v3260_v9 = vrot.slane %v3258_v40, 6  ;;  %v10385_v5 = vld [vmem:[%s15650_s3 + $0x200] ss:$8 sps:$4 sm:$0xff]   ;;  %v3281_v60 = vshll.u32 %v3070_v6, 16 }
 0x1e3   : > { %4088 = vmatprep.subr.bf16.mxu1 %v10360_v32  ;;  %v2614_v32 = vrot.slane %v2612_v11, 4  ;;  %v9325_v39 = vcombine.low %v3229_v14, %v3239_v47  ;;  %v10426_v47 = vld [vmem:[#allocation2 + $0x40] sm:$0xf]  ;;  %v3342_v8 = vrot.slane %v12089_v50, 6  ;;  %v3370_v29 = vshrl.u32 %v3074_v46, 16 }
 0x1e4   : > { %3637 = vmatmul.mubr.bf16.gmra.mxu0 %v9324_v53  ;;  %v3246_v38 = vrot.slane %v3244_v25, 6  ;;  %v12390_v53 = vadd.f32 %v11950_v31, %v12265_v41  ;;  %v10387_v25 = vld [vmem:[%s15650_s3 + $0x204] ss:$8 sps:$4 sm:$0xff]   ;;  %v3261_v11 = vor.u32 %v3260_v9, %v3257_v62  ;;  %v3278_v31 = vshrl.u32 %v3070_v6, 16 }
 0x1e5   : > { %3646 = vmatprep.mubr.bf16.mxu0 %v15798_v36  ;;  %v2616_v61 = vsel %vm12202_vm4, %v2614_v32, %v2615_v0  ;;  %v3267_v0 = vshll.u32 %v12405_v20, 16  ;;  %v10393_v32 = vld [vmem:[%s15650_s3 + $0x374] ss:$8 sps:$4 sm:$0xff]  }
 0x1e6   : > { %15836 = vst [vmem:[#allocation81_spill] sm:$0xff] %v12390_v53  ;;  %4089 = vmatpush1.bf16.msra.mxu1 %v10358_v52  ;;  %v15837_v52 = vld [vmem:[#allocation60_spill] sm:$0xff]  ;;  %v3247_v1 = vor.u32 %v3246_v38, %v3243_v43  ;;  %v3264_v43 = vshrl.u32 %v12405_v20, 16  ;;  %v9277_v38 = vcombine.low %v2613_v26, %v2616_v61  ;;  %v9248_v61 = vrot.slane %v12235_v37, 9 }
 0x1e7   : > { %4090 = vmatprep.subr.bf16.mxu1 %v10372_v24  ;;  %v12403_v23 = vadd.f32 %v15837_v52, %v12265_v41  ;;  %v15839_v24 = vld [vmem:[#allocation61_spill] sm:$0xff]  ;;  %v3253_v52 = vrot.slane %v3251_v19, 4  ;;  %v3280_v6 = vrot.slane %v3278_v31, 5 }
 0x1e8   : > { %2896 = vmatmul.mubr.bf16.gmra.mxu1 %v9276_v12  ;;  %v12413_v28 = vadd.f32 %v15839_v24, %v12265_v41  ;;  %v15841_v12 = vld [vmem:[#allocation62_spill] sm:$0xff]  ;;  %v3248_v62 = vrot.slane %v3247_v1, 4  ;;  %v3266_v9 = vrot.slane %v3264_v43, 5  ;;  %v3269_v24 = vrot.slane %v3267_v0, 6  ;;  %v15847_v1 = vld [vmem:[#allocation64_spill] sm:$0xff] }
 0x1e9   : > { %15838 = vst [vmem:[#allocation60_spill] sm:$0xff] %v12403_v23  ;;  %2905 = vmatprep.mubr.bf16.mxu1 %v15798_v36  ;;  %v12421_v40 = vadd.f32 %v15841_v12, %v12265_v41  ;;  %v15843_v12 = vld [vmem:[#allocation67_spill] sm:$0xff]  ;;  %v12445_v43 = vadd.f32 %v15847_v1, %v12265_v41  ;;  %v3296_v1 = vrot.slane %v12061_v48, 6 }
 0x1ea   : > { %15840 = vst [vmem:[#allocation61_spill] sm:$0xff] %v12413_v28  ;;  %4091 = vmatpush1.bf16.msra.mxu1 %v10370_v54  ;;  %v2619_v54 = vrot.slane %v10426_v47, 5  ;;  %v3272_v3 = vrot.slane %v15843_v12, 5  ;;  %v15845_v23 = vld [vmem:[#allocation63_spill] sm:$0xff]  ;;  %v3270_v47 = vor.u32 %v3269_v24, %v3266_v9  ;;  %v3252_v37 = vsel %vm12129_vm1, %v3248_v62, %v3251_v19  ;;  %v3071_v24 = vld [vmem:[#allocation2 + $0x74] sm:$0x3] }
 0x1eb   : > { %15842 = vst [vmem:[#allocation62_spill] sm:$0xff] %v12421_v40  ;;  %4092 = vmatprep.subr.bf16.mxu1 %v10387_v25  ;;  %v3273_v25 = vrot.slane %v15844_v30, 6  ;;  %v12438_v26 = vadd.f32 %v15845_v23, %v12265_v41  ;;  %15848 = vst [vmem:[#allocation66_spill] sm:$0xff] %v12445_v43  ;;  %v12447_v0 = vld [vmem:[#allocation2 + $0x6c] sm:$0xe]  ;;  %v3283_v40 = vrot.slane %v3281_v60, 6 }
 0x1ec   : > { %3647 = vmatmul.mubr.bf16.gmra.mxu0 %v9325_v39  ;;  %v3262_v39 = vsel %vm12129_vm1, %v3253_v52, %v3261_v11  ;;  %v2621_v52 = vrot.slane %v2619_v54, 4  ;;  %v3290_v31 = vshll.u32 %v12447_v0, 16  ;;  %v2620_v60 = vsel %vm12202_vm4, %v9248_v61, %v2619_v54  ;;  %v10428_v54 = vld [vmem:[#allocation2 + $0x4c] sm:$0xf] }
 0x1ed   : > { %3656 = vmatprep.mubr.bf16.mxu0 %v15798_v36  ;;  %15846 = vst [vmem:[#allocation67_spill] sm:$0xff] %v12438_v26  ;;  %v3274_v14 = vor.u32 %v3273_v25, %v3272_v3  ;;  %v9326_v9 = vcombine.low %v3252_v37, %v3262_v39  ;;  %v3284_v3 = vor.u32 %v3283_v40, %v3280_v6  ;;  %v3271_v25 = vrot.slane %v3270_v47, 4  ;;  %v15849_v47 = vld [vmem:[#allocation65_spill] sm:$0xff] }
 0x1ee   : > { %4093 = vmatpush1.bf16.msra.mxu1 %v10385_v5  ;;  %v10427_v5 = vld [vmem:[#allocation2 + $0x44] sm:$0x1]  ;;  %v3295_v62 = vrot.slane %v12065_v10, 5  ;;  %v3301_v37 = vshrl.u32 %v3071_v24, 16  ;;  %v3304_v11 = vshll.u32 %v3071_v24, 16  ;;  %v2626_v61 = vrot.slane %v10428_v54, 5 }
 0x1ef   : > { %5321 = vmatprep.subr.bf16.mxu1 %v10393_v32  ;;  %v2622_v28 = vrot.slane %v10427_v5, 5  ;;  %v3287_v32 = vshrl.u32 %v12447_v0, 16  ;;  %v3276_v19 = vrot.slane %v3274_v14, 4  ;;  %v3292_v5 = vrot.slane %v3290_v31, 6  ;;  %v3072_v54 = vld [vmem:[#allocation2 + $0x80] sm:$0x3] }
 0x1f0   : > { %2906 = vmatmul.mubr.bf16.gmra.mxu1 %v9277_v38  ;;  %v12458_v38 = vpop.f32.mrf.mxu0  ;;  %v12469_v6 = vadd.f32 %v15849_v47, %v12265_v41  ;;  %v3303_v31 = vrot.slane %v3301_v37, 5  ;;  %v3306_v26 = vrot.slane %v3304_v11, 6  ;;  %v3297_v47 = vor.u32 %v3296_v1, %v3295_v62 }
 0x1f1   : > { %2915 = vmatprep.mubr.bf16.mxu1 %v15798_v36  ;;  %v3289_v39 = vrot.slane %v3287_v32, 5  ;;  %v2623_v40 = vsel %vm12202_vm4, %v2621_v52, %v2622_v28  ;;  %v3285_v32 = vsel %vm12129_vm1, %v3276_v19, %v3284_v3  ;;  %v3275_v28 = vsel %vm12129_vm1, %v3271_v25, %v3274_v14  ;;  %v10429_v19 = vld [vmem:[#allocation2 + $0x50] sm:$0x1] }
 0x1f2   : > { %v12463_v23 = vpop.f32.mrf.mxu0  ;;  %15850 = vst [vmem:[#allocation63_spill] sm:$0xff] %v12469_v6  ;;  %v9278_v43 = vcombine.low %v2620_v60, %v2623_v40  ;;  %v2628_v11 = vrot.slane %v2626_v61, 4  ;;  %v2629_v22 = vrot.slane %v10429_v19, 5  ;;  %v9327_v37 = vcombine.low %v3275_v28, %v3285_v32  ;;  %v10430_v32 = vld [vmem:[#allocation2 + $0x58] sm:$0xf] }
 0x1f3   : > { %v3293_v41 = vor.u32 %v3292_v5, %v3289_v39  ;;  %v3307_v15 = vor.u32 %v3306_v26, %v3303_v31  ;;  %v3324_v14 = vshrl.u32 %v3072_v54, 16  ;;  %v3327_v25 = vshll.u32 %v3072_v54, 16  ;;  %v12495_v28 = vld [vmem:[#allocation2 + $0x84] sm:$0xe] }
 0x1f4   : > { %3657 = vmatmul.mubr.bf16.gmra.mxu0 %v9326_v9  ;;  %v12471_v9 = vld [vmem:[#allocation2 + $0x78] sm:$0xe]  ;;  %v12475_v24 = vpop.f32.mrf.mxu0  ;;  %v3318_v62 = vrot.slane %v12076_v56, 5  ;;  %v3319_v1 = vrot.slane %v12074_v57, 6  ;;  %v3299_v52 = vrot.slane %v3297_v47, 4  ;;  %v2630_v26 = vsel %vm12202_vm4, %v2628_v11, %v2629_v22 }
 0x1f5   : > { %3666 = vmatprep.mubr.bf16.mxu0 %v15798_v36  ;;  %v3310_v60 = vshrl.u32 %v12471_v9, 16  ;;  %v3313_v40 = vshll.u32 %v12471_v9, 16  ;;  %v3294_v5 = vrot.slane %v3293_v41, 4  ;;  %v2633_v31 = vrot.slane %v10430_v32, 5 }
 0x1f6   : > { %v12483_v3 = vpop.f32.mrf.mxu0  ;;  %v3308_v54 = vsel %vm12129_vm1, %v3299_v52, %v3307_v15  ;;  %v3329_v53 = vrot.slane %v3327_v25, 6  ;;  %v9250_v41 = vrot.slane %v12352_v4, 9  ;;  %v3320_v16 = vor.u32 %v3319_v1, %v3318_v62 }
 0x1f7   : > { %v3312_v6 = vrot.slane %v3310_v60, 5  ;;  %v3315_v19 = vrot.slane %v3313_v40, 6  ;;  %v3073_v60 = vld [vmem:[#allocation2 + $0x8c] sm:$0x3]  ;;  %v3298_v40 = vsel %vm12129_vm1, %v3294_v5, %v3297_v47  ;;  %v3333_v22 = vshrl.u32 %v12495_v28, 16 }
 0x1f8   : > { %2916 = vmatmul.mubr.bf16.gmra.mxu1 %v9278_v43  ;;  %v2627_v43 = vsel %vm12202_vm4, %v9249_v55, %v2626_v61  ;;  %v12490_v39 = vpop.f32.mrf.mxu0  ;;  %v3336_v32 = vshll.u32 %v12495_v28, 16  ;;  %v2635_v15 = vrot.slane %v2633_v31, 4  ;;  %v9328_v52 = vcombine.low %v3298_v40, %v3308_v54 }
 0x1f9   : > { %2925 = vmatprep.mubr.bf16.mxu1 %v15798_v36  ;;  %v9279_v61 = vcombine.low %v2627_v43, %v2630_v26  ;;  %v3316_v11 = vor.u32 %v3315_v19, %v3312_v6  ;;  %v10431_v43 = vld [vmem:[#allocation2 + $0x5c] sm:$0x1]  ;;  %v3350_v25 = vshll.u32 %v3073_v60, 16  ;;  %v2634_v62 = vsel %vm12202_vm4, %v9250_v41, %v2633_v31  ;;  %v10432_v6 = vld [vmem:[#allocation2 + $0x64] sm:$0xf] }
 0x1fa   : > { %v12497_v55 = vpop.f32.mrf.mxu0  ;;  %v2636_v26 = vrot.slane %v10431_v43, 5  ;;  %v2640_v47 = vrot.slane %v10432_v6, 5  ;;  %v3322_v1 = vrot.slane %v3320_v16, 4  ;;  %v3341_v5 = vrot.slane %v12091_v27, 5 }
 0x1fb   : > { %v3317_v19 = vrot.slane %v3316_v11, 4  ;;  %v3338_v43 = vrot.slane %v3336_v32, 6 }
 0x1fc   : > { %3667 = vmatmul.mubr.bf16.gmra.mxu0 %v9327_v37  ;;  %v3326_v37 = vrot.slane %v3324_v14, 5  ;;  %v12506_v7 = vpop.f32.mrf.mxu0  ;;  %v3347_v14 = vshrl.u32 %v3073_v60, 16  ;;  %v2637_v31 = vsel %vm12202_vm4, %v2635_v15, %v2636_v26  ;;  %v2642_v26 = vrot.slane %v2640_v47, 4 }
 0x1fd   : > { %3676 = vmatprep.mubr.bf16.mxu0 %v15798_v36  ;;  %v9280_v41 = vcombine.low %v2634_v62, %v2637_v31 }
 0x1fe   : > { %v3330_v4 = vor.u32 %v3329_v53, %v3326_v37  ;;  %v12514_v54 = vpop.f32.mrf.mxu0  ;;  %v12516_v53 = vld [vmem:[#allocation2 + $0x90] sm:$0xe]  ;;  %v9251_v37 = vrot.slane %v12405_v20, 9  ;;  %v3349_v40 = vrot.slane %v3347_v14, 5  ;;  %v3321_v20 = vsel %vm12129_vm1, %v3317_v19, %v3320_v16 }
 0x1ff   : > { %v3356_v2 = vshrl.u32 %v12516_v53, 16  ;;  %v3359_v18 = vshll.u32 %v12516_v53, 16  ;;  %v3373_v16 = vshll.u32 %v3074_v46, 16 }
 0x200   : > { %2926 = vmatmul.mubr.bf16.gmra.mxu1 %v9279_v61  ;;  %v3335_v61 = vrot.slane %v3333_v22, 5  ;;  %v3331_v60 = vsel %vm12129_vm1, %v3322_v1, %v3330_v4  ;;  %v10433_v22 = vld [vmem:[#allocation2 + $0x68] sm:$0x1]  ;;  %v3343_v4 = vor.u32 %v3342_v8, %v3341_v5 }
 0x201   : > { %2935 = vmatprep.mubr.bf16.mxu1 %v15798_v36  ;;  %v2643_v32 = vrot.slane %v10433_v22, 5  ;;  %v9329_v62 = vcombine.low %v3321_v20, %v3331_v60  ;;  %v3358_v5 = vrot.slane %v3356_v2, 5  ;;  %v10434_v20 = vld [vmem:[#allocation2 + $0x70] sm:$0xf]  ;;  %v12553_v2 = vld [vmem:[#allocation2 + $0x9c] sm:$0xe] }
 0x202   : > { %v3339_v15 = vor.u32 %v3338_v43, %v3335_v61  ;;  %v3361_v61 = vrot.slane %v3359_v18, 6  ;;  %v15855_v43 = vld [vmem:[#allocation68_spill] sm:$0xff]  ;;  %v3345_v60 = vrot.slane %v3343_v4, 4  ;;  %v9252_v18 = vrot.slane %v12447_v0, 9 }
 0x203   : > { %v2061_v11 = vpop.f32.mrf.mxu1  ;;  %v3382_v0 = vshll.u32 %v12553_v2, 16 }
 0x204   : > { %3677 = vmatmul.mubr.bf16.gmra.mxu0 %v9328_v52  ;;  %v3352_v52 = vrot.slane %v3350_v25, 6  ;;  %v12524_v6 = vadd.f32 %v12458_v38, %v2061_v11  ;;  %v2641_v38 = vsel %vm12202_vm4, %v9251_v37, %v2640_v47  ;;  %v15853_v11 = vld [vmem:[#allocation69_spill] sm:$0xff]  ;;  %v3365_v47 = vrot.slane %v15855_v43, 6 }
 0x205   : > { %3686 = vmatprep.mubr.bf16.mxu0 %v15798_v36  ;;  %v2063_v14 = vpop.f32.mrf.mxu1  ;;  %v12530_v25 = vpop.f32.mrf.mxu0  ;;  %v3364_v22 = vrot.slane %v15853_v11, 5  ;;  %v3340_v37 = vrot.slane %v3339_v15, 4 }
 0x206   : > { %15851 = vst [vmem:[#allocation64_spill] sm:$0xff] %v12524_v6  ;;  %v12536_v1 = vadd.f32 %v12463_v23, %v2063_v14  ;;  %v3353_v31 = vor.u32 %v3352_v52, %v3349_v40  ;;  %v2644_v23 = vsel %vm12202_vm4, %v2642_v26, %v2643_v32  ;;  %v2647_v14 = vrot.slane %v10434_v20, 5 }
 0x207   : > { %v12539_v19 = vpop.f32.mrf.mxu0  ;;  %v9281_v46 = vcombine.low %v2641_v38, %v2644_v23  ;;  %v3372_v26 = vrot.slane %v3370_v29, 5  ;;  %v3344_v38 = vsel %vm12129_vm1, %v3340_v37, %v3343_v4  ;;  %v3379_v23 = vshrl.u32 %v12553_v2, 16  ;;  %v10436_v37 = vld [vmem:[#allocation2 + $0x7c] sm:$0xf] }
 0x208   : > { %2936 = vmatmul.mubr.bf16.gmra.mxu1 %v9280_v41  ;;  %15852 = vst [vmem:[#allocation65_spill] sm:$0xff] %v12536_v1  ;;  %v2065_v41 = vpop.f32.mrf.mxu1  ;;  %v3354_v32 = vsel %vm12129_vm1, %v3345_v60, %v3353_v31  ;;  %v3075_v1 = vld [vmem:[#allocation2 + $0xa4] sm:$0x3]  ;;  %v2649_v29 = vrot.slane %v2647_v14, 4  ;;  %v2654_v60 = vrot.slane %v10436_v37, 5  ;;  %v3384_v6 = vrot.slane %v3382_v0, 6 }
 0x209   : > { %2945 = vmatprep.mubr.bf16.mxu1 %v15798_v36  ;;  %v12542_v8 = vadd.f32 %v12475_v24, %v2065_v41  ;;  %v12548_v52 = vpop.f32.mrf.mxu0  ;;  %v3362_v41 = vor.u32 %v3361_v61, %v3358_v5  ;;  %v9330_v31 = vcombine.low %v3344_v38, %v3354_v32  ;;  %v3393_v61 = vshrl.u32 %v3075_v1, 16  ;;  %v12588_v37 = vld [vmem:[#allocation2] sm:$0xc] }
 0x20a   : > { %v2067_v40 = vpop.f32.mrf.mxu1  ;;  %v3381_v38 = vrot.slane %v3379_v23, 5 }
 0x20b   : > { %15854 = vst [vmem:[#allocation69_spill] sm:$0xff] %v12542_v8  ;;  %v12551_v24 = vadd.f32 %v12483_v3, %v2067_v40  ;;  %v12558_v15 = vpop.f32.mrf.mxu0  ;;  %v3366_v8 = vor.u32 %v3365_v47, %v3364_v22  ;;  %v10435_v40 = vld [vmem:[#allocation2 + $0x74] sm:$0x1]  ;;  %v2648_v22 = vsel %vm12202_vm4, %v9252_v18, %v2647_v14  ;;  %v3396_v47 = vshll.u32 %v3075_v1, 16 }
 0x20c   : > { %3687 = vmatmul.mubr.bf16.gmra.mxu0 %v9329_v62  ;;  %v3375_v62 = vrot.slane %v3373_v16, 6  ;;  %v2650_v20 = vrot.slane %v10435_v40, 5  ;;  %v3387_v14 = vrot.slane %v12122_v45, 5  ;;  %v3388_v18 = vrot.slane %v12120_v63, 6 }
 0x20d   : > { %3696 = vmatprep.mubr.bf16.mxu0 %v15798_v36  ;;  %15856 = vst [vmem:[#allocation82_spill] sm:$0xff] %v12551_v24  ;;  %v3368_v24 = vrot.slane %v3366_v8, 4  ;;  %v3398_v23 = vrot.slane %v3396_v47, 6  ;;  %v9253_v45 = vrot.slane %v12471_v9, 9  ;;  %v4325_v9 = vshll.u32 %v12588_v37, 16 }
 0x20e   : > { %v3376_v16 = vor.u32 %v3375_v62, %v3372_v26  ;;  %v2651_v26 = vsel %vm12202_vm4, %v2649_v29, %v2650_v20  ;;  %v2656_v29 = vrot.slane %v2654_v60, 4 }
 0x210   : > { %2946 = vmatmul.mubr.bf16.gmra.mxu1 %v9281_v46  ;;  %v3363_v46 = vrot.slane %v3362_v41, 4  ;;  %v9282_v41 = vcombine.low %v2648_v22, %v2651_v26 }
 0x211   : > { %v12562_v3 = vpop.f32.mrf.mxu0  ;;  %2955 = vmatprep.mubr.bf16.mxu1 %v15798_v36 }
 0x212   : > { %v2071_v5 = vpop.f32.mrf.mxu1 }
 0x213   : > { %v12569_v4 = vpop.f32.mrf.mxu0  ;;  %v12572_v40 = vadd.f32 %v12490_v39, %v2071_v5  ;;  %v3377_v39 = vsel %vm12129_vm1, %v3368_v24, %v3376_v16  ;;  %v3395_v5 = vrot.slane %v3393_v61, 5  ;;  %v3367_v24 = vsel %vm12129_vm1, %v3363_v46, %v3366_v8  ;;  %v10438_v46 = vld [vmem:[#allocation2 + $0x88] sm:$0xf] }
 0x214   : > { %3697 = vmatmul.mubr.bf16.gmra.mxu0 %v9330_v31  ;;  %v2073_v32 = vpop.f32.mrf.mxu1  ;;  %v3385_v16 = vor.u32 %v3384_v6, %v3381_v38  ;;  %v3389_v61 = vor.u32 %v3388_v18, %v3387_v14  ;;  %v2655_v8 = vsel %vm12202_vm4, %v9253_v45, %v2654_v60  ;;  %v9254_v6 = vrot.slane %v12495_v28, 9 }
 0x215   : > { %15857 = vst [vmem:[#allocation83_spill] sm:$0xff] %v12572_v40  ;;  %3706 = vmatprep.mubr.bf16.mxu0 %v15798_v36  ;;  %v12577_v1 = vpop.f32.mrf.mxu0  ;;  %v12582_v62 = vadd.f32 %v12497_v55, %v2073_v32  ;;  %v10437_v40 = vld [vmem:[#allocation2 + $0x80] sm:$0x1]  ;;  %v4307_v55 = vld [vmem:[#allocation2 + $0x8] sm:$0x7]  ;;  %v9331_v32 = vcombine.low %v3367_v24, %v3377_v39  ;;  %v3399_v26 = vor.u32 %v3398_v23, %v3395_v5  ;;  %v2661_v38 = vrot.slane %v10438_v46, 5 }
 0x216   : > { %v2075_v31 = vpop.f32.mrf.mxu1  ;;  %v2657_v63 = vrot.slane %v10437_v40, 5  ;;  %v3391_v18 = vrot.slane %v3389_v61, 4  ;;  %v15861_v39 = vld [vmem:[#allocation39_spill] sm:$0xff]  ;;  %v4327_v45 = vrot.slane %v4325_v9, 7 }
 0x217   : > { %15858 = vst [vmem:[#allocation84_spill] sm:$0xff] %v12582_v62  ;;  %v12586_v0 = vpop.f32.mrf.mxu0  ;;  %v12592_v20 = vadd.f32 %v12506_v7, %v2075_v31  ;;  %v4322_v7 = vshrl.u32 %v12588_v37, 16  ;;  %v4339_v31 = vshll.u32 %v4307_v55, 16  ;;  %v4330_v24 = vrot.slane %v15861_v39, 6 }
 0x218   : > { %2956 = vmatmul.mubr.bf16.gmra.mxu1 %v9282_v41  ;;  %v2077_v22 = vpop.f32.mrf.mxu1  ;;  %v4336_v41 = vshrl.u32 %v4307_v55, 16  ;;  %v2658_v23 = vsel %vm12202_vm4, %v2656_v29, %v2657_v63  ;;  %v3400_v28 = vsel %vm12129_vm1, %v3391_v18, %v3399_v26  ;;  %v2663_v62 = vrot.slane %v2661_v38, 4 }
 0x219   : > { %15859 = vst [vmem:[#allocation85_spill] sm:$0xff] %v12592_v20  ;;  %v12596_v47 = vpop.f32.mrf.mxu0  ;;  %2965 = vmatprep.mubr.bf16.mxu1 %v15798_v36  ;;  %v12600_v40 = vadd.f32 %v12514_v54, %v2077_v22  ;;  %v3386_v54 = vrot.slane %v3385_v16, 4  ;;  %v15862_v22 = vld [vmem:[#allocation38_spill] sm:$0xff]  ;;  %v4324_v55 = vrot.slane %v4322_v7, 6  ;;  %v9283_v60 = vcombine.low %v2655_v8, %v2658_v23  ;;  %v10439_v20 = vld [vmem:[#allocation2 + $0x8c] sm:$0x1] }
 0x21a   : > { %v4331_v5 = vrot.slane %v15862_v22, 7  ;;  %v4341_v46 = vrot.slane %v4339_v31, 7  ;;  %v2664_v16 = vrot.slane %v10439_v20, 5  ;;  %v4308_v22 = vld [vmem:[#allocation2 + $0x14] sm:$0x7]  ;;  %v2662_v63 = vsel %vm12202_vm4, %v9254_v6, %v2661_v38 }
 0x21b   : > { %15860 = vst [vmem:[#allocation86_spill] sm:$0xff] %v12600_v40  ;;  %v12607_v14 = vpop.f32.mrf.mxu0  ;;  %v12616_v40 = vld [vmem:[#allocation2 + $0xc] sm:$0xc]  ;;  %v3390_v29 = vsel %vm12129_vm1, %v3386_v54, %v3389_v61  ;;  %v4359_v38 = vshrl.u32 %v4308_v22, 16  ;;  %v4362_v13 = vshll.u32 %v4308_v22, 16 }
 0x21c   : > { %3707 = vmatmul.mubr.bf16.gmra.mxu0 %v9331_v32  ;;  %v4338_v32 = vrot.slane %v4336_v41, 6  ;;  %v4332_v9 = vor.u32 %v4331_v5, %v4330_v24  ;;  %v9332_v26 = vcombine.low %v3390_v29, %v3400_v28  ;;  %v4328_v41 = vor.u32 %v4327_v45, %v4324_v55  ;;  %v10440_v61 = vld [vmem:[#allocation2 + $0x94] sm:$0xf] }
 0x21d   : > { %3716 = vmatprep.mubr.bf16.mxu0 %v15798_v36  ;;  %v12618_v39 = vpop.f32.mrf.mxu0  ;;  %v4345_v31 = vshrl.u32 %v12616_v40, 16  ;;  %v4348_v8 = vshll.u32 %v12616_v40, 16  ;;  %v2668_v54 = vrot.slane %v10440_v61, 5  ;;  %v15865_v55 = vld [vmem:[#allocation48_spill] sm:$0xff]  ;;  %v12649_v61 = vld [vmem:[#allocation2 + $0x18] sm:$0xc] }
 0x21e   : > { %v4342_v6 = vor.u32 %v4341_v46, %v4338_v32  ;;  %v4353_v45 = vrot.slane %v15865_v55, 6  ;;  %v4329_v46 = vrot.slane %v4328_v41, 4  ;;  %v4309_v41 = vld [vmem:[#allocation2 + $0x20] sm:$0x7] }
 0x21f   : > { %v12636_v5 = vpop.f32.mrf.mxu0  ;;  %v2670_v55 = vrot.slane %v2668_v54, 4 }
 0x220   : > { %v2081_v43 = vpop.f32.mrf.mxu1  ;;  %2966 = vmatmul.mubr.bf16.gmra.mxu1 %v9283_v60  ;;  %v15866_v60 = vld [vmem:[#allocation47_spill] sm:$0xff] }
 0x221   : > { %v12625_v7 = vadd.f32 %v12530_v25, %v2081_v43  ;;  %2975 = vmatprep.mubr.bf16.mxu1 %v15798_v36  ;;  %v2665_v25 = vsel %vm12202_vm4, %v2663_v62, %v2664_v16  ;;  %v9255_v43 = vrot.slane %v12516_v53, 9  ;;  %v4354_v28 = vrot.slane %v15866_v60, 7 }
 0x222   : > { %v2083_v20 = vpop.f32.mrf.mxu1  ;;  %v9284_v32 = vcombine.low %v2662_v63, %v2665_v25  ;;  %v4347_v16 = vrot.slane %v4345_v31, 6  ;;  %v4350_v53 = vrot.slane %v4348_v8, 7  ;;  %v4333_v31 = vsel %vm11370_vm7, %v4329_v46, %v4332_v9 }
 0x223   : > { %v12631_v18 = vadd.f32 %v12539_v19, %v2083_v20  ;;  %v4334_v19 = vrot.slane %v4332_v9, 4  ;;  %v4364_v20 = vrot.slane %v4362_v13, 7  ;;  %v4355_v8 = vor.u32 %v4354_v28, %v4353_v45 }
 0x224   : > { %3717 = vmatmul.mubr.bf16.gmra.mxu0 %v9332_v26  ;;  %v2085_v24 = vpop.f32.mrf.mxu1  ;;  %v4351_v13 = vor.u32 %v4350_v53, %v4347_v16  ;;  %v9256_v28 = vrot.slane %v12553_v2, 9 }
 0x225   : > { %15863 = vst [vmem:[#allocation39_spill] sm:$0xff] %v12631_v18  ;;  %v12639_v23 = vadd.f32 %v12548_v52, %v2085_v24  ;;  %4828 = vmatprep.mubr.bf16.mxu0 %v15798_v36  ;;  %v4343_v26 = vsel %vm11370_vm7, %v4334_v19, %v4342_v6  ;;  %v4361_v52 = vrot.slane %v4359_v38, 6  ;;  %v10441_v24 = vld [vmem:[#allocation2 + $0x98] sm:$0x1]  ;;  %v10442_v18 = vld [vmem:[#allocation2 + $0xa0] sm:$0xf] }
 0x226   : > { %v2087_v62 = vpop.f32.mrf.mxu1  ;;  %v2675_v60 = vrot.slane %v10442_v18, 5  ;;  %v9425_v6 = vcombine.low %v4333_v31, %v4343_v26  ;;  %v4368_v18 = vshrl.u32 %v12649_v61, 16  ;;  %v4371_v19 = vshll.u32 %v12649_v61, 16 }
 0x227   : > { %15864 = vst [vmem:[#allocation38_spill] sm:$0xff] %v12639_v23  ;;  %v12645_v22 = vadd.f32 %v12558_v15, %v2087_v62  ;;  %v2671_v23 = vrot.slane %v10441_v24, 5  ;;  %v12651_v63 = vpop.f32.mrf.mxu0  ;;  %v2669_v15 = vsel %vm12202_vm4, %v9255_v43, %v2668_v54  ;;  %v4365_v62 = vor.u32 %v4364_v20, %v4361_v52  ;;  %v10443_v24 = vld [vmem:[#allocation2 + $0xa4] sm:$0x1] }
 0x228   : > { %2976 = vmatmul.mubr.bf16.gmra.mxu1 %v9284_v32  ;;  %v4382_v43 = vshrl.u32 %v4309_v41, 16  ;;  %v4385_v54 = vshll.u32 %v4309_v41, 16  ;;  %v2678_v9 = vrot.slane %v10443_v24, 5  ;;  %v2677_v46 = vrot.slane %v2675_v60, 4 }
 0x229   : > { %2985 = vmatprep.mubr.bf16.mxu1 %v15798_v36  ;;  %v2091_v38 = vpop.f32.mrf.mxu1  ;;  %v12658_v25 = vpop.f32.mrf.mxu0  ;;  %v2672_v45 = vsel %vm12202_vm4, %v2670_v55, %v2671_v23  ;;  %v4376_v52 = vrot.slane %v11681_v44, 6  ;;  %v4377_v20 = vrot.slane %v11678_v59, 7  ;;  %v4352_v23 = vrot.slane %v4351_v13, 4 }
 0x22a   : > { %v12663_v32 = vadd.f32 %v12562_v3, %v2091_v38  ;;  %v4357_v3 = vrot.slane %v4355_v8, 4  ;;  %v9285_v41 = vcombine.low %v2669_v15, %v2672_v45  ;;  %v4370_v2 = vrot.slane %v4368_v18, 6  ;;  %v4310_v15 = vld [vmem:[#allocation2 + $0x2c] sm:$0x7] }
 0x22b   : > { %v2093_v16 = vpop.f32.mrf.mxu1  ;;  %v12668_v53 = vpop.f32.mrf.mxu0  ;;  %v4384_v24 = vrot.slane %v4382_v43, 6  ;;  %v2676_v59 = vsel %vm12202_vm4, %v9256_v28, %v2675_v60  ;;  %v2679_v13 = vsel %vm12202_vm4, %v2677_v46, %v2678_v9  ;;  %v10444_v43 = vld [vmem:[#allocation2 + $0x4] sm:$0xf]  ;;  %v4405_v9 = vshrl.u32 %v4310_v15, 16 }
 0x22c   : > { %4829 = vmatmul.mubr.bf16.vlgmr.msra.gmra.mxu0 %v9425_v6  ;;  %v12671_v26 = vadd.f32 %v12569_v4, %v2093_v16  ;;  %v4373_v6 = vrot.slane %v4371_v19, 7  ;;  %v4366_v4 = vsel %vm11370_vm7, %v4357_v3, %v4365_v62  ;;  %v4387_v16 = vrot.slane %v4385_v54, 7 }
 0x22d   : > { %4838 = vmatprep.mubr.bf16.mxu0 %v15798_v36  ;;  %v2095_v31 = vpop.f32.mrf.mxu1  ;;  %v12676_v55 = vpop.f32.mrf.mxu0  ;;  %v4378_v19 = vor.u32 %v4377_v20, %v4376_v52  ;;  %v3829_v54 = vrot.slane %v10444_v43, 6  ;;  %v9286_v46 = vcombine.low %v2676_v59, %v2679_v13  ;;  %v10445_v20 = vld [vmem:[#allocation2 + $0x8] sm:$0x3]  ;;  %v12711_v43 = vld [vmem:[#allocation2 + $0x30] sm:$0xc] }
 0x22e   : > { %15868 = vst [vmem:[#allocation48_spill] sm:$0xff] %v12671_v26  ;;  %v12679_v38 = vadd.f32 %v12577_v1, %v2095_v31  ;;  %v12683_v26 = vld [vmem:[#allocation2 + $0x24] sm:$0xc]  ;;  %v4356_v1 = vsel %vm11370_vm7, %v4352_v23, %v4355_v8  ;;  %v4374_v60 = vor.u32 %v4373_v6, %v4370_v2  ;;  %v4388_v3 = vor.u32 %v4387_v16, %v4384_v24 }
 0x22f   : > { %v2097_v44 = vpop.f32.mrf.mxu1  ;;  %v9426_v62 = vcombine.low %v4356_v1, %v4366_v4  ;;  %v4391_v28 = vshrl.u32 %v12683_v26, 16  ;;  %v4394_v49 = vshll.u32 %v12683_v26, 16  ;;  %v4380_v31 = vrot.slane %v4378_v19, 4 }
 0x230   : > { %15869 = vst [vmem:[#allocation47_spill] sm:$0xff] %v12679_v38  ;;  %2986 = vmatmul.mubr.bf16.gmra.mxu1 %v9285_v41  ;;  %v12690_v18 = vadd.f32 %v12586_v0, %v2097_v44  ;;  %v4408_v0 = vshll.u32 %v4310_v15, 16  ;;  %v3832_v41 = vrot.slane %v10445_v20, 6  ;;  %v4399_v23 = vrot.slane %v11757_v34, 6 }
 0x231   : > { %2995 = vmatprep.mubr.bf16.mxu1 %v15798_v36  ;;  %v12695_v45 = vpop.f32.mrf.mxu0  ;;  %v4400_v2 = vrot.slane %v11754_v33, 7  ;;  %v3831_v4 = vrot.slane %v3829_v54, 4  ;;  %v4375_v24 = vrot.slane %v4374_v60, 4  ;;  %v4393_v16 = vrot.slane %v4391_v28, 6  ;;  %v4311_v60 = vld [vmem:[#allocation2 + $0x38] sm:$0x7] }
 0x232   : > { %15870 = vst [vmem:[#allocation36_spill] sm:$0xff] %v12690_v18  ;;  %v4389_v44 = vsel %vm11370_vm7, %v4380_v31, %v4388_v3  ;;  %v4396_v13 = vrot.slane %v4394_v49, 7  ;;  %v4407_v1 = vrot.slane %v4405_v9, 6  ;;  %v9349_v34 = vrot.slane %v12588_v37, 10  ;;  %v10446_v9 = vld [vmem:[#allocation2 + $0x10] sm:$0xf] }
 0x233   : > { %v12699_v8 = vpop.f32.mrf.mxu0  ;;  %v3833_v28 = vsel %vm12715_vm8, %v3831_v4, %v3832_v41  ;;  %v4379_v49 = vsel %vm11370_vm7, %v4375_v24, %v4378_v19  ;;  %v4431_v19 = vshll.u32 %v4311_v60, 16  ;;  %v10447_v24 = vld [vmem:[#allocation2 + $0x14] sm:$0x3] }
 0x234   : > { %4839 = vmatmul.mubr.bf16.gmra.mxu0 %v9426_v62  ;;  %v2101_v52 = vpop.f32.mrf.mxu1  ;;  %v4410_v62 = vrot.slane %v4408_v0, 7  ;;  %v3836_v0 = vrot.slane %v10446_v9, 6  ;;  %v9427_v37 = vcombine.low %v4379_v49, %v4389_v44  ;;  %v4397_v41 = vor.u32 %v4396_v13, %v4393_v16 }
 0x235   : > { %4848 = vmatprep.mubr.bf16.mxu0 %v15798_v36  ;;  %v12705_v6 = vadd.f32 %v12596_v47, %v2101_v52  ;;  %v12709_v15 = vpop.f32.mrf.mxu0  ;;  %v4401_v52 = vor.u32 %v4400_v2, %v4399_v23  ;;  %v3830_v23 = vsel %vm12715_vm8, %v9349_v34, %v3829_v54  ;;  %v3839_v44 = vrot.slane %v10447_v24, 6 }
 0x236   : > { %v2103_v59 = vpop.f32.mrf.mxu1  ;;  %v4411_v4 = vor.u32 %v4410_v62, %v4407_v1  ;;  %v4422_v16 = vrot.slane %v11822_v17, 6  ;;  %v4423_v13 = vrot.slane %v11819_v21, 7  ;;  %v9379_v1 = vcombine.low %v3830_v23, %v3833_v28  ;;  %v4312_v28 = vld [vmem:[#allocation2 + $0x44] sm:$0x7] }
 0x237   : > { %15871 = vst [vmem:[#allocation87_spill] sm:$0xff] %v12705_v6  ;;  %v12721_v47 = vadd.f32 %v12607_v14, %v2103_v59  ;;  %v4414_v14 = vshrl.u32 %v12711_v43, 16  ;;  %v12733_v59 = vpop.f32.mrf.mxu0  ;;  %v3838_v62 = vrot.slane %v3836_v0, 4  ;;  %v4398_v9 = vrot.slane %v4397_v41, 4 }
 0x238   : > { %2996 = vmatmul.mubr.bf16.gmra.mxu1 %v9286_v46  ;;  %v2105_v3 = vpop.f32.mrf.mxu1  ;;  %v4417_v46 = vshll.u32 %v12711_v43, 16  ;;  %v4433_v17 = vrot.slane %v4431_v19, 7  ;;  %v9350_v21 = vrot.slane %v12616_v40, 10  ;;  %v10394_v40 = vld [vmem:[%s15650_s3 + $0x360] ss:$8 sps:$4 sm:$0xff]  }
 0x239   : > { %15874 = vst [vmem:[#allocation88_spill] sm:$0xff] %v12721_v47  ;;  %4110 = vmatprep.mubr.bf16.mxu1 %v15798_v36  ;;  %v12729_v20 = vadd.f32 %v12618_v39, %v2105_v3  ;;  %v4428_v47 = vshrl.u32 %v4311_v60, 16  ;;  %v10391_v39 = vld [vmem:[%s15650_s3 + $0x370] ss:$8 sps:$4 sm:$0xff]   ;;  %v4403_v3 = vrot.slane %v4401_v52, 4  ;;  %v4416_v54 = vrot.slane %v4414_v14, 6 }
 0x23a   : > { %v2107_v31 = vpop.f32.mrf.mxu1  ;;  %v4419_v34 = vrot.slane %v4417_v46, 7  ;;  %v10396_v60 = vld [vmem:[%s15650_s3 + $0x364] ss:$8 sps:$4 sm:$0xff]   ;;  %v3840_v46 = vsel %vm12715_vm8, %v3838_v62, %v3839_v44  ;;  %v4402_v23 = vsel %vm11370_vm7, %v4398_v9, %v4401_v52  ;;  %v3837_v62 = vsel %vm12715_vm8, %v9350_v21, %v3836_v0 }
 0x23b   : > { %15875 = vst [vmem:[#allocation89_spill] sm:$0xff] %v12729_v20  ;;  %v12738_v2 = vadd.f32 %v12636_v5, %v2107_v31  ;;  %v12746_v5 = vld [vmem:[#allocation2 + $0x3c] sm:$0xc]  ;;  %v4430_v31 = vrot.slane %v4428_v47, 6 }
 0x23c   : > { %4849 = vmatmul.mubr.bf16.gmra.mxu0 %v9427_v37  ;;  %v4412_v37 = vsel %vm11370_vm7, %v4403_v3, %v4411_v4  ;;  %v4437_v19 = vshrl.u32 %v12746_v5, 16  ;;  %v4440_v44 = vshll.u32 %v12746_v5, 16 }
 0x23d   : > { %15876 = vst [vmem:[#allocation90_spill] sm:$0xff] %v12738_v2  ;;  %4858 = vmatprep.mubr.bf16.mxu0 %v15798_v36  ;;  %v12751_v49 = vpop.f32.mrf.mxu0  ;;  %v4424_v2 = vor.u32 %v4423_v13, %v4422_v16  ;;  %v9428_v4 = vcombine.low %v4402_v23, %v4412_v37  ;;  %v10399_v16 = vld [vmem:[%s15650_s3 + $0x354] ss:$8 sps:$4 sm:$0xff]   ;;  %v4451_v13 = vshrl.u32 %v4312_v28, 16  ;;  %v15880_v37 = vld [vmem:[#allocation58_spill] sm:$0xff] }
 0x23e   : > { %v12787_v23 = vld [vmem:[#allocation2 + $0x48] sm:$0xc] }
 0x23f   : > { %v2111_v24 = vpop.f32.mrf.mxu1  ;;  %v12763_v41 = vpop.f32.mrf.mxu0 }
 0x240   : > { %4111 = vmatmul.mubr.bf16.vlgmr.msra.gmra.mxu1 %v9379_v1  ;;  %v12757_v14 = vadd.f32 %v12651_v63, %v2111_v24  ;;  %v4420_v63 = vor.u32 %v4419_v34, %v4416_v54  ;;  %v4454_v1 = vshll.u32 %v4312_v28, 16  ;;  %v10448_v34 = vld [vmem:[#allocation2 + $0x1c] sm:$0xf]  ;;  %v9380_v28 = vcombine.low %v3837_v62, %v3840_v46  ;;  %v4313_v62 = vld [vmem:[#allocation2 + $0x50] sm:$0x7] }
 0x241   : > { %5322 = vmatpush1.bf16.msra.mxu1 %v10391_v39  ;;  %4120 = vmatprep.mubr.bf16.mxu1 %v15798_v36  ;;  %v2113_v47 = vpop.f32.mrf.mxu1  ;;  %v12774_v52 = vpop.f32.mrf.mxu0  ;;  %v4434_v39 = vor.u32 %v4433_v17, %v4430_v31  ;;  %v3843_v9 = vrot.slane %v10448_v34, 6  ;;  %v4445_v31 = vrot.slane %v15880_v37, 6  ;;  %v15881_v17 = vld [vmem:[#allocation57_spill] sm:$0xff] }
 0x242   : > { %15877 = vst [vmem:[#allocation91_spill] sm:$0xff] %v12757_v14  ;;  %v12772_v3 = vadd.f32 %v12658_v25, %v2113_v47  ;;  %5323 = vmatprep.subr.bf16.mxu1 %v10396_v60  ;;  %v4426_v60 = vrot.slane %v4424_v2, 4  ;;  %v4446_v24 = vrot.slane %v15881_v17, 7  ;;  %v4421_v21 = vrot.slane %v4420_v63, 4 }
 0x243   : > { %v2115_v54 = vpop.f32.mrf.mxu1  ;;  %v12789_v0 = vpop.f32.mrf.mxu0  ;;  %v4453_v17 = vrot.slane %v4451_v13, 6  ;;  %v4456_v46 = vrot.slane %v4454_v1, 7  ;;  %v3845_v63 = vrot.slane %v3843_v9, 4 }
 0x244   : > { %15878 = vst [vmem:[#allocation92_spill] sm:$0xff] %v12772_v3  ;;  %4859 = vmatmul.mubr.bf16.gmra.mxu0 %v9428_v4  ;;  %v12782_v25 = vadd.f32 %v12668_v53, %v2115_v54  ;;  %v10397_v53 = vld [vmem:[%s15650_s3 + $0x350] ss:$8 sps:$4 sm:$0xff]   ;;  %v4439_v4 = vrot.slane %v4437_v19, 6  ;;  %v4442_v54 = vrot.slane %v4440_v44, 7  ;;  %v4435_v37 = vsel %vm11370_vm7, %v4426_v60, %v4434_v39 }
 0x245   : > { %4868 = vmatprep.mubr.bf16.mxu0 %v15798_v36  ;;  %v2117_v47 = vpop.f32.mrf.mxu1  ;;  %5324 = vmatpush1.bf16.msra.mxu1 %v10394_v40  ;;  %v10402_v40 = vld [vmem:[%s15650_s3 + $0x344] ss:$8 sps:$4 sm:$0xff]   ;;  %v4425_v19 = vsel %vm11370_vm7, %v4421_v21, %v4424_v2  ;;  %v4460_v44 = vshrl.u32 %v12787_v23, 16  ;;  %v4463_v39 = vshll.u32 %v12787_v23, 16  ;;  %v10450_v60 = vld [vmem:[#allocation2 + $0x28] sm:$0xf]  ;;  %v4457_v21 = vor.u32 %v4456_v46, %v4453_v17 }
 0x246   : > { %15879 = vst [vmem:[#allocation93_spill] sm:$0xff] %v12782_v25  ;;  %v12795_v34 = vadd.f32 %v12676_v55, %v2117_v47  ;;  %5325 = vmatprep.subr.bf16.mxu1 %v10399_v16  ;;  %v10449_v25 = vld [vmem:[#allocation2 + $0x20] sm:$0x3]  ;;  %v4447_v55 = vor.u32 %v4446_v24, %v4445_v31  ;;  %v9429_v1 = vcombine.low %v4425_v19, %v4435_v37  ;;  %v3850_v47 = vrot.slane %v10450_v60, 6  ;;  %v10405_v37 = vld [vmem:[%s15650_s3 + $0x334] ss:$8 sps:$4 sm:$0xff]  }
 0x247   : > { %v3846_v3 = vrot.slane %v10449_v25, 6  ;;  %v4477_v25 = vshll.u32 %v4313_v62, 16  ;;  %v10400_v2 = vld [vmem:[%s15650_s3 + $0x340] ss:$8 sps:$4 sm:$0xff]   ;;  %v9351_v24 = vrot.slane %v12649_v61, 10  ;;  %v4469_v61 = vrot.slane %v11945_v58, 7 }
 0x248   : > { %15882 = vst [vmem:[#allocation58_spill] sm:$0xff] %v12795_v34  ;;  %4121 = vmatmul.mubr.bf16.gmra.mxu1 %v9380_v28  ;;  %v4474_v34 = vshrl.u32 %v4313_v62, 16  ;;  %v4443_v28 = vor.u32 %v4442_v54, %v4439_v4  ;;  %v10451_v19 = vld [vmem:[#allocation2 + $0x2c] sm:$0x3]  ;;  %v4449_v54 = vrot.slane %v4447_v55, 4  ;;  %v4462_v17 = vrot.slane %v4460_v44, 6 }
 0x249   : > { %4130 = vmatprep.mubr.bf16.mxu1 %v15798_v36  ;;  %v2121_v16 = vpop.f32.mrf.mxu1  ;;  %v12807_v13 = vpop.f32.mrf.mxu0  ;;  %5326 = vmatpush1.bf16.msra.mxu1 %v10397_v53  ;;  %v3847_v53 = vsel %vm12715_vm8, %v3845_v63, %v3846_v3  ;;  %v3853_v60 = vrot.slane %v10451_v19, 6  ;;  %v4465_v46 = vrot.slane %v4463_v39, 7  ;;  %v3844_v3 = vsel %vm12715_vm8, %v9351_v24, %v3843_v9  ;;  %v10403_v58 = vld [vmem:[%s15650_s3 + $0x330] ss:$8 sps:$4 sm:$0xff]   ;;  %v12841_v9 = vld [vmem:[#allocation2 + $0x54] sm:$0xc] }
 0x24a   : > { %v12813_v31 = vadd.f32 %v12695_v45, %v2121_v16  ;;  %5327 = vmatprep.subr.bf16.mxu1 %v10402_v40  ;;  %v4468_v45 = vrot.slane %v11948_v51, 6  ;;  %v3852_v63 = vrot.slane %v3850_v47, 4  ;;  %v4479_v19 = vrot.slane %v4477_v25, 7 }
 0x24b   : > { %v2123_v62 = vpop.f32.mrf.mxu1  ;;  %v12821_v14 = vpop.f32.mrf.mxu0  ;;  %v9381_v51 = vcombine.low %v3844_v3, %v3847_v53  ;;  %v4444_v44 = vrot.slane %v4443_v28, 4  ;;  %v4458_v39 = vsel %vm11370_vm7, %v4449_v54, %v4457_v21  ;;  %v4314_v28 = vld [vmem:[#allocation2 + $0x5c] sm:$0x7] }
 0x24c   : > { %15883 = vst [vmem:[#allocation57_spill] sm:$0xff] %v12813_v31  ;;  %4869 = vmatmul.mubr.bf16.gmra.mxu0 %v9429_v1  ;;  %v12826_v4 = vadd.f32 %v12699_v8, %v2123_v62  ;;  %v4476_v1 = vrot.slane %v4474_v34, 6  ;;  %v10408_v34 = vld [vmem:[%s15650_s3 + $0x324] ss:$8 sps:$4 sm:$0xff]   ;;  %v3854_v24 = vsel %vm12715_vm8, %v3852_v63, %v3853_v60  ;;  %v12858_v62 = vld [vmem:[#allocation2 + $0x34] sm:$0xf] }
 0x24d   : > { %4878 = vmatprep.mubr.bf16.mxu0 %v15798_v36  ;;  %v2125_v40 = vpop.f32.mrf.mxu1  ;;  %v12831_v16 = vpop.f32.mrf.mxu0  ;;  %5328 = vmatpush1.bf16.msra.mxu1 %v10400_v2  ;;  %v9352_v2 = vrot.slane %v12683_v26, 10  ;;  %v15736_v54 = vrot.slane %v12858_v62, 6  ;;  %v4466_v26 = vor.u32 %v4465_v46, %v4462_v17  ;;  %v4500_v63 = vshll.u32 %v4314_v28, 16  ;;  %v10411_v17 = vld [vmem:[%s15650_s3 + $0x314] ss:$8 sps:$4 sm:$0xff]  }
 0x24e   : > { %15884 = vst [vmem:[#allocation94_spill] sm:$0xff] %v12826_v4  ;;  %v12837_v8 = vadd.f32 %v12709_v15, %v2125_v40  ;;  %5329 = vmatprep.subr.bf16.mxu1 %v10405_v37  ;;  %v12851_v15 = vor.u32 %v4469_v61, %v4468_v45  ;;  %v4448_v37 = vsel %vm11370_vm7, %v4444_v44, %v4447_v55  ;;  %v4483_v45 = vshrl.u32 %v12841_v9, 16  ;;  %v12875_v44 = vld [vmem:[#allocation2 + $0x60] sm:$0xc] }
 0x24f   : > { %v2127_v25 = vpop.f32.mrf.mxu1  ;;  %v12849_v53 = vpop.f32.mrf.mxu0  ;;  %v9430_v60 = vcombine.low %v4448_v37, %v4458_v39  ;;  %v4480_v3 = vor.u32 %v4479_v19, %v4476_v1  ;;  %v4486_v61 = vshll.u32 %v12841_v9, 16  ;;  %v3851_v55 = vsel %vm12715_vm8, %v9352_v2, %v3850_v47  ;;  %v10453_v19 = vld [vmem:[#allocation2 + $0x38] sm:$0x3] }
 0x250   : > { %15885 = vst [vmem:[#allocation95_spill] sm:$0xff] %v12837_v8  ;;  %4131 = vmatmul.mubr.bf16.gmra.mxu1 %v9381_v51  ;;  %v12854_v21 = vadd.f32 %v12733_v59, %v2127_v25  ;;  %v10406_v59 = vld [vmem:[%s15650_s3 + $0x320] ss:$8 sps:$4 sm:$0xff]   ;;  %v4497_v40 = vshrl.u32 %v4314_v28, 16  ;;  %v9382_v46 = vcombine.low %v3851_v55, %v3854_v24  ;;  %v4472_v51 = vrot.slane %v12851_v15, 4 }
 0x251   : > { %4140 = vmatprep.mubr.bf16.mxu1 %v15798_v36  ;;  %5330 = vmatpush1.bf16.msra.mxu1 %v10403_v58  ;;  %v12872_v1 = vpop.f32.mrf.mxu0  ;;  %v3860_v58 = vrot.slane %v10453_v19, 6  ;;  %v3859_v47 = vrot.slane %v15736_v54, 4  ;;  %v4491_v25 = vrot.slane %v11990_v42, 6  ;;  %v4492_v2 = vrot.slane %v11987_v35, 7  ;;  %v12889_v19 = vld [vmem:[#allocation2 + $0x68] sm:$0x7] }
 0x252   : > { %15886 = vst [vmem:[#allocation96_spill] sm:$0xff] %v12854_v21  ;;  %5331 = vmatprep.subr.bf16.mxu1 %v10408_v34  ;;  %v4467_v34 = vrot.slane %v4466_v26, 4  ;;  %v4481_v37 = vsel %vm11370_vm7, %v4472_v51, %v4480_v3  ;;  %v4488_v55 = vrot.slane %v4486_v61, 7  ;;  %v10409_v26 = vld [vmem:[%s15650_s3 + $0x310] ss:$8 sps:$4 sm:$0xff]   ;;  %v4499_v54 = vrot.slane %v4497_v40, 6 }
 0x253   : > { %v12885_v28 = vpop.f32.mrf.mxu0  ;;  %v4502_v35 = vrot.slane %v4500_v63, 7  ;;  %v10414_v3 = vld [vmem:[%s15650_s3 + $0x304] ss:$8 sps:$4 sm:$0xff]   ;;  %v9353_v61 = vrot.slane %v12711_v43, 10  ;;  %v10454_v40 = vld [vmem:[#allocation2 + $0x40] sm:$0xf]  ;;  %v4493_v21 = vor.u32 %v4492_v2, %v4491_v25 }
 0x254   : > { %4879 = vmatmul.mubr.bf16.gmra.mxu0 %v9430_v60  ;;  %v4485_v60 = vrot.slane %v4483_v45, 6  ;;  %v3864_v63 = vrot.slane %v10454_v40, 6  ;;  %v4520_v8 = vshrl.u32 %v12889_v19, 16 }
 0x255   : > { %v2131_v39 = vpop.f32.mrf.mxu1  ;;  %4888 = vmatprep.mubr.bf16.mxu0 %v15798_v36  ;;  %5332 = vmatpush1.bf16.msra.mxu1 %v10406_v59  ;;  %v3861_v59 = vsel %vm12715_vm8, %v3859_v47, %v3860_v58  ;;  %v12905_v51 = vpop.f32.mrf.mxu0  ;;  %v4503_v25 = vor.u32 %v4502_v35, %v4499_v54 }
 0x256   : > { %v12883_v24 = vadd.f32 %v12751_v49, %v2131_v39  ;;  %v4506_v49 = vshrl.u32 %v12875_v44, 16  ;;  %v4509_v39 = vshll.u32 %v12875_v44, 16  ;;  %5333 = vmatprep.subr.bf16.mxu1 %v10411_v17  ;;  %v4471_v17 = vsel %vm11370_vm7, %v4467_v34, %v12851_v15  ;;  %v10412_v15 = vld [vmem:[%s15650_s3 + $0x300] ss:$8 sps:$4 sm:$0xff]  }
 0x257   : > { %v2133_v42 = vpop.f32.mrf.mxu1  ;;  %v12916_v58 = vpop.f32.mrf.mxu0  ;;  %v9431_v47 = vcombine.low %v4471_v17, %v4481_v37  ;;  %v15891_v37 = vrot.slane %v12858_v62, 6 }
 0x258   : > { %15887 = vst [vmem:[#allocation97_spill] sm:$0xff] %v12883_v24  ;;  %v12900_v45 = vadd.f32 %v12763_v41, %v2133_v42  ;;  %4141 = vmatmul.mubr.bf16.gmra.mxu1 %v9382_v46  ;;  %v4523_v41 = vshll.u32 %v12889_v19, 16  ;;  %v4489_v42 = vor.u32 %v4488_v55, %v4485_v60  ;;  %v4514_v46 = vrot.slane %v15843_v12, 6 }
 0x259   : > { %v2135_v24 = vpop.f32.mrf.mxu1  ;;  %4150 = vmatprep.mubr.bf16.mxu1 %v15798_v36  ;;  %5334 = vmatpush1.bf16.msra.mxu1 %v10409_v26  ;;  %v4508_v2 = vrot.slane %v4506_v49, 6  ;;  %v4511_v40 = vrot.slane %v4509_v39, 7  ;;  %v3858_v12 = vsel %vm12715_vm8, %v9353_v61, %v15891_v37  ;;  %v9354_v55 = vrot.slane %v12746_v5, 10  ;;  %v10455_v26 = vld [vmem:[#allocation2 + $0x4c] sm:$0xf] }
 0x25a   : > { %15888 = vst [vmem:[#allocation98_spill] sm:$0xff] %v12900_v45  ;;  %v12913_v43 = vadd.f32 %v12774_v52, %v2135_v24  ;;  %v4515_v52 = vrot.slane %v15844_v30, 7  ;;  %5335 = vmatprep.subr.bf16.mxu1 %v10414_v3  ;;  %v3871_v54 = vrot.slane %v10455_v26, 6  ;;  %v9383_v35 = vcombine.low %v3858_v12, %v3861_v59  ;;  %v10456_v61 = vld [vmem:[#allocation2 + $0x44] sm:$0x3]  ;;  %v15905_v45 = vld [vmem:[#allocation68_spill] sm:$0xff] }
 0x25b   : > { %v2137_v34 = vpop.f32.mrf.mxu1  ;;  %v4495_v30 = vrot.slane %v4493_v21, 4  ;;  %v4522_v49 = vrot.slane %v4520_v8, 6  ;;  %v4525_v39 = vrot.slane %v4523_v41, 7  ;;  %v12938_v62 = vsel %vm12715_vm8, %v9354_v55, %v3864_v63  ;;  %v10457_v41 = vld [vmem:[#allocation2 + $0x50] sm:$0x3] }
 0x25c   : > { %15889 = vst [vmem:[#allocation99_spill] sm:$0xff] %v12913_v43  ;;  %v12924_v24 = vadd.f32 %v12789_v0, %v2137_v34  ;;  %v12930_v60 = vpop.f32.mrf.mxu0  ;;  %4889 = vmatmul.mubr.bf16.gmra.mxu0 %v9431_v47  ;;  %v12934_v0 = vld [vmem:[#allocation2 + $0x6c] sm:$0xc]  ;;  %v3866_v3 = vrot.slane %v3864_v63, 4  ;;  %v3867_v17 = vrot.slane %v10456_v61, 6  ;;  %v4490_v5 = vrot.slane %v4489_v42, 4 }
 0x25d   : > { %4898 = vmatprep.mubr.bf16.mxu0 %v15798_v36  ;;  %v12942_v34 = vld [vmem:[#allocation2 + $0x74] sm:$0x7]  ;;  %5336 = vmatpush1.bf16.msra.mxu1 %v10412_v15  ;;  %v4504_v8 = vsel %vm11370_vm7, %v4495_v30, %v4503_v25  ;;  %v3874_v37 = vrot.slane %v10457_v41, 6  ;;  %v4512_v12 = vor.u32 %v4511_v40, %v4508_v2  ;;  %v4516_v26 = vor.u32 %v4515_v52, %v4514_v46 }
 0x25e   : > { %15890 = vst [vmem:[#allocation100_spill] sm:$0xff] %v12924_v24  ;;  %v12940_v47 = vpop.f32.mrf.mxu0  ;;  %v2141_v59 = vpop.f32.mrf.mxu1  ;;  %v4494_v61 = vsel %vm11370_vm7, %v4490_v5, %v4493_v21  ;;  %v9355_v42 = vrot.slane %v12787_v23, 10  ;;  %v3873_v24 = vrot.slane %v3871_v54, 4  ;;  %v4526_v43 = vor.u32 %v4525_v39, %v4522_v49  ;;  %v12974_v5 = vld [vmem:[#allocation2 + $0x78] sm:$0xc] }
 0x25f   : > { %v12947_v55 = vadd.f32 %v12807_v13, %v2141_v59  ;;  %v4529_v25 = vshrl.u32 %v12934_v0, 16  ;;  %v4532_v30 = vshll.u32 %v12934_v0, 16  ;;  %v4543_v46 = vshrl.u32 %v12942_v34, 16  ;;  %v12981_v59 = vld [vmem:[#allocation2 + $0x58] sm:$0xf] }
 0x260   : > { %v12949_v63 = vpop.f32.mrf.mxu0  ;;  %4151 = vmatmul.mubr.bf16.gmra.mxu1 %v9383_v35  ;;  %v2143_v15 = vpop.f32.mrf.mxu1  ;;  %v3868_v21 = vsel %vm12715_vm8, %v3866_v3, %v3867_v17  ;;  %v9432_v23 = vcombine.low %v4494_v61, %v4504_v8  ;;  %v4546_v40 = vshll.u32 %v12942_v34, 16  ;;  %v12968_v35 = vsel %vm12715_vm8, %v9355_v42, %v3871_v54  ;;  %15895 = vst [vmem:[#allocation104_spill] sm:$0xff] %v12981_v59 }
 0x261   : > { %15892 = vst [vmem:[#allocation101_spill] sm:$0xff] %v12947_v55  ;;  %v12958_v13 = vadd.f32 %v12821_v14, %v2143_v15  ;;  %4160 = vmatprep.mubr.bf16.mxu1 %v15798_v36  ;;  %v12972_v49 = vsel %vm12715_vm8, %v3873_v24, %v3874_v37  ;;  %v4513_v14 = vrot.slane %v4512_v12, 4  ;;  %v4518_v39 = vrot.slane %v4516_v26, 4 }
 0x262   : > { %v12963_v2 = vpop.f32.mrf.mxu0  ;;  %v2145_v52 = vpop.f32.mrf.mxu1  ;;  %v3878_v8 = vrot.slane %v12981_v59, 6  ;;  %v4537_v54 = vrot.slane %v12065_v10, 6  ;;  %v4538_v41 = vrot.slane %v12061_v48, 7  ;;  %v4531_v12 = vrot.slane %v4529_v25, 6 }
 0x263   : > { %15893 = vst [vmem:[#allocation102_spill] sm:$0xff] %v12958_v13  ;;  %v12977_v3 = vadd.f32 %v12831_v16, %v2145_v52  ;;  %v4527_v37 = vsel %vm11370_vm7, %v4518_v39, %v4526_v43  ;;  %v4534_v16 = vrot.slane %v4532_v30, 7  ;;  %v4545_v61 = vrot.slane %v4543_v46, 6  ;;  %v10459_v30 = vld [vmem:[#allocation2 + $0x5c] sm:$0x3] }
 0x264   : > { %v12979_v17 = vpop.f32.mrf.mxu0  ;;  %4899 = vmatmul.mubr.bf16.gmra.mxu0 %v9432_v23  ;;  %v2147_v24 = vpop.f32.mrf.mxu1  ;;  %v4548_v23 = vrot.slane %v4546_v40, 7  ;;  %v4552_v52 = vshrl.u32 %v12974_v5, 16  ;;  %v4555_v10 = vshll.u32 %v12974_v5, 16  ;;  %v9384_v48 = vcombine.low %v12938_v62, %v3868_v21  ;;  %v13004_v40 = vld [vmem:[#allocation2 + $0x64] sm:$0xf] }
 0x265   : > { %15894 = vst [vmem:[#allocation103_spill] sm:$0xff] %v12977_v3  ;;  %4908 = vmatprep.mubr.bf16.mxu0 %v15798_v36  ;;  %v12990_v42 = vadd.f32 %v12849_v53, %v2147_v24  ;;  %v9385_v59 = vcombine.low %v12968_v35, %v12972_v49  ;;  %v9356_v43 = vrot.slane %v12841_v9, 10  ;;  %v4517_v53 = vsel %vm11370_vm7, %v4513_v14, %v4516_v26  ;;  %v10461_v9 = vld [vmem:[#allocation2 + $0x68] sm:$0x3] }
 0x266   : > { %v12992_v15 = vpop.f32.mrf.mxu0  ;;  %v3881_v46 = vrot.slane %v10459_v30, 6  ;;  %v4539_v39 = vor.u32 %v4538_v41, %v4537_v54  ;;  %v3885_v24 = vrot.slane %v13004_v40, 6  ;;  %v9433_v21 = vcombine.low %v4517_v53, %v4527_v37 }
 0x267   : > { %15896 = vst [vmem:[#allocation105_spill] sm:$0xff] %v12990_v42  ;;  %v13007_v42 = vld [vmem:[#allocation2 + $0x80] sm:$0x7]  ;;  %v3880_v35 = vrot.slane %v3878_v8, 4  ;;  %v4535_v49 = vor.u32 %v4534_v16, %v4531_v12  ;;  %v3888_v3 = vrot.slane %v10461_v9, 6  ;;  %v4549_v14 = vor.u32 %v4548_v23, %v4545_v61 }
 0x268   : > { %v13000_v25 = vpop.f32.mrf.mxu0  ;;  %v2151_v62 = vpop.f32.mrf.mxu1  ;;  %4161 = vmatmul.mubr.bf16.gmra.mxu1 %v9384_v48  ;;  %v4554_v54 = vrot.slane %v4552_v52, 6  ;;  %v4557_v41 = vrot.slane %v4555_v10, 7  ;;  %v13017_v55 = vsel %vm12715_vm8, %v9356_v43, %v3878_v8  ;;  %v9357_v37 = vrot.slane %v12875_v44, 10  ;;  %v13031_v8 = vld [vmem:[#allocation2 + $0x84] sm:$0xc] }
 0x269   : > { %v13010_v13 = vadd.f32 %v12872_v1, %v2151_v62  ;;  %4170 = vmatprep.mubr.bf16.mxu1 %v15798_v36  ;;  %v4566_v12 = vshrl.u32 %v13007_v42, 16  ;;  %v4569_v16 = vshll.u32 %v13007_v42, 16  ;;  %v13029_v61 = vsel %vm12715_vm8, %v3880_v35, %v3881_v46  ;;  %v13040_v62 = vld [vmem:[#allocation2 + $0x8c] sm:$0x7] }
 0x26a   : > { %v13013_v26 = vpop.f32.mrf.mxu0  ;;  %v2153_v30 = vpop.f32.mrf.mxu1  ;;  %v4541_v23 = vrot.slane %v4539_v39, 4  ;;  %v3887_v52 = vrot.slane %v3885_v24, 4  ;;  %v4536_v44 = vrot.slane %v4535_v49, 4  ;;  %v13036_v43 = vsel %vm12715_vm8, %v9357_v37, %v3885_v24 }
 0x26b   : > { %15897 = vst [vmem:[#allocation106_spill] sm:$0xff] %v13010_v13  ;;  %v13023_v1 = vadd.f32 %v12885_v28, %v2153_v30  ;;  %v4560_v28 = vrot.slane %v12076_v56, 6  ;;  %v4561_v53 = vrot.slane %v12074_v57, 7  ;;  %v4558_v24 = vor.u32 %v4557_v41, %v4554_v54 }
 0x26c   : > { %v13025_v48 = vpop.f32.mrf.mxu0  ;;  %4909 = vmatmul.mubr.bf16.gmra.mxu0 %v9433_v21  ;;  %v2155_v10 = vpop.f32.mrf.mxu1  ;;  %v4550_v35 = vsel %vm11370_vm7, %v4541_v23, %v4549_v14  ;;  %v13051_v49 = vsel %vm12715_vm8, %v3887_v52, %v3888_v3  ;;  %v4540_v56 = vsel %vm11370_vm7, %v4536_v44, %v4539_v39  ;;  %v4568_v57 = vrot.slane %v4566_v12, 6 }
 0x26d   : > { %15898 = vst [vmem:[#allocation107_spill] sm:$0xff] %v13023_v1  ;;  %4918 = vmatprep.mubr.bf16.mxu0 %v15798_v36  ;;  %v13043_v46 = vadd.f32 %v12905_v51, %v2155_v10  ;;  %v4571_v30 = vrot.slane %v4569_v16, 7  ;;  %v4575_v37 = vshrl.u32 %v13031_v8, 16  ;;  %v4578_v14 = vshll.u32 %v13031_v8, 16 }
 0x26e   : > { %v13045_v21 = vpop.f32.mrf.mxu0  ;;  %v2157_v9 = vpop.f32.mrf.mxu1  ;;  %v4589_v23 = vshrl.u32 %v13040_v62, 16  ;;  %v4592_v3 = vshll.u32 %v13040_v62, 16  ;;  %v9386_v39 = vcombine.low %v13017_v55, %v13029_v61  ;;  %v9434_v41 = vcombine.low %v4540_v56, %v4550_v35  ;;  %v13078_v55 = vld [vmem:[#allocation2 + $0x90] sm:$0xc] }
 0x26f   : > { %15899 = vst [vmem:[#allocation108_spill] sm:$0xff] %v13043_v46  ;;  %v13057_v51 = vadd.f32 %v12916_v58, %v2157_v9  ;;  %v4562_v16 = vor.u32 %v4561_v53, %v4560_v28  ;;  %v4559_v44 = vrot.slane %v4558_v24, 4  ;;  %v9358_v9 = vrot.slane %v12934_v0, 10 }
 0x270   : > { %v13059_v10 = vpop.f32.mrf.mxu0  ;;  %v2161_v54 = vpop.f32.mrf.mxu1  ;;  %4171 = vmatmul.mubr.bf16.gmra.mxu1 %v9385_v59  ;;  %v4572_v35 = vor.u32 %v4571_v30, %v4568_v57  ;;  %v4577_v56 = vrot.slane %v4575_v37, 6  ;;  %v4583_v28 = vrot.slane %v12091_v27, 6  ;;  %v4580_v0 = vrot.slane %v4578_v14, 7  ;;  %v10463_v30 = vld [vmem:[#allocation2 + $0x74] sm:$0x3] }
 0x271   : > { %15900 = vst [vmem:[#allocation109_spill] sm:$0xff] %v13057_v51  ;;  %v13069_v58 = vadd.f32 %v12930_v60, %v2161_v54  ;;  %4180 = vmatprep.mubr.bf16.mxu1 %v15798_v36  ;;  %v13075_v51 = vld [vmem:[#allocation2 + $0x70] sm:$0xf]  ;;  %v4584_v60 = vrot.slane %v12089_v50, 7  ;;  %v4591_v24 = vrot.slane %v4589_v23, 6  ;;  %v4594_v12 = vrot.slane %v4592_v3, 7 }
 0x272   : > { %v13072_v52 = vpop.f32.mrf.mxu0  ;;  %v3892_v59 = vrot.slane %v13075_v51, 6  ;;  %v2163_v61 = vpop.f32.mrf.mxu1  ;;  %v4564_v57 = vrot.slane %v4562_v16, 4  ;;  %v3895_v37 = vrot.slane %v10463_v30, 6  ;;  %v4598_v27 = vshrl.u32 %v13078_v55, 16 }
 0x273   : > { %15901 = vst [vmem:[#allocation110_spill] sm:$0xff] %v13069_v58  ;;  %v13083_v53 = vadd.f32 %v12940_v47, %v2163_v61  ;;  %v13087_v58 = vld [vmem:[#allocation2 + $0x98] sm:$0x7]  ;;  %v4601_v50 = vshll.u32 %v13078_v55, 16  ;;  %v4563_v14 = vsel %vm11370_vm7, %v4559_v44, %v4562_v16  ;;  %v4581_v44 = vor.u32 %v4580_v0, %v4577_v56 }
 0x274   : > { %v13085_v54 = vpop.f32.mrf.mxu0  ;;  %4919 = vmatmul.mubr.bf16.gmra.mxu0 %v9434_v41  ;;  %v2165_v46 = vpop.f32.mrf.mxu1  ;;  %v13101_v23 = vsel %vm12715_vm8, %v9358_v9, %v3892_v59  ;;  %v3894_v3 = vrot.slane %v3892_v59, 4  ;;  %v4573_v30 = vsel %vm11370_vm7, %v4564_v57, %v4572_v35  ;;  %v4612_v1 = vshrl.u32 %v13087_v58, 16  ;;  %v13116_v59 = vld [vmem:[#allocation2 + $0x7c] sm:$0xf] }
 0x275   : > { %15902 = vst [vmem:[#allocation111_spill] sm:$0xff] %v13083_v53  ;;  %4928 = vmatprep.mubr.bf16.mxu0 %v15798_v36  ;;  %v13093_v47 = vadd.f32 %v12949_v63, %v2165_v46  ;;  %v13105_v53 = vor.u32 %v4584_v60, %v4583_v28  ;;  %v4615_v63 = vshll.u32 %v13087_v58, 16  ;;  %v13109_v46 = vld [vmem:[#allocation2 + $0x9c] sm:$0xc]  ;;  %v4595_v9 = vor.u32 %v4594_v12, %v4591_v24 }
 0x276   : > { %v13095_v61 = vpop.f32.mrf.mxu0  ;;  %v2167_v41 = vpop.f32.mrf.mxu1  ;;  %v3899_v13 = vrot.slane %v13116_v59, 6  ;;  %v4600_v28 = vrot.slane %v4598_v27, 6  ;;  %v4603_v60 = vrot.slane %v4601_v50, 7  ;;  %v4606_v57 = vrot.slane %v15853_v11, 6 }
 0x277   : > { %15903 = vst [vmem:[#allocation112_spill] sm:$0xff] %v13093_v47  ;;  %v13112_v47 = vadd.f32 %v12963_v2, %v2167_v41  ;;  %v4607_v4 = vrot.slane %v15905_v45, 7  ;;  %v9435_v12 = vcombine.low %v4563_v14, %v4573_v30  ;;  %v13129_v56 = vsel %vm12715_vm8, %v3894_v3, %v3895_v37  ;;  %v10465_v37 = vld [vmem:[#allocation2 + $0x80] sm:$0x3]  ;;  %v13140_v30 = vld [vmem:[#allocation2 + $0xa4] sm:$0x7] }
 0x278   : > { %v13114_v16 = vpop.f32.mrf.mxu0  ;;  %v2171_v35 = vpop.f32.mrf.mxu1  ;;  %4181 = vmatmul.mubr.bf16.gmra.mxu1 %v9386_v39  ;;  %v4621_v39 = vshrl.u32 %v13109_v46, 16  ;;  %v4587_v24 = vrot.slane %v13105_v53, 4  ;;  %v4614_v11 = vrot.slane %v4612_v1, 6  ;;  %v4617_v27 = vrot.slane %v4615_v63, 7 }
 0x279   : > { %15904 = vst [vmem:[#allocation113_spill] sm:$0xff] %v13112_v47  ;;  %v13122_v31 = vadd.f32 %v12979_v17, %v2171_v35  ;;  %4190 = vmatprep.mubr.bf16.mxu1 %v15798_v36  ;;  %v4624_v45 = vshll.u32 %v13109_v46, 16  ;;  %v4582_v14 = vrot.slane %v4581_v44, 4  ;;  %v9359_v41 = vrot.slane %v12974_v5, 10  ;;  %v15908_v5 = vld [vmem:[#allocation71_spill] sm:$0xff] }
 0x27a   : > { %v13125_v2 = vpop.f32.mrf.mxu0  ;;  %v2173_v0 = vpop.f32.mrf.mxu1  ;;  %v3902_v3 = vrot.slane %v10465_v37, 6  ;;  %v4596_v1 = vsel %vm11370_vm7, %v4587_v24, %v4595_v9  ;;  %v3901_v63 = vrot.slane %v3899_v13, 4  ;;  %v4623_v44 = vrot.slane %v4621_v39, 6  ;;  %v15909_v37 = vld [vmem:[#allocation70_spill] sm:$0xff] }
 0x27b   : > { %15906 = vst [vmem:[#allocation68_spill] sm:$0xff] %v13122_v31  ;;  %v13135_v17 = vadd.f32 %v12992_v15, %v2173_v0  ;;  %v4604_v31 = vor.u32 %v4603_v60, %v4600_v28  ;;  %v4608_v15 = vor.u32 %v4607_v4, %v4606_v57  ;;  %v4630_v47 = vrot.slane %v15909_v37, 7 }
 0x27c   : > { %v13137_v50 = vpop.f32.mrf.mxu0  ;;  %4929 = vmatmul.mubr.bf16.gmra.mxu0 %v9435_v12  ;;  %v2175_v35 = vpop.f32.mrf.mxu1  ;;  %v4618_v6 = vor.u32 %v4617_v27, %v4614_v11  ;;  %v4626_v18 = vrot.slane %v4624_v45, 7  ;;  %v4635_v38 = vshrl.u32 %v13140_v30, 16  ;;  %v4638_v9 = vshll.u32 %v13140_v30, 16 }
 0x27d   : > { %15907 = vst [vmem:[#allocation114_spill] sm:$0xff] %v13135_v17  ;;  %4938 = vmatprep.mubr.bf16.mxu0 %v15798_v36  ;;  %v13146_v0 = vadd.f32 %v13000_v25, %v2175_v35  ;;  %v4629_v17 = vrot.slane %v15908_v5, 6  ;;  %v9388_v4 = vcombine.low %v13101_v23, %v13129_v56  ;;  %v15910_v57 = vcombine.low %v13036_v43, %v13051_v49  ;;  %v13192_v35 = vld [vmem:[#allocation2 + $0x88] sm:$0xf] }
 0x27e   : > { %v13148_v12 = vpop.f32.mrf.mxu0  ;;  %v2177_v20 = vpop.f32.mrf.mxu1  ;;  %v4586_v39 = vsel %vm11370_vm7, %v4582_v14, %v13105_v53  ;;  %v13169_v24 = vsel %vm12715_vm8, %v9359_v41, %v3899_v13  ;;  %v4605_v56 = vrot.slane %v4604_v31, 4  ;;  %v4627_v27 = vor.u32 %v4626_v18, %v4623_v44  ;;  %v5033_v18 = vld [vmem:[#allocation2 + $0x60] sm:$0x8] }
 0x27f   : > { %v13155_v28 = vadd.f32 %v13013_v26, %v2177_v20  ;;  %v13173_v20 = vsel %vm12715_vm8, %v3901_v63, %v3902_v3  ;;  %v4610_v26 = vrot.slane %v4608_v15, 4  ;;  %v9436_v49 = vcombine.low %v4586_v39, %v4596_v1  ;;  %v5034_v1 = vld [vmem:[#allocation2 + $0x6c] sm:$0x8] }
 0x280   : > { %v13159_v25 = vpop.f32.mrf.mxu0  ;;  %v2181_v60 = vpop.f32.mrf.mxu1  ;;  %4191 = vmatmul.mubr.bf16.gmra.mxu1 %v15910_v57  ;;  %v13181_v11 = vor.u32 %v4630_v47, %v4629_v17  ;;  %v4637_v45 = vrot.slane %v4635_v38, 6  ;;  %v4640_v14 = vrot.slane %v4638_v9, 7  ;;  %v9389_v3 = vcombine.low %v13169_v24, %v13173_v20  ;;  %v13195_v47 = vld [vmem:[#allocation2 + $0x8c] sm:$0x3] }
 0x281   : > { %v13176_v23 = vadd.f32 %v13025_v48, %v2181_v60  ;;  %4200 = vmatprep.mubr.bf16.mxu1 %v15798_v36  ;;  %v4619_v13 = vsel %vm11370_vm7, %v4610_v26, %v4618_v6  ;;  %v5128_v17 = vrot.slane %v13004_v40, 7  ;;  %v5131_v9 = vrot.slane %v12889_v19, 7 }
 0x282   : > { %v13179_v43 = vpop.f32.mrf.mxu0  ;;  %v2183_v53 = vpop.f32.mrf.mxu1  ;;  %v4633_v37 = vrot.slane %v13181_v11, 4  ;;  %v13209_v57 = vrot.slane %v4627_v27, 4  ;;  %v4641_v39 = vor.u32 %v4640_v14, %v4637_v45  ;;  %v5135_v19 = vrot.slane %v13075_v51, 7 }
 0x283   : > { %v13186_v41 = vadd.f32 %v13045_v21, %v2183_v53  ;;  %v4609_v21 = vsel %vm11370_vm7, %v4605_v56, %v4608_v15  ;;  %v9463_v15 = vrot.slane %v5033_v18, 11  ;;  %v5130_v26 = vrot.slane %v5128_v17, 4 }
 0x284   : > { %v13188_v48 = vpop.f32.mrf.mxu0  ;;  %4939 = vmatmul.mubr.bf16.gmra.mxu0 %v9436_v49  ;;  %v2185_v38 = vpop.f32.mrf.mxu1  ;;  %v9437_v5 = vcombine.low %v4609_v21, %v4619_v13  ;;  %v5035_v49 = vld [vmem:[#allocation2 + $0x78] sm:$0x8]  ;;  %v9464_v53 = vrot.slane %v5034_v1, 11  ;;  %v5138_v13 = vrot.slane %v12942_v34, 7  ;;  %v5142_v14 = vrot.slane %v13116_v59, 7 }
 0x285   : > { %4948 = vmatprep.mubr.bf16.mxu0 %v15798_v36  ;;  %v13203_v63 = vadd.f32 %v13059_v10, %v2185_v38  ;;  %v13226_v45 = vsel %vm13218_vm10, %v9463_v15, %v5128_v17  ;;  %v5145_v18 = vrot.slane %v13007_v42, 7  ;;  %v9465_v21 = vrot.slane %v5035_v49, 11  ;;  %v5036_v17 = vld [vmem:[#allocation2 + $0x84] sm:$0x8] }
 0x286   : > { %v13205_v44 = vpop.f32.mrf.mxu0  ;;  %v2187_v60 = vpop.f32.mrf.mxu1  ;;  %v13246_v42 = vsel %vm13218_vm10, %v9464_v53, %v5135_v19  ;;  %v5149_v59 = vrot.slane %v13192_v35, 7  ;;  %v9360_v29 = vrot.slane %v13031_v8, 10 }
 0x287   : > { %v13212_v40 = vadd.f32 %v13072_v52, %v2187_v60  ;;  %v13230_v52 = vsel %vm13218_vm10, %v5130_v26, %v5131_v9  ;;  %v4642_v9 = vsel %vm11370_vm7, %v4633_v37, %v4641_v39  ;;  %v13260_v37 = vsel %vm13218_vm10, %v9465_v21, %v5142_v14 }
 0x288   : > { %v13214_v56 = vpop.f32.mrf.mxu0  ;;  %v2191_v27 = vpop.f32.mrf.mxu1  ;;  %4201 = vmatmul.mubr.bf16.gmra.mxu1 %v9388_v4  ;;  %v5137_v4 = vrot.slane %v5135_v19, 4  ;;  %15913 = vst [vmem:[#allocation71_spill] sm:$0xff] %v13260_v37  ;;  %v5152_v39 = vrot.slane %v13040_v62, 7  ;;  %v5151_v19 = vrot.slane %v5149_v59, 4  ;;  %v5166_v62 = vrot.slane %v13140_v30, 7 }
 0x289   : > { %v13235_v38 = vadd.f32 %v13085_v54, %v2191_v27  ;;  %4210 = vmatprep.mubr.bf16.mxu1 %v15798_v36  ;;  %v5144_v54 = vrot.slane %v5142_v14, 4 }
 0x28a   : > { %v13238_v34 = vpop.f32.mrf.mxu0  ;;  %v2193_v1 = vpop.f32.mrf.mxu1  ;;  %v13256_v26 = vsel %vm13218_vm10, %v5137_v4, %v5138_v13  ;;  %v5037_v13 = vld [vmem:[#allocation2 + $0x90] sm:$0x8]  ;;  %v13277_v4 = vld [vmem:[#allocation2 + $0x94] sm:$0xf] }
 0x28b   : > { %v13250_v60 = vadd.f32 %v13095_v61, %v2193_v1  ;;  %v13268_v53 = vsel %vm13218_vm10, %v5144_v54, %v5145_v18  ;;  %v5156_v21 = vrot.slane %v13277_v4, 7  ;;  %v5159_v1 = vrot.slane %v13087_v58, 7  ;;  %v5038_v61 = vld [vmem:[#allocation2 + $0x9c] sm:$0x8]  ;;  %v13289_v54 = vld [vmem:[#allocation2 + $0xa0] sm:$0xf] }
 0x28c   : > { %v13252_v15 = vpop.f32.mrf.mxu0  ;;  %4949 = vmatmul.mubr.bf16.gmra.mxu0 %v9437_v5  ;;  %v2195_v49 = vpop.f32.mrf.mxu1  ;;  %15914 = vst [vmem:[#allocation70_spill] sm:$0xff] %v13268_v53  ;;  %v9466_v5 = vrot.slane %v5036_v17, 11  ;;  %v9468_v30 = vrot.slane %v5038_v61, 11  ;;  %v15916_v53 = vld [vmem:[#allocation64_spill] sm:$0xff] }
 0x28d   : > { %4958 = vmatprep.mubr.bf16.mxu0 %v15798_v36  ;;  %v13271_v27 = vadd.f32 %v13114_v16, %v2195_v49  ;;  %v13287_v16 = vsel %vm13218_vm10, %v5151_v19, %v5152_v39  ;;  %v5163_v49 = vrot.slane %v13289_v54, 7  ;;  %v15915_v39 = vrot.slane %v13192_v35, 6 }
 0x28e   : > { %v13273_v14 = vpop.f32.mrf.mxu0  ;;  %v2197_v18 = vpop.f32.mrf.mxu1  ;;  %v13283_v17 = vsel %vm13218_vm10, %v9466_v5, %v5149_v59  ;;  %v9467_v59 = vrot.slane %v5037_v13, 11  ;;  %v5158_v5 = vrot.slane %v5156_v21, 4 }
 0x28f   : > { %v13294_v51 = vadd.f32 %v13125_v2, %v2197_v18  ;;  %v3908_v19 = vrot.slane %v15915_v39, 4  ;;  %v4632_v2 = vsel %vm11370_vm7, %v13209_v57, %v13181_v11  ;;  %v5165_v18 = vrot.slane %v5163_v49, 4 }
 0x290   : > { %v13296_v58 = vpop.f32.mrf.mxu0  ;;  %v2867_v31 = vpop.f32.mrf.mxu1  ;;  %4211 = vmatmul.mubr.bf16.gmra.mxu1 %v9389_v3  ;;  %v9438_v6 = vcombine.low %v4632_v2, %v4642_v9  ;;  %v13315_v24 = vsel %vm13218_vm10, %v9467_v59, %v5156_v21  ;;  %v13319_v20 = vsel %vm13218_vm10, %v5158_v5, %v5159_v1  ;;  %v15919_v9 = vld [vmem:[#allocation65_spill] sm:$0xff]  ;;  %v3913_v2 = vrot.slane %v13277_v4, 6 }
 0x291   : > { %v3006_v37 = vadd.f32 %v2867_v31, %v15916_v53  ;;  %4220 = vmatprep.mubr.bf16.mxu1 %v15798_v36  ;;  %v13326_v31 = vsel %vm13218_vm10, %v9468_v30, %v5163_v49  ;;  %v13330_v57 = vsel %vm13218_vm10, %v5165_v18, %v5166_v62  ;;  %v15920_v53 = vrot.slane %v13195_v47, 6  ;;  %v15921_v5 = vld [vmem:[#allocation69_spill] sm:$0xff]  ;;  %v15922_v30 = vld [vmem:[#allocation82_spill] sm:$0xff] }
 0x292   : > { %v13311_v13 = vpop.f32.mrf.mxu0  ;;  %v2869_v3 = vpop.f32.mrf.mxu1  ;;  %15917 = vst [vmem:[#allocation64_spill] sm:$0xff] %v13326_v31  ;;  %15918 = vst [vmem:[#allocation115_spill] sm:$0xff] %v13330_v57  ;;  %v3907_v47 = vsel %vm12715_vm8, %v9360_v29, %v15915_v39  ;;  %v15923_v29 = vld [vmem:[#allocation83_spill] sm:$0xff]  ;;  %v15924_v39 = vld [vmem:[#allocation84_spill] sm:$0xff]  ;;  %vm5842_vm7 = vcmask 1043456  }
 0x293   : > { %v3007_v61 = vadd.f32 %v2869_v3, %v15919_v9  ;;  %v3910_v21 = vsel %vm12715_vm8, %v3908_v19, %v15920_v53  ;;  %v13340_v8 = vadd.f32 %v13137_v50, %v3006_v37  ;;  %v10470_v3 = vld [vmem:[#allocation2 + $0x98] sm:$0x3]  ;;  %v10471_v49 = vld [vmem:[#allocation2 + $0xa4] sm:$0x3]  ;;  %v10475_v31 = vld [vmem:[#allocation2 + $0x14] sm:$0x7] }
 0x294   : > { %v13337_v1 = vpop.f32.mrf.mxu0  ;;  %4959 = vmatmul.mubr.bf16.gmra.mxu0 %v9438_v6  ;;  %v2871_v59 = vpop.f32.mrf.mxu1  ;;  %v9390_v37 = vcombine.low %v3907_v47, %v3910_v21  ;;  %v3916_v9 = vrot.slane %v10470_v3, 6  ;;  %v15925_v3 = vld [vmem:[#allocation85_spill] sm:$0xff]  ;;  %vm13954_vm12 = vmor %vm5843_vm11, %vm5842_vm7 }
 0x295   : > { %v3008_v62 = vadd.f32 %v2871_v59, %v15921_v5  ;;  %v13353_v6 = vadd.f32 %v13148_v12, %v3007_v61  ;;  %v3915_v5 = vrot.slane %v3913_v2, 4 }
 0x296   : > { %v13350_v19 = vpop.f32.mrf.mxu0  ;;  %v2873_v50 = vpop.f32.mrf.mxu1 }
 0x297   : > { %v3009_v18 = vadd.f32 %v2873_v50, %v15922_v30  ;;  %v13359_v35 = vadd.f32 %v13159_v25, %v3008_v62  ;;  %v9361_v50 = vrot.slane %v13078_v55, 10  ;;  %v3917_v25 = vsel %vm12715_vm8, %v3915_v5, %v3916_v9  ;;  %v15926_v5 = vld [vmem:[#allocation86_spill] sm:$0xff] }
 0x298   : > { %v13356_v53 = vpop.f32.mrf.mxu0  ;;  %v2877_v59 = vpop.f32.mrf.mxu1  ;;  %4221 = vmatmul.mubr.bf16.gmra.mxu1 %v9390_v37 }
 0x299   : > { %v3010_v4 = vadd.f32 %v2877_v59, %v15923_v29  ;;  %4230 = vmatprep.mubr.bf16.mxu1 %v15798_v36  ;;  %v13366_v61 = vadd.f32 %v13179_v43, %v3009_v18  ;;  %v3914_v43 = vsel %vm12715_vm8, %v9361_v50, %v3913_v2  ;;  %v3920_v18 = vrot.slane %v13289_v54, 6 }
 0x29a   : > { %v13363_v12 = vpop.f32.mrf.mxu0  ;;  %v2879_v21 = vpop.f32.mrf.mxu1  ;;  %v9391_v9 = vcombine.low %v3914_v43, %v3917_v25  ;;  %v15927_v25 = vld [vmem:[#allocation39_spill] sm:$0xff]  ;;  %v9362_v43 = vrot.slane %v13109_v46, 10 }
 0x29b   : > { %v3011_v47 = vadd.f32 %v2879_v21, %v15924_v39  ;;  %v13375_v37 = vadd.f32 %v13188_v48, %v3010_v4  ;;  %v3923_v48 = vrot.slane %v10471_v49, 6  ;;  %v3922_v2 = vrot.slane %v3920_v18, 4 }
 0x29c   : > { %v13372_v62 = vpop.f32.mrf.mxu0  ;;  %v2881_v30 = vpop.f32.mrf.mxu1 }
 0x29d   : > { %v3012_v59 = vadd.f32 %v2881_v30, %v15925_v3  ;;  %v13384_v55 = vadd.f32 %v13205_v44, %v3011_v47 }
 0x29e   : > { %v13381_v29 = vpop.f32.mrf.mxu0  ;;  %v2883_v21 = vpop.f32.mrf.mxu1 }
 0x29f   : > { %v3013_v39 = vadd.f32 %v2883_v21, %v15926_v5  ;;  %v13390_v30 = vadd.f32 %v13214_v56, %v3012_v59  ;;  %v3924_v56 = vsel %vm12715_vm8, %v3922_v2, %v3923_v48 }
 0x2a0   : > { %v13387_v4 = vpop.f32.mrf.mxu0  ;;  %v2887_v3 = vpop.f32.mrf.mxu1  ;;  %4231 = vmatmul.mubr.bf16.gmra.mxu1 %v9391_v9  ;;  %v15928_v9 = vld [vmem:[#allocation38_spill] sm:$0xff] }
 0x2a1   : > { %v3014_v54 = vadd.f32 %v2887_v3, %v12625_v7  ;;  %4240 = vmatprep.mubr.bf16.mxu1 %v15798_v36  ;;  %v13397_v47 = vadd.f32 %v13238_v34, %v3013_v39  ;;  %v3921_v34 = vsel %vm12715_vm8, %v9362_v43, %v3920_v18  ;;  %v10472_v39 = vld [vmem:[#allocation2 + $0x4] sm:$0xf]  ;;  %v5025_v18 = vld [vmem:[#allocation2] sm:$0x8] }
 0x2a2   : > { %v13394_v44 = vpop.f32.mrf.mxu0  ;;  %v2889_v50 = vpop.f32.mrf.mxu1  ;;  %v5072_v3 = vrot.slane %v10472_v39, 7  ;;  %v9392_v48 = vcombine.low %v3921_v34, %v3924_v56  ;;  %v9455_v39 = vrot.slane %v5025_v18, 11 }
 0x2a3   : > { %v3015_v49 = vadd.f32 %v2889_v50, %v15927_v25  ;;  %v13406_v7 = vadd.f32 %v13252_v15, %v3014_v54  ;;  %v10473_v25 = vld [vmem:[#allocation2 + $0x8] sm:$0x7] }
 0x2a4   : > { %v13403_v59 = vpop.f32.mrf.mxu0  ;;  %v2891_v21 = vpop.f32.mrf.mxu1  ;;  %v5075_v15 = vrot.slane %v10473_v25, 7 }
 0x2a5   : > { %v3016_v5 = vadd.f32 %v2891_v21, %v15928_v9  ;;  %v13414_v46 = vadd.f32 %v13273_v14, %v3015_v49  ;;  %v5074_v14 = vrot.slane %v5072_v3, 4  ;;  %v15929_v9 = vld [vmem:[#allocation48_spill] sm:$0xff] }
 0x2a6   : > { %v13411_v11 = vpop.f32.mrf.mxu0  ;;  %v2893_v50 = vpop.f32.mrf.mxu1 }
 0x2a7   : > { %v3017_v2 = vadd.f32 %v2893_v50, %v12645_v22  ;;  %v13420_v21 = vadd.f32 %v13296_v58, %v3016_v5  ;;  %v5076_v58 = vsel %vm13218_vm10, %v5074_v14, %v5075_v15  ;;  %v15933_v14 = vld [vmem:[#allocation36_spill] sm:$0xff] }
 0x2a8   : > { %v13417_v54 = vpop.f32.mrf.mxu0  ;;  %v2897_v33 = vpop.f32.mrf.mxu1  ;;  %4241 = vmatmul.mubr.bf16.gmra.mxu1 %v9392_v48  ;;  %v15931_v48 = vld [vmem:[#allocation47_spill] sm:$0xff] }
 0x2a9   : > { %v3018_v43 = vadd.f32 %v2897_v33, %v12663_v32  ;;  %5353 = vmatprep.mubr.bf16.mxu1 %v15798_v36  ;;  %v13427_v56 = vadd.f32 %v13311_v13, %v3017_v2  ;;  %v5073_v33 = vsel %vm13218_vm10, %v9455_v39, %v5072_v3  ;;  %v10474_v13 = vld [vmem:[#allocation2 + $0x10] sm:$0xf]  ;;  %v5026_v3 = vld [vmem:[#allocation2 + $0xc] sm:$0x8] }
 0x2aa   : > { %v13424_v49 = vpop.f32.mrf.mxu0  ;;  %v2899_v22 = vpop.f32.mrf.mxu1  ;;  %v5079_v2 = vrot.slane %v10474_v13, 7  ;;  %v9485_v15 = vcombine.low %v5073_v33, %v5076_v58  ;;  %v15935_v39 = vld [vmem:[#allocation87_spill] sm:$0xff] }
 0x2ab   : > { %v3019_v34 = vadd.f32 %v2899_v22, %v15929_v9  ;;  %v13435_v50 = vadd.f32 %v13337_v1, %v3018_v43  ;;  %v5082_v1 = vrot.slane %v10475_v31, 7  ;;  %v15937_v31 = vld [vmem:[#allocation88_spill] sm:$0xff] }
 0x2ac   : > { %v13432_v5 = vpop.f32.mrf.mxu0  ;;  %v2901_v32 = vpop.f32.mrf.mxu1 }
 0x2ad   : > { %15930 = vst [vmem:[#allocation65_spill] sm:$0xff] %v13435_v50  ;;  %v3020_v25 = vadd.f32 %v2901_v32, %v15931_v48  ;;  %v13443_v18 = vadd.f32 %v13350_v19, %v3019_v34  ;;  %v5081_v19 = vrot.slane %v5079_v2, 4  ;;  %v10477_v50 = vld [vmem:[#allocation2 + $0x20] sm:$0x7] }
 0x2ae   : > { %v13440_v57 = vpop.f32.mrf.mxu0  ;;  %v2903_v22 = vpop.f32.mrf.mxu1 }
 0x2af   : > { %15932 = vst [vmem:[#allocation69_spill] sm:$0xff] %v13443_v18  ;;  %v3021_v9 = vadd.f32 %v2903_v22, %v15933_v14  ;;  %v13449_v32 = vadd.f32 %v13356_v53, %v3020_v25  ;;  %v9456_v14 = vrot.slane %v5026_v3, 11  ;;  %v5083_v53 = vsel %vm13218_vm10, %v5081_v19, %v5082_v1  ;;  %v15941_v19 = vld [vmem:[#allocation90_spill] sm:$0xff] }
 0x2b0   : > { %v13446_v43 = vpop.f32.mrf.mxu0  ;;  %v2907_v48 = vpop.f32.mrf.mxu1  ;;  %5354 = vmatmul.mubr.bf16.vlgmr.msra.gmra.mxu1 %v9485_v15 }
 0x2b1   : > { %15934 = vst [vmem:[#allocation82_spill] sm:$0xff] %v13449_v32  ;;  %v3022_v13 = vadd.f32 %v2907_v48, %v15935_v39  ;;  %5363 = vmatprep.mubr.bf16.mxu1 %v15798_v36  ;;  %v13456_v58 = vadd.f32 %v13363_v12, %v3021_v9  ;;  %v15939_v39 = vld [vmem:[#allocation89_spill] sm:$0xff]  ;;  %v5080_v18 = vsel %vm13218_vm10, %v9456_v14, %v5079_v2  ;;  %v15943_v14 = vld [vmem:[#allocation91_spill] sm:$0xff] }
 0x2b2   : > { %v13453_v34 = vpop.f32.mrf.mxu0  ;;  %v2909_v33 = vpop.f32.mrf.mxu1  ;;  %v10476_v12 = vld [vmem:[#allocation2 + $0x1c] sm:$0xf]  ;;  %v9486_v1 = vcombine.low %v5080_v18, %v5083_v53  ;;  %v5027_v2 = vld [vmem:[#allocation2 + $0x18] sm:$0x8] }
 0x2b3   : > { %15936 = vst [vmem:[#allocation83_spill] sm:$0xff] %v13456_v58  ;;  %v3023_v22 = vadd.f32 %v2909_v33, %v15937_v31  ;;  %v13464_v15 = vadd.f32 %v13372_v62, %v3022_v13  ;;  %v5086_v9 = vrot.slane %v10476_v12, 7  ;;  %v5089_v62 = vrot.slane %v10477_v50, 7  ;;  %v15945_v50 = vld [vmem:[#allocation92_spill] sm:$0xff] }
 0x2b4   : > { %v13461_v25 = vpop.f32.mrf.mxu0  ;;  %v2911_v48 = vpop.f32.mrf.mxu1 }
 0x2b5   : > { %15938 = vst [vmem:[#allocation84_spill] sm:$0xff] %v13464_v15  ;;  %v3024_v32 = vadd.f32 %v2911_v48, %v15939_v39  ;;  %v13472_v3 = vadd.f32 %v13381_v29, %v3023_v22  ;;  %v5088_v29 = vrot.slane %v5086_v9, 4  ;;  %v10479_v15 = vld [vmem:[#allocation2 + $0x2c] sm:$0x7] }
 0x2b6   : > { %v13469_v58 = vpop.f32.mrf.mxu0  ;;  %v2913_v33 = vpop.f32.mrf.mxu1 }
 0x2b7   : > { %15940 = vst [vmem:[#allocation85_spill] sm:$0xff] %v13472_v3  ;;  %v3025_v31 = vadd.f32 %v2913_v33, %v15941_v19  ;;  %v13478_v48 = vadd.f32 %v13387_v4, %v3024_v32  ;;  %v9457_v19 = vrot.slane %v5027_v2, 11  ;;  %v5090_v4 = vsel %vm13218_vm10, %v5088_v29, %v5089_v62  ;;  %v15949_v29 = vld [vmem:[#allocation58_spill] sm:$0xff] }
 0x2b8   : > { %v13475_v13 = vpop.f32.mrf.mxu0  ;;  %v2917_v39 = vpop.f32.mrf.mxu1  ;;  %5364 = vmatmul.mubr.bf16.gmra.mxu1 %v9486_v1 }
 0x2b9   : > { %15942 = vst [vmem:[#allocation86_spill] sm:$0xff] %v13478_v48  ;;  %v3026_v12 = vadd.f32 %v2917_v39, %v15943_v14  ;;  %5373 = vmatprep.mubr.bf16.mxu1 %v15798_v36  ;;  %v13485_v18 = vadd.f32 %v13394_v44, %v3025_v31  ;;  %v15947_v14 = vld [vmem:[#allocation93_spill] sm:$0xff]  ;;  %v5087_v3 = vsel %vm13218_vm10, %v9457_v19, %v5086_v9  ;;  %v10478_v44 = vld [vmem:[#allocation2 + $0x28] sm:$0xf]  ;;  %v5028_v9 = vld [vmem:[#allocation2 + $0x24] sm:$0x8] }
 0x2ba   : > { %v13482_v22 = vpop.f32.mrf.mxu0  ;;  %v2919_v53 = vpop.f32.mrf.mxu1  ;;  %v5093_v31 = vrot.slane %v10478_v44, 7  ;;  %v9487_v62 = vcombine.low %v5087_v3, %v5090_v4  ;;  %v15951_v19 = vld [vmem:[#allocation57_spill] sm:$0xff] }
 0x2bb   : > { %15944 = vst [vmem:[#allocation39_spill] sm:$0xff] %v13485_v18  ;;  %v3027_v33 = vadd.f32 %v2919_v53, %v15945_v50  ;;  %v13493_v1 = vadd.f32 %v13403_v59, %v3026_v12  ;;  %v5096_v59 = vrot.slane %v10479_v15, 7  ;;  %v15953_v15 = vld [vmem:[#allocation94_spill] sm:$0xff] }
 0x2bc   : > { %v13490_v32 = vpop.f32.mrf.mxu0  ;;  %v2921_v39 = vpop.f32.mrf.mxu1 }
 0x2bd   : > { %15946 = vst [vmem:[#allocation38_spill] sm:$0xff] %v13493_v1  ;;  %v3028_v48 = vadd.f32 %v2921_v39, %v15947_v14  ;;  %v13501_v2 = vadd.f32 %v13411_v11, %v3027_v33  ;;  %v5095_v11 = vrot.slane %v5093_v31, 4  ;;  %v10481_v1 = vld [vmem:[#allocation2 + $0x38] sm:$0x7] }
 0x2be   : > { %v13498_v18 = vpop.f32.mrf.mxu0  ;;  %v2923_v53 = vpop.f32.mrf.mxu1 }
 0x2bf   : > { %15948 = vst [vmem:[#allocation48_spill] sm:$0xff] %v13501_v2  ;;  %v3029_v50 = vadd.f32 %v2923_v53, %v15949_v29  ;;  %v13507_v39 = vadd.f32 %v13417_v54, %v3028_v48  ;;  %v9458_v29 = vrot.slane %v5028_v9, 11  ;;  %v5097_v54 = vsel %vm13218_vm10, %v5095_v11, %v5096_v59  ;;  %v15957_v11 = vld [vmem:[#allocation96_spill] sm:$0xff] }
 0x2c0   : > { %v13504_v12 = vpop.f32.mrf.mxu0  ;;  %v2927_v14 = vpop.f32.mrf.mxu1  ;;  %5374 = vmatmul.mubr.bf16.gmra.mxu1 %v9487_v62 }
 0x2c1   : > { %15950 = vst [vmem:[#allocation47_spill] sm:$0xff] %v13507_v39  ;;  %v3030_v44 = vadd.f32 %v2927_v14, %v15951_v19  ;;  %5383 = vmatprep.mubr.bf16.mxu1 %v15798_v36  ;;  %v13514_v3 = vadd.f32 %v13424_v49, %v3029_v50  ;;  %v15955_v19 = vld [vmem:[#allocation95_spill] sm:$0xff]  ;;  %v5094_v2 = vsel %vm13218_vm10, %v9458_v29, %v5093_v31  ;;  %v10480_v49 = vld [vmem:[#allocation2 + $0x34] sm:$0xf]  ;;  %v5029_v31 = vld [vmem:[#allocation2 + $0x30] sm:$0x8] }
 0x2c2   : > { %v13511_v33 = vpop.f32.mrf.mxu0  ;;  %v2929_v4 = vpop.f32.mrf.mxu1  ;;  %v5100_v50 = vrot.slane %v10480_v49, 7  ;;  %v9488_v59 = vcombine.low %v5094_v2, %v5097_v54  ;;  %v15959_v29 = vld [vmem:[#allocation97_spill] sm:$0xff] }
 0x2c3   : > { %15952 = vst [vmem:[#allocation36_spill] sm:$0xff] %v13514_v3  ;;  %v3031_v53 = vadd.f32 %v2929_v4, %v15953_v15  ;;  %v13522_v62 = vadd.f32 %v13432_v5, %v3030_v44  ;;  %v5103_v5 = vrot.slane %v10481_v1, 7  ;;  %v15961_v1 = vld [vmem:[#allocation98_spill] sm:$0xff] }
 0x2c4   : > { %v13519_v48 = vpop.f32.mrf.mxu0  ;;  %v2931_v14 = vpop.f32.mrf.mxu1 }
 0x2c5   : > { %15954 = vst [vmem:[#allocation87_spill] sm:$0xff] %v13522_v62  ;;  %v3032_v39 = vadd.f32 %v2931_v14, %v15955_v19  ;;  %v13530_v9 = vadd.f32 %v13440_v57, %v3031_v53  ;;  %v5102_v57 = vrot.slane %v5100_v50, 4  ;;  %v10483_v62 = vld [vmem:[#allocation2 + $0x44] sm:$0x7] }
 0x2c6   : > { %v13527_v3 = vpop.f32.mrf.mxu0  ;;  %v2933_v4 = vpop.f32.mrf.mxu1 }
 0x2c7   : > { %15956 = vst [vmem:[#allocation88_spill] sm:$0xff] %v13530_v9  ;;  %v3033_v15 = vadd.f32 %v2933_v4, %v15957_v11  ;;  %v13536_v14 = vadd.f32 %v13446_v43, %v3032_v39  ;;  %v9459_v11 = vrot.slane %v5029_v31, 11  ;;  %v5104_v43 = vsel %vm13218_vm10, %v5102_v57, %v5103_v5  ;;  %v15965_v57 = vld [vmem:[#allocation100_spill] sm:$0xff] }
 0x2c8   : > { %v13533_v44 = vpop.f32.mrf.mxu0  ;;  %v2937_v19 = vpop.f32.mrf.mxu1  ;;  %5384 = vmatmul.mubr.bf16.gmra.mxu1 %v9488_v59 }
 0x2c9   : > { %15958 = vst [vmem:[#allocation89_spill] sm:$0xff] %v13536_v14  ;;  %v3034_v49 = vadd.f32 %v2937_v19, %v15959_v29  ;;  %5393 = vmatprep.mubr.bf16.mxu1 %v15798_v36  ;;  %v13543_v2 = vadd.f32 %v13453_v34, %v3033_v15  ;;  %v15963_v29 = vld [vmem:[#allocation99_spill] sm:$0xff]  ;;  %v5101_v9 = vsel %vm13218_vm10, %v9459_v11, %v5100_v50  ;;  %v10482_v34 = vld [vmem:[#allocation2 + $0x40] sm:$0xf]  ;;  %v5030_v50 = vld [vmem:[#allocation2 + $0x3c] sm:$0x8] }
 0x2ca   : > { %v13540_v53 = vpop.f32.mrf.mxu0  ;;  %v2939_v54 = vpop.f32.mrf.mxu1  ;;  %v5107_v15 = vrot.slane %v10482_v34, 7  ;;  %v9489_v5 = vcombine.low %v5101_v9, %v5104_v43  ;;  %v15967_v11 = vld [vmem:[#allocation101_spill] sm:$0xff] }
 0x2cb   : > { %15960 = vst [vmem:[#allocation90_spill] sm:$0xff] %v13543_v2  ;;  %v3035_v4 = vadd.f32 %v2939_v54, %v15961_v1  ;;  %v13551_v59 = vadd.f32 %v13461_v25, %v3034_v49  ;;  %v5110_v25 = vrot.slane %v10483_v62, 7  ;;  %v15969_v62 = vld [vmem:[#allocation102_spill] sm:$0xff] }
 0x2cc   : > { %v13548_v39 = vpop.f32.mrf.mxu0  ;;  %v2941_v19 = vpop.f32.mrf.mxu1 }
 0x2cd   : > { %15962 = vst [vmem:[#allocation91_spill] sm:$0xff] %v13551_v59  ;;  %v3036_v14 = vadd.f32 %v2941_v19, %v15963_v29  ;;  %v13559_v31 = vadd.f32 %v13469_v58, %v3035_v4  ;;  %v5109_v58 = vrot.slane %v5107_v15, 4  ;;  %v10485_v59 = vld [vmem:[#allocation2 + $0x50] sm:$0x7] }
 0x2ce   : > { %v13556_v2 = vpop.f32.mrf.mxu0  ;;  %v2943_v54 = vpop.f32.mrf.mxu1 }
 0x2cf   : > { %15964 = vst [vmem:[#allocation92_spill] sm:$0xff] %v13559_v31  ;;  %v3037_v1 = vadd.f32 %v2943_v54, %v15965_v57  ;;  %v13565_v19 = vadd.f32 %v13475_v13, %v3036_v14  ;;  %v9460_v57 = vrot.slane %v5030_v50, 11  ;;  %v5111_v13 = vsel %vm13218_vm10, %v5109_v58, %v5110_v25  ;;  %v15972_v58 = vld [vmem:[#allocation105_spill] sm:$0xff] }
 0x2d0   : > { %v13562_v49 = vpop.f32.mrf.mxu0  ;;  %v2947_v29 = vpop.f32.mrf.mxu1  ;;  %5394 = vmatmul.mubr.bf16.gmra.mxu1 %v9489_v5 }
 0x2d1   : > { %15966 = vst [vmem:[#allocation93_spill] sm:$0xff] %v13565_v19  ;;  %v3038_v34 = vadd.f32 %v2947_v29, %v15967_v11  ;;  %5403 = vmatprep.mubr.bf16.mxu1 %v15798_v36  ;;  %v13572_v9 = vadd.f32 %v13482_v22, %v3037_v1  ;;  %v15971_v11 = vld [vmem:[#allocation103_spill] sm:$0xff]  ;;  %v5108_v31 = vsel %vm13218_vm10, %v9460_v57, %v5107_v15  ;;  %v15974_v57 = vld [vmem:[#allocation106_spill] sm:$0xff] }
 0x2d2   : > { %v13569_v4 = vpop.f32.mrf.mxu0  ;;  %v2949_v43 = vpop.f32.mrf.mxu1  ;;  %v10484_v22 = vld [vmem:[#allocation2 + $0x4c] sm:$0xf]  ;;  %v9490_v25 = vcombine.low %v5108_v31, %v5111_v13 }
 0x2d3   : > { %15968 = vst [vmem:[#allocation58_spill] sm:$0xff] %v13572_v9  ;;  %v3039_v54 = vadd.f32 %v2949_v43, %v15969_v62  ;;  %v13580_v5 = vadd.f32 %v13490_v32, %v3038_v34  ;;  %v5114_v1 = vrot.slane %v10484_v22, 7  ;;  %v5117_v32 = vrot.slane %v10485_v59, 7 }
 0x2d4   : > { %v13577_v14 = vpop.f32.mrf.mxu0  ;;  %v2951_v29 = vpop.f32.mrf.mxu1 }
 0x2d5   : > { %15970 = vst [vmem:[#allocation57_spill] sm:$0xff] %v13580_v5  ;;  %v3040_v19 = vadd.f32 %v2951_v29, %v15971_v11  ;;  %v13588_v50 = vadd.f32 %v13498_v18, %v3039_v54  ;;  %v5031_v11 = vld [vmem:[#allocation2 + $0x48] sm:$0x8]  ;;  %v5116_v5 = vrot.slane %v5114_v1, 4 }
 0x2d6   : > { %v13585_v9 = vpop.f32.mrf.mxu0  ;;  %v2953_v43 = vpop.f32.mrf.mxu1  ;;  %v15976_v54 = vld [vmem:[#allocation107_spill] sm:$0xff] }
 0x2d7   : > { %v3041_v62 = vadd.f32 %v2953_v43, %v15972_v58  ;;  %v13592_v34 = vadd.f32 %v13504_v12, %v3040_v19  ;;  %v9461_v43 = vrot.slane %v5031_v11, 11  ;;  %v5118_v12 = vsel %vm13218_vm10, %v5116_v5, %v5117_v32  ;;  %v15978_v58 = vld [vmem:[#allocation108_spill] sm:$0xff]  ;;  %v10486_v5 = vld [vmem:[#allocation2 + $0x5c] sm:$0x7] }
 0x2d8   : > { %v2957_v29 = vpop.f32.mrf.mxu1  ;;  %5404 = vmatmul.mubr.bf16.gmra.mxu1 %v9490_v25  ;;  %v3702_v15 = vpop.f32.mrf.mxu0  ;;  %v5124_v32 = vrot.slane %v10486_v5, 7 }
 0x2d9   : > { %15973 = vst [vmem:[#allocation94_spill] sm:$0xff] %v13592_v34  ;;  %v3042_v22 = vadd.f32 %v2957_v29, %v15974_v57  ;;  %5413 = vmatprep.mubr.bf16.mxu1 %v15798_v36  ;;  %v13597_v18 = vadd.f32 %v13511_v33, %v3041_v62  ;;  %v5115_v57 = vsel %vm13218_vm10, %v9461_v43, %v5114_v1  ;;  %v15979_v34 = vld [vmem:[#allocation104_spill] sm:$0xff]  ;;  %v15982_v43 = vld [vmem:[#allocation111_spill] sm:$0xff] }
 0x2da   : > { %v2959_v31 = vpop.f32.mrf.mxu1  ;;  %v3704_v25 = vpop.f32.mrf.mxu0  ;;  %v5121_v33 = vrot.slane %v15979_v34, 7  ;;  %v9491_v11 = vcombine.low %v5115_v57, %v5118_v12 }
 0x2db   : > { %15975 = vst [vmem:[#allocation95_spill] sm:$0xff] %v13597_v18  ;;  %v3043_v13 = vadd.f32 %v2959_v31, %v15976_v54  ;;  %v13603_v59 = vadd.f32 %v13519_v48, %v3042_v22  ;;  %v15980_v54 = vld [vmem:[#allocation109_spill] sm:$0xff] }
 0x2dc   : > { %v2961_v19 = vpop.f32.mrf.mxu1  ;;  %v5123_v34 = vrot.slane %v5121_v33, 4 }
 0x2dd   : > { %15977 = vst [vmem:[#allocation96_spill] sm:$0xff] %v13603_v59  ;;  %v3044_v29 = vadd.f32 %v2961_v19, %v15978_v58  ;;  %v13610_v62 = vadd.f32 %v13527_v3, %v3043_v13  ;;  %v3708_v19 = vpop.f32.mrf.mxu0  ;;  %v5032_v58 = vld [vmem:[#allocation2 + $0x54] sm:$0x8]  ;;  %v15981_v59 = vld [vmem:[#allocation110_spill] sm:$0xff] }
 0x2de   : > { %v2963_v31 = vpop.f32.mrf.mxu1  ;;  %v9462_v57 = vrot.slane %v5032_v58, 11 }
 0x2df   : > { %v3045_v18 = vadd.f32 %v2963_v31, %v15980_v54  ;;  %v13614_v48 = vadd.f32 %v13533_v44, %v3044_v29  ;;  %v5125_v44 = vsel %vm13218_vm10, %v5123_v34, %v5124_v32  ;;  %v15983_v54 = vld [vmem:[#allocation112_spill] sm:$0xff] }
 0x2e0   : > { %v2967_v22 = vpop.f32.mrf.mxu1  ;;  %5414 = vmatmul.mubr.bf16.gmra.mxu1 %v9491_v11  ;;  %v3710_v11 = vpop.f32.mrf.mxu0  ;;  %v5122_v5 = vsel %vm13218_vm10, %v9462_v57, %v5121_v33 }
 0x2e1   : > { %v3046_v1 = vadd.f32 %v2967_v22, %v15981_v59  ;;  %5423 = vmatprep.mubr.bf16.mxu1 %v15798_v36  ;;  %v13619_v3 = vadd.f32 %v13540_v53, %v3045_v18  ;;  %v9492_v22 = vcombine.low %v5122_v5, %v5125_v44 }
 0x2e2   : > { %v2969_v13 = vpop.f32.mrf.mxu1 }
 0x2e3   : > { %v3047_v12 = vadd.f32 %v2969_v13, %v15982_v43  ;;  %v13625_v29 = vadd.f32 %v13548_v39, %v3046_v1  ;;  %v15984_v13 = vld [vmem:[#allocation113_spill] sm:$0xff]  ;;  %v3712_v39 = vpop.f32.mrf.mxu0  ;;  %v15985_v1 = vld [vmem:[#allocation68_spill] sm:$0xff] }
 0x2e4   : > { %v2971_v31 = vpop.f32.mrf.mxu1 }
 0x2e5   : > { %v3048_v59 = vadd.f32 %v2971_v31, %v15983_v54  ;;  %v13631_v53 = vadd.f32 %v13556_v2, %v3047_v12  ;;  %v15986_v2 = vld [vmem:[#allocation114_spill] sm:$0xff]  ;;  %v3714_v31 = vpop.f32.mrf.mxu0 }
 0x2e6   : > { %v2973_v18 = vpop.f32.mrf.mxu1 }
 0x2e7   : > { %v3049_v58 = vadd.f32 %v2973_v18, %v15984_v13  ;;  %v13635_v43 = vadd.f32 %v13562_v49, %v3048_v59  ;;  %v15987_v13 = vcombine.low %v13226_v45, %v13230_v52 }
 0x2e8   : > { %v2977_v32 = vpop.f32.mrf.mxu1  ;;  %5424 = vmatmul.mubr.bf16.gmra.mxu1 %v9492_v22 }
 0x2e9   : > { %v3050_v34 = vadd.f32 %v2977_v32, %v15985_v1  ;;  %5433 = vmatprep.mubr.bf16.mxu1 %v15798_v36  ;;  %v13640_v10 = vadd.f32 %v13569_v4, %v3049_v58  ;;  %v3718_v4 = vpop.f32.mrf.mxu0 }
 0x2ea   : > { %v2979_v33 = vpop.f32.mrf.mxu1 }
 0x2eb   : > { %v3051_v12 = vadd.f32 %v2979_v33, %v15986_v2  ;;  %v13644_v57 = vadd.f32 %v13577_v14, %v3050_v34 }
 0x2ec   : > { %v2981_v44 = vpop.f32.mrf.mxu1 }
 0x2ed   : > { %v3052_v49 = vadd.f32 %v2981_v44, %v13146_v0  ;;  %v13648_v54 = vadd.f32 %v13585_v9, %v3051_v12 }
 0x2ee   : > { %v2983_v59 = vpop.f32.mrf.mxu1 }
 0x2ef   : > { %v3053_v5 = vadd.f32 %v2983_v59, %v13155_v28  ;;  %v13651_v18 = vadd.f32 %v3702_v15, %v3052_v49  ;;  %v3720_v28 = vpop.f32.mrf.mxu0 }
 0x2f0   : > { %v2987_v22 = vpop.f32.mrf.mxu1  ;;  %5434 = vmatmul.mubr.bf16.gmra.mxu1 %v15987_v13 }
 0x2f1   : > { %v3054_v14 = vadd.f32 %v2987_v22, %v13176_v23  ;;  %5443 = vmatprep.mubr.bf16.mxu1 %v15798_v36  ;;  %v13658_v58 = vadd.f32 %v3704_v25, %v3053_v5  ;;  %v3722_v23 = vpop.f32.mrf.mxu0  ;;  %v15988_v25 = vcombine.low %v13246_v42, %v13256_v26  ;;  %v15989_v5 = vld [vmem:[#allocation71_spill] sm:$0xff]  ;;  %v15990_v22 = vld [vmem:[#allocation70_spill] sm:$0xff] }
 0x2f2   : > { %v2989_v0 = vpop.f32.mrf.mxu1  ;;  %v15991_v13 = vcombine.low %v15989_v5, %v15990_v22  ;;  %v15998_v5 = vld [vmem:[#allocation69_spill] sm:$0xff] }
 0x2f3   : > { %v3055_v9 = vadd.f32 %v2989_v0, %v13186_v41  ;;  %v13661_v32 = vadd.f32 %v3708_v19, %v3054_v14 }
 0x2f4   : > { %v2991_v15 = vpop.f32.mrf.mxu1 }
 0x2f5   : > { %v3056_v1 = vadd.f32 %v2991_v15, %v13203_v63  ;;  %v13664_v34 = vadd.f32 %v3710_v11, %v3055_v9 }
 0x2f6   : > { %v2993_v33 = vpop.f32.mrf.mxu1 }
 0x2f7   : > { %v3057_v45 = vadd.f32 %v2993_v33, %v13212_v40  ;;  %v13667_v52 = vadd.f32 %v3712_v39, %v3056_v1  ;;  %v3724_v40 = vpop.f32.mrf.mxu0  ;;  %v15992_v33 = vcombine.low %v13283_v17, %v13287_v16 }
 0x2f8   : > { %v2997_v2 = vpop.f32.mrf.mxu1  ;;  %5444 = vmatmul.mubr.bf16.gmra.mxu1 %v15988_v25 }
 0x2f9   : > { %v3058_v41 = vadd.f32 %v2997_v2, %v13235_v38  ;;  %5453 = vmatprep.mubr.bf16.mxu1 %v15798_v36  ;;  %v13674_v19 = vadd.f32 %v3714_v31, %v3057_v45  ;;  %v13685_v38 = vpop.f32.mrf.mxu0 }
 0x2fa   : > { %v2999_v63 = vpop.f32.mrf.mxu1 }
 0x2fb   : > { %v3059_v11 = vadd.f32 %v2999_v63, %v13250_v60  ;;  %v13677_v12 = vadd.f32 %v3718_v4, %v3058_v41 }
 0x2fc   : > { %v3001_v39 = vpop.f32.mrf.mxu1 }
 0x2fd   : > { %v3060_v44 = vadd.f32 %v3001_v39, %v13271_v27  ;;  %v13680_v49 = vadd.f32 %v3720_v28, %v3059_v11 }
 0x2fe   : > { %v3003_v59 = vpop.f32.mrf.mxu1 }
 0x2ff   : > { %v3061_v42 = vadd.f32 %v3003_v59, %v13294_v51  ;;  %v13683_v26 = vadd.f32 %v3722_v23, %v3060_v44  ;;  %v13699_v51 = vpop.f32.mrf.mxu0  ;;  %v15995_v59 = vld [vmem:[#allocation115_spill] sm:$0xff] }
 0x300   : > { %v4112_v31 = vpop.f32.mrf.mxu1  ;;  %5454 = vmatmul.mubr.bf16.gmra.mxu1 %v15991_v13 }
 0x301   : > { %v13691_v60 = vadd.f32 %v4112_v31, %v13340_v8  ;;  %5463 = vmatprep.mubr.bf16.mxu1 %v15798_v36  ;;  %v13694_v27 = vadd.f32 %v3724_v40, %v3061_v42  ;;  %v13707_v8 = vpop.f32.mrf.mxu0  ;;  %v15997_v42 = vld [vmem:[#allocation65_spill] sm:$0xff] }
 0x302   : > { %v4114_v4 = vpop.f32.mrf.mxu1 }
 0x303   : > { %v13697_v14 = vadd.f32 %v4114_v4, %v13353_v6  ;;  %v13719_v23 = vpop.f32.mrf.mxu0  ;;  %v15999_v4 = vld [vmem:[#allocation82_spill] sm:$0xff] }
 0x304   : > { %v4116_v0 = vpop.f32.mrf.mxu1 }
 0x305   : > { %v13702_v9 = vadd.f32 %v4116_v0, %v13359_v35  ;;  %v13727_v17 = vpop.f32.mrf.mxu0 }
 0x306   : > { %v4118_v28 = vpop.f32.mrf.mxu1 }
 0x307   : > { %v13705_v15 = vadd.f32 %v4118_v28, %v13366_v61  ;;  %v13739_v11 = vpop.f32.mrf.mxu0  ;;  %v16001_v28 = vld [vmem:[#allocation83_spill] sm:$0xff] }
 0x308   : > { %v4122_v1 = vpop.f32.mrf.mxu1  ;;  %5464 = vmatmul.mubr.bf16.gmra.mxu1 %v15992_v33 }
 0x309   : > { %v13713_v6 = vadd.f32 %v4122_v1, %v13375_v37  ;;  %5473 = vmatprep.mubr.bf16.mxu1 %v15798_v36  ;;  %v15993_v37 = vcombine.low %v13315_v24, %v13319_v20  ;;  %v13747_v24 = vpop.f32.mrf.mxu0 }
 0x30a   : > { %v4124_v45 = vpop.f32.mrf.mxu1 }
 0x30b   : > { %v13717_v35 = vadd.f32 %v4124_v45, %v13384_v55 }
 0x30c   : > { %v4126_v61 = vpop.f32.mrf.mxu1 }
 0x30d   : > { %v13722_v2 = vadd.f32 %v4126_v61, %v13390_v30  ;;  %v16003_v61 = vld [vmem:[#allocation84_spill] sm:$0xff] }
 0x30e   : > { %v4128_v25 = vpop.f32.mrf.mxu1 }
 0x30f   : > { %v13725_v41 = vadd.f32 %v4128_v25, %v13397_v47 }
 0x310   : > { %v4132_v16 = vpop.f32.mrf.mxu1  ;;  %5474 = vmatmul.mubr.bf16.gmra.mxu1 %v15993_v37  ;;  %v16005_v37 = vld [vmem:[#allocation85_spill] sm:$0xff] }
 0x311   : > { %v13733_v55 = vadd.f32 %v4132_v16, %v13406_v7  ;;  %5483 = vmatprep.mubr.bf16.mxu1 %v15798_v36  ;;  %v15994_v7 = vld [vmem:[#allocation64_spill] sm:$0xff] }
 0x312   : > { %v4134_v63 = vpop.f32.mrf.mxu1  ;;  %v15996_v36 = vcombine.low %v15994_v7, %v15995_v59 }
 0x313   : > { %v13737_v30 = vadd.f32 %v4134_v63, %v13414_v46 }
 0x314   : > { %v4136_v47 = vpop.f32.mrf.mxu1 }
 0x315   : > { %v13742_v40 = vadd.f32 %v4136_v47, %v13420_v21  ;;  %v13758_v21 = vpop.f32.mrf.mxu0 }
 0x316   : > { %v4138_v39 = vpop.f32.mrf.mxu1 }
 0x317   : > { %v13745_v44 = vadd.f32 %v4138_v39, %v13427_v56  ;;  %v13766_v33 = vpop.f32.mrf.mxu0 }
 0x318   : > { %v4142_v20 = vpop.f32.mrf.mxu1  ;;  %5484 = vmatmul.mubr.bf16.gmra.mxu1 %v15996_v36  ;;  %v16009_v36 = vld [vmem:[#allocation39_spill] sm:$0xff] }
 0x319   : > { %v13753_v46 = vadd.f32 %v4142_v20, %v15997_v42  ;;  %v13774_v47 = vpop.f32.mrf.mxu0  ;;  %v16007_v20 = vld [vmem:[#allocation86_spill] sm:$0xff] }
 0x31a   : > { %v4144_v31 = vpop.f32.mrf.mxu1 }
 0x31b   : > { %v13756_v22 = vadd.f32 %v4144_v31, %v15998_v5  ;;  %v13782_v31 = vpop.f32.mrf.mxu0 }
 0x31c   : > { %v4146_v13 = vpop.f32.mrf.mxu1 }
 0x31d   : > { %v13761_v56 = vadd.f32 %v4146_v13, %v15999_v4  ;;  %v16011_v13 = vld [vmem:[#allocation38_spill] sm:$0xff] }
 0x31e   : > { %v4148_v0 = vpop.f32.mrf.mxu1 }
 0x31f   : > { %16000 = vst [vmem:[#allocation97_spill] sm:$0xff] %v13761_v56  ;;  %v13764_v1 = vadd.f32 %v4148_v0, %v16001_v28  ;;  %v16013_v28 = vld [vmem:[#allocation48_spill] sm:$0xff]  ;;  %v16032_v56 = vld [vmem:[#allocation93_spill] sm:$0xff] }
 0x320   : > { %v4152_v45 = vpop.f32.mrf.mxu1 }
 0x321   : > { %16002 = vst [vmem:[#allocation98_spill] sm:$0xff] %v13764_v1  ;;  %v13769_v25 = vadd.f32 %v4152_v45, %v16003_v61  ;;  %v13790_v61 = vpop.f32.mrf.mxu0  ;;  %v16028_v1 = vld [vmem:[#allocation91_spill] sm:$0xff] }
 0x322   : > { %v4154_v16 = vpop.f32.mrf.mxu1 }
 0x323   : > { %16004 = vst [vmem:[#allocation99_spill] sm:$0xff] %v13769_v25  ;;  %v13772_v63 = vadd.f32 %v4154_v16, %v16005_v37  ;;  %v16015_v37 = vld [vmem:[#allocation47_spill] sm:$0xff]  ;;  %v16023_v25 = vld [vmem:[#allocation89_spill] sm:$0xff] }
 0x324   : > { %v4156_v39 = vpop.f32.mrf.mxu1 }
 0x325   : > { %16006 = vst [vmem:[#allocation100_spill] sm:$0xff] %v13772_v63  ;;  %v13777_v7 = vadd.f32 %v4156_v39, %v16007_v20  ;;  %v16019_v63 = vld [vmem:[#allocation87_spill] sm:$0xff] }
 0x326   : > { %v4158_v59 = vpop.f32.mrf.mxu1 }
 0x327   : > { %16008 = vst [vmem:[#allocation101_spill] sm:$0xff] %v13777_v7  ;;  %v13780_v42 = vadd.f32 %v4158_v59, %v16009_v36  ;;  %v16017_v7 = vld [vmem:[#allocation36_spill] sm:$0xff]  ;;  %v13798_v36 = vpop.f32.mrf.mxu0 }
 0x328   : > { %v4162_v5 = vpop.f32.mrf.mxu1 }
 0x329   : > { %16010 = vst [vmem:[#allocation102_spill] sm:$0xff] %v13780_v42  ;;  %v13785_v4 = vadd.f32 %v4162_v5, %v16011_v13 }
 0x32a   : > { %v4164_v0 = vpop.f32.mrf.mxu1 }
 0x32b   : > { %16012 = vst [vmem:[#allocation103_spill] sm:$0xff] %v13785_v4  ;;  %v13788_v45 = vadd.f32 %v4164_v0, %v16013_v28  ;;  %v16021_v4 = vld [vmem:[#allocation88_spill] sm:$0xff]  ;;  %v13806_v28 = vpop.f32.mrf.mxu0 }
 0x32c   : > { %v4166_v16 = vpop.f32.mrf.mxu1 }
 0x32d   : > { %16014 = vst [vmem:[#allocation105_spill] sm:$0xff] %v13788_v45  ;;  %v13793_v39 = vadd.f32 %v4166_v16, %v16015_v37 }
 0x32e   : > { %v4168_v20 = vpop.f32.mrf.mxu1 }
 0x32f   : > { %16016 = vst [vmem:[#allocation106_spill] sm:$0xff] %v13793_v39  ;;  %v13796_v59 = vadd.f32 %v4168_v20, %v16017_v7  ;;  %v16025_v39 = vld [vmem:[#allocation90_spill] sm:$0xff]  ;;  %v13814_v20 = vpop.f32.mrf.mxu0 }
 0x330   : > { %v4172_v42 = vpop.f32.mrf.mxu1  ;;  %16027 = vst [vmem:[#allocation111_spill] sm:$0xff] %v13814_v20  ;;  %v16037_v20 = vld [vmem:[#allocation57_spill] sm:$0xff] }
 0x331   : > { %16018 = vst [vmem:[#allocation107_spill] sm:$0xff] %v13796_v59  ;;  %v13801_v5 = vadd.f32 %v4172_v42, %v16019_v63 }
 0x332   : > { %v4174_v13 = vpop.f32.mrf.mxu1 }
 0x333   : > { %16020 = vst [vmem:[#allocation108_spill] sm:$0xff] %v13801_v5  ;;  %v13804_v0 = vadd.f32 %v4174_v13, %v16021_v4  ;;  %v16030_v5 = vld [vmem:[#allocation92_spill] sm:$0xff]  ;;  %v13822_v13 = vpop.f32.mrf.mxu0 }
 0x334   : > { %v4176_v45 = vpop.f32.mrf.mxu1 }
 0x335   : > { %16022 = vst [vmem:[#allocation104_spill] sm:$0xff] %v13804_v0  ;;  %v13809_v16 = vadd.f32 %v4176_v45, %v16023_v25 }
 0x336   : > { %v4178_v37 = vpop.f32.mrf.mxu1 }
 0x337   : > { %16024 = vst [vmem:[#allocation109_spill] sm:$0xff] %v13809_v16  ;;  %v13812_v7 = vadd.f32 %v4178_v37, %v16025_v39  ;;  %v16034_v16 = vld [vmem:[#allocation58_spill] sm:$0xff]  ;;  %v13830_v37 = vpop.f32.mrf.mxu0 }
 0x338   : > { %v4182_v59 = vpop.f32.mrf.mxu1  ;;  %16036 = vst [vmem:[#allocation71_spill] sm:$0xff] %v13830_v37  ;;  %v16042_v37 = vld [vmem:[#allocation96_spill] sm:$0xff] }
 0x339   : > { %16026 = vst [vmem:[#allocation110_spill] sm:$0xff] %v13812_v7  ;;  %v13817_v63 = vadd.f32 %v4182_v59, %v16028_v1 }
 0x33a   : > { %v4184_v42 = vpop.f32.mrf.mxu1 }
 0x33b   : > { %16029 = vst [vmem:[#allocation112_spill] sm:$0xff] %v13817_v63  ;;  %v13820_v4 = vadd.f32 %v4184_v42, %v16030_v5  ;;  %v13838_v42 = vpop.f32.mrf.mxu0  ;;  %v16039_v63 = vld [vmem:[#allocation94_spill] sm:$0xff] }
 0x33c   : > { %v4186_v0 = vpop.f32.mrf.mxu1 }
 0x33d   : > { %16031 = vst [vmem:[#allocation113_spill] sm:$0xff] %v13820_v4  ;;  %v13825_v25 = vadd.f32 %v4186_v0, %v16032_v56 }
 0x33e   : > { %v4188_v45 = vpop.f32.mrf.mxu1 }
 0x33f   : > { %16033 = vst [vmem:[#allocation68_spill] sm:$0xff] %v13825_v25  ;;  %v13828_v39 = vadd.f32 %v4188_v45, %v16034_v16  ;;  %v16040_v25 = vld [vmem:[#allocation95_spill] sm:$0xff]  ;;  %v13846_v45 = vpop.f32.mrf.mxu0 }
 0x340   : > { %v4192_v7 = vpop.f32.mrf.mxu1 }
 0x341   : > { %16035 = vst [vmem:[#allocation114_spill] sm:$0xff] %v13828_v39  ;;  %v13833_v1 = vadd.f32 %v4192_v7, %v16037_v20 }
 0x342   : > { %v4194_v59 = vpop.f32.mrf.mxu1 }
 0x343   : > { %v13836_v5 = vadd.f32 %v4194_v59, %v13588_v50  ;;  %v13854_v59 = vpop.f32.mrf.mxu0 }
 0x344   : > { %v4196_v4 = vpop.f32.mrf.mxu1 }
 0x345   : > { %16038 = vst [vmem:[#allocation70_spill] sm:$0xff] %v13836_v5  ;;  %v13841_v56 = vadd.f32 %v4196_v4, %v16039_v63 }
 0x346   : > { %v4198_v0 = vpop.f32.mrf.mxu1 }
 0x347   : > { %v13844_v16 = vadd.f32 %v4198_v0, %v16040_v25  ;;  %v13862_v0 = vpop.f32.mrf.mxu0 }
 0x348   : > { %v4202_v39 = vpop.f32.mrf.mxu1 }
 0x349   : > { %16041 = vst [vmem:[#allocation64_spill] sm:$0xff] %v13844_v16  ;;  %v13849_v7 = vadd.f32 %v4202_v39, %v16042_v37 }
 0x34a   : > { %v4204_v20 = vpop.f32.mrf.mxu1 }
 0x34b   : > { %v13852_v50 = vadd.f32 %v4204_v20, %v13610_v62  ;;  %v13870_v20 = vpop.f32.mrf.mxu0 }
 0x34c   : > { %v4206_v5 = vpop.f32.mrf.mxu1 }
 0x34d   : > { %16043 = vst [vmem:[#allocation115_spill] sm:$0xff] %v13852_v50  ;;  %v13857_v63 = vadd.f32 %v4206_v5, %v13614_v48 }
 0x34e   : > { %v4208_v4 = vpop.f32.mrf.mxu1 }
 0x34f   : > { %v13860_v25 = vadd.f32 %v4208_v4, %v13619_v3  ;;  %v13878_v4 = vpop.f32.mrf.mxu0 }
 0x350   : > { %v4212_v16 = vpop.f32.mrf.mxu1 }
 0x351   : > { %16044 = vst [vmem:[#allocation65_spill] sm:$0xff] %v13860_v25  ;;  %v13865_v39 = vadd.f32 %v4212_v16, %v13625_v29 }
 0x352   : > { %v4214_v37 = vpop.f32.mrf.mxu1 }
 0x353   : > { %v13868_v62 = vadd.f32 %v4214_v37, %v13631_v53  ;;  %v13886_v37 = vpop.f32.mrf.mxu0 }
 0x354   : > { %v4216_v50 = vpop.f32.mrf.mxu1 }
 0x355   : > { %16045 = vst [vmem:[#allocation69_spill] sm:$0xff] %v13868_v62  ;;  %v13873_v48 = vadd.f32 %v4216_v50, %v13635_v43 }
 0x356   : > { %v4218_v5 = vpop.f32.mrf.mxu1 }
 0x357   : > { %v13876_v3 = vadd.f32 %v4218_v5, %v13640_v10  ;;  %v13894_v5 = vpop.f32.mrf.mxu0 }
 0x358   : > { %v4222_v25 = vpop.f32.mrf.mxu1 }
 0x359   : > { %16046 = vst [vmem:[#allocation82_spill] sm:$0xff] %v13876_v3  ;;  %v13881_v29 = vadd.f32 %v4222_v25, %v13644_v57 }
 0x35a   : > { %v4224_v16 = vpop.f32.mrf.mxu1 }
 0x35b   : > { %v13884_v53 = vadd.f32 %v4224_v16, %v13648_v54  ;;  %v13902_v16 = vpop.f32.mrf.mxu0 }
 0x35c   : > { %v4226_v62 = vpop.f32.mrf.mxu1 }
 0x35d   : > { %16047 = vst [vmem:[#allocation83_spill] sm:$0xff] %v13884_v53  ;;  %v13889_v43 = vadd.f32 %v4226_v62, %v13651_v18 }
 0x35e   : > { %v4228_v50 = vpop.f32.mrf.mxu1 }
 0x35f   : > { %v13892_v10 = vadd.f32 %v4228_v50, %v13658_v58  ;;  %v13910_v50 = vpop.f32.mrf.mxu0 }
 0x360   : > { %v4232_v3 = vpop.f32.mrf.mxu1 }
 0x361   : > { %16048 = vst [vmem:[#allocation84_spill] sm:$0xff] %v13892_v10  ;;  %v13897_v57 = vadd.f32 %v4232_v3, %v13661_v32 }
 0x362   : > { %v4234_v25 = vpop.f32.mrf.mxu1 }
 0x363   : > { %v13900_v54 = vadd.f32 %v4234_v25, %v13664_v34  ;;  %v5550_v25 = vld [vmem:[%s15651_s4] sm:$0x3] }
 0x364   : > { %v4236_v53 = vpop.f32.mrf.mxu1 }
 0x365   : > { %16049 = vst [vmem:[#allocation85_spill] sm:$0xff] %v13900_v54  ;;  %v13905_v18 = vadd.f32 %v4236_v53, %v13667_v52  ;;  %v13921_v52 = vpop.f32.mrf.mxu0  ;;  %v16056_v54 = vld [vmem:[#allocation37_spill] sm:$0xff] }
 0x366   : > { %v4238_v62 = vpop.f32.mrf.mxu1 }
 0x367   : > { %16050 = vst [vmem:[#allocation86_spill] sm:$0xff] %v13905_v18  ;;  %v13908_v58 = vadd.f32 %v4238_v62, %v13674_v19 }
 0x368   : > { %v4242_v10 = vpop.f32.mrf.mxu1 }
 0x369   : > { %16051 = vst [vmem:[#allocation39_spill] sm:$0xff] %v13908_v58  ;;  %v13913_v32 = vadd.f32 %v4242_v10, %v13677_v12  ;;  %v16055_v58 = vld [vmem:[#allocation35_spill] sm:$0xff]  ;;  %v13934_v10 = vpop.f32.mrf.mxu0 }
 0x36a   : > { %v4244_v3 = vpop.f32.mrf.mxu1  ;;  %v13927_v18 = vrot.slane %v5550_v25, %v16055_v58 }
 0x36b   : > { %16052 = vst [vmem:[#allocation38_spill] sm:$0xff] %v13913_v32  ;;  %v13916_v34 = vadd.f32 %v4244_v3, %v13680_v49  ;;  %v4969_v49 = vadd.f32 %v13685_v38, %v13691_v60  ;;  %v4970_v32 = vadd.f32 %v13699_v51, %v13697_v14  ;;  %v4972_v14 = vadd.f32 %v13719_v23, %v13705_v15 }
 0x36c   : > { %v4246_v53 = vpop.f32.mrf.mxu1  ;;  %v4974_v23 = vadd.f32 %v13739_v11, %v13717_v35  ;;  %v4976_v35 = vadd.f32 %v13758_v21, %v13725_v41  ;;  %v4978_v41 = vadd.f32 %v13774_v47, %v13737_v30  ;;  %v4980_v30 = vadd.f32 %v13790_v61, %v13745_v44 }
 0x36d   : > { %16053 = vst [vmem:[#allocation48_spill] sm:$0xff] %v13916_v34  ;;  %v13924_v19 = vadd.f32 %v4246_v53, %v13683_v26  ;;  %v13939_v26 = vrot.slane %v5550_v25, %v16056_v54  ;;  %v4973_v54 = vadd.f32 %v13727_v17, %v13713_v6  ;;  %v4975_v17 = vadd.f32 %v13747_v24, %v13722_v2 }
 0x36e   : > { %v4248_v62 = vpop.f32.mrf.mxu1  ;;  %v4977_v2 = vadd.f32 %v13766_v33, %v13733_v55  ;;  %v4979_v55 = vadd.f32 %v13782_v31, %v13742_v40  ;;  %v4981_v40 = vadd.f32 %v13798_v36, %v13753_v46  ;;  %v4982_v44 = vadd.f32 %v13806_v28, %v13756_v22  ;;  %v16059_v46 = vld [vmem:[#allocation97_spill] sm:$0xff]  ;;  %v16060_v36 = vld [vmem:[#allocation111_spill] sm:$0xff]  ;;  %v16061_v22 = vld [vmem:[#allocation98_spill] sm:$0xff] }
 0x36f   : > { %16054 = vst [vmem:[#allocation47_spill] sm:$0xff] %v13924_v19  ;;  %v13930_v12 = vadd.f32 %v4248_v62, %v13694_v27  ;;  %v4971_v27 = vadd.f32 %v13707_v8, %v13702_v9  ;;  %v13944_v62 = vpop.f32.mrf.mxu0  ;;  %v4984_v28 = vadd.f32 %v13822_v13, %v16061_v22  ;;  %v16064_v13 = vld [vmem:[#allocation100_spill] sm:$0xff] }
 0x370   : > { %v5355_v3 = vpop.f32.mrf.mxu1 }
 0x371   : > { %v5494_v34 = vadd.f32 %v5355_v3, %v4969_v49  ;;  %v13952_v8 = vpop.f32.mrf.mxu0 }
 0x372   : > { %v5357_v53 = vpop.f32.mrf.mxu1 }
 0x373   : > { %v5562_v58 = vadd.f32 %v13927_v18, %v5494_v34  ;;  %v5495_v19 = vadd.f32 %v5357_v53, %v4970_v32 }
 0x374   : > { %v5359_v38 = vpop.f32.mrf.mxu1 }
 0x375   : > { %v5563_v60 = vadd.f32 %v13939_v26, %v5495_v19  ;;  %v5496_v49 = vadd.f32 %v5359_v38, %v4971_v27  ;;  %v5618_v34 = vmax.f32 %v5562_v58, 0.0 }
 0x376   : > { %v5361_v51 = vpop.f32.mrf.mxu1 }
 0x377   : > { %v5619_v32 = vmax.f32 %v5563_v60, 0.0  ;;  %v5564_v25 = vadd.f32 %v13927_v18, %v5496_v49  ;;  %v5497_v9 = vadd.f32 %v5361_v51, %v4972_v14  ;;  %v13966_v14 = vpop.f32.mrf.mxu0 }
 0x378   : > { %v5365_v19 = vpop.f32.mrf.mxu1 }
 0x379   : > { %v10036_v53 = vpack.c.bf16 %v5619_v32, %v5618_v34  ;;  %v5565_v27 = vadd.f32 %v13939_v26, %v5497_v9  ;;  %v5498_v15 = vadd.f32 %v5365_v19, %v4973_v54  ;;  %v5620_v58 = vmax.f32 %v5564_v25, 0.0 }
 0x37a   : > { %v5367_v6 = vpop.f32.mrf.mxu1 }
 0x37b   : > { %5845 = vst.msk [vmem:[#allocation3] sm:$0xff] %vm13954_vm12, %v10036_v53  ;;  %v5621_v38 = vmax.f32 %v5565_v27, 0.0  ;;  %v5566_v60 = vadd.f32 %v13927_v18, %v5498_v15  ;;  %v5499_v49 = vadd.f32 %v5367_v6, %v4974_v23  ;;  %v13976_v53 = vpop.f32.mrf.mxu0 }
 0x37c   : > { %v5369_v51 = vpop.f32.mrf.mxu1 }
 0x37d   : > { %v10037_v34 = vpack.c.bf16 %v5621_v38, %v5620_v58  ;;  %v5567_v54 = vadd.f32 %v13939_v26, %v5499_v49  ;;  %v5500_v32 = vadd.f32 %v5369_v51, %v4975_v17  ;;  %v5622_v24 = vmax.f32 %v5566_v60, 0.0  ;;  %v13986_v60 = vpop.f32.mrf.mxu0 }
 0x37e   : > { %v5371_v11 = vpop.f32.mrf.mxu1 }
 0x37f   : > { %5846 = vst.msk [vmem:[#allocation3 + $0x8] sm:$0xff] %vm13954_vm12, %v10037_v34  ;;  %v5623_v25 = vmax.f32 %v5567_v54, 0.0  ;;  %v5568_v9 = vadd.f32 %v13927_v18, %v5500_v32  ;;  %v5501_v19 = vadd.f32 %v5371_v11, %v4976_v35 }
 0x380   : > { %v5375_v27 = vpop.f32.mrf.mxu1 }
 0x381   : > { %v10038_v15 = vpack.c.bf16 %v5623_v25, %v5622_v24  ;;  %v5569_v23 = vadd.f32 %v13939_v26, %v5501_v19  ;;  %v5502_v6 = vadd.f32 %v5375_v27, %v4977_v2  ;;  %v5624_v33 = vmax.f32 %v5568_v9, 0.0  ;;  %v13996_v2 = vpop.f32.mrf.mxu0 }
 0x382   : > { %v5377_v21 = vpop.f32.mrf.mxu1  ;;  %v4983_v27 = vadd.f32 %v16060_v36, %v16059_v46 }
 0x383   : > { %5847 = vst.msk [vmem:[#allocation3 + $0x10] sm:$0xff] %vm13954_vm12, %v10038_v15  ;;  %v5625_v17 = vmax.f32 %v5569_v23, 0.0  ;;  %v5570_v58 = vadd.f32 %v13927_v18, %v5502_v6  ;;  %v5503_v38 = vadd.f32 %v5377_v21, %v4978_v41  ;;  %v14006_v21 = vpop.f32.mrf.mxu0 }
 0x384   : > { %v5379_v49 = vpop.f32.mrf.mxu1 }
 0x385   : > { %v10039_v51 = vpack.c.bf16 %v5625_v17, %v5624_v33  ;;  %v5571_v34 = vadd.f32 %v13939_v26, %v5503_v38  ;;  %v5504_v54 = vadd.f32 %v5379_v49, %v4979_v55  ;;  %v5626_v31 = vmax.f32 %v5570_v58, 0.0  ;;  %v16062_v49 = vld [vmem:[#allocation99_spill] sm:$0xff] }
 0x386   : > { %v5381_v47 = vpop.f32.mrf.mxu1 }
 0x387   : > { %5848 = vst.msk [vmem:[#allocation3 + $0x18] sm:$0xff] %vm13954_vm12, %v10039_v51  ;;  %v5627_v32 = vmax.f32 %v5571_v34, 0.0  ;;  %v5572_v35 = vadd.f32 %v13927_v18, %v5504_v54  ;;  %v5505_v11 = vadd.f32 %v5381_v47, %v4980_v30  ;;  %v16063_v51 = vld [vmem:[#allocation71_spill] sm:$0xff] }
 0x388   : > { %v5385_v24 = vpop.f32.mrf.mxu1  ;;  %v4985_v34 = vadd.f32 %v16063_v51, %v16062_v49 }
 0x389   : > { %v10040_v25 = vpack.c.bf16 %v5627_v32, %v5626_v31  ;;  %v5573_v9 = vadd.f32 %v13939_v26, %v5505_v11  ;;  %v5506_v19 = vadd.f32 %v5385_v24, %v4981_v40  ;;  %v5628_v15 = vmax.f32 %v5572_v35, 0.0  ;;  %v14016_v31 = vpop.f32.mrf.mxu0 }
 0x38a   : > { %v5387_v61 = vpop.f32.mrf.mxu1 }
 0x38b   : > { %5849 = vst.msk [vmem:[#allocation3 + $0x20] sm:$0xff] %vm13954_vm12, %v10040_v25  ;;  %v5629_v23 = vmax.f32 %v5573_v9, 0.0  ;;  %v5574_v6 = vadd.f32 %v13927_v18, %v5506_v19  ;;  %v5507_v41 = vadd.f32 %v5387_v61, %v4982_v44  ;;  %v4986_v25 = vadd.f32 %v13838_v42, %v16064_v13  ;;  %v16065_v19 = vld [vmem:[#allocation101_spill] sm:$0xff]  ;;  %v16066_v42 = vld [vmem:[#allocation102_spill] sm:$0xff] }
 0x38c   : > { %v5389_v55 = vpop.f32.mrf.mxu1  ;;  %v4987_v44 = vadd.f32 %v13846_v45, %v16065_v19  ;;  %v16067_v45 = vld [vmem:[#allocation103_spill] sm:$0xff] }
 0x38d   : > { %v10041_v33 = vpack.c.bf16 %v5629_v23, %v5628_v15  ;;  %v5575_v17 = vadd.f32 %v13939_v26, %v5507_v41  ;;  %v5508_v58 = vadd.f32 %v5389_v55, %v4983_v27  ;;  %v5630_v54 = vmax.f32 %v5574_v6, 0.0  ;;  %v14026_v15 = vpop.f32.mrf.mxu0 }
 0x38e   : > { %v5391_v38 = vpop.f32.mrf.mxu1 }
 0x38f   : > { %5850 = vst.msk [vmem:[#allocation3 + $0x28] sm:$0xff] %vm13954_vm12, %v10041_v33  ;;  %v5631_v30 = vmax.f32 %v5575_v17, 0.0  ;;  %v5576_v47 = vadd.f32 %v13927_v18, %v5508_v58  ;;  %v5509_v40 = vadd.f32 %v5391_v38, %v4984_v28  ;;  %v4988_v33 = vadd.f32 %v13854_v59, %v16066_v42  ;;  %v14036_v51 = vpop.f32.mrf.mxu0  ;;  %v16068_v59 = vld [vmem:[#allocation105_spill] sm:$0xff] }
 0x390   : > { %v5395_v32 = vpop.f32.mrf.mxu1  ;;  %v4989_v58 = vadd.f32 %v13862_v0, %v16067_v45  ;;  %v16069_v0 = vld [vmem:[#allocation106_spill] sm:$0xff] }
 0x391   : > { %v10042_v35 = vpack.c.bf16 %v5631_v30, %v5630_v54  ;;  %v5577_v11 = vadd.f32 %v13939_v26, %v5509_v40  ;;  %v5510_v24 = vadd.f32 %v5395_v32, %v4985_v34  ;;  %v5632_v61 = vmax.f32 %v5576_v47, 0.0 }
 0x392   : > { %v5397_v9 = vpop.f32.mrf.mxu1  ;;  %v4990_v40 = vadd.f32 %v13870_v20, %v16068_v59  ;;  %v16070_v20 = vld [vmem:[#allocation107_spill] sm:$0xff] }
 0x393   : > { %5851 = vst.msk [vmem:[#allocation3 + $0x30] sm:$0xff] %vm13954_vm12, %v10042_v35  ;;  %v5633_v46 = vmax.f32 %v5577_v11, 0.0  ;;  %v5578_v36 = vadd.f32 %v13927_v18, %v5510_v24  ;;  %v5511_v27 = vadd.f32 %v5397_v9, %v4986_v25  ;;  %v4991_v35 = vadd.f32 %v13878_v4, %v16069_v0  ;;  %v14046_v9 = vpop.f32.mrf.mxu0  ;;  %v16071_v4 = vld [vmem:[#allocation108_spill] sm:$0xff] }
 0x394   : > { %v5399_v23 = vpop.f32.mrf.mxu1 }
 0x395   : > { %v10043_v6 = vpack.c.bf16 %v5633_v46, %v5632_v61  ;;  %v5579_v41 = vadd.f32 %v13939_v26, %v5511_v27  ;;  %v5512_v55 = vadd.f32 %v5399_v23, %v4987_v44  ;;  %v5634_v22 = vmax.f32 %v5578_v36, 0.0 }
 0x396   : > { %v5401_v17 = vpop.f32.mrf.mxu1  ;;  %v4992_v36 = vadd.f32 %v13886_v37, %v16070_v20  ;;  %v4993_v23 = vadd.f32 %v13894_v5, %v16071_v4  ;;  %v16072_v37 = vld [vmem:[#allocation104_spill] sm:$0xff]  ;;  %v16073_v5 = vld [vmem:[#allocation109_spill] sm:$0xff] }
 0x397   : > { %5852 = vst.msk [vmem:[#allocation3 + $0x38] sm:$0xff] %vm13954_vm12, %v10043_v6  ;;  %v5635_v28 = vmax.f32 %v5579_v41, 0.0  ;;  %v5580_v38 = vadd.f32 %v13927_v18, %v5512_v55  ;;  %v5513_v49 = vadd.f32 %v5401_v17, %v4988_v33  ;;  %v14056_v33 = vpop.f32.mrf.mxu0 }
 0x398   : > { %v5405_v34 = vpop.f32.mrf.mxu1 }
 0x399   : > { %v10044_v54 = vpack.c.bf16 %v5635_v28, %v5634_v22  ;;  %v5581_v30 = vadd.f32 %v13939_v26, %v5513_v49  ;;  %v5514_v47 = vadd.f32 %v5405_v34, %v4989_v58  ;;  %v5636_v11 = vmax.f32 %v5580_v38, 0.0  ;;  %v14066_v59 = vpop.f32.mrf.mxu0 }
 0x39a   : > { %v5407_v32 = vpop.f32.mrf.mxu1  ;;  %v4994_v28 = vadd.f32 %v13902_v16, %v16072_v37  ;;  %v4995_v49 = vadd.f32 %v13910_v50, %v16073_v5  ;;  %v16074_v16 = vld [vmem:[#allocation110_spill] sm:$0xff]  ;;  %v16075_v50 = vld [vmem:[#allocation112_spill] sm:$0xff] }
 0x39b   : > { %5853 = vst.msk [vmem:[#allocation3 + $0x40] sm:$0xff] %vm13954_vm12, %v10044_v54  ;;  %v5637_v24 = vmax.f32 %v5581_v30, 0.0  ;;  %v5582_v13 = vadd.f32 %v13927_v18, %v5514_v47  ;;  %v5515_v25 = vadd.f32 %v5407_v32, %v4990_v40 }
 0x39c   : > { %v5409_v19 = vpop.f32.mrf.mxu1 }
 0x39d   : > { %v10045_v44 = vpack.c.bf16 %v5637_v24, %v5636_v11  ;;  %v5583_v61 = vadd.f32 %v13939_v26, %v5515_v25  ;;  %v5516_v46 = vadd.f32 %v5409_v19, %v4991_v35  ;;  %v5638_v6 = vmax.f32 %v5582_v13, 0.0 }
 0x39e   : > { %v5411_v27 = vpop.f32.mrf.mxu1  ;;  %v4996_v11 = vadd.f32 %v13921_v52, %v16074_v16  ;;  %v4997_v13 = vadd.f32 %v13934_v10, %v16075_v50  ;;  %v16076_v52 = vld [vmem:[#allocation113_spill] sm:$0xff]  ;;  %v16077_v10 = vld [vmem:[#allocation68_spill] sm:$0xff] }
 0x39f   : > { %5854 = vst.msk [vmem:[#allocation3 + $0x48] sm:$0xff] %vm13954_vm12, %v10045_v44  ;;  %v5639_v41 = vmax.f32 %v5583_v61, 0.0  ;;  %v5584_v55 = vadd.f32 %v13927_v18, %v5516_v46  ;;  %v5517_v42 = vadd.f32 %v5411_v27, %v4992_v36  ;;  %v14076_v46 = vpop.f32.mrf.mxu0 }
 0x3a0   : > { %v5415_v17 = vpop.f32.mrf.mxu1 }
 0x3a1   : > { %v10046_v45 = vpack.c.bf16 %v5639_v41, %v5638_v6  ;;  %v5585_v58 = vadd.f32 %v13939_v26, %v5517_v42  ;;  %v5518_v22 = vadd.f32 %v5415_v17, %v4993_v23  ;;  %v5640_v34 = vmax.f32 %v5584_v55, 0.0 }
 0x3a2   : > { %v5417_v38 = vpop.f32.mrf.mxu1  ;;  %v4998_v23 = vadd.f32 %v13944_v62, %v16076_v52  ;;  %v4999_v41 = vadd.f32 %v13952_v8, %v16077_v10  ;;  %v16078_v62 = vld [vmem:[#allocation114_spill] sm:$0xff]  ;;  %v5001_v8 = vadd.f32 %v13976_v53, %v13833_v1  ;;  %v5003_v1 = vadd.f32 %v13996_v2, %v13841_v56 }
 0x3a3   : > { %5855 = vst.msk [vmem:[#allocation3 + $0x50] sm:$0xff] %vm13954_vm12, %v10046_v45  ;;  %v5641_v54 = vmax.f32 %v5585_v58, 0.0  ;;  %v5586_v30 = vadd.f32 %v13927_v18, %v5518_v22  ;;  %v5519_v47 = vadd.f32 %v5417_v38, %v4994_v28  ;;  %v14086_v58 = vpop.f32.mrf.mxu0  ;;  %v5000_v5 = vadd.f32 %v13966_v14, %v16078_v62  ;;  %v16079_v14 = vld [vmem:[#allocation70_spill] sm:$0xff] }
 0x3a4   : > { %v5419_v40 = vpop.f32.mrf.mxu1  ;;  %v5005_v56 = vadd.f32 %v14016_v31, %v13849_v7  ;;  %v5007_v7 = vadd.f32 %v14036_v51, %v13857_v63  ;;  %v5009_v63 = vadd.f32 %v14056_v33, %v13865_v39  ;;  %v5011_v39 = vadd.f32 %v14076_v46, %v13873_v48 }
 0x3a5   : > { %v10047_v32 = vpack.c.bf16 %v5641_v54, %v5640_v34  ;;  %v5587_v0 = vadd.f32 %v13939_v26, %v5519_v47  ;;  %v5520_v35 = vadd.f32 %v5419_v40, %v4995_v49  ;;  %v5642_v25 = vmax.f32 %v5586_v30, 0.0  ;;  %v14096_v40 = vpop.f32.mrf.mxu0 }
 0x3a6   : > { %v5421_v24 = vpop.f32.mrf.mxu1  ;;  %v5013_v48 = vadd.f32 %v14096_v40, %v13881_v29 }
 0x3a7   : > { %5856 = vst.msk [vmem:[#allocation3 + $0x58] sm:$0xff] %vm13954_vm12, %v10047_v32  ;;  %v5643_v19 = vmax.f32 %v5587_v0, 0.0  ;;  %v5588_v44 = vadd.f32 %v13927_v18, %v5520_v35  ;;  %v5521_v61 = vadd.f32 %v5421_v24, %v4996_v11  ;;  %v5002_v11 = vadd.f32 %v13986_v60, %v16079_v14  ;;  %v16080_v60 = vld [vmem:[#allocation64_spill] sm:$0xff] }
 0x3a8   : > { %v5425_v20 = vpop.f32.mrf.mxu1 }
 0x3a9   : > { %v10048_v36 = vpack.c.bf16 %v5643_v19, %v5642_v25  ;;  %v5589_v27 = vadd.f32 %v13939_v26, %v5521_v61  ;;  %v5522_v4 = vadd.f32 %v5425_v20, %v4997_v13  ;;  %v5644_v55 = vmax.f32 %v5588_v44, 0.0  ;;  %v14106_v19 = vpop.f32.mrf.mxu0 }
 0x3aa   : > { %v5427_v6 = vpop.f32.mrf.mxu1 }
 0x3ab   : > { %5857 = vst.msk [vmem:[#allocation3 + $0x60] sm:$0xff] %vm13954_vm12, %v10048_v36  ;;  %v5645_v42 = vmax.f32 %v5589_v27, 0.0  ;;  %v5590_v17 = vadd.f32 %v13927_v18, %v5522_v4  ;;  %v5523_v45 = vadd.f32 %v5427_v6, %v4998_v23  ;;  %v5004_v27 = vadd.f32 %v14006_v21, %v16080_v60  ;;  %v4944_v10 = vpop.f32.mrf.mxu0 }
 0x3ac   : > { %v5429_v22 = vpop.f32.mrf.mxu1  ;;  %v5015_v29 = vadd.f32 %v4944_v10, %v13889_v43 }
 0x3ad   : > { %v10049_v37 = vpack.c.bf16 %v5645_v42, %v5644_v55  ;;  %v5591_v28 = vadd.f32 %v13939_v26, %v5523_v45  ;;  %v5524_v38 = vadd.f32 %v5429_v22, %v4999_v41  ;;  %v5646_v34 = vmax.f32 %v5590_v17, 0.0  ;;  %v16081_v45 = vld [vmem:[#allocation115_spill] sm:$0xff]  ;;  %v4946_v62 = vpop.f32.mrf.mxu0 }
 0x3ae   : > { %v5431_v49 = vpop.f32.mrf.mxu1  ;;  %v5006_v21 = vadd.f32 %v14026_v15, %v16081_v45 }
 0x3af   : > { %5858 = vst.msk [vmem:[#allocation3 + $0x68] sm:$0xff] %vm13954_vm12, %v10049_v37  ;;  %v5647_v54 = vmax.f32 %v5591_v28, 0.0  ;;  %v5592_v30 = vadd.f32 %v13927_v18, %v5524_v38  ;;  %v5525_v47 = vadd.f32 %v5431_v49, %v5000_v5 }
 0x3b0   : > { %v5435_v32 = vpop.f32.mrf.mxu1 }
 0x3b1   : > { %v10050_v0 = vpack.c.bf16 %v5647_v54, %v5646_v34  ;;  %v5593_v35 = vadd.f32 %v13939_v26, %v5525_v47  ;;  %v5526_v16 = vadd.f32 %v5435_v32, %v5001_v8  ;;  %v5648_v53 = vmax.f32 %v5592_v30, 0.0  ;;  %v16082_v54 = vld [vmem:[#allocation65_spill] sm:$0xff] }
 0x3b2   : > { %v5437_v24 = vpop.f32.mrf.mxu1  ;;  %v5008_v15 = vadd.f32 %v14046_v9, %v16082_v54 }
 0x3b3   : > { %5859 = vst.msk [vmem:[#allocation3 + $0x70] sm:$0xff] %vm13954_vm12, %v10050_v0  ;;  %v5649_v50 = vmax.f32 %v5593_v35, 0.0  ;;  %v5594_v13 = vadd.f32 %v13927_v18, %v5526_v16  ;;  %v5527_v25 = vadd.f32 %v5437_v24, %v5002_v11  ;;  %v4950_v35 = vpop.f32.mrf.mxu0 }
 0x3b4   : > { %v5439_v44 = vpop.f32.mrf.mxu1 }
 0x3b5   : > { %v10051_v61 = vpack.c.bf16 %v5649_v50, %v5648_v53  ;;  %v5595_v20 = vadd.f32 %v13939_v26, %v5527_v25  ;;  %v5528_v36 = vadd.f32 %v5439_v44, %v5003_v1  ;;  %v5650_v2 = vmax.f32 %v5594_v13, 0.0  ;;  %v16083_v1 = vld [vmem:[#allocation69_spill] sm:$0xff]  ;;  %v4952_v44 = vpop.f32.mrf.mxu0 }
 0x3b6   : > { %v5441_v4 = vpop.f32.mrf.mxu1  ;;  %v5010_v9 = vadd.f32 %v14066_v59, %v16083_v1 }
 0x3b7   : > { %5860 = vst.msk [vmem:[#allocation3 + $0x78] sm:$0xff] %vm13954_vm12, %v10051_v61  ;;  %v5651_v52 = vmax.f32 %v5595_v20, 0.0  ;;  %v5596_v23 = vadd.f32 %v13927_v18, %v5528_v36  ;;  %v5529_v6 = vadd.f32 %v5441_v4, %v5004_v27  ;;  %v16084_v27 = vld [vmem:[#allocation82_spill] sm:$0xff] }
 0x3b8   : > { %v5445_v41 = vpop.f32.mrf.mxu1  ;;  %v5012_v59 = vadd.f32 %v14086_v58, %v16084_v27 }
 0x3b9   : > { %v10052_v55 = vpack.c.bf16 %v5651_v52, %v5650_v2  ;;  %v5597_v42 = vadd.f32 %v13939_v26, %v5529_v6  ;;  %v5530_v17 = vadd.f32 %v5445_v41, %v5005_v56  ;;  %v5652_v31 = vmax.f32 %v5596_v23, 0.0  ;;  %v4954_v23 = vpop.f32.mrf.mxu0 }
 0x3ba   : > { %v5447_v22 = vpop.f32.mrf.mxu1 }
 0x3bb   : > { %5861 = vst.msk [vmem:[#allocation3 + $0x80] sm:$0xff] %vm13954_vm12, %v10052_v55  ;;  %v5653_v37 = vmax.f32 %v5597_v42, 0.0  ;;  %v5598_v28 = vadd.f32 %v13927_v18, %v5530_v17  ;;  %v5531_v38 = vadd.f32 %v5447_v22, %v5006_v21  ;;  %v16085_v17 = vld [vmem:[#allocation83_spill] sm:$0xff] }
 0x3bc   : > { %v5449_v5 = vpop.f32.mrf.mxu1  ;;  %v5014_v58 = vadd.f32 %v14106_v19, %v16085_v17 }
 0x3bd   : > { %v10053_v49 = vpack.c.bf16 %v5653_v37, %v5652_v31  ;;  %v5599_v8 = vadd.f32 %v13939_v26, %v5531_v38  ;;  %v5532_v34 = vadd.f32 %v5449_v5, %v5007_v7  ;;  %v5654_v51 = vmax.f32 %v5598_v28, 0.0  ;;  %v4956_v31 = vpop.f32.mrf.mxu0 }
 0x3be   : > { %v5451_v30 = vpop.f32.mrf.mxu1 }
 0x3bf   : > { %5862 = vst.msk [vmem:[#allocation3 + $0x88] sm:$0xff] %vm13954_vm12, %v10053_v49  ;;  %v5655_v47 = vmax.f32 %v5599_v8, 0.0  ;;  %v5600_v32 = vadd.f32 %v13927_v18, %v5532_v34  ;;  %v5533_v0 = vadd.f32 %v5451_v30, %v5008_v15  ;;  %v16086_v49 = vld [vmem:[#allocation84_spill] sm:$0xff]  ;;  %v5017_v34 = vadd.f32 %v4950_v35, %v13897_v57  ;;  %v4960_v30 = vpop.f32.mrf.mxu0 }
 0x3c0   : > { %v5455_v16 = vpop.f32.mrf.mxu1  ;;  %v5016_v8 = vadd.f32 %v4946_v62, %v16086_v49 }
 0x3c1   : > { %v10054_v14 = vpack.c.bf16 %v5655_v47, %v5654_v51  ;;  %v5601_v11 = vadd.f32 %v13939_v26, %v5533_v0  ;;  %v5534_v24 = vadd.f32 %v5455_v16, %v5009_v63  ;;  %v5656_v33 = vmax.f32 %v5600_v32, 0.0  ;;  %v16087_v0 = vld [vmem:[#allocation85_spill] sm:$0xff] }
 0x3c2   : > { %v5457_v53 = vpop.f32.mrf.mxu1  ;;  %v5018_v16 = vadd.f32 %v4952_v44, %v16087_v0 }
 0x3c3   : > { %5863 = vst.msk [vmem:[#allocation3 + $0x90] sm:$0xff] %vm13954_vm12, %v10054_v14  ;;  %v5657_v50 = vmax.f32 %v5601_v11, 0.0  ;;  %v5602_v13 = vadd.f32 %v13927_v18, %v5534_v24  ;;  %v5535_v25 = vadd.f32 %v5457_v53, %v5010_v9  ;;  %v16088_v14 = vld [vmem:[#allocation86_spill] sm:$0xff]  ;;  %v4962_v9 = vpop.f32.mrf.mxu0 }
 0x3c4   : > { %v5459_v61 = vpop.f32.mrf.mxu1  ;;  %v5019_v11 = vadd.f32 %v4954_v23, %v16088_v14 }
 0x3c5   : > { %v10055_v20 = vpack.c.bf16 %v5657_v50, %v5656_v33  ;;  %v5603_v36 = vadd.f32 %v13939_v26, %v5535_v25  ;;  %v5536_v60 = vadd.f32 %v5459_v61, %v5011_v39  ;;  %v5658_v46 = vmax.f32 %v5602_v13, 0.0  ;;  %v16089_v13 = vld [vmem:[#allocation39_spill] sm:$0xff]  ;;  %v16090_v61 = vld [vmem:[#allocation38_spill] sm:$0xff] }
 0x3c6   : > { %v5461_v4 = vpop.f32.mrf.mxu1  ;;  %v5020_v25 = vadd.f32 %v4956_v31, %v16089_v13 }
 0x3c7   : > { %5864 = vst.msk [vmem:[#allocation3 + $0x98] sm:$0xff] %vm13954_vm12, %v10055_v20  ;;  %v5659_v56 = vmax.f32 %v5603_v36, 0.0  ;;  %v5604_v2 = vadd.f32 %v13927_v18, %v5536_v60  ;;  %v5537_v52 = vadd.f32 %v5461_v4, %v5012_v59  ;;  %v5021_v20 = vadd.f32 %v4960_v30, %v16090_v61  ;;  %v4964_v4 = vpop.f32.mrf.mxu0 }
 0x3c8   : > { %v5465_v6 = vpop.f32.mrf.mxu1 }
 0x3c9   : > { %v10056_v41 = vpack.c.bf16 %v5659_v56, %v5658_v46  ;;  %v5605_v55 = vadd.f32 %v13939_v26, %v5537_v52  ;;  %v5538_v42 = vadd.f32 %v5465_v6, %v5013_v48  ;;  %v5660_v40 = vmax.f32 %v5604_v2, 0.0  ;;  %v16091_v52 = vld [vmem:[#allocation48_spill] sm:$0xff] }
 0x3ca   : > { %v5467_v45 = vpop.f32.mrf.mxu1  ;;  %v5022_v23 = vadd.f32 %v4962_v9, %v16091_v52 }
 0x3cb   : > { %5865 = vst.msk [vmem:[#allocation3 + $0xa0] sm:$0xff] %vm13954_vm12, %v10056_v41  ;;  %v5661_v21 = vmax.f32 %v5605_v55, 0.0  ;;  %v5606_v22 = vadd.f32 %v13927_v18, %v5538_v42  ;;  %v5539_v7 = vadd.f32 %v5467_v45, %v5014_v58  ;;  %v16092_v41 = vld [vmem:[#allocation47_spill] sm:$0xff] }
 0x3cc   : > { %v5469_v37 = vpop.f32.mrf.mxu1  ;;  %v5023_v55 = vadd.f32 %v4964_v4, %v16092_v41 }
 0x3cd   : > { %v10057_v28 = vpack.c.bf16 %v5661_v21, %v5660_v40  ;;  %v5607_v38 = vadd.f32 %v13939_v26, %v5539_v7  ;;  %v5540_v5 = vadd.f32 %v5469_v37, %v5015_v29  ;;  %v5662_v43 = vmax.f32 %v5606_v22, 0.0  ;;  %v4966_v29 = vpop.f32.mrf.mxu0 }
 0x3ce   : > { %v5471_v19 = vpop.f32.mrf.mxu1  ;;  %v5024_v31 = vadd.f32 %v4966_v29, %v13930_v12 }
 0x3cf   : > { %5866 = vst.msk [vmem:[#allocation3 + $0xa8] sm:$0xff] %vm13954_vm12, %v10057_v28  ;;  %v5663_v10 = vmax.f32 %v5607_v38, 0.0  ;;  %v5608_v54 = vadd.f32 %v13927_v18, %v5540_v5  ;;  %v5541_v15 = vadd.f32 %v5471_v19, %v5016_v8 }
 0x3d0   : > { %v5475_v63 = vpop.f32.mrf.mxu1 }
 0x3d1   : > { %v10058_v51 = vpack.c.bf16 %v5663_v10, %v5662_v43  ;;  %v5609_v47 = vadd.f32 %v13939_v26, %v5541_v15  ;;  %v5542_v32 = vadd.f32 %v5475_v63, %v5017_v34  ;;  %v5664_v57 = vmax.f32 %v5608_v54, 0.0 }
 0x3d2   : > { %v5477_v62 = vpop.f32.mrf.mxu1 }
 0x3d3   : > { %5867 = vst.msk [vmem:[#allocation3 + $0xb0] sm:$0xff] %vm13954_vm12, %v10058_v51  ;;  %v5665_v35 = vmax.f32 %v5609_v47, 0.0  ;;  %v5610_v24 = vadd.f32 %v13927_v18, %v5542_v32  ;;  %v5543_v1 = vadd.f32 %v5477_v62, %v5018_v16 }
 0x3d4   : > { %v5479_v53 = vpop.f32.mrf.mxu1 }
 0x3d5   : > { %v10059_v39 = vpack.c.bf16 %v5665_v35, %v5664_v57  ;;  %v5611_v33 = vadd.f32 %v13939_v26, %v5543_v1  ;;  %v5544_v50 = vadd.f32 %v5479_v53, %v5019_v11  ;;  %v5666_v36 = vmax.f32 %v5610_v24, 0.0 }
 0x3d6   : > { %v5481_v44 = vpop.f32.mrf.mxu1 }
 0x3d7   : > { %5868 = vst.msk [vmem:[#allocation3 + $0xb8] sm:$0xff] %vm13954_vm12, %v10059_v39  ;;  %v5667_v60 = vmax.f32 %v5611_v33, 0.0  ;;  %v5612_v27 = vadd.f32 %v13927_v18, %v5544_v50  ;;  %v5545_v59 = vadd.f32 %v5481_v44, %v5020_v25 }
 0x3d8   : > { %v5485_v48 = vpop.f32.mrf.mxu1 }
 0x3d9   : > { %v10060_v46 = vpack.c.bf16 %v5667_v60, %v5666_v36  ;;  %v5613_v56 = vadd.f32 %v13939_v26, %v5545_v59  ;;  %v5546_v2 = vadd.f32 %v5485_v48, %v5021_v20  ;;  %v5668_v42 = vmax.f32 %v5612_v27, 0.0 }
 0x3da   : > { %v5487_v6 = vpop.f32.mrf.mxu1 }
 0x3db   : > { %5869 = vst.msk [vmem:[#allocation3 + $0xc0] sm:$0xff] %vm13954_vm12, %v10060_v46  ;;  %v5669_v17 = vmax.f32 %v5613_v56, 0.0  ;;  %v5614_v58 = vadd.f32 %v13927_v18, %v5546_v2  ;;  %v5547_v45 = vadd.f32 %v5487_v6, %v5022_v23 }
 0x3dc   : > { %v5489_v40 = vpop.f32.mrf.mxu1 }
 0x3dd   : > { %v10061_v21 = vpack.c.bf16 %v5669_v17, %v5668_v42  ;;  %v5615_v22 = vadd.f32 %v13939_v26, %v5547_v45  ;;  %v5548_v7 = vadd.f32 %v5489_v40, %v5023_v55  ;;  %v5670_v28 = vmax.f32 %v5614_v58, 0.0 }
 0x3de   : > { %v5491_v37 = vpop.f32.mrf.mxu1 }
 0x3df   : > { %5870 = vst.msk [vmem:[#allocation3 + $0xc8] sm:$0xff] %vm13954_vm12, %v10061_v21  ;;  %v5671_v38 = vmax.f32 %v5615_v22, 0.0  ;;  %v5616_v5 = vadd.f32 %v13927_v18, %v5548_v7  ;;  %v5549_v49 = vadd.f32 %v5491_v37, %v5024_v31 }
 0x3e1   : > { %v10062_v8 = vpack.c.bf16 %v5671_v38, %v5670_v28  ;;  %v5617_v19 = vadd.f32 %v13939_v26, %v5549_v49  ;;  %v5672_v34 = vmax.f32 %v5616_v5, 0.0 }
 0x3e3   : > { %5871 = vst.msk [vmem:[#allocation3 + $0xd0] sm:$0xff] %vm13954_vm12, %v10062_v8  ;;  %v5673_v43 = vmax.f32 %v5617_v19, 0.0  ;;  %5876 = sbr.rel (%p9543_p7) target bundleno = 1004 (0x3ec), region = 68 }
 0x3e5   : > { %v10063_v10 = vpack.c.bf16 %v5673_v43, %v5672_v34 }
 0x3e7   : > { %5872 = vst.msk [vmem:[#allocation3 + $0xd8] sm:$0xff] %vm13954_vm12, %v10063_v10 }
 0x3e8   : > { %v10917_v12 = vmov 0  }
 0x3e9   : > { %5877 = vst.msk [vmem:[#allocation3] sm:$0xff] %vm13954_vm12, %v10917_v12  ;;  %5878 = vst.msk [vmem:[#allocation3 + $0x8] sm:$0xff] %vm13954_vm12, %v10917_v12 }
 0x3ea   : > { %5879 = vst.msk [vmem:[#allocation3 + $0x10] sm:$0xff] %vm13954_vm12, %v10917_v12  ;;  %5880 = vst.msk [vmem:[#allocation3 + $0x18] sm:$0xff] %vm13954_vm12, %v10917_v12 }
 0x3eb   : > { %5881 = vst.msk [vmem:[#allocation3 + $0x20] sm:$0xff] %vm13954_vm12, %v10917_v12  ;;  %5882 = vst.msk [vmem:[#allocation3 + $0x28] sm:$0xff] %vm13954_vm12, %v10917_v12 }
 0x3ec PF: > { %p9544_p4 = scmp.ne.s32.totalorder %s10895_s19, 1 }
 0x3ee   : > { %5886 = sbr.rel (%p9544_p4) target bundleno = 1015 (0x3f7), region = 72 }
 0x3f3   : > { %v10918_v18 = vmov 0  }
 0x3f4   : > { %5887 = vst.msk [vmem:[#allocation3 + $0xb0] sm:$0xff] %vm13954_vm12, %v10918_v18  ;;  %5888 = vst.msk [vmem:[#allocation3 + $0xb8] sm:$0xff] %vm13954_vm12, %v10918_v18 }
 0x3f5   : > { %5889 = vst.msk [vmem:[#allocation3 + $0xc0] sm:$0xff] %vm13954_vm12, %v10918_v18  ;;  %5890 = vst.msk [vmem:[#allocation3 + $0xc8] sm:$0xff] %vm13954_vm12, %v10918_v18 }
 0x3f6   : > { %5891 = vst.msk [vmem:[#allocation3 + $0xd0] sm:$0xff] %vm13954_vm12, %v10918_v18  ;;  %5892 = vst.msk [vmem:[#allocation3 + $0xd8] sm:$0xff] %vm13954_vm12, %v10918_v18 }
 0x3f7 PF: > { %v10487_v26 = vld [vmem:[%s15652_s5 + $0x114] ss:$8 sps:$4 sm:$0xff]   ;;  %v10491_v15 = vld [vmem:[%s15652_s5 + $0x110] ss:$8 sps:$4 sm:$0xff]   ;;  %v10493_v3 = vld [vmem:[%s15652_s5 + $0x104] ss:$8 sps:$4 sm:$0xff]  }
 0x3f8   : > { %v10489_v54 = vld [vmem:[%s15652_s5 + $0x74] ss:$8 sps:$4 sm:$0xff]   ;;  %6148 = vmatprep.subr.bf16.mxu0 %v10487_v26  ;;  %v10492_v30 = vld [vmem:[%s15652_s5 + $0x70] ss:$8 sps:$4 sm:$0xff]   ;;  %v10495_v63 = vld [vmem:[%s15652_s5 + $0x64] ss:$8 sps:$4 sm:$0xff]  }
 0x3f9   : > { %6373 = vmatprep.subr.bf16.mxu1 %v10489_v54  ;;  %6149 = vmatpush1.bf16.msra.mxu0 %v10491_v15  ;;  %v10497_v51 = vld [vmem:[%s15652_s5 + $0x100] ss:$8 sps:$4 sm:$0xff]   ;;  %v10499_v32 = vld [vmem:[%s15652_s5 + $0xf4] ss:$8 sps:$4 sm:$0xff]   ;;  %v10503_v16 = vld [vmem:[%s15652_s5 + $0xf0] ss:$8 sps:$4 sm:$0xff]  }
 0x3fa   : > { %6374 = vmatpush1.bf16.msra.mxu1 %v10492_v30  ;;  %6150 = vmatprep.subr.bf16.mxu0 %v10493_v3  ;;  %v10498_v47 = vld [vmem:[%s15652_s5 + $0x60] ss:$8 sps:$4 sm:$0xff]   ;;  %v10501_v0 = vld [vmem:[%s15652_s5 + $0x54] ss:$8 sps:$4 sm:$0xff]   ;;  %v10504_v62 = vld [vmem:[%s15652_s5 + $0x50] ss:$8 sps:$4 sm:$0xff]  }
 0x3fb   : > { %6375 = vmatprep.subr.bf16.mxu1 %v10495_v63  ;;  %v10505_v14 = vld [vmem:[%s15652_s5 + $0xe4] ss:$8 sps:$4 sm:$0xff]   ;;  %v10509_v57 = vld [vmem:[%s15652_s5 + $0xe0] ss:$8 sps:$4 sm:$0xff]   ;;  %v10511_v24 = vld [vmem:[%s15652_s5 + $0xd4] ss:$8 sps:$4 sm:$0xff]  }
 0x3fc   : > { %v10507_v11 = vld [vmem:[%s15652_s5 + $0x44] ss:$8 sps:$4 sm:$0xff]   ;;  %v10510_v35 = vld [vmem:[%s15652_s5 + $0x40] ss:$8 sps:$4 sm:$0xff]   ;;  %v10513_v1 = vld [vmem:[%s15652_s5 + $0x34] ss:$8 sps:$4 sm:$0xff]  }
 0x3fd   : > { %6151 = vmatpush1.bf16.msra.mxu0 %v10497_v51  ;;  %v10515_v9 = vld [vmem:[%s15652_s5 + $0xd0] ss:$8 sps:$4 sm:$0xff]   ;;  %v10517_v39 = vld [vmem:[%s15652_s5 + $0xc4] ss:$8 sps:$4 sm:$0xff]   ;;  %v10521_v50 = vld [vmem:[%s15652_s5 + $0xc0] ss:$8 sps:$4 sm:$0xff]  }
 0x3fe   : > { %6376 = vmatpush1.bf16.msra.mxu1 %v10498_v47  ;;  %6152 = vmatprep.subr.bf16.mxu0 %v10499_v32  ;;  %v10516_v53 = vld [vmem:[%s15652_s5 + $0x30] ss:$8 sps:$4 sm:$0xff]   ;;  %v10519_v33 = vld [vmem:[%s15652_s5 + $0x24] ss:$8 sps:$4 sm:$0xff]   ;;  %v10522_v13 = vld [vmem:[%s15652_s5 + $0x20] ss:$8 sps:$4 sm:$0xff]  }
 0x3ff   : > { %6377 = vmatprep.subr.bf16.mxu1 %v10501_v0  ;;  %v10523_v25 = vld [vmem:[%s15652_s5 + $0xb4] ss:$8 sps:$4 sm:$0xff]   ;;  %v10527_v61 = vld [vmem:[%s15652_s5 + $0xb0] ss:$8 sps:$4 sm:$0xff]   ;;  %v10529_v36 = vld [vmem:[%s15652_s5 + $0xa4] ss:$8 sps:$4 sm:$0xff]  }
 0x400   : > { %v10525_v44 = vld [vmem:[%s15652_s5 + $0x14] ss:$8 sps:$4 sm:$0xff]   ;;  %v10528_v20 = vld [vmem:[%s15652_s5 + $0x10] ss:$8 sps:$4 sm:$0xff]   ;;  %v10531_v60 = vld [vmem:[%s15652_s5 + $0x4] ss:$8 sps:$4 sm:$0xff]  }
 0x401   : > { %6153 = vmatpush1.bf16.msra.mxu0 %v10503_v16  ;;  %v10533_v27 = vld [vmem:[%s15652_s5 + $0xa0] ss:$8 sps:$4 sm:$0xff]   ;;  %v10535_v4 = vld [vmem:[%s15652_s5 + $0x134] ss:$8 sps:$4 sm:$0xff]   ;;  %v10539_v2 = vld [vmem:[%s15652_s5 + $0x130] ss:$8 sps:$4 sm:$0xff]  }
 0x402   : > { %6378 = vmatpush1.bf16.msra.mxu1 %v10504_v62  ;;  %6154 = vmatprep.subr.bf16.mxu0 %v10505_v14  ;;  %v10534_v59 = vld [vmem:[%s15652_s5] ss:$8 sps:$4 sm:$0xff]   ;;  %v10549_v48 = vld [vmem:[#allocation3 + $0x14] ss:$8 sps:$4 sm:$0xff]   ;;  %v10552_v56 = vld [vmem:[#allocation3 + $0x4] ss:$8 sps:$4 sm:$0xff]  }
 0x403   : > { %6379 = vmatprep.subr.bf16.mxu1 %v10507_v11  ;;  %v10537_v46 = vld [vmem:[%s15652_s5 + $0x94] ss:$8 sps:$4 sm:$0xff]   ;;  %9601 = vmatprep.mubr.msk.bf16.mxu0 %vm496_vm0, %v10549_v48  ;;  %v10540_v52 = vld [vmem:[%s15652_s5 + $0x90] ss:$8 sps:$4 sm:$0xff]   ;;  %v10541_v23 = vld [vmem:[%s15652_s5 + $0x124] ss:$8 sps:$4 sm:$0xff]  }
 0x404   : > { %9631 = vmatprep.mubr.msk.bf16.mxu1 %vm496_vm0, %v10552_v56  ;;  %v10543_v6 = vld [vmem:[%s15652_s5 + $0x84] ss:$8 sps:$4 sm:$0xff]   ;;  %v10545_v41 = vld [vmem:[%s15652_s5 + $0x120] ss:$8 sps:$4 sm:$0xff]   ;;  %v10555_v42 = vld [vmem:[%s15652_s5 + $0x1b4] ss:$8 sps:$4 sm:$0xff]  }
 0x405   : > { %6155 = vmatpush1.bf16.msra.mxu0 %v10509_v57  ;;  %v10546_v55 = vld [vmem:[%s15652_s5 + $0x80] ss:$8 sps:$4 sm:$0xff]   ;;  %v10553_v45 = vld [vmem:[%s15652_s5 + $0x1b0] ss:$8 sps:$4 sm:$0xff]   ;;  %v14346_v29 = vld [vmem:[#allocation3 + $0x24] ss:$8 sps:$4 sm:$0xff]  }
 0x406   : > { %6380 = vmatpush1.bf16.msra.mxu1 %v10510_v35  ;;  %6156 = vmatprep.subr.bf16.mxu0 %v10511_v24  ;;  %v10547_v17 = vld [vmem:[#allocation3 + $0x10] ss:$8 sps:$4 sm:$0xff]   ;;  %v10550_v58 = vld [vmem:[#allocation3] ss:$8 sps:$4 sm:$0xff]   ;;  %v10560_v40 = vld [vmem:[%s15652_s5 + $0x1a4] ss:$8 sps:$4 sm:$0xff]  }
 0x407   : > { %6381 = vmatprep.subr.bf16.mxu1 %v10513_v1  ;;  %v10579_v21 = vld [vmem:[%s15652_s5 + $0x254] ss:$8 sps:$4 sm:$0xff]   ;;  %v10558_v22 = vld [vmem:[%s15652_s5 + $0x1a0] ss:$8 sps:$4 sm:$0xff]   ;;  %v10577_v7 = vld [vmem:[%s15652_s5 + $0x250] ss:$8 sps:$4 sm:$0xff]  }
 0x408   : > { %v10582_v31 = vld [vmem:[%s15652_s5 + $0x244] ss:$8 sps:$4 sm:$0xff]   ;;  %v10564_v37 = vld [vmem:[%s15652_s5 + $0x194] ss:$8 sps:$4 sm:$0xff]   ;;  %v14369_v28 = vld [vmem:[#allocation3 + $0x20] ss:$8 sps:$4 sm:$0xff]  }
 0x409   : > { %6157 = vmatpush1.bf16.msra.mxu0 %v10515_v9  ;;  %v10562_v38 = vld [vmem:[%s15652_s5 + $0x190] ss:$8 sps:$4 sm:$0xff]   ;;  %v14374_v5 = vld [vmem:[#allocation3 + $0x34] ss:$8 sps:$4 sm:$0xff]   ;;  %v10580_v8 = vld [vmem:[%s15652_s5 + $0x240] ss:$8 sps:$4 sm:$0xff]  }
 0x40a   : > { %6382 = vmatpush1.bf16.msra.mxu1 %v10516_v53  ;;  %6158 = vmatprep.subr.bf16.mxu0 %v10517_v39  ;;  %v10570_v49 = vld [vmem:[%s15652_s5 + $0x184] ss:$8 sps:$4 sm:$0xff]   ;;  %v10591_v19 = vld [vmem:[%s15652_s5 + $0x234] ss:$8 sps:$4 sm:$0xff]   ;;  %v10568_v34 = vld [vmem:[%s15652_s5 + $0x180] ss:$8 sps:$4 sm:$0xff]  }
 0x40b   : > { %6383 = vmatprep.subr.bf16.mxu1 %v10519_v33  ;;  %v10576_v43 = vld [vmem:[%s15652_s5 + $0x174] ss:$8 sps:$4 sm:$0xff]   ;;  %v10589_v10 = vld [vmem:[%s15652_s5 + $0x230] ss:$8 sps:$4 sm:$0xff]   ;;  %v10594_v54 = vld [vmem:[%s15652_s5 + $0x224] ss:$8 sps:$4 sm:$0xff]  }
 0x40c   : > { %v14399_v12 = vld [vmem:[#allocation3 + $0x30] ss:$8 sps:$4 sm:$0xff]   ;;  %v14401_v18 = vld [vmem:[#allocation3 + $0x44] ss:$8 sps:$4 sm:$0xff]   ;;  %v14433_v32 = vld [vmem:[#allocation3 + $0x40] ss:$8 sps:$4 sm:$0xff]  }
 0x40d   : > { %6159 = vmatpush1.bf16.msra.mxu0 %v10521_v50  ;;  %v10574_v26 = vld [vmem:[%s15652_s5 + $0x170] ss:$8 sps:$4 sm:$0xff]   ;;  %v10588_v15 = vld [vmem:[%s15652_s5 + $0x164] ss:$8 sps:$4 sm:$0xff]   ;;  %v10592_v30 = vld [vmem:[%s15652_s5 + $0x220] ss:$8 sps:$4 sm:$0xff]  }
 0x40e   : > { %6384 = vmatpush1.bf16.msra.mxu1 %v10522_v13  ;;  %6160 = vmatprep.subr.bf16.mxu0 %v10523_v25  ;;  %v10603_v3 = vld [vmem:[%s15652_s5 + $0x214] ss:$8 sps:$4 sm:$0xff]   ;;  %v10586_v63 = vld [vmem:[%s15652_s5 + $0x160] ss:$8 sps:$4 sm:$0xff]   ;;  %v10601_v47 = vld [vmem:[%s15652_s5 + $0x210] ss:$8 sps:$4 sm:$0xff]  }
 0x40f   : > { %6385 = vmatprep.subr.bf16.mxu1 %v10525_v44  ;;  %v10599_v51 = vld [vmem:[%s15652_s5 + $0x154] ss:$8 sps:$4 sm:$0xff]   ;;  %v10597_v16 = vld [vmem:[%s15652_s5 + $0x150] ss:$8 sps:$4 sm:$0xff]   ;;  %v10609_v62 = vld [vmem:[%s15652_s5 + $0x204] ss:$8 sps:$4 sm:$0xff]  }
 0x410   : > { %v14435_v0 = vld [vmem:[#allocation3 + $0x54] ss:$8 sps:$4 sm:$0xff]   ;;  %v10607_v11 = vld [vmem:[%s15652_s5 + $0x200] ss:$8 sps:$4 sm:$0xff]   ;;  %v10613_v24 = vld [vmem:[%s15652_s5 + $0x1f0] ss:$8 sps:$4 sm:$0xff]  }
 0x411   : > { %6161 = vmatpush1.bf16.msra.mxu0 %v10527_v61  ;;  %v10606_v14 = vld [vmem:[%s15652_s5 + $0x144] ss:$8 sps:$4 sm:$0xff]   ;;  %v10615_v57 = vld [vmem:[%s15652_s5 + $0x1f4] ss:$8 sps:$4 sm:$0xff]   ;;  %v10604_v35 = vld [vmem:[%s15652_s5 + $0x140] ss:$8 sps:$4 sm:$0xff]  }
 0x412   : > { %6386 = vmatpush1.bf16.msra.mxu1 %v10528_v20  ;;  %6162 = vmatprep.subr.bf16.mxu0 %v10529_v36  ;;  %v10618_v1 = vld [vmem:[%s15652_s5 + $0x1d4] ss:$8 sps:$4 sm:$0xff]   ;;  %v14467_v9 = vld [vmem:[#allocation3 + $0x50] ss:$8 sps:$4 sm:$0xff]   ;;  %v10621_v33 = vld [vmem:[%s15652_s5 + $0x1e4] ss:$8 sps:$4 sm:$0xff]  }
 0x413   : > { %6387 = vmatprep.subr.bf16.mxu1 %v10531_v60  ;;  %v14469_v53 = vld [vmem:[#allocation3 + $0x64] ss:$8 sps:$4 sm:$0xff]   ;;  %v10616_v39 = vld [vmem:[%s15652_s5 + $0x1d0] ss:$8 sps:$4 sm:$0xff]   ;;  %v10619_v50 = vld [vmem:[%s15652_s5 + $0x1e0] ss:$8 sps:$4 sm:$0xff]  }
 0x414   : > { %v10627_v13 = vld [vmem:[%s15652_s5 + $0x1c4] ss:$8 sps:$4 sm:$0xff]   ;;  %v10630_v25 = vld [vmem:[%s15652_s5 + $0x274] ss:$8 sps:$4 sm:$0xff]   ;;  %v10625_v44 = vld [vmem:[%s15652_s5 + $0x1c0] ss:$8 sps:$4 sm:$0xff]  }
 0x415   : > { %6163 = vmatpush1.bf16.msra.mxu0 %v10533_v27  ;;  %v10628_v61 = vld [vmem:[%s15652_s5 + $0x270] ss:$8 sps:$4 sm:$0xff]   ;;  %v10636_v20 = vld [vmem:[%s15652_s5 + $0x2f4] ss:$8 sps:$4 sm:$0xff]   ;;  %v10633_v27 = vld [vmem:[%s15652_s5 + $0x264] ss:$8 sps:$4 sm:$0xff]  }
 0x416   : > { %6388 = vmatpush1.bf16.msra.mxu1 %v10534_v59  ;;  %6176 = vmatprep.subr.bf16.mxu0 %v10535_v4  ;;  %v14501_v36 = vld [vmem:[#allocation3 + $0x60] ss:$8 sps:$4 sm:$0xff]   ;;  %v14503_v60 = vld [vmem:[#allocation3 + $0x74] ss:$8 sps:$4 sm:$0xff]   ;;  %vm8604_vm13 = vcmask 523264   ;;  %s16218_s16 = sld [smem:[#allocation116_spill]] }
 0x417   : > { %6401 = vmatprep.subr.bf16.mxu1 %v10537_v46  ;;  %v10631_v59 = vld [vmem:[%s15652_s5 + $0x260] ss:$8 sps:$4 sm:$0xff]   ;;  %v10651_v4 = vld [vmem:[%s15652_s5 + $0x394] ss:$8 sps:$4 sm:$0xff]   ;;  %s16231_s29 = sld [smem:[#allocation12_spill]]  ;;  %s10064_s27 = sshll.u32 %s10895_s19, 4 }
 0x418   : > { %v14522_v46 = vld [vmem:[#allocation3 + $0x84] ss:$8 sps:$4 sm:$0xff]   ;;  %v14530_v56 = vld [vmem:[#allocation3 + $0x80] ss:$8 sps:$4 sm:$0xff]   ;;  %s9007_s10 = sshll.u32 %s14190_s22, 4  ;;  %s16236_s30 = sld [smem:[#allocation117_spill]]  ;;  %s15581_s10 = int_to_ptr.vmem [resolvable:$true] %s9007_s10 }
 0x419   : > { %6177 = vmatpush2.bf16.msra.mxu0 %v10539_v2  ;;  %v10634_v2 = vld [vmem:[%s15652_s5 + $0x2f0] ss:$8 sps:$4 sm:$0xff]   ;;  %s15587_s11 = scalar_lea.sflag [#allocation6], %s389_s18  ;;  %s10791_s12 = scalar_lea.vmem %s15581_s10, 2048 }
 0x41a   : > { %6402 = vmatpush2.bf16.msra.mxu1 %v10540_v52  ;;  %6178 = vmatprep.subr.bf16.mxu0 %v10541_v23  ;;  %v10639_v52 = vld [vmem:[%s15652_s5 + $0x2e4] ss:$8 sps:$4 sm:$0xff]   ;;  %v10649_v23 = vld [vmem:[%s15652_s5 + $0x390] ss:$8 sps:$4 sm:$0xff]   ;;  %p10792_p5 = scmp.ne.s32.totalorder %s15581_s10, %s10791_s12  ;;  %s10919_s25 = smov [#allocation7]  }
 0x41b   : > { %6403 = vmatprep.subr.bf16.mxu1 %v10543_v6  ;;  %v10654_v6 = vld [vmem:[%s15652_s5 + $0x384] ss:$8 sps:$4 sm:$0xff]  }
 0x41c   : > { %p10793_p8 = pnand %p10792_p5, %p11059_p12 }
 0x41d   : > { %6179 = vmatpush2.bf16.msra.mxu0 %v10545_v41  ;;  %v10637_v41 = vld [vmem:[%s15652_s5 + $0x2e0] ss:$8 sps:$4 sm:$0xff]   ;;  %s10003_s21 = sshll.u32 %s16231_s29, 5 }
 0x41e   : > { %6404 = vmatpush2.bf16.msra.mxu1 %v10546_v55  ;;  %6719 = vmatprep.subr.bf16.mxu0 %v10555_v42  ;;  %v10642_v55 = vld [vmem:[%s15652_s5 + $0x2d4] ss:$8 sps:$4 sm:$0xff]   ;;  %v10640_v42 = vld [vmem:[%s15652_s5 + $0x2d0] ss:$8 sps:$4 sm:$0xff]   ;;  %s9004_s24 = sadd.s32 %s10064_s27, %s10003_s21  ;;  %p10794_p9 = pneg %p10793_p8 }
 0x41f   : > { %7097 = vmatprep.subr.bf16.mxu1 %v10579_v21  ;;  %v10663_v21 = vld [vmem:[%s15652_s5 + $0x364] ss:$8 sps:$4 sm:$0xff]   ;;  %s10004_s19 = sshll.u32 %s9004_s24, 7 }
 0x420   : > { %6181 = vmatmul.mubr.bf16.vlgmr.msra.gmra.mxu0 %v10547_v17  ;;  %s15579_s28 = scalar_lea.hbm %s16236_s30, %s10004_s19 }
 0x421   : > { %6406 = vmatmul.mubr.bf16.vlgmr.msra.gmra.mxu1 %v10550_v58  ;;  %6720 = vmatpush1.bf16.msra.mxu0 %v10553_v45  ;;  %v10645_v58 = vld [vmem:[%s15652_s5 + $0x2c4] ss:$8 sps:$4 sm:$0xff]   ;;  %v10660_v45 = vld [vmem:[%s15652_s5 + $0x374] ss:$8 sps:$4 sm:$0xff]  }
 0x422   : > { %9602 = vmatprep.mubr.msk.bf16.mxu0 %vm496_vm0, %v14346_v29  ;;  %9632 = vmatprep.mubr.msk.bf16.mxu1 %vm496_vm0, %v10549_v48  ;;  %v14520_v48 = vld [vmem:[#allocation3 + $0x70] ss:$8 sps:$4 sm:$0xff]  }
 0x423   : > { %6721 = vmatprep.subr.bf16.mxu0 %v10560_v40  ;;  %7098 = vmatpush1.bf16.msra.mxu1 %v10577_v7  ;;  %v10643_v40 = vld [vmem:[%s15652_s5 + $0x2c0] ss:$8 sps:$4 sm:$0xff]   ;;  %v10646_v7 = vld [vmem:[%s15652_s5 + $0x2b0] ss:$8 sps:$4 sm:$0xff]  }
 0x424   : > { %7099 = vmatprep.subr.bf16.mxu1 %v10582_v31  ;;  %v10661_v31 = vld [vmem:[%s15652_s5 + $0x360] ss:$8 sps:$4 sm:$0xff]  }
 0x425   : > { %6722 = vmatpush1.bf16.msra.mxu0 %v10558_v22  ;;  %v10648_v22 = vld [vmem:[%s15652_s5 + $0x2b4] ss:$8 sps:$4 sm:$0xff]  }
 0x426   : > { %6723 = vmatprep.subr.bf16.mxu0 %v10564_v37  ;;  %v10657_v37 = vld [vmem:[%s15652_s5 + $0x2a4] ss:$8 sps:$4 sm:$0xff]  }
 0x427   : > { %7100 = vmatpush1.bf16.msra.mxu1 %v10580_v8  ;;  %v10675_v8 = vld [vmem:[%s15652_s5 + $0x344] ss:$8 sps:$4 sm:$0xff]  }
 0x428   : > { %6191 = vmatmul.mubr.bf16.gmra.mxu0 %v14369_v28  ;;  %7101 = vmatprep.subr.bf16.mxu1 %v10591_v19  ;;  %v10664_v19 = vld [vmem:[%s15652_s5 + $0x290] ss:$8 sps:$4 sm:$0xff]  }
 0x429   : > { %6416 = vmatmul.mubr.bf16.gmra.mxu1 %v10547_v17  ;;  %6724 = vmatpush1.bf16.msra.mxu0 %v10562_v38  ;;  %v10652_v17 = vld [vmem:[%s15652_s5 + $0x380] ss:$8 sps:$4 sm:$0xff]  }
 0x42a   : > { %9603 = vmatprep.mubr.msk.bf16.mxu0 %vm496_vm0, %v14374_v5  ;;  %9633 = vmatprep.mubr.msk.bf16.mxu1 %vm496_vm0, %v14346_v29  ;;  %v10655_v38 = vld [vmem:[%s15652_s5 + $0x2a0] ss:$8 sps:$4 sm:$0xff]  }
 0x42b   : > { %6725 = vmatprep.subr.bf16.mxu0 %v10570_v49  ;;  %7102 = vmatpush1.bf16.msra.mxu1 %v10589_v10  ;;  %v10666_v49 = vld [vmem:[%s15652_s5 + $0x294] ss:$8 sps:$4 sm:$0xff]  }
 0x42c   : > { %7103 = vmatprep.subr.bf16.mxu1 %v10594_v54  ;;  %v10681_v10 = vld [vmem:[%s15652_s5 + $0x334] ss:$8 sps:$4 sm:$0xff]  }
 0x42d   : > { %6726 = vmatpush1.bf16.msra.mxu0 %v10568_v34  ;;  %v10673_v34 = vld [vmem:[%s15652_s5 + $0x340] ss:$8 sps:$4 sm:$0xff]   ;;  %v10684_v54 = vld [vmem:[%s15652_s5 + $0x314] ss:$8 sps:$4 sm:$0xff]  }
 0x42e   : > { %6727 = vmatprep.subr.bf16.mxu0 %v10576_v43  ;;  %v10672_v43 = vld [vmem:[%s15652_s5 + $0x284] ss:$8 sps:$4 sm:$0xff]  }
 0x42f   : > { %7104 = vmatpush1.bf16.msra.mxu1 %v10592_v30  ;;  %v10682_v30 = vld [vmem:[%s15652_s5 + $0x310] ss:$8 sps:$4 sm:$0xff]  }
 0x430   : > { %6201 = vmatmul.mubr.bf16.gmra.mxu0 %v14399_v12  ;;  %7105 = vmatprep.subr.bf16.mxu1 %v10603_v3  ;;  %v10685_v3 = vld [vmem:[%s15652_s5 + $0x320] ss:$8 sps:$4 sm:$0xff]  }
 0x431   : > { %6426 = vmatmul.mubr.bf16.gmra.mxu1 %v14369_v28  ;;  %9604 = vmatprep.mubr.msk.bf16.mxu0 %vm496_vm0, %v14401_v18 }
 0x432   : > { %9634 = vmatprep.mubr.msk.bf16.mxu1 %vm496_vm0, %v14374_v5  ;;  %6728 = vmatpush1.bf16.msra.mxu0 %v10574_v26  ;;  %v10679_v26 = vld [vmem:[%s15652_s5 + $0x330] ss:$8 sps:$4 sm:$0xff]  }
 0x433   : > { %6729 = vmatprep.subr.bf16.mxu0 %v10588_v15  ;;  %7106 = vmatpush1.bf16.msra.mxu1 %v10601_v47  ;;  %v10687_v15 = vld [vmem:[%s15652_s5 + $0x324] ss:$8 sps:$4 sm:$0xff]   ;;  %v10691_v47 = vld [vmem:[%s15652_s5 + $0x300] ss:$8 sps:$4 sm:$0xff]  }
 0x434   : > { %7107 = vmatprep.subr.bf16.mxu1 %v10609_v62  ;;  %v10699_v62 = vld [vmem:[%s15652_s5 + $0x3a4] ss:$8 sps:$4 sm:$0xff]  }
 0x436   : > { %6730 = vmatpush1.bf16.msra.mxu0 %v10586_v63  ;;  %v10693_v63 = vld [vmem:[%s15652_s5 + $0x304] ss:$8 sps:$4 sm:$0xff]  }
 0x437   : > { %6731 = vmatprep.subr.bf16.mxu0 %v10599_v51  ;;  %7108 = vmatpush1.bf16.msra.mxu1 %v10607_v11  ;;  %v10696_v51 = vld [vmem:[%s15652_s5 + $0x3b4] ss:$8 sps:$4 sm:$0xff]  }
 0x438   : > { %6211 = vmatmul.mubr.bf16.gmra.mxu0 %v14433_v32  ;;  %7109 = vmatprep.subr.bf16.mxu1 %v10615_v57  ;;  %v14682_v11 = vld [vmem:[#allocation3 + $0x94] ss:$8 sps:$4 sm:$0xff]   ;;  %v10697_v57 = vld [vmem:[%s15652_s5 + $0x3a0] ss:$8 sps:$4 sm:$0xff]  }
 0x439   : > { %6436 = vmatmul.mubr.bf16.gmra.mxu1 %v14399_v12  ;;  %9605 = vmatprep.mubr.msk.bf16.mxu0 %vm496_vm0, %v14435_v0 }
 0x43a   : > { %9635 = vmatprep.mubr.msk.bf16.mxu1 %vm496_vm0, %v14401_v18  ;;  %6732 = vmatpush1.bf16.msra.mxu0 %v10597_v16  ;;  %v10694_v16 = vld [vmem:[%s15652_s5 + $0x3b0] ss:$8 sps:$4 sm:$0xff]  }
 0x43b   : > { %6733 = vmatprep.subr.bf16.mxu0 %v10606_v14  ;;  %7110 = vmatpush1.bf16.msra.mxu1 %v10613_v24  ;;  %v10702_v14 = vld [vmem:[%s15652_s5 + $0x434] ss:$8 sps:$4 sm:$0xff]   ;;  %v14694_v24 = vld [vmem:[#allocation3 + $0x90] ss:$8 sps:$4 sm:$0xff]  }
 0x43c   : > { %7111 = vmatprep.subr.bf16.mxu1 %v10621_v33  ;;  %v10700_v33 = vld [vmem:[%s15652_s5 + $0x430] ss:$8 sps:$4 sm:$0xff]  }
 0x43e   : > { %6734 = vmatpush1.bf16.msra.mxu0 %v10604_v35  ;;  %v16093_v35 = vmov 0  }
 0x43f   : > { %6747 = vmatprep.subr.bf16.mxu0 %v10618_v1  ;;  %7112 = vmatpush1.bf16.msra.mxu1 %v10619_v50  ;;  %v14696_v1 = vld [vmem:[#allocation3 + $0xa4] ss:$8 sps:$4 sm:$0xff]  }
 0x440   : > { %6221 = vmatmul.mubr.bf16.gmra.mxu0 %v14467_v9  ;;  %7125 = vmatprep.subr.bf16.mxu1 %v10630_v25  ;;  %v10705_v50 = vld [vmem:[%s15652_s5 + $0x424] ss:$8 sps:$4 sm:$0xff]   ;;  %v10709_v25 = vld [vmem:[%s15652_s5 + $0x400] ss:$8 sps:$4 sm:$0xff]  }
 0x441   : > { %6446 = vmatmul.mubr.bf16.gmra.mxu1 %v14433_v32  ;;  %9606 = vmatprep.mubr.msk.bf16.mxu0 %vm496_vm0, %v14469_v53 }
 0x442   : > { %9636 = vmatprep.mubr.msk.bf16.mxu1 %vm496_vm0, %v14435_v0  ;;  %6748 = vmatpush2.bf16.msra.mxu0 %v10616_v39  ;;  %v14704_v39 = vld [vmem:[#allocation3 + $0xa0] ss:$8 sps:$4 sm:$0xff]  }
 0x443   : > { %6749 = vmatprep.subr.bf16.mxu0 %v10627_v13  ;;  %7126 = vmatpush2.bf16.msra.mxu1 %v10628_v61  ;;  %v10708_v13 = vld [vmem:[%s15652_s5 + $0x414] ss:$8 sps:$4 sm:$0xff]   ;;  %v10717_v61 = vld [vmem:[%s15652_s5 + $0x3e4] ss:$8 sps:$4 sm:$0xff]  }
 0x444   : > { %7127 = vmatprep.subr.bf16.mxu1 %v10633_v27  ;;  %v10720_v27 = vld [vmem:[%s15652_s5 + $0x3d4] ss:$8 sps:$4 sm:$0xff]  }
 0x446   : > { %6750 = vmatpush2.bf16.msra.mxu0 %v10625_v44  ;;  %v10714_v44 = vld [vmem:[%s15652_s5 + $0x3f4] ss:$8 sps:$4 sm:$0xff]  }
 0x447   : > { %7475 = vmatprep.subr.bf16.mxu0 %v10636_v20  ;;  %7128 = vmatpush2.bf16.msra.mxu1 %v10631_v59  ;;  %v10715_v20 = vld [vmem:[%s15652_s5 + $0x3e0] ss:$8 sps:$4 sm:$0xff]   ;;  %v10718_v59 = vld [vmem:[%s15652_s5 + $0x3d0] ss:$8 sps:$4 sm:$0xff]  }
 0x448   : > { %6231 = vmatmul.mubr.bf16.gmra.mxu0 %v14501_v36  ;;  %7853 = vmatprep.subr.bf16.mxu1 %v10651_v4  ;;  %v10723_v4 = vld [vmem:[%s15652_s5 + $0x3c4] ss:$8 sps:$4 sm:$0xff]  }
 0x449   : > { %6456 = vmatmul.mubr.bf16.gmra.mxu1 %v14467_v9  ;;  %9607 = vmatprep.mubr.msk.bf16.mxu0 %vm496_vm0, %v14503_v60 }
 0x44a   : > { %9637 = vmatprep.mubr.msk.bf16.mxu1 %vm496_vm0, %v14469_v53 }
 0x450   : > { %6241 = vmatmul.mubr.bf16.gmra.mxu0 %v14520_v48 }
 0x451   : > { %6466 = vmatmul.mubr.bf16.gmra.mxu1 %v14501_v36  ;;  %9608 = vmatprep.mubr.msk.bf16.mxu0 %vm496_vm0, %v14522_v46 }
 0x452   : > { %9638 = vmatprep.mubr.msk.bf16.mxu1 %vm496_vm0, %v14503_v60 }
 0x458   : > { %6251 = vmatmul.mubr.bf16.gmra.mxu0 %v14530_v56 }
 0x459   : > { %6476 = vmatmul.mubr.bf16.gmra.mxu1 %v14520_v48  ;;  %9695 = vmatprep.mubr.msk.bf16.mxu0 %vm496_vm0, %v14346_v29  ;;  %v10658_v29 = vld [vmem:[%s15652_s5 + $0x370] ss:$8 sps:$4 sm:$0xff]  }
 0x45a   : > { %9759 = vmatprep.mubr.msk.bf16.mxu1 %vm496_vm0, %v14374_v5 }
 0x460   : > { %6752 = vmatmul.mubr.bf16.vlgmr.msra.gmra.mxu0 %v14369_v28  ;;  %v10669_v28 = vld [vmem:[%s15652_s5 + $0x354] ss:$8 sps:$4 sm:$0xff]  }
 0x461   : > { %7130 = vmatmul.mubr.bf16.vlgmr.msra.gmra.mxu1 %v14399_v12  ;;  %7476 = vmatpush1.bf16.msra.mxu0 %v10634_v2  ;;  %v10721_v2 = vld [vmem:[%s15652_s5 + $0x3c0] ss:$8 sps:$4 sm:$0xff]  }
 0x462   : > { %9696 = vmatprep.mubr.msk.bf16.mxu0 %vm496_vm0, %v14374_v5  ;;  %7477 = vmatprep.subr.bf16.mxu0 %v10639_v52  ;;  %v10667_v5 = vld [vmem:[%s15652_s5 + $0x350] ss:$8 sps:$4 sm:$0xff]   ;;  %v10729_v52 = vld [vmem:[%s15652_s5 + $0x454] ss:$8 sps:$4 sm:$0xff]  }
 0x463   : > { %9760 = vmatprep.mubr.msk.bf16.mxu1 %vm496_vm0, %v14401_v18  ;;  %7854 = vmatpush1.bf16.msra.mxu1 %v10649_v23  ;;  %v10727_v23 = vld [vmem:[%s15652_s5 + $0x450] ss:$8 sps:$4 sm:$0xff]  }
 0x464   : > { %7855 = vmatprep.subr.bf16.mxu1 %v10654_v6  ;;  %v10735_v6 = vld [vmem:[%s15652_s5 + $0x444] ss:$8 sps:$4 sm:$0xff]  }
 0x465   : > { %7478 = vmatpush1.bf16.msra.mxu0 %v10637_v41  ;;  %v10733_v41 = vld [vmem:[%s15652_s5 + $0x440] ss:$8 sps:$4 sm:$0xff]  }
 0x466   : > { %7479 = vmatprep.subr.bf16.mxu0 %v10642_v55  ;;  %v14799_v55 = vld [vmem:[#allocation3 + $0xb4] ss:$8 sps:$4 sm:$0xff]  }
 0x467   : > { %7856 = vmatpush1.bf16.msra.mxu1 %v10652_v17  ;;  %v14810_v17 = vld [vmem:[#allocation3 + $0xc4] ss:$8 sps:$4 sm:$0xff]  }
 0x468   : > { %6762 = vmatmul.mubr.bf16.gmra.mxu0 %v14399_v12  ;;  %7857 = vmatprep.subr.bf16.mxu1 %v10660_v45  ;;  %v10670_v12 = vld [vmem:[%s15652_s5 + $0x280] ss:$8 sps:$4 sm:$0xff]  }
 0x469   : > { %7140 = vmatmul.mubr.bf16.gmra.mxu1 %v14433_v32  ;;  %7480 = vmatpush1.bf16.msra.mxu0 %v10640_v42  ;;  %v14808_v42 = vld [vmem:[#allocation3 + $0xb0] ss:$8 sps:$4 sm:$0xff]  }
 0x46a   : > { %9697 = vmatprep.mubr.msk.bf16.mxu0 %vm496_vm0, %v14401_v18  ;;  %9761 = vmatprep.mubr.msk.bf16.mxu1 %vm496_vm0, %v14435_v0 }
 0x46b   : > { %7481 = vmatprep.subr.bf16.mxu0 %v10645_v58  ;;  %7858 = vmatpush1.bf16.msra.mxu1 %v10658_v29  ;;  %v14818_v58 = vld [vmem:[#allocation3 + $0xc0] ss:$8 sps:$4 sm:$0xff]  }
 0x46c   : > { %7859 = vmatprep.subr.bf16.mxu1 %v10663_v21 }
 0x46d   : > { %7482 = vmatpush1.bf16.msra.mxu0 %v10643_v40 }
 0x46e   : > { %7483 = vmatprep.subr.bf16.mxu0 %v10648_v22 }
 0x46f   : > { %7860 = vmatpush1.bf16.msra.mxu1 %v10661_v31 }
 0x470   : > { %6772 = vmatmul.mubr.bf16.gmra.mxu0 %v14433_v32  ;;  %7861 = vmatprep.subr.bf16.mxu1 %v10669_v28 }
 0x471   : > { %7150 = vmatmul.mubr.bf16.gmra.mxu1 %v14467_v9  ;;  %9698 = vmatprep.mubr.msk.bf16.mxu0 %vm496_vm0, %v14435_v0 }
 0x472   : > { %9762 = vmatprep.mubr.msk.bf16.mxu1 %vm496_vm0, %v14469_v53  ;;  %7484 = vmatpush1.bf16.msra.mxu0 %v10646_v7 }
 0x473   : > { %7485 = vmatprep.subr.bf16.mxu0 %v10657_v37  ;;  %7862 = vmatpush1.bf16.msra.mxu1 %v10667_v5 }
 0x474   : > { %7863 = vmatprep.subr.bf16.mxu1 %v10675_v8 }
 0x476   : > { %7486 = vmatpush1.bf16.msra.mxu0 %v10655_v38 }
 0x477   : > { %7487 = vmatprep.subr.bf16.mxu0 %v10666_v49  ;;  %7864 = vmatpush1.bf16.msra.mxu1 %v10673_v34 }
 0x478   : > { %6782 = vmatmul.mubr.bf16.gmra.mxu0 %v14467_v9  ;;  %7865 = vmatprep.subr.bf16.mxu1 %v10681_v10 }
 0x479   : > { %7160 = vmatmul.mubr.bf16.gmra.mxu1 %v14501_v36  ;;  %9699 = vmatprep.mubr.msk.bf16.mxu0 %vm496_vm0, %v14469_v53 }
 0x47a   : > { %9763 = vmatprep.mubr.msk.bf16.mxu1 %vm496_vm0, %v14503_v60  ;;  %7488 = vmatpush1.bf16.msra.mxu0 %v10664_v19 }
 0x47b   : > { %7489 = vmatprep.subr.bf16.mxu0 %v10672_v43  ;;  %7866 = vmatpush1.bf16.msra.mxu1 %v10679_v26 }
 0x47c   : > { %7867 = vmatprep.subr.bf16.mxu1 %v10687_v15 }
 0x47e   : > { %7490 = vmatpush1.bf16.msra.mxu0 %v10670_v12 }
 0x47f   : > { %7503 = vmatprep.subr.bf16.mxu0 %v10684_v54  ;;  %7868 = vmatpush1.bf16.msra.mxu1 %v10685_v3 }
 0x480   : > { %6792 = vmatmul.mubr.bf16.gmra.mxu0 %v14501_v36  ;;  %7881 = vmatprep.subr.bf16.mxu1 %v10696_v51 }
 0x481   : > { %7170 = vmatmul.mubr.bf16.gmra.mxu1 %v14520_v48  ;;  %9700 = vmatprep.mubr.msk.bf16.mxu0 %vm496_vm0, %v14503_v60 }
 0x482   : > { %9764 = vmatprep.mubr.msk.bf16.mxu1 %vm496_vm0, %v14522_v46  ;;  %7504 = vmatpush2.bf16.msra.mxu0 %v10682_v30  ;;  %v10740_v30 = vld [vmem:[%s15654_s7 + $0x38] sm:$0xff]  }
 0x483   : > { %7505 = vmatprep.subr.bf16.mxu0 %v10693_v63  ;;  %7882 = vmatpush2.bf16.msra.mxu1 %v10694_v16 }
 0x484   : > { %7883 = vmatprep.subr.bf16.mxu1 %v10699_v62 }
 0x486   : > { %7506 = vmatpush2.bf16.msra.mxu0 %v10691_v47 }
 0x487   : > { %8231 = vmatprep.subr.bf16.mxu0 %v10702_v14  ;;  %7884 = vmatpush2.bf16.msra.mxu1 %v10697_v57  ;;  %v10742_v57 = vld [vmem:[%s15654_s7 + $0x30] sm:$0xff]  }
 0x488   : > { %6802 = vmatmul.mubr.bf16.gmra.mxu0 %v14520_v48  ;;  %8629 = vmatprep.subr.bf16.mxu1 %v16093_v35 }
 0x489   : > { %7180 = vmatmul.mubr.bf16.gmra.mxu1 %v14530_v56  ;;  %9701 = vmatprep.mubr.msk.bf16.mxu0 %vm496_vm0, %v14522_v46 }
 0x48a   : > { %9765 = vmatprep.mubr.msk.bf16.mxu1 %vm496_vm0, %v14682_v11 }
 0x490   : > { %6812 = vmatmul.mubr.bf16.gmra.mxu0 %v14530_v56 }
 0x491   : > { %7190 = vmatmul.mubr.bf16.gmra.mxu1 %v14694_v24  ;;  %9702 = vmatprep.mubr.msk.bf16.mxu0 %vm496_vm0, %v14682_v11 }
 0x492   : > { %9766 = vmatprep.mubr.msk.bf16.mxu1 %vm496_vm0, %v14696_v1 }
 0x498   : > { %6822 = vmatmul.mubr.bf16.gmra.mxu0 %v14694_v24 }
 0x499   : > { %7200 = vmatmul.mubr.bf16.gmra.mxu1 %v14704_v39  ;;  %9823 = vmatprep.mubr.msk.bf16.mxu0 %vm496_vm0, %v14401_v18  ;;  %v10703_v18 = vld [vmem:[%s15652_s5 + $0x420] ss:$8 sps:$4 sm:$0xff]  }
 0x49a   : > { %9887 = vmatprep.mubr.msk.bf16.mxu1 %vm496_vm0, %v14435_v0 }
 0x4a0   : > { %7508 = vmatmul.mubr.bf16.vlgmr.msra.gmra.mxu0 %v14433_v32  ;;  %v10706_v32 = vld [vmem:[%s15652_s5 + $0x410] ss:$8 sps:$4 sm:$0xff]  }
 0x4a1   : > { %7886 = vmatmul.mubr.bf16.vlgmr.msra.gmra.mxu1 %v14467_v9  ;;  %8232 = vmatpush1.bf16.msra.mxu0 %v10700_v33 }
 0x4a2   : > { %9824 = vmatprep.mubr.msk.bf16.mxu0 %vm496_vm0, %v14435_v0  ;;  %8233 = vmatprep.subr.bf16.mxu0 %v10705_v50  ;;  %v10711_v0 = vld [vmem:[%s15652_s5 + $0x404] ss:$8 sps:$4 sm:$0xff]  }
 0x4a3   : > { %9888 = vmatprep.mubr.msk.bf16.mxu1 %vm496_vm0, %v14469_v53 }
 0x4a5   : > { %8234 = vmatpush1.bf16.msra.mxu0 %v10703_v18 }
 0x4a6   : > { %8235 = vmatprep.subr.bf16.mxu0 %v10708_v13 }
 0x4a8   : > { %7518 = vmatmul.mubr.bf16.gmra.mxu0 %v14467_v9  ;;  %v10712_v9 = vld [vmem:[%s15652_s5 + $0x3f0] ss:$8 sps:$4 sm:$0xff]  }
 0x4a9   : > { %7896 = vmatmul.mubr.bf16.gmra.mxu1 %v14501_v36  ;;  %8236 = vmatpush1.bf16.msra.mxu0 %v10706_v32 }
 0x4aa   : > { %9825 = vmatprep.mubr.msk.bf16.mxu0 %vm496_vm0, %v14469_v53  ;;  %9889 = vmatprep.mubr.msk.bf16.mxu1 %vm496_vm0, %v14503_v60 }
 0x4ab   : > { %8237 = vmatprep.subr.bf16.mxu0 %v10711_v0 }
 0x4ad   : > { %8238 = vmatpush1.bf16.msra.mxu0 %v10709_v25 }
 0x4ae   : > { %8239 = vmatprep.subr.bf16.mxu0 %v10714_v44 }
 0x4b0   : > { %7528 = vmatmul.mubr.bf16.gmra.mxu0 %v14501_v36 }
 0x4b1   : > { %7906 = vmatmul.mubr.bf16.gmra.mxu1 %v14520_v48  ;;  %9826 = vmatprep.mubr.msk.bf16.mxu0 %vm496_vm0, %v14503_v60 }
 0x4b2   : > { %9890 = vmatprep.mubr.msk.bf16.mxu1 %vm496_vm0, %v14522_v46  ;;  %8240 = vmatpush1.bf16.msra.mxu0 %v10712_v9 }
 0x4b3   : > { %8241 = vmatprep.subr.bf16.mxu0 %v10717_v61 }
 0x4b6   : > { %8242 = vmatpush1.bf16.msra.mxu0 %v10715_v20 }
 0x4b7   : > { %8243 = vmatprep.subr.bf16.mxu0 %v10720_v27 }
 0x4b8   : > { %7538 = vmatmul.mubr.bf16.gmra.mxu0 %v14520_v48 }
 0x4b9   : > { %7916 = vmatmul.mubr.bf16.gmra.mxu1 %v14530_v56  ;;  %9827 = vmatprep.mubr.msk.bf16.mxu0 %vm496_vm0, %v14522_v46 }
 0x4ba   : > { %9891 = vmatprep.mubr.msk.bf16.mxu1 %vm496_vm0, %v14682_v11  ;;  %8244 = vmatpush1.bf16.msra.mxu0 %v10718_v59 }
 0x4bb   : > { %8245 = vmatprep.subr.bf16.mxu0 %v10723_v4 }
 0x4be   : > { %8246 = vmatpush1.bf16.msra.mxu0 %v10721_v2  ;;  %v10745_v2 = vld [vmem:[%s15655_s8 + $0x20] sm:$0xff]  }
 0x4bf   : > { %8259 = vmatprep.subr.bf16.mxu0 %v10729_v52  ;;  %v10746_v52 = vld [vmem:[%s15654_s7 + $0x20] sm:$0xff]  }
 0x4c0   : > { %7548 = vmatmul.mubr.bf16.gmra.mxu0 %v14530_v56 }
 0x4c1   : > { %7926 = vmatmul.mubr.bf16.gmra.mxu1 %v14694_v24  ;;  %9828 = vmatprep.mubr.msk.bf16.mxu0 %vm496_vm0, %v14682_v11 }
 0x4c2   : > { %9892 = vmatprep.mubr.msk.bf16.mxu1 %vm496_vm0, %v14696_v1  ;;  %8260 = vmatpush2.bf16.msra.mxu0 %v10727_v23 }
 0x4c3   : > { %8261 = vmatprep.subr.bf16.mxu0 %v10735_v6 }
 0x4c6   : > { %8262 = vmatpush2.bf16.msra.mxu0 %v10733_v41 }
 0x4c7   : > { %8822 = vmatprep.subr.bf16.mxu0 %v16093_v35 }
 0x4c8   : > { %7558 = vmatmul.mubr.bf16.gmra.mxu0 %v14694_v24 }
 0x4c9   : > { %7936 = vmatmul.mubr.bf16.gmra.mxu1 %v14704_v39  ;;  %9829 = vmatprep.mubr.msk.bf16.mxu0 %vm496_vm0, %v14696_v1 }
 0x4ca   : > { %9893 = vmatprep.mubr.msk.bf16.mxu1 %vm496_vm0, %v14799_v55 }
 0x4d0   : > { %7568 = vmatmul.mubr.bf16.gmra.mxu0 %v14704_v39 }
 0x4d1   : > { %7946 = vmatmul.mubr.bf16.gmra.mxu1 %v14808_v42  ;;  %9830 = vmatprep.mubr.msk.bf16.mxu0 %vm496_vm0, %v14799_v55 }
 0x4d2   : > { %9894 = vmatprep.mubr.msk.bf16.mxu1 %vm496_vm0, %v14810_v17 }
 0x4d8   : > { %7578 = vmatmul.mubr.bf16.gmra.mxu0 %v14808_v42 }
 0x4d9   : > { %7956 = vmatmul.mubr.bf16.gmra.mxu1 %v14818_v58  ;;  %9951 = vmatprep.mubr.msk.bf16.mxu0 %vm496_vm0, %v14469_v53 }
 0x4e0   : > { %v6182_v45 = vpop.f32.mrf.mxu0  ;;  %8264 = vmatmul.mubr.bf16.vlgmr.msra.gmra.mxu0 %v14501_v36 }
 0x4e1   : > { %v6407_v29 = vpop.f32.mrf.mxu1  ;;  %9952 = vmatprep.mubr.msk.bf16.mxu0 %vm496_vm0, %v14503_v60  ;;  %8823 = vmatpush1.bf16.msra.mxu0 %v10740_v30  ;;  %v10749_v30 = vld [vmem:[%s15655_s8 + $0x10] sm:$0xff]  }
 0x4e2   : > { %v14825_v40 = vadd.f32 %v6407_v29, %v6182_v45  ;;  %v6184_v21 = vpop.f32.mrf.mxu0  ;;  %8824 = vmatprep.subr.bf16.mxu0 %v16093_v35 }
 0x4e3   : > { %v6409_v22 = vpop.f32.mrf.mxu1 }
 0x4e4   : > { %v14829_v7 = vadd.f32 %v6409_v22, %v6184_v21  ;;  %v6186_v31 = vpop.f32.mrf.mxu0 }
 0x4e5   : > { %v6411_v37 = vpop.f32.mrf.mxu1  ;;  %8825 = vmatpush1.bf16.msra.mxu0 %v10742_v57 }
 0x4e6   : > { %v14831_v28 = vadd.f32 %v6411_v37, %v6186_v31  ;;  %v14833_v38 = vpop.f32.mrf.mxu0  ;;  %8826 = vmatprep.subr.bf16.mxu0 %v16093_v35  ;;  %v10747_v31 = vld [vmem:[%s15655_s8 + $0x18] sm:$0xff]  }
 0x4e7   : > { %v14835_v53 = vpop.f32.mrf.mxu1  ;;  %v10748_v37 = vld [vmem:[%s15654_s7 + $0x18] sm:$0xff]  }
 0x4e8   : > { %v6192_v5 = vpop.f32.mrf.mxu0  ;;  %8274 = vmatmul.mubr.bf16.gmra.mxu0 %v14520_v48 }
 0x4e9   : > { %v6417_v49 = vpop.f32.mrf.mxu1  ;;  %9953 = vmatprep.mubr.msk.bf16.mxu0 %vm496_vm0, %v14522_v46  ;;  %v10739_v46 = vld [vmem:[%s15655_s8 + $0x38] sm:$0xff]  }
 0x4ea   : > { %v14838_v36 = vadd.f32 %v6417_v49, %v6192_v5  ;;  %v6194_v60 = vpop.f32.mrf.mxu0  ;;  %8630 = vmatpush1.bf16.msra.mxu1 %v10739_v46 }
 0x4eb   : > { %v6419_v8 = vpop.f32.mrf.mxu1  ;;  %8631 = vmatprep.subr.bf16.mxu1 %v16093_v35 }
 0x4ec   : > { %v14842_v19 = vadd.f32 %v6419_v8, %v6194_v60  ;;  %v6196_v34 = vpop.f32.mrf.mxu0 }
 0x4ed   : > { %v6421_v43 = vpop.f32.mrf.mxu1 }
 0x4ee   : > { %v14844_v10 = vadd.f32 %v6421_v43, %v6196_v34  ;;  %v14846_v12 = vpop.f32.mrf.mxu0 }
 0x4ef   : > { %v14848_v26 = vpop.f32.mrf.mxu1 }
 0x4f0   : > { %v6202_v54 = vpop.f32.mrf.mxu0  ;;  %8284 = vmatmul.mubr.bf16.gmra.mxu0 %v14530_v56 }
 0x4f1   : > { %v6427_v15 = vpop.f32.mrf.mxu1  ;;  %9954 = vmatprep.mubr.msk.bf16.mxu0 %vm496_vm0, %v14682_v11  ;;  %v10741_v11 = vld [vmem:[%s15655_s8 + $0x30] sm:$0xff]  }
 0x4f2   : > { %v14851_v48 = vadd.f32 %v6427_v15, %v6202_v54  ;;  %v6204_v3 = vpop.f32.mrf.mxu0  ;;  %8632 = vmatpush1.bf16.msra.mxu1 %v10741_v11 }
 0x4f3   : > { %v6429_v63 = vpop.f32.mrf.mxu1  ;;  %8633 = vmatprep.subr.bf16.mxu1 %v16093_v35 }
 0x4f4   : > { %v14861_v51 = vadd.f32 %v6429_v63, %v6204_v3  ;;  %v6206_v56 = vpop.f32.mrf.mxu0 }
 0x4f5   : > { %v6431_v47 = vpop.f32.mrf.mxu1 }
 0x4f6   : > { %v14865_v16 = vadd.f32 %v6431_v47, %v6206_v56  ;;  %v14867_v62 = vpop.f32.mrf.mxu0 }
 0x4f7   : > { %v14869_v14 = vpop.f32.mrf.mxu1 }
 0x4f8   : > { %v6212_v33 = vpop.f32.mrf.mxu0  ;;  %8294 = vmatmul.mubr.bf16.gmra.mxu0 %v14694_v24  ;;  %v10743_v24 = vld [vmem:[%s15655_s8 + $0x28] sm:$0xff]  }
 0x4f9   : > { %v6437_v50 = vpop.f32.mrf.mxu1  ;;  %9955 = vmatprep.mubr.msk.bf16.mxu0 %vm496_vm0, %v14696_v1  ;;  %v10744_v1 = vld [vmem:[%s15654_s7 + $0x28] sm:$0xff]   ;;  %8634 = vmatpush1.bf16.msra.mxu1 %v10743_v24  ;;  %v10736_v24 = vld [vmem:[#allocation3 + $0xd0] ss:$8 sps:$4 sm:$0xff]  }
 0x4fa   : > { %v14878_v18 = vadd.f32 %v6437_v50, %v6212_v33  ;;  %v6214_v13 = vpop.f32.mrf.mxu0  ;;  %8827 = vmatpush1.bf16.msra.mxu0 %v10744_v1  ;;  %8635 = vmatprep.subr.bf16.mxu1 %v16093_v35  ;;  %v10751_v33 = vld [vmem:[%s15655_s8 + $0x8] sm:$0xff]  }
 0x4fb   : > { %v6439_v32 = vpop.f32.mrf.mxu1  ;;  %8828 = vmatprep.subr.bf16.mxu0 %v16093_v35  ;;  %v10752_v50 = vld [vmem:[%s15654_s7 + $0x8] sm:$0xff]  }
 0x4fc   : > { %v14883_v0 = vadd.f32 %v6439_v32, %v6214_v13  ;;  %v6216_v25 = vpop.f32.mrf.mxu0 }
 0x4fd   : > { %v6441_v44 = vpop.f32.mrf.mxu1  ;;  %8636 = vmatpush1.bf16.msra.mxu1 %v10745_v2 }
 0x4fe   : > { %v14886_v9 = vadd.f32 %v6441_v44, %v6216_v25  ;;  %v14894_v61 = vpop.f32.mrf.mxu0  ;;  %8829 = vmatpush1.bf16.msra.mxu0 %v10746_v52  ;;  %8637 = vmatprep.subr.bf16.mxu1 %v16093_v35 }
 0x4ff   : > { %v14896_v20 = vpop.f32.mrf.mxu1  ;;  %8830 = vmatprep.subr.bf16.mxu0 %v16093_v35 }
 0x500   : > { %v6222_v27 = vpop.f32.mrf.mxu0  ;;  %8304 = vmatmul.mubr.bf16.gmra.mxu0 %v14704_v39 }
 0x501   : > { %v6447_v59 = vpop.f32.mrf.mxu1  ;;  %9956 = vmatprep.mubr.msk.bf16.mxu0 %vm496_vm0, %v14799_v55  ;;  %8638 = vmatpush1.bf16.msra.mxu1 %v10747_v31 }
 0x502   : > { %v14900_v4 = vadd.f32 %v6447_v59, %v6222_v27  ;;  %v6224_v23 = vpop.f32.mrf.mxu0  ;;  %8831 = vmatpush1.bf16.msra.mxu0 %v10748_v37  ;;  %8639 = vmatprep.subr.bf16.mxu1 %v16093_v35  ;;  %v10754_v27 = vld [vmem:[%s15654_s7] sm:$0xff]  }
 0x503   : > { %v6449_v6 = vpop.f32.mrf.mxu1  ;;  %8832 = vmatprep.subr.bf16.mxu0 %v16093_v35 }
 0x504   : > { %v14911_v39 = vadd.f32 %v6449_v6, %v6224_v23  ;;  %v6226_v41 = vpop.f32.mrf.mxu0  ;;  %v10753_v23 = vld [vmem:[%s15655_s8] sm:$0xff]  }
 0x505   : > { %v6451_v45 = vpop.f32.mrf.mxu1  ;;  %8640 = vmatpush1.bf16.msra.mxu1 %v10749_v30 }
 0x506   : > { %v14915_v55 = vadd.f32 %v6451_v45, %v6226_v41  ;;  %v6228_v29 = vpop.f32.mrf.mxu0  ;;  %8641 = vmatprep.subr.bf16.mxu1 %v16093_v35 }
 0x507   : > { %v6453_v21 = vpop.f32.mrf.mxu1 }
 0x508   : > { %v14917_v22 = vadd.f32 %v6453_v21, %v6228_v29  ;;  %v6232_v5 = vpop.f32.mrf.mxu0  ;;  %8314 = vmatmul.mubr.bf16.gmra.mxu0 %v14808_v42  ;;  %v10738_v42 = vld [vmem:[#allocation3 + $0xd4] ss:$8 sps:$4 sm:$0xff]  }
 0x509   : > { %v6457_v49 = vpop.f32.mrf.mxu1  ;;  %9957 = vmatprep.mubr.msk.bf16.mxu0 %vm496_vm0, %v14810_v17  ;;  %v10750_v17 = vld [vmem:[%s15654_s7 + $0x10] sm:$0xff]   ;;  %8642 = vmatpush1.bf16.msra.mxu1 %v10751_v33  ;;  %v10756_v29 = vld [vmem:[%s15654_s7 + $0x58] sm:$0xff]  }
 0x50a   : > { %v14926_v60 = vadd.f32 %v6457_v49, %v6232_v5  ;;  %v6234_v8 = vpop.f32.mrf.mxu0  ;;  %8833 = vmatpush1.bf16.msra.mxu0 %v10750_v17  ;;  %8643 = vmatprep.subr.bf16.mxu1 %v16093_v35 }
 0x50b   : > { %v6459_v34 = vpop.f32.mrf.mxu1  ;;  %8834 = vmatprep.subr.bf16.mxu0 %v16093_v35 }
 0x50c   : > { %v14931_v43 = vadd.f32 %v6459_v34, %v6234_v8  ;;  %v6236_v54 = vpop.f32.mrf.mxu0  ;;  %v10755_v34 = vld [vmem:[%s15655_s8 + $0x58] sm:$0xff]  }
 0x50d   : > { %v6461_v15 = vpop.f32.mrf.mxu1  ;;  %8644 = vmatpush1.bf16.msra.mxu1 %v10753_v23 }
 0x50e   : > { %v14934_v46 = vadd.f32 %v6461_v15, %v6236_v54  ;;  %v6238_v3 = vpop.f32.mrf.mxu0  ;;  %8835 = vmatpush1.bf16.msra.mxu0 %v10752_v50  ;;  %8653 = vmatprep.subr.bf16.mxu1 %v16093_v35  ;;  %v10757_v54 = vld [vmem:[%s15654_s7 + $0x50] sm:$0xff]  }
 0x50f   : > { %v6463_v63 = vpop.f32.mrf.mxu1  ;;  %8836 = vmatprep.subr.bf16.mxu0 %v16093_v35 }
 0x510   : > { %v14942_v56 = vadd.f32 %v6463_v63, %v6238_v3  ;;  %v6242_v47 = vpop.f32.mrf.mxu0  ;;  %8324 = vmatmul.mubr.bf16.gmra.mxu0 %v14818_v58 }
 0x511   : > { %v6467_v11 = vpop.f32.mrf.mxu1  ;;  %9958 = vmatprep.mubr.msk.bf16.mxu0 %vm496_vm0, %v10738_v42  ;;  %8654 = vmatpush2.bf16.msra.mxu1 %v10755_v34  ;;  %v16100_v34 = vld [vmem:[#allocation41_spill] sm:$0xff] }
 0x512   : > { %v14946_v57 = vadd.f32 %v6467_v11, %v6242_v47  ;;  %v6244_v13 = vpop.f32.mrf.mxu0  ;;  %8837 = vmatpush1.bf16.msra.mxu0 %v10754_v27  ;;  %8655 = vmatprep.subr.bf16.mxu1 %v16093_v35  ;;  %v10759_v47 = vld [vmem:[%s15654_s7 + $0x48] sm:$0xff]  }
 0x513   : > { %v6469_v32 = vpop.f32.mrf.mxu1  ;;  %8846 = vmatprep.subr.bf16.mxu0 %v16093_v35 }
 0x514   : > { %v14956_v25 = vadd.f32 %v6469_v32, %v6244_v13  ;;  %v6246_v58 = vpop.f32.mrf.mxu0  ;;  %v10758_v32 = vld [vmem:[%s15655_s8 + $0x50] sm:$0xff]  }
 0x515   : > { %v6471_v44 = vpop.f32.mrf.mxu1  ;;  %8656 = vmatpush2.bf16.msra.mxu1 %v10758_v32 }
 0x516   : > { %v14960_v1 = vadd.f32 %v6471_v44, %v6246_v58  ;;  %v6248_v59 = vpop.f32.mrf.mxu0  ;;  %8847 = vmatpush2.bf16.msra.mxu0 %v10756_v29  ;;  %8657 = vmatprep.subr.bf16.mxu1 %v16093_v35 }
 0x517   : > { %v6473_v2 = vpop.f32.mrf.mxu1  ;;  %8848 = vmatprep.subr.bf16.mxu0 %v16093_v35 }
 0x518   : > { %v14965_v52 = vadd.f32 %v6473_v2, %v6248_v59  ;;  %v6252_v6 = vpop.f32.mrf.mxu0  ;;  %8334 = vmatmul.mubr.bf16.gmra.mxu0 %v10736_v24 }
 0x519   : > { %v6477_v41 = vpop.f32.mrf.mxu1 }
 0x51a   : > { %v14971_v45 = vadd.f32 %v6477_v41, %v6252_v6  ;;  %v6254_v21 = vpop.f32.mrf.mxu0  ;;  %8849 = vmatpush2.bf16.msra.mxu0 %v10757_v54  ;;  %v16096_v6 = vld [vmem:[#allocation73_spill] sm:$0xff]  ;;  %v16101_v54 = vmax.f32 %v16100_v34, 0.0 }
 0x51b   : > { %v6479_v31 = vpop.f32.mrf.mxu1  ;;  %8850 = vmatprep.subr.bf16.mxu0 %v16093_v35  ;;  %v16097_v41 = vmax.f32 %v16096_v6, 0.0 }
 0x51c   : > { %v14977_v37 = vadd.f32 %v6479_v31, %v6254_v21  ;;  %v6256_v5 = vpop.f32.mrf.mxu0 }
 0x51d   : > { %v6481_v49 = vpop.f32.mrf.mxu1 }
 0x51e   : > { %v14980_v8 = vadd.f32 %v6481_v49, %v6256_v5  ;;  %v6258_v15 = vpop.f32.mrf.mxu0  ;;  %8851 = vmatpush2.bf16.msra.mxu0 %v10759_v47  ;;  %v16098_v5 = vld [vmem:[#allocation40_spill] sm:$0xff] }
 0x51f   : > { %v6483_v42 = vpop.f32.mrf.mxu1  ;;  %8852 = vmatprep.subr.bf16.mxu0 %v16093_v35  ;;  %v16099_v49 = vmax.f32 %v16098_v5, 0.0 }
 0x520   : > { %v14988_v30 = vadd.f32 %v6483_v42, %v6258_v15  ;;  %v6753_v17 = vpop.f32.mrf.mxu0 }
 0x521   : > { %v7131_v3 = vpop.f32.mrf.mxu1  ;;  %v6832_v63 = vadd.f32 %v6753_v17, %v14825_v40  ;;  %v6414_v40 = vadd.f32 %v14835_v53, %v14833_v38  ;;  %v10760_v38 = vld [vmem:[%s15655_s8 + $0x48] sm:$0xff]   ;;  %v8452_v15 = vpack.c.bf16 %v16101_v54, %v16099_v49 }
 0x522   : > { %v6755_v11 = vpop.f32.mrf.mxu0  ;;  %8658 = vmatpush2.bf16.msra.mxu1 %v10760_v38  ;;  %v16104_v38 = vld [vmem:[#allocation77_spill] sm:$0xff] }
 0x523   : > { %v7133_v33 = vpop.f32.mrf.mxu1  ;;  %v6833_v50 = vadd.f32 %v6755_v11, %v14829_v7  ;;  %v14997_v13 = vadd.f32 %v7131_v3, %v6832_v63  ;;  %v10761_v7 = vld [vmem:[%s15654_s7 + $0x40] sm:$0xff]   ;;  %8659 = vmatprep.subr.bf16.mxu1 %v16093_v35 }
 0x524   : > { %v6757_v58 = vpop.f32.mrf.mxu0  ;;  %8853 = vmatpush2.bf16.msra.mxu0 %v10761_v7  ;;  %v10762_v11 = vld [vmem:[%s15655_s8 + $0x40] sm:$0xff]   ;;  %v16102_v7 = vld [vmem:[#allocation75_spill] sm:$0xff] }
 0x525   : > { %v15002_v44 = vpop.f32.mrf.mxu1  ;;  %v15008_v24 = vadd.f32 %v6757_v58, %v14831_v28  ;;  %v15010_v27 = vadd.f32 %v7133_v33, %v6833_v50  ;;  %v16094_v28 = vld [vmem:[#allocation72_spill] sm:$0xff] }
 0x526   : > { %v6759_v59 = vpop.f32.mrf.mxu0  ;;  %v16095_v53 = vmax.f32 %v16094_v28, 0.0  ;;  %8660 = vmatpush2.bf16.msra.mxu1 %v10762_v11  ;;  %v16105_v28 = vmax.f32 %v16104_v38, 0.0 }
 0x527   : > { %v15015_v2 = vpop.f32.mrf.mxu1  ;;  %v15018_v23 = vadd.f32 %v6759_v59, %v6414_v40  ;;  %v16103_v59 = vmax.f32 %v16102_v7, 0.0 }
 0x528   : > { %v8453_v29 = vpack.c.bf16 %v16097_v41, %v16095_v53  ;;  %v6763_v21 = vpop.f32.mrf.mxu0 }
 0x529   : > { %v7141_v31 = vpop.f32.mrf.mxu1  ;;  %v6836_v42 = vadd.f32 %v6763_v21, %v14838_v36  ;;  %v6424_v36 = vadd.f32 %v14848_v26, %v14846_v12  ;;  %v8455_v53 = vpack.c.bf16 %v16105_v28, %v16103_v59  ;;  %v16108_v26 = vld [vmem:[#allocation43_spill] sm:$0xff] }
 0x52a   : > { %9991 = vmatprep.mubr.msk.bf16.mxu0 %vm8604_vm13, %v8453_v29  ;;  %v6765_v17 = vpop.f32.mrf.mxu0  ;;  %v16106_v29 = vld [vmem:[#allocation42_spill] sm:$0xff] }
 0x52b   : > { %v7143_v3 = vpop.f32.mrf.mxu1  ;;  %8855 = vmatmul.mubr.bf16.vlgmr.msra.gmra.mxu0 %v8452_v15  ;;  %v6837_v63 = vadd.f32 %v6765_v17, %v14842_v19  ;;  %v15035_v47 = vadd.f32 %v7141_v31, %v6836_v42  ;;  %v16107_v12 = vmax.f32 %v16106_v29, 0.0  ;;  %v6434_v17 = vadd.f32 %v14869_v14, %v14867_v62  ;;  %v16116_v62 = vld [vmem:[#allocation45_spill] sm:$0xff] }
 0x52c   : > { %v6767_v33 = vpop.f32.mrf.mxu0  ;;  %9992 = vmatprep.mubr.msk.bf16.mxu0 %vm8604_vm13, %v8455_v53  ;;  %v16114_v53 = vld [vmem:[#allocation44_spill] sm:$0xff]  ;;  %v16117_v14 = vmax.f32 %v16116_v62, 0.0 }
 0x52d   : > { %v15040_v50 = vpop.f32.mrf.mxu1  ;;  %v15045_v32 = vadd.f32 %v6767_v33, %v14844_v10  ;;  %v15047_v58 = vadd.f32 %v7143_v3, %v6837_v63  ;;  %v16109_v10 = vmax.f32 %v16108_v26, 0.0 }
 0x52e   : > { %v6769_v35 = vpop.f32.mrf.mxu0 }
 0x52f   : > { %v15049_v19 = vpop.f32.mrf.mxu1  ;;  %v15051_v40 = vadd.f32 %v6769_v35, %v6424_v36  ;;  %v8454_v21 = vpack.c.bf16 %v16109_v10, %v16107_v12  ;;  %v16110_v36 = vld [vmem:[#allocation74_spill] sm:$0xff]  ;;  %v16112_v35 = vld [vmem:[#allocation76_spill] sm:$0xff] }
 0x530   : > { %v6773_v6 = vpop.f32.mrf.mxu0  ;;  %v16113_v7 = vmax.f32 %v16112_v35, 0.0 }
 0x531   : > { %v7151_v41 = vpop.f32.mrf.mxu1  ;;  %v6840_v31 = vadd.f32 %v6773_v6, %v14851_v48  ;;  %v16115_v6 = vmax.f32 %v16114_v53, 0.0 }
 0x532   : > { %v6775_v5 = vpop.f32.mrf.mxu0 }
 0x533   : > { %v7153_v49 = vpop.f32.mrf.mxu1  ;;  %8863 = vmatmul.mubr.bf16.gmra.mxu0 %v8454_v21  ;;  %v6841_v34 = vadd.f32 %v6775_v5, %v14861_v51  ;;  %v15064_v54 = vadd.f32 %v7151_v41, %v6840_v31  ;;  %v16111_v51 = vmax.f32 %v16110_v36, 0.0  ;;  %v6444_v5 = vadd.f32 %v14896_v20, %v14894_v61  ;;  %v16120_v36 = vld [vmem:[#allocation81_spill] sm:$0xff] }
 0x534   : > { %v6777_v15 = vpop.f32.mrf.mxu0  ;;  %v16124_v61 = vld [vmem:[#allocation49_spill] sm:$0xff] }
 0x535   : > { %v15066_v42 = vpop.f32.mrf.mxu1  ;;  %v15071_v3 = vadd.f32 %v6777_v15, %v14865_v16  ;;  %v15073_v63 = vadd.f32 %v7153_v49, %v6841_v34  ;;  %v8457_v59 = vpack.c.bf16 %v16113_v7, %v16111_v51  ;;  %v8456_v16 = vpack.c.bf16 %v16117_v14, %v16115_v6 }
 0x536   : > { %v6779_v48 = vpop.f32.mrf.mxu0  ;;  %v16121_v51 = vmax.f32 %v16120_v36, 0.0  ;;  %v16125_v20 = vmax.f32 %v16124_v61, 0.0 }
 0x537   : > { %v15075_v11 = vpop.f32.mrf.mxu1  ;;  %v15077_v33 = vadd.f32 %v6779_v48, %v6434_v17  ;;  %9993 = vmatprep.mubr.msk.bf16.mxu0 %vm8604_vm13, %v8457_v59  ;;  %v16118_v48 = vld [vmem:[#allocation79_spill] sm:$0xff] }
 0x538   : > { %v6783_v38 = vpop.f32.mrf.mxu0 }
 0x539   : > { %v7161_v28 = vpop.f32.mrf.mxu1  ;;  %v6844_v41 = vadd.f32 %v6783_v38, %v14878_v18  ;;  %v16122_v38 = vld [vmem:[#allocation46_spill] sm:$0xff] }
 0x53a   : > { %v6785_v29 = vpop.f32.mrf.mxu0 }
 0x53b   : > { %v7163_v12 = vpop.f32.mrf.mxu1  ;;  %8871 = vmatmul.mubr.bf16.gmra.mxu0 %v8456_v16  ;;  %v6845_v26 = vadd.f32 %v6785_v29, %v14883_v0  ;;  %v15090_v10 = vadd.f32 %v7161_v28, %v6844_v41  ;;  %v16119_v0 = vmax.f32 %v16118_v48, 0.0  ;;  %v16123_v28 = vmax.f32 %v16122_v38, 0.0  ;;  %v16132_v38 = vld [vmem:[#allocation51_spill] sm:$0xff] }
 0x53c   : > { %v6787_v21 = vpop.f32.mrf.mxu0 }
 0x53d   : > { %v15092_v31 = vpop.f32.mrf.mxu1  ;;  %v15097_v49 = vadd.f32 %v6787_v21, %v14886_v9  ;;  %v15099_v34 = vadd.f32 %v7163_v12, %v6845_v26  ;;  %v8459_v35 = vpack.c.bf16 %v16121_v51, %v16119_v0  ;;  %v8458_v9 = vpack.c.bf16 %v16125_v20, %v16123_v28  ;;  %v16128_v0 = vld [vmem:[#allocation80_spill] sm:$0xff] }
 0x53e   : > { %v6789_v18 = vpop.f32.mrf.mxu0 }
 0x53f   : > { %v15101_v15 = vpop.f32.mrf.mxu1  ;;  %v15103_v17 = vadd.f32 %v6789_v18, %v6444_v5  ;;  %9994 = vmatprep.mubr.msk.bf16.mxu0 %vm8604_vm13, %v8459_v35  ;;  %v16126_v18 = vld [vmem:[#allocation78_spill] sm:$0xff] }
 0x540   : > { %v6793_v7 = vpop.f32.mrf.mxu0  ;;  %v16127_v48 = vmax.f32 %v16126_v18, 0.0 }
 0x541   : > { %v7171_v59 = vpop.f32.mrf.mxu1  ;;  %v6848_v53 = vadd.f32 %v6793_v7, %v14900_v4  ;;  %v16130_v7 = vld [vmem:[#allocation50_spill] sm:$0xff] }
 0x542   : > { %v6795_v6 = vpop.f32.mrf.mxu0 }
 0x543   : > { %v7173_v62 = vpop.f32.mrf.mxu1  ;;  %8879 = vmatmul.mubr.bf16.gmra.mxu0 %v8458_v9  ;;  %v6849_v14 = vadd.f32 %v6795_v6, %v14911_v39  ;;  %v15116_v16 = vadd.f32 %v7171_v59, %v6848_v53  ;;  %v16129_v39 = vmax.f32 %v16128_v0, 0.0  ;;  %v16131_v59 = vmax.f32 %v16130_v7, 0.0  ;;  %v16142_v7 = vld [vmem:[#allocation52_spill] sm:$0xff] }
 0x544   : > { %v6797_v41 = vpop.f32.mrf.mxu0 }
 0x545   : > { %v15118_v29 = vpop.f32.mrf.mxu1  ;;  %v15121_v12 = vadd.f32 %v6797_v41, %v14915_v55  ;;  %v15123_v26 = vadd.f32 %v7173_v62, %v6849_v14  ;;  %v8461_v36 = vpack.c.bf16 %v16129_v39, %v16127_v48  ;;  %v16133_v55 = vmax.f32 %v16132_v38, 0.0  ;;  %v16138_v48 = vld [vmem:[#allocation61_spill] sm:$0xff]  ;;  %v16140_v39 = vld [vmem:[#allocation67_spill] sm:$0xff] }
 0x546   : > { %v6799_v21 = vpop.f32.mrf.mxu0  ;;  %v16139_v0 = vmax.f32 %v16138_v48, 0.0  ;;  %v16144_v38 = vld [vmem:[#allocation53_spill] sm:$0xff] }
 0x547   : > { %v15125_v5 = vpop.f32.mrf.mxu1  ;;  %v15128_v4 = vadd.f32 %v6799_v21, %v14917_v22  ;;  %v8460_v28 = vpack.c.bf16 %v16133_v55, %v16131_v59  ;;  %9995 = vmatprep.mubr.msk.bf16.mxu0 %vm8604_vm13, %v8461_v36  ;;  %v16143_v59 = vmax.f32 %v16142_v7, 0.0 }
 0x548   : > { %v6803_v51 = vpop.f32.mrf.mxu0 }
 0x549   : > { %v7181_v35 = vpop.f32.mrf.mxu1  ;;  %v6852_v61 = vadd.f32 %v6803_v51, %v14926_v60 }
 0x54a   : > { %v6805_v20 = vpop.f32.mrf.mxu0 }
 0x54b   : > { %v7183_v9 = vpop.f32.mrf.mxu1  ;;  %8887 = vmatmul.mubr.bf16.gmra.mxu0 %v8460_v28  ;;  %v6853_v22 = vadd.f32 %v6805_v20, %v14931_v43  ;;  %v15141_v53 = vadd.f32 %v7181_v35, %v6852_v61  ;;  %v16141_v43 = vmax.f32 %v16140_v39, 0.0 }
 0x54c   : > { %v6807_v6 = vpop.f32.mrf.mxu0 }
 0x54d   : > { %v15143_v62 = vpop.f32.mrf.mxu1  ;;  %v15146_v14 = vadd.f32 %v6807_v6, %v14934_v46  ;;  %v15148_v41 = vadd.f32 %v7183_v9, %v6853_v22  ;;  %v8463_v36 = vpack.c.bf16 %v16141_v43, %v16139_v0  ;;  %v16145_v46 = vmax.f32 %v16144_v38, 0.0  ;;  %v16150_v43 = vld [vmem:[#allocation60_spill] sm:$0xff]  ;;  %v16154_v38 = vld [vmem:[#allocation54_spill] sm:$0xff] }
 0x54e   : > { %16134 = vst [vmem:[#allocation36_spill] sm:$0xff] %v15143_v62  ;;  %v6809_v21 = vpop.f32.mrf.mxu0 }
 0x54f   : > { %16135 = vst [vmem:[#allocation87_spill] sm:$0xff] %v15146_v14  ;;  %v15150_v18 = vpop.f32.mrf.mxu1  ;;  %v15153_v60 = vadd.f32 %v6809_v21, %v14942_v56  ;;  %v8462_v55 = vpack.c.bf16 %v16145_v46, %v16143_v59  ;;  %9996 = vmatprep.mubr.msk.bf16.mxu0 %vm8604_vm13, %v8463_v36  ;;  %v16151_v36 = vmax.f32 %v16150_v43, 0.0  ;;  %v16155_v46 = vmax.f32 %v16154_v38, 0.0 }
 0x550   : > { %16136 = vst [vmem:[#allocation88_spill] sm:$0xff] %v15150_v18  ;;  %v6813_v51 = vpop.f32.mrf.mxu0 }
 0x551   : > { %16137 = vst [vmem:[#allocation89_spill] sm:$0xff] %v15153_v60  ;;  %v7191_v35 = vpop.f32.mrf.mxu1  ;;  %v6856_v28 = vadd.f32 %v6813_v51, %v14946_v57  ;;  %v16152_v51 = vld [vmem:[#allocation62_spill] sm:$0xff] }
 0x552   : > { %v6815_v61 = vpop.f32.mrf.mxu0 }
 0x553   : > { %v7193_v20 = vpop.f32.mrf.mxu1  ;;  %8895 = vmatmul.mubr.bf16.gmra.mxu0 %v8462_v55  ;;  %v6857_v56 = vadd.f32 %v6815_v61, %v14956_v25  ;;  %v15166_v9 = vadd.f32 %v7191_v35, %v6856_v28  ;;  %v16153_v25 = vmax.f32 %v16152_v51, 0.0  ;;  %v16156_v55 = vld [vmem:[#allocation55_spill] sm:$0xff] }
 0x554   : > { %v6817_v22 = vpop.f32.mrf.mxu0 }
 0x555   : > { %v15168_v6 = vpop.f32.mrf.mxu1  ;;  %v15171_v21 = vadd.f32 %v6817_v22, %v14960_v1  ;;  %v15173_v48 = vadd.f32 %v7193_v20, %v6857_v56  ;;  %v8465_v35 = vpack.c.bf16 %v16153_v25, %v16151_v36  ;;  %v16157_v1 = vmax.f32 %v16156_v55, 0.0 }
 0x556   : > { %16146 = vst [vmem:[#allocation90_spill] sm:$0xff] %v15168_v6  ;;  %v6819_v0 = vpop.f32.mrf.mxu0 }
 0x557   : > { %16147 = vst [vmem:[#allocation91_spill] sm:$0xff] %v15171_v21  ;;  %v15175_v39 = vpop.f32.mrf.mxu1  ;;  %v15178_v57 = vadd.f32 %v6819_v0, %v14965_v52  ;;  %v8464_v28 = vpack.c.bf16 %v16157_v1, %v16155_v46  ;;  %9997 = vmatprep.mubr.msk.bf16.mxu0 %vm8604_vm13, %v8465_v35  ;;  %v16162_v35 = vld [vmem:[#allocation66_spill] sm:$0xff]  ;;  %v16164_v46 = vld [vmem:[#allocation63_spill] sm:$0xff] }
 0x558   : > { %16148 = vst [vmem:[#allocation92_spill] sm:$0xff] %v15175_v39  ;;  %v6823_v7 = vpop.f32.mrf.mxu0 }
 0x559   : > { %16149 = vst [vmem:[#allocation93_spill] sm:$0xff] %v15178_v57  ;;  %v7201_v59 = vpop.f32.mrf.mxu1  ;;  %v6860_v61 = vadd.f32 %v6823_v7, %v14971_v45  ;;  %v16163_v7 = vmax.f32 %v16162_v35, 0.0 }
 0x55a   : > { %v6825_v20 = vpop.f32.mrf.mxu0 }
 0x55b   : > { %v7203_v56 = vpop.f32.mrf.mxu1  ;;  %8903 = vmatmul.mubr.bf16.gmra.mxu0 %v8464_v28  ;;  %v6861_v52 = vadd.f32 %v6825_v20, %v14977_v37  ;;  %v15191_v22 = vadd.f32 %v7201_v59, %v6860_v61  ;;  %v16165_v37 = vmax.f32 %v16164_v46, 0.0  ;;  %v16166_v28 = vld [vmem:[#allocation56_spill] sm:$0xff] }
 0x55c   : > { %v6827_v0 = vpop.f32.mrf.mxu0  ;;  %v16167_v61 = vmax.f32 %v16166_v28, 0.0 }
 0x55d   : > { %v15193_v43 = vpop.f32.mrf.mxu1  ;;  %v15196_v36 = vadd.f32 %v6827_v0, %v14980_v8  ;;  %v15198_v51 = vadd.f32 %v7203_v56, %v6861_v52  ;;  %v8467_v59 = vpack.c.bf16 %v16165_v37, %v16163_v7  ;;  %v16168_v8 = vld [vmem:[#allocation59_spill] sm:$0xff] }
 0x55e   : > { %16158 = vst [vmem:[#allocation58_spill] sm:$0xff] %v15193_v43  ;;  %v6829_v25 = vpop.f32.mrf.mxu0  ;;  %v16169_v20 = vmax.f32 %v16168_v8, 0.0 }
 0x55f   : > { %16159 = vst [vmem:[#allocation57_spill] sm:$0xff] %v15196_v36  ;;  %v15200_v38 = vpop.f32.mrf.mxu1  ;;  %v15203_v45 = vadd.f32 %v6829_v25, %v14988_v30  ;;  %9998 = vmatprep.mubr.msk.bf16.mxu0 %vm8604_vm13, %v8467_v59 }
 0x560   : > { %16160 = vst [vmem:[#allocation94_spill] sm:$0xff] %v15200_v38  ;;  %v7509_v55 = vpop.f32.mrf.mxu0  ;;  %v8466_v56 = vpack.c.bf16 %v16169_v20, %v16167_v61 }
 0x561   : > { %16161 = vst [vmem:[#allocation95_spill] sm:$0xff] %v15203_v45  ;;  %v15209_v1 = vpop.f32.mrf.mxu1  ;;  %v15216_v52 = vadd.f32 %v7509_v55, %v14997_v13 }
 0x562   : > { %v7511_v30 = vpop.f32.mrf.mxu0 }
 0x563   : > { %v15219_v0 = vpop.f32.mrf.mxu1  ;;  %8911 = vmatmul.mubr.bf16.gmra.mxu0 %v8466_v56  ;;  %v15222_v25 = vadd.f32 %v7511_v30, %v15010_v27 }
 0x564   : > { %v15224_v35 = vpop.f32.mrf.mxu0 }
 0x565   : > { %v15228_v46 = vpop.f32.mrf.mxu1 }
 0x566   : > { %v15226_v7 = vpop.f32.mrf.mxu0 }
 0x567   : > { %v15233_v13 = vpop.f32.mrf.mxu1 }
 0x568   : > { %v7519_v37 = vpop.f32.mrf.mxu0 }
 0x569   : > { %v15231_v28 = vadd.f32 %v7519_v37, %v15035_v47  ;;  %v15240_v27 = vpop.f32.mrf.mxu1 }
 0x56a   : > { %v7521_v59 = vpop.f32.mrf.mxu0 }
 0x56b   : > { %v15236_v55 = vadd.f32 %v7521_v59, %v15047_v58  ;;  %v15247_v30 = vpop.f32.mrf.mxu1 }
 0x56c   : > { %v15238_v61 = vpop.f32.mrf.mxu0 }
 0x56d   : > { %v15254_v58 = vpop.f32.mrf.mxu1 }
 0x56e   : > { %v15242_v8 = vpop.f32.mrf.mxu0 }
 0x56f   : > { %v15261_v36 = vpop.f32.mrf.mxu1 }
 0x570   : > { %v7529_v20 = vpop.f32.mrf.mxu0 }
 0x571   : > { %v15245_v56 = vadd.f32 %v7529_v20, %v15064_v54 }
 0x572   : > { %v7531_v47 = vpop.f32.mrf.mxu0 }
 0x573   : > { %v15250_v37 = vadd.f32 %v7531_v47, %v15073_v63  ;;  %v15268_v63 = vpop.f32.mrf.mxu1 }
 0x574   : > { %v15252_v38 = vpop.f32.mrf.mxu0 }
 0x575   : > { %v15275_v21 = vpop.f32.mrf.mxu1 }
 0x576   : > { %v15256_v59 = vpop.f32.mrf.mxu0 }
 0x578   : > { %v7539_v45 = vpop.f32.mrf.mxu0 }
 0x579   : > { %v15259_v43 = vadd.f32 %v7539_v45, %v15090_v10 }
 0x57a   : > { %v7541_v54 = vpop.f32.mrf.mxu0 }
 0x57b   : > { %v15264_v20 = vadd.f32 %v7541_v54, %v15099_v34  ;;  %v15282_v34 = vpop.f32.mrf.mxu1 }
 0x57c   : > { %v15266_v39 = vpop.f32.mrf.mxu0 }
 0x57d   : > { %v15289_v14 = vpop.f32.mrf.mxu1 }
 0x57e   : > { %v15270_v47 = vpop.f32.mrf.mxu0 }
 0x580   : > { %v7549_v57 = vpop.f32.mrf.mxu0 }
 0x581   : > { %v15273_v6 = vadd.f32 %v7549_v57, %v15116_v16 }
 0x582   : > { %v7551_v10 = vpop.f32.mrf.mxu0 }
 0x583   : > { %16170 = vst [vmem:[#allocation96_spill] sm:$0xff] %v15273_v6  ;;  %v15278_v45 = vadd.f32 %v7551_v10, %v15123_v26  ;;  %v15296_v26 = vpop.f32.mrf.mxu1 }
 0x584   : > { %v15280_v18 = vpop.f32.mrf.mxu0 }
 0x585   : > { %16171 = vst [vmem:[#allocation97_spill] sm:$0xff] %v15278_v45  ;;  %16172 = vst [vmem:[#allocation111_spill] sm:$0xff] %v15280_v18 }
 0x586   : > { %v15284_v54 = vpop.f32.mrf.mxu0 }
 0x587   : > { %16173 = vst [vmem:[#allocation98_spill] sm:$0xff] %v15284_v54  ;;  %v15303_v54 = vpop.f32.mrf.mxu1 }
 0x588   : > { %v7559_v60 = vpop.f32.mrf.mxu0 }
 0x589   : > { %v15287_v62 = vadd.f32 %v7559_v60, %v15141_v53 }
 0x58a   : > { %v7561_v16 = vpop.f32.mrf.mxu0 }
 0x58b   : > { %16174 = vst [vmem:[#allocation99_spill] sm:$0xff] %v15287_v62  ;;  %v15292_v57 = vadd.f32 %v7561_v16, %v15148_v41  ;;  %v15310_v41 = vpop.f32.mrf.mxu1 }
 0x58c   : > { %v15294_v6 = vpop.f32.mrf.mxu0 }
 0x58d   : > { %16175 = vst [vmem:[#allocation71_spill] sm:$0xff] %v15292_v57  ;;  %16176 = vst [vmem:[#allocation100_spill] sm:$0xff] %v15294_v6 }
 0x58e   : > { %v15298_v10 = vpop.f32.mrf.mxu0 }
 0x58f   : > { %16177 = vst [vmem:[#allocation101_spill] sm:$0xff] %v15298_v10  ;;  %v15317_v10 = vpop.f32.mrf.mxu1 }
 0x590   : > { %v7569_v45 = vpop.f32.mrf.mxu0 }
 0x591   : > { %v15301_v18 = vadd.f32 %v7569_v45, %v15166_v9 }
 0x592   : > { %v7571_v53 = vpop.f32.mrf.mxu0 }
 0x593   : > { %16178 = vst [vmem:[#allocation102_spill] sm:$0xff] %v15301_v18  ;;  %v15306_v60 = vadd.f32 %v7571_v53, %v15173_v48  ;;  %v7212_v48 = vadd.f32 %v15002_v44, %v15008_v24  ;;  %v15326_v53 = vpop.f32.mrf.mxu1  ;;  %v7967_v44 = vadd.f32 %v15219_v0, %v15222_v25 }
 0x594   : > { %v15308_v62 = vpop.f32.mrf.mxu0  ;;  %16185 = vst [vmem:[#allocation109_spill] sm:$0xff] %v15326_v53  ;;  %v16188_v53 = vld [vmem:[#allocation37_spill] sm:$0xff] }
 0x595   : > { %16179 = vst [vmem:[#allocation103_spill] sm:$0xff] %v15306_v60  ;;  %16180 = vst [vmem:[#allocation105_spill] sm:$0xff] %v15308_v62 }
 0x596   : > { %v15312_v16 = vpop.f32.mrf.mxu0 }
 0x597   : > { %16181 = vst [vmem:[#allocation106_spill] sm:$0xff] %v15312_v16  ;;  %v15344_v16 = vpop.f32.mrf.mxu1 }
 0x598   : > { %v7579_v57 = vpop.f32.mrf.mxu0 }
 0x599   : > { %v15315_v6 = vadd.f32 %v7579_v57, %v15191_v22  ;;  %v8376_v22 = vld [vmem:[%s15653_s6] sm:$0x3]  ;;  %v7213_v57 = vadd.f32 %v15015_v2, %v15018_v23 }
 0x59a   : > { %v7581_v9 = vpop.f32.mrf.mxu0 }
 0x59b   : > { %16182 = vst [vmem:[#allocation107_spill] sm:$0xff] %v15315_v6  ;;  %v15320_v45 = vadd.f32 %v7581_v9, %v15198_v51  ;;  %v7966_v51 = vadd.f32 %v15209_v1, %v15216_v52  ;;  %v7590_v9 = vadd.f32 %v15224_v35, %v7212_v48  ;;  %v7591_v24 = vadd.f32 %v15226_v7, %v7213_v57  ;;  %v15357_v48 = vpop.f32.mrf.mxu1 }
 0x59c   : > { %v15322_v18 = vpop.f32.mrf.mxu0  ;;  %v15348_v1 = vrot.slane %v8376_v22, %v16188_v53  ;;  %v7216_v52 = vadd.f32 %v15040_v50, %v15045_v32 }
 0x59d   : > { %16183 = vst [vmem:[#allocation108_spill] sm:$0xff] %v15320_v45  ;;  %16184 = vst [vmem:[#allocation104_spill] sm:$0xff] %v15322_v18  ;;  %v7968_v2 = vadd.f32 %v15228_v46, %v7590_v9  ;;  %v7969_v0 = vadd.f32 %v15233_v13, %v7591_v24  ;;  %v7970_v46 = vadd.f32 %v15240_v27, %v15231_v28  ;;  %v15368_v9 = vpop.f32.mrf.mxu1 }
 0x59e   : > { %v15328_v60 = vpop.f32.mrf.mxu0 }
 0x59f   : > { %16186 = vst [vmem:[#allocation110_spill] sm:$0xff] %v15328_v60  ;;  %v16187_v60 = vld [vmem:[#allocation35_spill] sm:$0xff] }
 0x5a0   : > { %v8265_v45 = vpop.f32.mrf.mxu0  ;;  %v15342_v18 = vrot.slane %v8376_v22, %v16187_v60  ;;  %v7217_v60 = vadd.f32 %v15049_v19, %v15051_v40 }
 0x5a1   : > { %v8344_v6 = vadd.f32 %v8265_v45, %v7966_v51  ;;  %v7594_v45 = vadd.f32 %v15238_v61, %v7216_v52 }
 0x5a2   : > { %v8267_v62 = vpop.f32.mrf.mxu0  ;;  %v7595_v13 = vadd.f32 %v15242_v8, %v7217_v60  ;;  %v7974_v60 = vadd.f32 %v15268_v63, %v15245_v56 }
 0x5a3   : > { %v8345_v23 = vadd.f32 %v8267_v62, %v7967_v44  ;;  %v8388_v25 = vadd.f32 %v15342_v18, %v8344_v6  ;;  %v7971_v6 = vadd.f32 %v15247_v30, %v15236_v55  ;;  %v7972_v51 = vadd.f32 %v15254_v58, %v7594_v45 }
 0x5a4   : > { %v8269_v35 = vpop.f32.mrf.mxu0  ;;  %v7220_v55 = vadd.f32 %v15066_v42, %v15071_v3  ;;  %v7973_v8 = vadd.f32 %v15261_v36, %v7595_v13  ;;  %v7221_v58 = vadd.f32 %v15075_v11, %v15077_v33  ;;  %v7975_v45 = vadd.f32 %v15275_v21, %v15250_v37 }
 0x5a5   : > { %v8346_v7 = vadd.f32 %v8269_v35, %v7968_v2  ;;  %v8389_v53 = vadd.f32 %v15348_v1, %v8345_v23  ;;  %v8420_v19 = vmax.f32 %v8388_v25, 0.0  ;;  %v15377_v25 = vpop.f32.mrf.mxu1  ;;  %v7224_v21 = vadd.f32 %v15092_v31, %v15097_v49 }
 0x5a6   : > { %v8271_v62 = vpop.f32.mrf.mxu0  ;;  %v7599_v11 = vadd.f32 %v15256_v59, %v7221_v58 }
 0x5a7   : > { %v8390_v50 = vadd.f32 %v15342_v18, %v8346_v7  ;;  %v8347_v32 = vadd.f32 %v8271_v62, %v7969_v0  ;;  %v8421_v27 = vmax.f32 %v8389_v53, 0.0  ;;  %v7598_v0 = vadd.f32 %v15252_v38, %v7220_v55  ;;  %v15389_v63 = vpop.f32.mrf.mxu1 }
 0x5a8   : > { %v8275_v22 = vpop.f32.mrf.mxu0  ;;  %v7977_v59 = vadd.f32 %v15289_v14, %v7599_v11  ;;  %v16191_v11 = vld [vmem:[#allocation109_spill] sm:$0xff] }
 0x5a9   : > { %v8422_v40 = vmax.f32 %v8390_v50, 0.0  ;;  %v8391_v61 = vadd.f32 %v15348_v1, %v8347_v32  ;;  %v8348_v57 = vadd.f32 %v8275_v22, %v7970_v46  ;;  %v7976_v56 = vadd.f32 %v15282_v34, %v7598_v0 }
 0x5aa   : > { %v8277_v28 = vpop.f32.mrf.mxu0  ;;  %v7225_v34 = vadd.f32 %v15101_v15, %v15103_v17 }
 0x5ab   : > { %v8492_v44 = vpack.c.bf16 %v8422_v40, %v8420_v19  ;;  %v8423_v24 = vmax.f32 %v8391_v61, 0.0  ;;  %v8349_v2 = vadd.f32 %v8277_v28, %v7971_v6  ;;  %v8392_v52 = vadd.f32 %v15342_v18, %v8348_v57 }
 0x5ac   : > { %v8279_v30 = vpop.f32.mrf.mxu0  ;;  %v7602_v57 = vadd.f32 %v15266_v39, %v7224_v21  ;;  %v7603_v15 = vadd.f32 %v15270_v47, %v7225_v34 }
 0x5ad   : > { %v8493_v23 = vpack.c.bf16 %v8423_v24, %v8421_v27  ;;  %v8350_v35 = vadd.f32 %v8279_v30, %v7972_v51  ;;  %v8393_v42 = vadd.f32 %v15348_v1, %v8349_v2  ;;  %v8424_v38 = vmax.f32 %v8392_v52, 0.0  ;;  %v15398_v51 = vpop.f32.mrf.mxu1 }
 0x5ae   : > { %v8281_v7 = vpop.f32.mrf.mxu0  ;;  %v7978_v27 = vadd.f32 %v15296_v26, %v15259_v43  ;;  %v7980_v43 = vadd.f32 %v15310_v41, %v7602_v57  ;;  %v7229_v41 = vadd.f32 %v15125_v5, %v15128_v4 }
 0x5af   : > { %v8394_v3 = vadd.f32 %v15342_v18, %v8350_v35  ;;  %v8351_v36 = vadd.f32 %v8281_v7, %v7973_v8  ;;  %9971 = vmatprep.mubr.msk.bf16.mxu1 %vm8604_vm13, %v8493_v23  ;;  %v8425_v32 = vmax.f32 %v8393_v42, 0.0  ;;  %v15410_v26 = vpop.f32.mrf.mxu1 }
 0x5b0   : > { %v8285_v33 = vpop.f32.mrf.mxu0  ;;  %8662 = vmatmul.mubr.bf16.vlgmr.msra.gmra.mxu1 %v8492_v44  ;;  %v7979_v44 = vadd.f32 %v15303_v54, %v15264_v20  ;;  %v7228_v20 = vadd.f32 %v15118_v29, %v15121_v12  ;;  %v7981_v54 = vadd.f32 %v15317_v10, %v7603_v15  ;;  %v16192_v10 = vld [vmem:[#allocation97_spill] sm:$0xff] }
 0x5b1   : > { %v8426_v62 = vmax.f32 %v8394_v3, 0.0  ;;  %v8395_v46 = vadd.f32 %v15348_v1, %v8351_v36  ;;  %v8352_v53 = vadd.f32 %v8285_v33, %v7974_v60  ;;  %v16189_v60 = vld [vmem:[#allocation111_spill] sm:$0xff]  ;;  %v7947_v3 = vpop.f32.mrf.mxu1 }
 0x5b2   : > { %v8287_v50 = vpop.f32.mrf.mxu0  ;;  %v7606_v42 = vadd.f32 %v16189_v60, %v7228_v20 }
 0x5b3   : > { %v8427_v6 = vmax.f32 %v8395_v46, 0.0  ;;  %v8353_v13 = vadd.f32 %v8287_v50, %v7975_v45  ;;  %v8494_v22 = vpack.c.bf16 %v8426_v62, %v8424_v38  ;;  %v8396_v40 = vadd.f32 %v15342_v18, %v8352_v53  ;;  %v16190_v45 = vld [vmem:[#allocation96_spill] sm:$0xff]  ;;  %v16193_v46 = vld [vmem:[#allocation98_spill] sm:$0xff] }
 0x5b4   : > { %v8289_v37 = vpop.f32.mrf.mxu0  ;;  %v7982_v33 = vadd.f32 %v16191_v11, %v16190_v45  ;;  %v7983_v62 = vadd.f32 %v15344_v16, %v16192_v10  ;;  %v7607_v53 = vadd.f32 %v16193_v46, %v7229_v41  ;;  %v16202_v45 = vld [vmem:[#allocation91_spill] sm:$0xff]  ;;  %v16203_v11 = vld [vmem:[#allocation90_spill] sm:$0xff]  ;;  %v16205_v46 = vld [vmem:[#allocation92_spill] sm:$0xff] }
 0x5b5   : > { %v8495_v19 = vpack.c.bf16 %v8427_v6, %v8425_v32  ;;  %v8354_v61 = vadd.f32 %v8289_v37, %v7976_v56  ;;  %v8397_v31 = vadd.f32 %v15348_v1, %v8353_v13  ;;  %v8428_v39 = vmax.f32 %v8396_v40, 0.0  ;;  %v7949_v13 = vpop.f32.mrf.mxu1  ;;  %v16194_v40 = vld [vmem:[#allocation87_spill] sm:$0xff] }
 0x5b6   : > { %v8291_v28 = vpop.f32.mrf.mxu0  ;;  %v7984_v6 = vadd.f32 %v15357_v48, %v7606_v42  ;;  %v7985_v57 = vadd.f32 %v15368_v9, %v7607_v53  ;;  %v16198_v48 = vld [vmem:[#allocation100_spill] sm:$0xff]  ;;  %v16200_v9 = vld [vmem:[#allocation71_spill] sm:$0xff] }
 0x5b7   : > { %v8398_v49 = vadd.f32 %v15342_v18, %v8354_v61  ;;  %v8355_v14 = vadd.f32 %v8291_v28, %v7977_v59  ;;  %9972 = vmatprep.mubr.msk.bf16.mxu1 %vm8604_vm13, %v8495_v19  ;;  %v8429_v8 = vmax.f32 %v8397_v31, 0.0  ;;  %v16195_v61 = vld [vmem:[#allocation36_spill] sm:$0xff] }
 0x5b8   : > { %v8295_v17 = vpop.f32.mrf.mxu0  ;;  %8670 = vmatmul.mubr.bf16.gmra.mxu1 %v8494_v22  ;;  %v7232_v16 = vadd.f32 %v16195_v61, %v16194_v40 }
 0x5b9   : > { %v8430_v24 = vmax.f32 %v8398_v49, 0.0  ;;  %v8399_v2 = vadd.f32 %v15348_v1, %v8355_v14  ;;  %v8356_v55 = vadd.f32 %v8295_v17, %v7978_v27  ;;  %v16196_v49 = vld [vmem:[#allocation89_spill] sm:$0xff]  ;;  %v16197_v14 = vld [vmem:[#allocation88_spill] sm:$0xff]  ;;  %v7951_v17 = vpop.f32.mrf.mxu1 }
 0x5ba   : > { %v8297_v30 = vpop.f32.mrf.mxu0  ;;  %v7610_v15 = vadd.f32 %v16198_v48, %v7232_v16  ;;  %v16210_v48 = vld [vmem:[#allocation57_spill] sm:$0xff] }
 0x5bb   : > { %v8431_v23 = vmax.f32 %v8399_v2, 0.0  ;;  %v8357_v52 = vadd.f32 %v8297_v30, %v7979_v44  ;;  %v8496_v35 = vpack.c.bf16 %v8430_v24, %v8428_v39  ;;  %v8400_v0 = vadd.f32 %v15342_v18, %v8356_v55  ;;  %v16199_v24 = vld [vmem:[#allocation99_spill] sm:$0xff] }
 0x5bc   : > { %v8299_v47 = vpop.f32.mrf.mxu0  ;;  %v7233_v44 = vadd.f32 %v16197_v14, %v16196_v49  ;;  %v7986_v2 = vadd.f32 %v15377_v25, %v16199_v24  ;;  %v7988_v25 = vadd.f32 %v15398_v51, %v7610_v15  ;;  %v16206_v51 = vld [vmem:[#allocation105_spill] sm:$0xff]  ;;  %v16211_v15 = vld [vmem:[#allocation58_spill] sm:$0xff] }
 0x5bd   : > { %v8497_v58 = vpack.c.bf16 %v8431_v23, %v8429_v8  ;;  %v8358_v7 = vadd.f32 %v8299_v47, %v7980_v43  ;;  %v8401_v38 = vadd.f32 %v15348_v1, %v8357_v52  ;;  %v8432_v4 = vmax.f32 %v8400_v0, 0.0  ;;  %v16201_v23 = vld [vmem:[#allocation101_spill] sm:$0xff]  ;;  %v7953_v0 = vpop.f32.mrf.mxu1 }
 0x5be   : > { %v8301_v36 = vpop.f32.mrf.mxu0  ;;  %v7987_v8 = vadd.f32 %v15389_v63, %v16200_v9  ;;  %v7611_v52 = vadd.f32 %v16201_v23, %v7233_v44  ;;  %v7236_v63 = vadd.f32 %v16203_v11, %v16202_v45  ;;  %v16213_v9 = vld [vmem:[#allocation94_spill] sm:$0xff]  ;;  %v16214_v23 = vld [vmem:[#allocation104_spill] sm:$0xff] }
 0x5bf   : > { %v8402_v29 = vadd.f32 %v15342_v18, %v8358_v7  ;;  %v8359_v12 = vadd.f32 %v8301_v36, %v7981_v54  ;;  %9973 = vmatprep.mubr.msk.bf16.mxu1 %vm8604_vm13, %v8497_v58  ;;  %v8433_v21 = vmax.f32 %v8401_v38, 0.0 }
 0x5c0   : > { %v8305_v5 = vpop.f32.mrf.mxu0  ;;  %8678 = vmatmul.mubr.bf16.gmra.mxu1 %v8496_v35  ;;  %v7989_v38 = vadd.f32 %v15410_v26, %v7611_v52  ;;  %v16208_v26 = vld [vmem:[#allocation103_spill] sm:$0xff] }
 0x5c1   : > { %v8434_v56 = vmax.f32 %v8402_v29, 0.0  ;;  %v8403_v50 = vadd.f32 %v15348_v1, %v8359_v12  ;;  %v8360_v32 = vadd.f32 %v8305_v5, %v7982_v33  ;;  %v7614_v5 = vadd.f32 %v16206_v51, %v7236_v63 }
 0x5c2   : > { %v8307_v22 = vpop.f32.mrf.mxu0 }
 0x5c3   : > { %v8435_v37 = vmax.f32 %v8403_v50, 0.0  ;;  %v8361_v59 = vadd.f32 %v8307_v22, %v7983_v62  ;;  %v8498_v19 = vpack.c.bf16 %v8434_v56, %v8432_v4  ;;  %v8404_v27 = vadd.f32 %v15342_v18, %v8360_v32  ;;  %v16204_v62 = vld [vmem:[#allocation93_spill] sm:$0xff]  ;;  %v7957_v4 = vpop.f32.mrf.mxu1  ;;  %v16207_v50 = vld [vmem:[#allocation102_spill] sm:$0xff] }
 0x5c4   : > { %v8309_v34 = vpop.f32.mrf.mxu0  ;;  %v7237_v53 = vadd.f32 %v16205_v46, %v16204_v62  ;;  %v7990_v32 = vadd.f32 %v7947_v3, %v16207_v50 }
 0x5c5   : > { %v8499_v28 = vpack.c.bf16 %v8435_v37, %v8433_v21  ;;  %v8362_v31 = vadd.f32 %v8309_v34, %v7984_v6  ;;  %v8405_v55 = vadd.f32 %v15348_v1, %v8361_v59  ;;  %v8436_v20 = vmax.f32 %v8404_v27, 0.0  ;;  %v16209_v59 = vld [vmem:[#allocation106_spill] sm:$0xff]  ;;  %v7959_v3 = vpop.f32.mrf.mxu1 }
 0x5c6   : > { %v8311_v39 = vpop.f32.mrf.mxu0  ;;  %v7991_v37 = vadd.f32 %v7949_v13, %v16208_v26 }
 0x5c7   : > { %v8406_v43 = vadd.f32 %v15342_v18, %v8362_v31  ;;  %v8363_v30 = vadd.f32 %v8311_v39, %v7985_v57  ;;  %9974 = vmatprep.mubr.msk.bf16.mxu1 %vm8604_vm13, %v8499_v28  ;;  %v8437_v41 = vmax.f32 %v8405_v55, 0.0  ;;  %v7992_v28 = vadd.f32 %v7951_v17, %v7614_v5  ;;  %v7961_v52 = vpop.f32.mrf.mxu1 }
 0x5c8   : > { %v8315_v35 = vpop.f32.mrf.mxu0  ;;  %8686 = vmatmul.mubr.bf16.gmra.mxu1 %v8498_v19  ;;  %v7615_v19 = vadd.f32 %v16209_v59, %v7237_v53  ;;  %v7240_v39 = vadd.f32 %v16211_v15, %v16210_v48 }
 0x5c9   : > { %v8438_v47 = vmax.f32 %v8406_v43, 0.0  ;;  %v8407_v54 = vadd.f32 %v15348_v1, %v8363_v30  ;;  %v8364_v58 = vadd.f32 %v8315_v35, %v7986_v2  ;;  %v16212_v30 = vld [vmem:[#allocation95_spill] sm:$0xff] }
 0x5ca   : > { %v8317_v7 = vpop.f32.mrf.mxu0  ;;  %v7993_v24 = vadd.f32 %v7953_v0, %v7615_v19  ;;  %v7618_v17 = vadd.f32 %v16214_v23, %v7240_v39  ;;  %v16216_v0 = vld [vmem:[#allocation108_spill] sm:$0xff] }
 0x5cb   : > { %v8500_v60 = vpack.c.bf16 %v8438_v47, %v8436_v20  ;;  %v8439_v42 = vmax.f32 %v8407_v54, 0.0  ;;  %v8365_v36 = vadd.f32 %v8317_v7, %v7987_v8  ;;  %v8408_v12 = vadd.f32 %v15342_v18, %v8364_v58  ;;  %v16215_v20 = vld [vmem:[#allocation107_spill] sm:$0xff] }
 0x5cc   : > { %v8319_v33 = vpop.f32.mrf.mxu0  ;;  %v7241_v8 = vadd.f32 %v16213_v9, %v16212_v30  ;;  %v7994_v47 = vadd.f32 %v7957_v4, %v16215_v20  ;;  %v7995_v7 = vadd.f32 %v7959_v3, %v16216_v0 }
 0x5cd   : > { %v8501_v29 = vpack.c.bf16 %v8439_v42, %v8437_v41  ;;  %v8366_v10 = vadd.f32 %v8319_v33, %v7988_v25  ;;  %v8409_v6 = vadd.f32 %v15348_v1, %v8365_v36  ;;  %v8440_v61 = vmax.f32 %v8408_v12, 0.0  ;;  %v16217_v41 = vld [vmem:[#allocation110_spill] sm:$0xff] }
 0x5ce   : > { %v8321_v56 = vpop.f32.mrf.mxu0  ;;  %v7996_v33 = vadd.f32 %v7961_v52, %v7618_v17 }
 0x5cf   : > { %v8410_v22 = vadd.f32 %v15342_v18, %v8366_v10  ;;  %v8367_v21 = vadd.f32 %v8321_v56, %v7989_v38  ;;  %9975 = vmatprep.mubr.msk.bf16.mxu1 %vm8604_vm13, %v8501_v29  ;;  %v8441_v31 = vmax.f32 %v8409_v6, 0.0  ;;  %v7963_v38 = vpop.f32.mrf.mxu1 }
 0x5d0   : > { %v8325_v40 = vpop.f32.mrf.mxu0  ;;  %8694 = vmatmul.mubr.bf16.gmra.mxu1 %v8500_v60  ;;  %v7619_v60 = vadd.f32 %v16217_v41, %v7241_v8 }
 0x5d1   : > { %v8442_v16 = vmax.f32 %v8410_v22, 0.0  ;;  %v8411_v34 = vadd.f32 %v15348_v1, %v8367_v21  ;;  %v8368_v57 = vadd.f32 %v8325_v40, %v7990_v32 }
 0x5d2   : > { %v8327_v27 = vpop.f32.mrf.mxu0  ;;  %v7997_v51 = vadd.f32 %v7963_v38, %v7619_v60 }
 0x5d3   : > { %v8502_v49 = vpack.c.bf16 %v8442_v16, %v8440_v61  ;;  %v8443_v14 = vmax.f32 %v8411_v34, 0.0  ;;  %v8369_v44 = vadd.f32 %v8327_v27, %v7991_v37  ;;  %v8412_v55 = vadd.f32 %v15342_v18, %v8368_v57 }
 0x5d4   : > { %v8329_v13 = vpop.f32.mrf.mxu0 }
 0x5d5   : > { %v8503_v2 = vpack.c.bf16 %v8443_v14, %v8441_v31  ;;  %v8370_v43 = vadd.f32 %v8329_v13, %v7992_v28  ;;  %v8413_v54 = vadd.f32 %v15348_v1, %v8369_v44  ;;  %v8444_v36 = vmax.f32 %v8412_v55, 0.0 }
 0x5d6   : > { %v8331_v35 = vpop.f32.mrf.mxu0 }
 0x5d7   : > { %v8414_v58 = vadd.f32 %v15342_v18, %v8370_v43  ;;  %v8371_v25 = vadd.f32 %v8331_v35, %v7993_v24  ;;  %9976 = vmatprep.mubr.msk.bf16.mxu1 %vm8604_vm13, %v8503_v2  ;;  %v8445_v12 = vmax.f32 %v8413_v54, 0.0 }
 0x5d8   : > { %v8335_v42 = vpop.f32.mrf.mxu0  ;;  %8702 = vmatmul.mubr.bf16.gmra.mxu1 %v8502_v49 }
 0x5d9   : > { %v8446_v45 = vmax.f32 %v8414_v58, 0.0  ;;  %v8415_v11 = vadd.f32 %v15348_v1, %v8371_v25  ;;  %v8372_v63 = vadd.f32 %v8335_v42, %v7994_v47 }
 0x5da   : > { %v8337_v29 = vpop.f32.mrf.mxu0 }
 0x5db   : > { %v8504_v10 = vpack.c.bf16 %v8446_v45, %v8444_v36  ;;  %v8447_v62 = vmax.f32 %v8415_v11, 0.0  ;;  %v8373_v46 = vadd.f32 %v8337_v29, %v7995_v7  ;;  %v8416_v4 = vadd.f32 %v15342_v18, %v8372_v63  ;;  %v15500_v7 = vld [vmem:[%s16218_s16] ss:$0 sm:$0xff]  ;;  %v16219_v45 = vld [vmem:[#allocation19_spill] sm:$0xff]  ;;  %s10795_s16 = sshll.u32 %s10919_s25, 4  ;;  %s10796_s16 = int_to_ptr.vmem [resolvable:$false] %s10795_s16 }
 0x5dc   : > { %v8339_v53 = vpop.f32.mrf.mxu0  ;;  %s10797_s29 = scalar_lea.vmem %s10796_s16, 4096  ;;  %p10798_p10 = scmp.lt.s32.totalorder %s15581_s10, %s10796_s16 }
 0x5dd   : > { %v8505_v5 = vpack.c.bf16 %v8447_v62, %v8445_v12  ;;  %v8374_v56 = vadd.f32 %v8339_v53, %v7996_v33  ;;  %v8417_v32 = vadd.f32 %v15348_v1, %v8373_v46  ;;  %v8448_v21 = vmax.f32 %v8416_v4, 0.0  ;;  %p10799_p3 = scmp.lt.s32.totalorder %s10797_s29, %s10791_s12 }
 0x5de   : > { %v8341_v50 = vpop.f32.mrf.mxu0 }
 0x5df   : > { %v8418_v6 = vadd.f32 %v15342_v18, %v8374_v56  ;;  %v8375_v22 = vadd.f32 %v8341_v50, %v7997_v51  ;;  %9977 = vmatprep.mubr.msk.bf16.mxu1 %vm8604_vm13, %v8505_v5  ;;  %v8449_v59 = vmax.f32 %v8417_v32, 0.0  ;;  %v16221_v56 = vld [vmem:[#allocation21_spill] sm:$0xff]  ;;  %p10800_p11 = por %p10799_p3, %p10798_p10 }
 0x5e0   : > { %8710 = vmatmul.mubr.bf16.gmra.mxu1 %v8504_v10  ;;  %v16220_v10 = vld [vmem:[#allocation20_spill] sm:$0xff] }
 0x5e1   : > { %v8450_v26 = vmax.f32 %v8418_v6, 0.0  ;;  %v8419_v37 = vadd.f32 %v15348_v1, %v8375_v22  ;;  %p10801_p13 = pnand %p10800_p11, %p10794_p9 }
 0x5e3   : > { %v8506_v19 = vpack.c.bf16 %v8450_v26, %v8448_v21  ;;  %v8451_v40 = vmax.f32 %v8419_v37, 0.0  ;;  %v16222_v37 = vld [vmem:[#allocation22_spill] sm:$0xff] }
 0x5e5   : > { %v8507_v61 = vpack.c.bf16 %v8451_v40, %v8449_v59 }
 0x5e7   : > { %9978 = vmatprep.mubr.msk.bf16.mxu1 %vm8604_vm13, %v8507_v61 }
 0x5e8   : > { %8718 = vmatmul.mubr.bf16.gmra.mxu1 %v8506_v19 }
 0x5eb   : > { %v8856_v16 = vpop.f32.mrf.mxu0 }
 0x5ed   : > { %v8858_v34 = vpop.f32.mrf.mxu0 }
 0x5ef   : > { %v8859_v57 = vpop.f32.mrf.mxu0 }
 0x5f1   : > { %v8861_v28 = vpop.f32.mrf.mxu0 }
 0x5f3   : > { %v8864_v18 = vpop.f32.mrf.mxu0 }
 0x5f5   : > { %v8866_v3 = vpop.f32.mrf.mxu0 }
 0x5f7   : > { %v8867_v27 = vpop.f32.mrf.mxu0 }
 0x5f9   : > { %v8869_v31 = vpop.f32.mrf.mxu0 }
 0x5fb   : > { %v8872_v49 = vpop.f32.mrf.mxu0 }
 0x5fd   : > { %v8874_v14 = vpop.f32.mrf.mxu0 }
 0x5ff   : > { %v8875_v44 = vpop.f32.mrf.mxu0 }
 0x601   : > { %v8877_v48 = vpop.f32.mrf.mxu0 }
 0x603   : > { %v8880_v1 = vpop.f32.mrf.mxu0 }
 0x605   : > { %v8882_v15 = vpop.f32.mrf.mxu0 }
 0x607   : > { %v15479_v39 = vpop.f32.mrf.mxu0 }
 0x609   : > { %v8885_v13 = vpop.f32.mrf.mxu0 }
 0x60b   : > { %v15481_v24 = vpop.f32.mrf.mxu0 }
 0x60d   : > { %v8890_v2 = vpop.f32.mrf.mxu0 }
 0x60f   : > { %v15483_v55 = vpop.f32.mrf.mxu0 }
 0x611   : > { %v8893_v43 = vpop.f32.mrf.mxu0 }
 0x613   : > { %v15485_v30 = vpop.f32.mrf.mxu0 }
 0x615   : > { %v8898_v9 = vpop.f32.mrf.mxu0 }
 0x617   : > { %v15487_v8 = vpop.f32.mrf.mxu0 }
 0x619   : > { %v8901_v23 = vpop.f32.mrf.mxu0 }
 0x61b   : > { %v15489_v17 = vpop.f32.mrf.mxu0 }
 0x61d   : > { %v8906_v52 = vpop.f32.mrf.mxu0 }
 0x61f   : > { %v15491_v35 = vpop.f32.mrf.mxu0 }
 0x621   : > { %v8909_v20 = vpop.f32.mrf.mxu0 }
 0x623   : > { %v15493_v47 = vpop.f32.mrf.mxu0 }
 0x625   : > { %v8914_v54 = vpop.f32.mrf.mxu0 }
 0x627   : > { %v15495_v58 = vpop.f32.mrf.mxu0 }
 0x629   : > { %v8917_v25 = vpop.f32.mrf.mxu0 }
 0x670   : > { %v8663_v0 = vpop.f32.mrf.mxu1 }
 0x671   : > { %v8857_v41 = vadd.f32 %v8856_v16, %v8663_v0 }
 0x672   : > { %v8665_v60 = vpop.f32.mrf.mxu1 }
 0x673   : > { %v8926_v42 = vadd.f32 %v15500_v7, %v8857_v41 }
 0x674   : > { %v8666_v36 = vpop.f32.mrf.mxu1 }
 0x675   : > { %v8942_v11 = vadd.f32 %v8926_v42, %v16219_v45  ;;  %v8860_v63 = vadd.f32 %v8859_v57, %v8666_v36  ;;  %v16223_v57 = vld [vmem:[#allocation23_spill] sm:$0xff] }
 0x676   : > { %v8668_v33 = vpop.f32.mrf.mxu1 }
 0x677   : > { %v8958_v38 = vmax.f32 %v8942_v11, 0.0  ;;  %v8927_v29 = vadd.f32 %v15500_v7, %v8860_v63 }
 0x678   : > { %v8671_v12 = vpop.f32.mrf.mxu1 }
 0x679   : > { %8974 = vst.msk [vmem:[%s14190_s22] sm:$0xff] %vm496_vm0, %v8958_v38  ;;  %v8943_v62 = vadd.f32 %v8927_v29, %v16220_v10  ;;  %v8865_v46 = vadd.f32 %v8864_v18, %v8671_v12 }
 0x67a   : > { %v8673_v53 = vpop.f32.mrf.mxu1 }
 0x67b   : > { %v8959_v51 = vmax.f32 %v8943_v62, 0.0  ;;  %v8928_v5 = vadd.f32 %v15500_v7, %v8865_v46 }
 0x67c   : > { %v8674_v4 = vpop.f32.mrf.mxu1 }
 0x67d   : > { %8975 = vst.msk [vmem:[%s14190_s22 + $0x8] sm:$0xff] %vm496_vm0, %v8959_v51  ;;  %v8944_v50 = vadd.f32 %v8928_v5, %v16221_v56  ;;  %v8868_v32 = vadd.f32 %v8867_v27, %v8674_v4 }
 0x67e   : > { %v8676_v6 = vpop.f32.mrf.mxu1 }
 0x67f   : > { %v8960_v22 = vmax.f32 %v8944_v50, 0.0  ;;  %v8929_v21 = vadd.f32 %v15500_v7, %v8868_v32 }
 0x680   : > { %v8679_v26 = vpop.f32.mrf.mxu1 }
 0x681   : > { %8976 = vst.msk [vmem:[%s14190_s22 + $0x10] sm:$0xff] %vm496_vm0, %v8960_v22  ;;  %v8945_v59 = vadd.f32 %v8929_v21, %v16222_v37  ;;  %v8873_v19 = vadd.f32 %v8872_v49, %v8679_v26  ;;  %v16224_v49 = vld [vmem:[#allocation24_spill] sm:$0xff] }
 0x682   : > { %v8681_v40 = vpop.f32.mrf.mxu1 }
 0x683   : > { %v8961_v61 = vmax.f32 %v8945_v59, 0.0  ;;  %v8930_v16 = vadd.f32 %v15500_v7, %v8873_v19 }
 0x684   : > { %v8682_v34 = vpop.f32.mrf.mxu1 }
 0x685   : > { %8977 = vst.msk [vmem:[%s14190_s22 + $0x18] sm:$0xff] %vm496_vm0, %v8961_v61  ;;  %v8946_v28 = vadd.f32 %v8930_v16, %v16223_v57  ;;  %v8876_v18 = vadd.f32 %v8875_v44, %v8682_v34  ;;  %v16225_v44 = vld [vmem:[#allocation25_spill] sm:$0xff] }
 0x686   : > { %v8684_v3 = vpop.f32.mrf.mxu1 }
 0x687   : > { %v8962_v27 = vmax.f32 %v8946_v28, 0.0  ;;  %v8931_v31 = vadd.f32 %v15500_v7, %v8876_v18 }
 0x688   : > { %v8687_v14 = vpop.f32.mrf.mxu1 }
 0x689   : > { %8978 = vst.msk [vmem:[%s14190_s22 + $0x20] sm:$0xff] %vm496_vm0, %v8962_v27  ;;  %v8947_v48 = vadd.f32 %v8931_v31, %v16224_v49  ;;  %v8881_v15 = vadd.f32 %v8880_v1, %v8687_v14  ;;  %v16226_v1 = vld [vmem:[#allocation26_spill] sm:$0xff] }
 0x68a   : > { %v8689_v13 = vpop.f32.mrf.mxu1 }
 0x68b   : > { %v8963_v2 = vmax.f32 %v8947_v48, 0.0  ;;  %v8932_v43 = vadd.f32 %v15500_v7, %v8881_v15  ;;  %v16234_v15 = vld [vmem:[#allocation33_spill] sm:$0xff] }
 0x68c   : > { %v8690_v9 = vpop.f32.mrf.mxu1 }
 0x68d   : > { %8979 = vst.msk [vmem:[%s14190_s22 + $0x28] sm:$0xff] %vm496_vm0, %v8963_v2  ;;  %v8948_v23 = vadd.f32 %v8932_v43, %v16225_v44  ;;  %v8884_v52 = vadd.f32 %v15479_v39, %v8690_v9  ;;  %v16227_v39 = vld [vmem:[#allocation27_spill] sm:$0xff]  ;;  %v16235_v44 = vld [vmem:[#allocation34_spill] sm:$0xff] }
 0x68e   : > { %v8692_v20 = vpop.f32.mrf.mxu1 }
 0x68f   : > { %v8964_v54 = vmax.f32 %v8948_v23, 0.0  ;;  %v8933_v25 = vadd.f32 %v15500_v7, %v8884_v52 }
 0x690   : > { %v8695_v0 = vpop.f32.mrf.mxu1 }
 0x691   : > { %8980 = vst.msk [vmem:[%s14190_s22 + $0x30] sm:$0xff] %vm496_vm0, %v8964_v54  ;;  %v8949_v41 = vadd.f32 %v8933_v25, %v16226_v1  ;;  %v8889_v60 = vadd.f32 %v15481_v24, %v8695_v0  ;;  %v16228_v24 = vld [vmem:[#allocation28_spill] sm:$0xff] }
 0x692   : > { %v8697_v42 = vpop.f32.mrf.mxu1 }
 0x693   : > { %v8965_v36 = vmax.f32 %v8949_v41, 0.0  ;;  %v8934_v45 = vadd.f32 %v15500_v7, %v8889_v60 }
 0x694   : > { %v8698_v11 = vpop.f32.mrf.mxu1 }
 0x695   : > { %8981 = vst.msk [vmem:[%s14190_s22 + $0x38] sm:$0xff] %vm496_vm0, %v8965_v36  ;;  %v8950_v63 = vadd.f32 %v8934_v45, %v16227_v39  ;;  %v8892_v33 = vadd.f32 %v15483_v55, %v8698_v11  ;;  %v16229_v55 = vld [vmem:[#allocation29_spill] sm:$0xff] }
 0x696   : > { %v8700_v38 = vpop.f32.mrf.mxu1 }
 0x697   : > { %v8966_v29 = vmax.f32 %v8950_v63, 0.0  ;;  %v8935_v12 = vadd.f32 %v15500_v7, %v8892_v33 }
 0x698   : > { %v8703_v10 = vpop.f32.mrf.mxu1 }
 0x699   : > { %8982 = vst.msk [vmem:[%s14190_s22 + $0x40] sm:$0xff] %vm496_vm0, %v8966_v29  ;;  %v8951_v62 = vadd.f32 %v8935_v12, %v16228_v24  ;;  %v8897_v46 = vadd.f32 %v15485_v30, %v8703_v10  ;;  %v16230_v30 = vld [vmem:[#allocation30_spill] sm:$0xff] }
 0x69a   : > { %v8705_v53 = vpop.f32.mrf.mxu1 }
 0x69b   : > { %v8967_v51 = vmax.f32 %v8951_v62, 0.0  ;;  %v8936_v5 = vadd.f32 %v15500_v7, %v8897_v46 }
 0x69c   : > { %v8706_v4 = vpop.f32.mrf.mxu1 }
 0x69d   : > { %8983 = vst.msk [vmem:[%s14190_s22 + $0x48] sm:$0xff] %vm496_vm0, %v8967_v51  ;;  %v8952_v56 = vadd.f32 %v8936_v5, %v16229_v55  ;;  %v8900_v50 = vadd.f32 %v15487_v8, %v8706_v4  ;;  %v16232_v8 = vld [vmem:[#allocation31_spill] sm:$0xff] }
 0x69e   : > { %v8708_v32 = vpop.f32.mrf.mxu1 }
 0x69f   : > { %v8968_v6 = vmax.f32 %v8952_v56, 0.0  ;;  %v8937_v22 = vadd.f32 %v15500_v7, %v8900_v50 }
 0x6a0   : > { %v8711_v21 = vpop.f32.mrf.mxu1 }
 0x6a1   : > { %8984 = vst.msk [vmem:[%s14190_s22 + $0x50] sm:$0xff] %vm496_vm0, %v8968_v6  ;;  %v8953_v26 = vadd.f32 %v8937_v22, %v16230_v30  ;;  %v8905_v37 = vadd.f32 %v15489_v17, %v8711_v21  ;;  %v16233_v17 = vld [vmem:[#allocation32_spill] sm:$0xff] }
 0x6a2   : > { %v8713_v59 = vpop.f32.mrf.mxu1 }
 0x6a3   : > { %v8969_v19 = vmax.f32 %v8953_v26, 0.0  ;;  %v8938_v40 = vadd.f32 %v15500_v7, %v8905_v37 }
 0x6a4   : > { %v8714_v61 = vpop.f32.mrf.mxu1 }
 0x6a5   : > { %8985 = vst.msk [vmem:[%s14190_s22 + $0x58] sm:$0xff] %vm496_vm0, %v8969_v19  ;;  %v8954_v16 = vadd.f32 %v8938_v40, %v16232_v8  ;;  %v8908_v34 = vadd.f32 %v15491_v35, %v8714_v61 }
 0x6a6   : > { %v8716_v57 = vpop.f32.mrf.mxu1 }
 0x6a7   : > { %v8970_v28 = vmax.f32 %v8954_v16, 0.0  ;;  %v8939_v18 = vadd.f32 %v15500_v7, %v8908_v34 }
 0x6a8   : > { %v8719_v3 = vpop.f32.mrf.mxu1 }
 0x6a9   : > { %8986 = vst.msk [vmem:[%s14190_s22 + $0x60] sm:$0xff] %vm496_vm0, %v8970_v28  ;;  %v8955_v27 = vadd.f32 %v8939_v18, %v16233_v17  ;;  %v8913_v31 = vadd.f32 %v15493_v47, %v8719_v3 }
 0x6aa   : > { %v8721_v14 = vpop.f32.mrf.mxu1 }
 0x6ab   : > { %v8971_v49 = vmax.f32 %v8955_v27, 0.0  ;;  %v8940_v48 = vadd.f32 %v15500_v7, %v8913_v31 }
 0x6ac   : > { %v8722_v35 = vpop.f32.mrf.mxu1 }
 0x6ad   : > { %8987 = vst.msk [vmem:[%s14190_s22 + $0x68] sm:$0xff] %vm496_vm0, %v8971_v49  ;;  %v8956_v13 = vadd.f32 %v8940_v48, %v16234_v15  ;;  %v8916_v2 = vadd.f32 %v15495_v58, %v8722_v35 }
 0x6ae   : > { %v8724_v43 = vpop.f32.mrf.mxu1 }
 0x6af   : > { %v8972_v47 = vmax.f32 %v8956_v13, 0.0  ;;  %v8941_v9 = vadd.f32 %v15500_v7, %v8916_v2 }
 0x6b1   : > { %8988 = vst.msk [vmem:[%s14190_s22 + $0x70] sm:$0xff] %vm496_vm0, %v8972_v47  ;;  %v8957_v23 = vadd.f32 %v8941_v9, %v16235_v44 }
 0x6b3   : > { %v8973_v58 = vmax.f32 %v8957_v23, 0.0 }
 0x6b5   : > { %8989 = vst.msk [vmem:[%s14190_s22 + $0x78] sm:$0xff] %vm496_vm0, %v8973_v58 }
 0x6b6   : > { %10804 = shalt.err (!%p10801_p13)
}
 0x6b7   : > { %s10805_s18 = scalar_lea.hbm %s15579_s28, 2048  ;;  %s10809_s21 = scalar_lea.hbm %s16236_s30, 8192 }
 0x6b8   : > { %p10806_p0 = scmp.ne.s32.totalorder %s15579_s28, %s10805_s18  ;;  %p10810_p7 = scmp.lt.s32.totalorder %s15579_s28, %s16236_s30 }
 0x6b9   : > { %p10811_p4 = scmp.lt.s32.totalorder %s10809_s21, %s10805_s18 }
 0x6ba   : > { %p10807_p1 = pnand %p10806_p0, %p11059_p12 }
 0x6bb   : > { %p10812_p5 = por %p10811_p4, %p10810_p7 }
 0x6bc   : > { %p10808_p6 = pneg %p10807_p1 }
 0x6be   : > { %p10813_p8 = pnand %p10812_p5, %p10808_p6 }
 0x6c0   : > { %10816 = shalt.err (!%p10813_p8)
}
 0x6c1   : > { %s10920_s20 = smov 128   ;;  %s10921_s15 = smov 8  }
 0x6c2   : > { %10118 = dma.vmem_to_hbm [thread:$0]  (%p11059_p12), %s15581_s10, 2048, %s15579_s28, %s15587_s11, %s10920_s20, %s10920_s20, %s10921_s15  }
 0x6c3 PF: > { %p10129_p9 = scmp.ge.s32.totalorder %s10911_s23, 2  ;;  %s9022_s12 = sand.u32 1, %s10871_s13  }
 0x6c4   : > { %s9023_s25 = scalar_lea.sflag [#allocation6], %s9022_s12 }
 0x6c5   : > { %p10125_p10 = pnand %p10129_p9, %p11072_p2 }
 0x6c7   : > { %p10126_p3 = pneg %p10125_p10 }
 0x6c9   : > { %10866 = dma.done.wait (%p10126_p3), %s9023_s25, 2048  }
 0x6ca   : > { %10868 = vsyncadd (%p10126_p3), %s9023_s25, 4294965248  ;;  %s26_s23 = sadd.s32 1, %s10911_s23   ;;  %s16237_s16 = sld [smem:[#allocation10_spill]] }
 0x6cb   : > { %p23_p11 = scmp.ge.s32.totalorder %s26_s23, 6   ;;  %s16238_s15 = sld [smem:[#allocation18_spill]] }
 0x6cc   : > { %s16239_s26 = sld [smem:[#allocation11_spill]]  ;;  %s16245_s13 = smov %s10875_s14 }
 0x6cd   : > { %s16240_s18 = sld [smem:[#allocation17_spill]] }
 0x6ce   : > { %s16241_s19 = sld [smem:[#allocation13_spill]]  ;;  %25 = sbr.rel (!%p23_p11) target bundleno = 12 (0xc), region = 126 }
 0x6cf   : > { %s16242_s20 = sld [smem:[#allocation14_spill]] }
 0x6d0   : > { %s16243_s21 = sld [smem:[#allocation15_spill]]  ;;  %s16246_s14 = smov %s16237_s16 }
 0x6d1   : > { %s16244_s22 = sld [smem:[#allocation16_spill]]  ;;  %s16247_s16 = smov %s10887_s17 }
 0x6d2   : > { %s16248_s17 = smov %s16239_s26 }
 0x6d3   :  { %9028 = vsyncpa [#allocation5], 1 }
 0x6d4   :  { %9030 = vsyncpa [#allocation5 + $0x1], 1 }
 0x6d5   :  { %9031 = vsyncpa [#allocation6], 1 }
 0x6d6   :  { %9033 = vsyncpa [#allocation6 + $0x1], 1 }

</bundles_post_ra>
